<compile_context>
chip_gen: v7x
topology: tpu7x:2x2x1
jax: 0.10.0
libtpu: 0.0.40
codegen_flags: <defaults>
</compile_context>

<pallas_src>
import functools
import math

import jax
import jax.numpy as jnp
import numpy as np
from jax.experimental import pallas as pl
from jax.experimental.pallas import tpu as pltpu

_LN_EPS = 1e-5   # nn.LayerNorm default


# ----------------------------------------------------------------------------
# shared in-kernel helpers
# ----------------------------------------------------------------------------
def _ln(x, g, b):
    mu = jnp.mean(x, axis=-1, keepdims=True)
    var = jnp.mean(jnp.square(x - mu), axis=-1, keepdims=True)
    return (x - mu) * jax.lax.rsqrt(var + _LN_EPS) * g + b


def _conv3(x, w0, w1, w2, b):
    """3-tap 'valid' temporal conv as three shifted matmuls (bf16 x bf16 -> f32)."""
    t = x.shape[0] - 2
    acc = jnp.dot(x[0:t].astype(jnp.bfloat16), w0, preferred_element_type=jnp.float32)
    acc = acc + jnp.dot(x[1:t + 1].astype(jnp.bfloat16), w1,
                        preferred_element_type=jnp.float32)
    acc = acc + jnp.dot(x[2:t + 2].astype(jnp.bfloat16), w2,
                        preferred_element_type=jnp.float32)
    return acc + b


# ----------------------------------------------------------------------------
# Kernel 1: series_decomp (banded moving-average matmul) + add_noise channel.
# One grid step per (vnet, batch): vnet 0 gets the residual, vnet 1 the trend.
# ----------------------------------------------------------------------------
def _decomp_noise_kernel(w_ref, x_ref, nz_ref, o_ref):
    v = pl.program_id(0)                               # 0 -> seasonal, 1 -> trend
    x = x_ref[0].astype(jnp.float32)                   # (T, D)
    mean = jnp.dot(w_ref[...], x, preferred_element_type=jnp.float32)
    d = x.shape[-1]

    @pl.when(v == 0)
    def _():
        o_ref[0, 0, :, 0:d] = (x - mean).astype(o_ref.dtype)

    @pl.when(v > 0)
    def _():
        o_ref[0, 0, :, 0:d] = mean.astype(o_ref.dtype)

    o_ref[0, 0, :, d:d + 1] = nz_ref[0, 0].astype(o_ref.dtype)


def _avg_matrix(t, ksize):
    """Edge-replicated moving-average as a (T, T) banded matrix."""
    half = (ksize - 1) // 2
    w = np.zeros((t, t), np.float32)
    for i in range(t):
        for p in range(i - half, i + half + 1):
            w[i, min(max(p, 0), t - 1)] += 1.0 / ksize
    return w


def decomp_noise(x, noise, w_avg):
    B, T, D = x.shape
    return pl.pallas_call(
        _decomp_noise_kernel,
        out_shape=jax.ShapeDtypeStruct((2, B, T, D + 1), x.dtype),
        grid=(2, B),
        in_specs=[pl.BlockSpec((T, T), lambda v, b: (0, 0)),
                  pl.BlockSpec((1, T, D), lambda v, b: (b, 0, 0)),
                  pl.BlockSpec((1, 1, T, 1), lambda v, b: (v, b, 0, 0))],
        out_specs=pl.BlockSpec((1, 1, T, D + 1), lambda v, b: (v, b, 0, 0)),
        compiler_params=pltpu.CompilerParams(
            dimension_semantics=("parallel", "parallel")),
    )(w_avg, x, noise)


# ----------------------------------------------------------------------------
# Kernel 2: conv1 + LayerNorm(64) + ReLU + conv2 + LayerNorm(128) + ReLU.
# ----------------------------------------------------------------------------
def _conv_stage_kernel(x_ref, w1_ref, b1_ref, ln64_ref, w2_ref, b2_ref,
                       ln128_ref, o_ref):
    x = x_ref[0, 0].astype(jnp.float32)                          # (T, n_dim+1)
    h = _conv3(x, w1_ref[0, 0], w1_ref[0, 1], w1_ref[0, 2], b1_ref[0])
    h = jnp.maximum(_ln(h, ln64_ref[0, 0:1], ln64_ref[0, 1:2]), 0.0)
    h = _conv3(h, w2_ref[0, 0], w2_ref[0, 1], w2_ref[0, 2], b2_ref[0])
    h = jnp.maximum(_ln(h, ln128_ref[0, 0:1], ln128_ref[0, 1:2]), 0.0)
    o_ref[0, 0] = h.astype(o_ref.dtype)


def conv_stage(y, p):
    V, B, T, C = y.shape
    d_model = p['conv2_w'].shape[-1]

    def wspec(a):
        nz = (0,) * (a.ndim - 1)
        return pl.BlockSpec((1,) + a.shape[1:], lambda v, b, nz=nz: (v,) + nz)

    return pl.pallas_call(
        _conv_stage_kernel,
        out_shape=jax.ShapeDtypeStruct((V, B, T - 4, d_model), jnp.float32),
        grid=(V, B),
        in_specs=[pl.BlockSpec((1, 1, T, C), lambda v, b: (v, b, 0, 0)),
                  wspec(p['conv1_w']), wspec(p['conv1_b']), wspec(p['ln64']),
                  wspec(p['conv2_w']), wspec(p['conv2_b']), wspec(p['ln128'])],
        out_specs=pl.BlockSpec((1, 1, T - 4, d_model), lambda v, b: (v, b, 0, 0)),
        compiler_params=pltpu.CompilerParams(
            dimension_semantics=("parallel", "parallel")),
    )(y, p['conv1_w'], p['conv1_b'], p['ln64'],
      p['conv2_w'], p['conv2_b'], p['ln128'])


# ----------------------------------------------------------------------------
# Kernel 3: fully fused transformer decoder layer (post-norm, eval mode).
# The sequence axis is the batch (S = B, as in the torch module, which feeds
# (batch, time, d) into a seq-first transformer).  Per-head score sums and
# broadcasts use tiny matmuls against 0/1 matrices (no in-kernel reshapes).
# ----------------------------------------------------------------------------
def _decoder_layer_kernel(h_ref, mem_ref, gsum_ref, gbr_ref,
                          wqkv_ref, bqkv_ref, wo_ref, bo_ref,
                          wqc_ref, bqc_ref, wkvc_ref, bkvc_ref,
                          woc_ref, boc_ref, w1_ref, b1_ref, w2_ref, b2_ref,
                          lnp_ref, o_ref, *, n_head):
    S = h_ref.shape[1]
    D = h_ref.shape[-1]
    scale = 1.0 / math.sqrt(D // n_head)
    gsum = gsum_ref[...]                     # (D, n_head): per-head lane-sum
    gbr = gbr_ref[...]                       # (n_head, D): per-head broadcast
    lnp = lnp_ref[0]                         # (6, D): g1,b1,g2,b2,g3,b3

    def proj(a, w_ref, b_ref):
        return jnp.dot(a.astype(jnp.bfloat16), w_ref[0],
                       preferred_element_type=jnp.float32) + b_ref[0]

    def attn(qs, ks, vs):
        outs = []
        for s in range(S):
            sc = [jnp.dot(qs[s] * ks[t], gsum,
                          preferred_element_type=jnp.float32) * scale
                  for t in range(S)]                        # each (N, n_head)
            m = sc[0]
            for t in range(1, S):
                m = jnp.maximum(m, sc[t])
            es = [jnp.exp(c - m) for c in sc]
            den = es[0]
            for t in range(1, S):
                den = den + es[t]
            inv = 1.0 / den
            o = None
            for t in range(S):
                w_full = jnp.dot(es[t] * inv, gbr,
                                 preferred_element_type=jnp.float32)   # (N, D)
                c = w_full * vs[t]
                o = c if o is None else o + c
            outs.append(o)
        return outs

    xs = [h_ref[0, s].astype(jnp.float32) for s in range(S)]
    ms = [mem_ref[0, s].astype(jnp.float32) for s in range(S)]

    # --- self attention + add & norm ---
    qkv = [proj(x, wqkv_ref, bqkv_ref) for x in xs]
    sa = attn([t[:, 0:D] for t in qkv],
              [t[:, D:2 * D] for t in qkv],
              [t[:, 2 * D:3 * D] for t in qkv])
    xs = [_ln(xs[s] + proj(sa[s], wo_ref, bo_ref), lnp[0:1], lnp[1:2])
          for s in range(S)]

    # --- cross attention over the random memory + add & norm ---
    qc = [proj(x, wqc_ref, bqc_ref) for x in xs]
    kv = [proj(m, wkvc_ref, bkvc_ref) for m in ms]
    ca = attn(qc, [t[:, 0:D] for t in kv], [t[:, D:2 * D] for t in kv])
    xs = [_ln(xs[s] + proj(ca[s], woc_ref, boc_ref), lnp[2:3], lnp[3:4])
          for s in range(S)]

    # --- feed forward + add & norm ---
    ff = [proj(jnp.maximum(proj(x, w1_ref, b1_ref), 0.0), w2_ref, b2_ref)
          for x in xs]
    xs = [_ln(xs[s] + ff[s], lnp[4:5], lnp[5:6]) for s in range(S)]

    for s in range(S):
        o_ref[0, s] = xs[s].astype(o_ref.dtype)


def decoder_layer(h, memory, lp, gsum, gbr, n_head):
    V, S, N, D = h.shape

    def wspec(a):
        nz = (0,) * (a.ndim - 1)
        return pl.BlockSpec((1,) + a.shape[1:], lambda v, nz=nz: (v,) + nz)

    act_spec = pl.BlockSpec((1, S, N, D), lambda v: (v, 0, 0, 0))
    return pl.pallas_call(
        functools.partial(_decoder_layer_kernel, n_head=n_head),
        out_shape=jax.ShapeDtypeStruct((V, S, N, D), jnp.float32),
        grid=(V,),
        in_specs=[act_spec, act_spec,
                  pl.BlockSpec(gsum.shape, lambda v: (0, 0)),
                  pl.BlockSpec(gbr.shape, lambda v: (0, 0)),
                  wspec(lp['wqkv']), wspec(lp['bqkv']),
                  wspec(lp['wo']), wspec(lp['bo']),
                  wspec(lp['wq_c']), wspec(lp['bq_c']),
                  wspec(lp['wkv_c']), wspec(lp['bkv_c']),
                  wspec(lp['wo_c']), wspec(lp['bo_c']),
                  wspec(lp['w1']), wspec(lp['b1']),
                  wspec(lp['w2']), wspec(lp['b2']),
                  wspec(lp['lnp'])],
        out_specs=act_spec,
        compiler_params=pltpu.CompilerParams(dimension_semantics=("parallel",)),
    )(h, memory, gsum, gbr,
      lp['wqkv'], lp['bqkv'], lp['wo'], lp['bo'],
      lp['wq_c'], lp['bq_c'], lp['wkv_c'], lp['bkv_c'], lp['wo_c'], lp['bo_c'],
      lp['w1'], lp['b1'], lp['w2'], lp['b2'], lp['lnp'])


# ----------------------------------------------------------------------------
# Kernel 4 (tail): act(norm2) + deconv1 + LN + ReLU + (deconv2 (x) out-Linear,
# pre-folded) for BOTH VNets, then out_s+out_t, get_delta (L1 budget), zeroing
# of columns 5/8/11, x + delta and per-sequence -100 masking — one HBM store of
# the lane-sparse (T, n_dim) result per batch element.
# ----------------------------------------------------------------------------
def _tail_kernel(len_ref, h_ref, x_ref, ln128_ref, wd1_ref, bd1_ref,
                 ln64_ref, wf_ref, bf_ref, o_ref, pad1_ref, pad2_ref,
                 *, budget, eps):
    b = pl.program_id(0)
    n = h_ref.shape[2]                                    # T - 4
    acc = None
    for v in range(h_ref.shape[0]):                       # the two VNets
        h = h_ref[v, 0].astype(jnp.float32)               # (n, 128)
        h = jnp.maximum(_ln(h, ln128_ref[v, 0:1], ln128_ref[v, 1:2]), 0.0)
        # deconv1 (ConvTranspose1d k=3) == 3-tap conv on a zero-padded input
        pad1_ref[...] = jnp.zeros_like(pad1_ref)
        pad1_ref[2:2 + n, :] = h
        d1 = _conv3(pad1_ref[...], wd1_ref[v, 0], wd1_ref[v, 1], wd1_ref[v, 2],
                    bd1_ref[v])
        d1 = jnp.maximum(_ln(d1, ln64_ref[v, 0:1], ln64_ref[v, 1:2]), 0.0)
        # deconv2 + final Linear(n_dim+1 -> n_dim), folded into wf/bf
        pad2_ref[...] = jnp.zeros_like(pad2_ref)
        pad2_ref[2:2 + n + 2, :] = d1
        y = _conv3(pad2_ref[...], wf_ref[v, 0], wf_ref[v, 1], wf_ref[v, 2],
                   bf_ref[v])                             # (T, n_dim)
        acc = y if acc is None else acc + y

    # get_delta: rescale so mean|delta| over dims [1,2] equals the budget
    avg = jnp.mean(jnp.mean(jnp.abs(acc), axis=-1, keepdims=True),
                   axis=0, keepdims=True)
    delta = acc * (budget / (avg + eps))
    col = jax.lax.broadcasted_iota(jnp.int32, delta.shape, 1)
    delta = jnp.where((col == 5) | (col == 8) | (col == 11), 0.0, delta)
    out = x_ref[0].astype(jnp.float32) + delta
    row = jax.lax.broadcasted_iota(jnp.int32, delta.shape, 0)
    out = jnp.where(row >= len_ref[b], -100.0, out)
    o_ref[0] = out.astype(o_ref.dtype)


def tail(h, x, lengths, p, *, budget, eps=1e-4):
    V, B, N, D = h.shape
    T, n_dim = x.shape[1], x.shape[2]
    c_mid = p['deconv1_w'].shape[-1]

    def cspec(a):
        nz = (0,) * a.ndim
        return pl.BlockSpec(a.shape, lambda b_, lens, nz=nz: nz)

    return pl.pallas_call(
        functools.partial(_tail_kernel, budget=budget, eps=eps),
        out_shape=jax.ShapeDtypeStruct((B, T, n_dim), x.dtype),
        grid_spec=pltpu.PrefetchScalarGridSpec(
            num_scalar_prefetch=1,
            grid=(B,),
            in_specs=[pl.BlockSpec((V, 1, N, D), lambda b_, lens: (0, b_, 0, 0)),
                      pl.BlockSpec((1, T, n_dim), lambda b_, lens: (b_, 0, 0)),
                      cspec(p['ln128']), cspec(p['deconv1_w']),
                      cspec(p['deconv1_b']), cspec(p['ln64']),
                      cspec(p['final_w']), cspec(p['final_b'])],
            out_specs=pl.BlockSpec((1, T, n_dim), lambda b_, lens: (b_, 0, 0)),
            scratch_shapes=[pltpu.VMEM((N + 4, D), jnp.float32),
                            pltpu.VMEM((N + 6, c_mid), jnp.float32)]),
        compiler_params=pltpu.CompilerParams(dimension_semantics=("parallel",)),
    )(lengths, h, x, p['ln128'], p['deconv1_w'], p['deconv1_b'],
      p['ln64'], p['final_w'], p['final_b'])


# ----------------------------------------------------------------------------
# TestViewmaker forward
# ----------------------------------------------------------------------------
def viewmaker_forward(params, x, key, *, n_dim, n_head, budget):
    B, T, _ = x.shape
    k_ns, k_nt, k_ms, k_mt = jax.random.split(key, 4)

    # per-sequence valid lengths from the -100 padding (matches the torch loop)
    n_pad = jnp.sum((x == -100.0).astype(jnp.int32), axis=(1, 2))
    lengths = (T - n_pad // n_dim).astype(jnp.int32)

    # TODO(synk): torch.rand noise / decoder memory reproduced with
    #             jax.random.uniform (different RNG stream than PyTorch).
    noise = jnp.stack([jax.random.uniform(k_ns, (B, T, 1), x.dtype),
                       jax.random.uniform(k_nt, (B, T, 1), x.dtype)], axis=0)
    w_avg = jnp.asarray(_avg_matrix(T, 25))

    y0 = decomp_noise(x, noise, w_avg)                    # (2, B, T, n_dim+1)
    h = conv_stage(y0, params)                            # (2, B, T-4, 128)

    d_model = h.shape[-1]
    memory = jnp.stack(
        [jax.random.uniform(k_ms, (B, T - 4, d_model), x.dtype),
         jax.random.uniform(k_mt, (B, T - 4, d_model), x.dtype)], axis=0)
    # TODO(synk): nn.TransformerDecoderLayer dropout is train-mode only; eval
    #             semantics (no dropout) are implemented here.
    for lp in params['layers']:
        h = decoder_layer(h, memory, lp, params['gsum'], params['gbr'], n_head)

    return tail(h, x, lengths, params, budget=budget)


# ----------------------------------------------------------------------------
# Parameter init + one-time kernel-ready preparation (both VNets stacked on a
# leading axis of 2; matmul weights pre-cast to bf16; deconv2+out pre-folded).
# ----------------------------------------------------------------------------
def make_params(key, n_dim, n_layers, hidden_dim, n_head, d_model=128, c_mid=64):
    cin = n_dim + 1
    keys = iter(jax.random.split(key, 256))

    def u(shape, bound):
        return jax.random.uniform(next(keys), shape, jnp.float32, -bound, bound)

    def lin(ci, co):
        bd = 1.0 / math.sqrt(ci)
        return u((2, ci, co), bd), u((2, 1, co), bd)

    def conv(ci, co):
        bd = 1.0 / math.sqrt(ci * 3)
        return u((2, 3, ci, co), bd), u((2, 1, co), bd)

    bf16 = jnp.bfloat16
    p = {}
    w1, b1 = conv(cin, c_mid)
    w2, b2 = conv(c_mid, d_model)
    d1, bd1 = conv(d_model, c_mid)
    d2, bd2 = conv(c_mid, cin)
    ow, ob = lin(cin, n_dim)

    p['conv1_w'], p['conv1_b'] = w1.astype(bf16), b1
    p['conv2_w'], p['conv2_b'] = w2.astype(bf16), b2
    p['deconv1_w'], p['deconv1_b'] = d1.astype(bf16), bd1
    # deconv2 and the final Linear folded into one 3-tap conv
    p['final_w'] = jnp.einsum('vkio,vod->vkid', d2, ow).astype(bf16)
    p['final_b'] = jnp.einsum('vxo,vod->vxd', bd2, ow) + ob
    # shared LayerNorm(64) / LayerNorm(128) params: [:, 0] = gamma, [:, 1] = beta
    p['ln64'] = jnp.stack([jnp.ones((2, c_mid)), jnp.zeros((2, c_mid))], axis=1)
    p['ln128'] = jnp.stack([jnp.ones((2, d_model)), jnp.zeros((2, d_model))],
                           axis=1)

    layers = []
    for _ in range(n_layers):
        lp = {}
        lp['wqkv'], lp['bqkv'] = lin(d_model, 3 * d_model)
        lp['wo'], lp['bo'] = lin(d_model, d_model)
        lp['wq_c'], lp['bq_c'] = lin(d_model, d_model)
        lp['wkv_c'], lp['bkv_c'] = lin(d_model, 2 * d_model)
        lp['wo_c'], lp['bo_c'] = lin(d_model, d_model)
        lp['w1'], lp['b1'] = lin(d_model, hidden_dim)
        lp['w2'], lp['b2'] = lin(hidden_dim, d_model)
        for k in ('wqkv', 'wo', 'wq_c', 'wkv_c', 'wo_c', 'w1', 'w2'):
            lp[k] = lp[k].astype(bf16)
        g = jnp.ones((2, 1, d_model))
        z = jnp.zeros((2, 1, d_model))
        lp['lnp'] = jnp.concatenate([g, z, g, z, g, z], axis=1)   # (2, 6, 128)
        layers.append(lp)
    p['layers'] = layers

    dh = d_model // n_head
    gsum = np.repeat(np.eye(n_head, dtype=np.float32), dh, axis=0)  # (128, nh)
    p['gsum'] = jnp.asarray(gsum)
    p['gbr'] = jnp.asarray(gsum.T)
    return p


if __name__ == "__main__":
    B, T, N_DIM = 2, 32, 12            # n_dim must be >= 12 (delta columns 5/8/11)
    N_LAYERS, HIDDEN, N_HEAD = 1, 32, 4
    BUDGET = 0.05

    root = jax.random.PRNGKey(0)
    kx, kp, kfwd = jax.random.split(root, 3)

    x = jax.random.normal(kx, (B, T, N_DIM), jnp.float32)
    pad_from = 28                      # emulate -100 padding on the tail of seq 1
    x = x.at[1, pad_from:, :].set(-100.0)

    params = make_params(kp, N_DIM, N_LAYERS, HIDDEN, N_HEAD)

    fwd = jax.jit(functools.partial(viewmaker_forward, n_dim=N_DIM,
                                    n_head=N_HEAD, budget=BUDGET))
    out = jax.block_until_ready(fwd(params, x, kfwd))

    assert out.shape == (B, T, N_DIM)
    assert bool(jnp.all(jnp.isfinite(out)))
    # rows past the valid length are masked to exactly -100 (torch masking loop)
    assert bool(jnp.all(out[1, pad_from:, :] == -100.0))
    # delta columns 5/8/11 are zeroed, so the output equals the input there
    for c in (5, 8, 11):
        np.testing.assert_allclose(np.asarray(out[0, :, c]),
                                   np.asarray(x[0, :, c]), rtol=0, atol=1e-6)

    print("KERNEL_OK")
</pallas_src>

<mosaic_0001>
module attributes {stable_mosaic.version = 11 : i64} {
  func.func @_decomp_noise_kernel(%arg0: i32, %arg1: i32, %arg2: memref<32x32xf32, #tpu.memory_space<vmem>>, %arg3: memref<1x32x12xf32, #tpu.memory_space<vmem>>, %arg4: memref<1x1x32x1xf32, #tpu.memory_space<vmem>>, %arg5: memref<1x1x32x13xf32, #tpu.memory_space<vmem>>) attributes {dimension_semantics = [#tpu.dimension_semantics<parallel>, #tpu.dimension_semantics<parallel>], iteration_bounds = array<i64: 2, 2>, scalar_prefetch = 0 : i64, scratch_operands = 0 : i64, tpu.core_type = #tpu.core_type<tc>, window_params = [{pipeline_mode = #tpu.pipeline_mode<synchronous>, transform_indices = @transform_0, window_bounds = array<i64: 32, 32>}, {transform_indices = @transform_1, window_bounds = array<i64: 1, 32, 12>}, {transform_indices = @transform_2, window_bounds = array<i64: 1, 1, 32, 1>}, {transform_indices = @transform_3, window_bounds = array<i64: 1, 1, 32, 13>}]} {
    %c0 = arith.constant 0 : index
    %c0_0 = arith.constant 0 : index
    %c0_1 = arith.constant 0 : index
    %0 = vector.load %arg3[%c0, %c0_0, %c0_1] : memref<1x32x12xf32, #tpu.memory_space<vmem>>, vector<1x32x12xf32>
    %1 = vector.shape_cast %0 : vector<1x32x12xf32> to vector<32x12xf32>
    %c0_2 = arith.constant 0 : index
    %c0_3 = arith.constant 0 : index
    %2 = vector.load %arg2[%c0_2, %c0_3] : memref<32x32xf32, #tpu.memory_space<vmem>>, vector<32x32xf32>
    %cst = arith.constant dense<0.000000e+00> : vector<32x12xf32>
    %3 = tpu.matmul %2, %1, %cst {dimension_numbers = #tpu.dot_dimension_numbers<[1], [0], [0], [1], [0, 0, 1, 1], [], []>} : vector<32x32xf32>, vector<32x12xf32>, vector<32x12xf32> -> vector<32x12xf32>
    %c0_i32 = arith.constant 0 : i32
    %4 = arith.cmpi eq, %arg0, %c0_i32 : i32
    %5 = arith.extui %4 : i1 to i32
    %c0_i32_4 = arith.constant 0 : i32
    %6 = arith.cmpi ne, %5, %c0_i32_4 : i32
    scf.if %6 {
      %15 = arith.subf %1, %3 : vector<32x12xf32>
      %c0_14 = arith.constant 0 : index
      %c0_15 = arith.constant 0 : index
      %c0_16 = arith.constant 0 : index
      %c0_17 = arith.constant 0 : index
      %16 = vector.load %arg5[%c0_14, %c0_15, %c0_16, %c0_17] : memref<1x1x32x13xf32, #tpu.memory_space<vmem>>, vector<1x1x32x12xf32>
      %17 = vector.shape_cast %16 : vector<1x1x32x12xf32> to vector<32x12xf32>
      %18 = vector.shape_cast %15 : vector<32x12xf32> to vector<1x1x32x12xf32>
      tpu.vector_store %arg5[%c0_14, %c0_15, %c0_16, %c0_17], %18 {strides = array<i32>} : memref<1x1x32x13xf32, #tpu.memory_space<vmem>>, vector<1x1x32x12xf32>,
    } else {
    }
    %c0_i32_5 = arith.constant 0 : i32
    %7 = arith.cmpi sgt, %arg0, %c0_i32_5 : i32
    %8 = arith.extui %7 : i1 to i32
    %c0_i32_6 = arith.constant 0 : i32
    %9 = arith.cmpi ne, %8, %c0_i32_6 : i32
    scf.if %9 {
      %c0_14 = arith.constant 0 : index
      %c0_15 = arith.constant 0 : index
      %c0_16 = arith.constant 0 : index
      %c0_17 = arith.constant 0 : index
      %15 = vector.load %arg5[%c0_14, %c0_15, %c0_16, %c0_17] : memref<1x1x32x13xf32, #tpu.memory_space<vmem>>, vector<1x1x32x12xf32>
      %16 = vector.shape_cast %15 : vector<1x1x32x12xf32> to vector<32x12xf32>
      %17 = vector.shape_cast %3 : vector<32x12xf32> to vector<1x1x32x12xf32>
      tpu.vector_store %arg5[%c0_14, %c0_15, %c0_16, %c0_17], %17 {strides = array<i32>} : memref<1x1x32x13xf32, #tpu.memory_space<vmem>>, vector<1x1x32x12xf32>,
    } else {
    }
    %c0_7 = arith.constant 0 : index
    %c0_8 = arith.constant 0 : index
    %c0_9 = arith.constant 0 : index
    %c0_10 = arith.constant 0 : index
    %10 = vector.load %arg4[%c0_7, %c0_8, %c0_9, %c0_10] : memref<1x1x32x1xf32, #tpu.memory_space<vmem>>, vector<1x1x32x1xf32>
    %11 = vector.shape_cast %10 : vector<1x1x32x1xf32> to vector<32x1xf32>
    %c0_11 = arith.constant 0 : index
    %c0_12 = arith.constant 0 : index
    %c0_13 = arith.constant 0 : index
    %c12 = arith.constant 12 : index
    %12 = vector.load %arg5[%c0_11, %c0_12, %c0_13, %c12] : memref<1x1x32x13xf32, #tpu.memory_space<vmem>>, vector<1x1x32x1xf32>
    %13 = vector.shape_cast %12 : vector<1x1x32x1xf32> to vector<32x1xf32>
    %14 = vector.shape_cast %11 : vector<32x1xf32> to vector<1x1x32x1xf32>
    tpu.vector_store %arg5[%c0_11, %c0_12, %c0_13, %c12], %14 {strides = array<i32>} : memref<1x1x32x13xf32, #tpu.memory_space<vmem>>, vector<1x1x32x1xf32>,
    return
  }
  func.func @transform_0(%arg0: i32, %arg1: i32) -> (i32, i32) {
    %c0_i32 = arith.constant 0 : i32
    %c0_i32_0 = arith.constant 0 : i32
    %c0_i32_1 = arith.constant 0 : i32
    return %c0_i32, %c0_i32_0 : i32, i32
  }
  func.func @transform_1(%arg0: i32, %arg1: i32) -> (i32, i32, i32) {
    %c0_i32 = arith.constant 0 : i32
    %c0_i32_0 = arith.constant 0 : i32
    %c0_i32_1 = arith.constant 0 : i32
    return %arg1, %c0_i32, %c0_i32_0 : i32, i32, i32
  }
  func.func @transform_2(%arg0: i32, %arg1: i32) -> (i32, i32, i32, i32) {
    %c0_i32 = arith.constant 0 : i32
    %c0_i32_0 = arith.constant 0 : i32
    %c0_i32_1 = arith.constant 0 : i32
    return %arg0, %arg1, %c0_i32, %c0_i32_0 : i32, i32, i32, i32
  }
  func.func @transform_3(%arg0: i32, %arg1: i32) -> (i32, i32, i32, i32) {
    %c0_i32 = arith.constant 0 : i32
    %c0_i32_0 = arith.constant 0 : i32
    %c0_i32_1 = arith.constant 0 : i32
    return %arg0, %arg1, %c0_i32, %c0_i32_0 : i32, i32, i32, i32
  }
}

module attributes {stable_mosaic.version = 11 : i64} {
  func.func @_conv_stage_kernel(%arg0: i32, %arg1: i32, %arg2: memref<1x1x32x13xf32, #tpu.memory_space<vmem>>, %arg3: memref<1x3x13x64xbf16, #tpu.memory_space<vmem>>, %arg4: memref<1x1x64xf32, #tpu.memory_space<vmem>>, %arg5: memref<1x2x64xf32, #tpu.memory_space<vmem>>, %arg6: memref<1x3x64x128xbf16, #tpu.memory_space<vmem>>, %arg7: memref<1x1x128xf32, #tpu.memory_space<vmem>>, %arg8: memref<1x2x128xf32, #tpu.memory_space<vmem>>, %arg9: memref<1x1x28x128xf32, #tpu.memory_space<vmem>>) attributes {dimension_semantics = [#tpu.dimension_semantics<parallel>, #tpu.dimension_semantics<parallel>], iteration_bounds = array<i64: 2, 2>, scalar_prefetch = 0 : i64, scratch_operands = 0 : i64, tpu.core_type = #tpu.core_type<tc>, window_params = [{transform_indices = @transform_0, window_bounds = array<i64: 1, 1, 32, 13>}, {transform_indices = @transform_1, window_bounds = array<i64: 1, 3, 13, 64>}, {transform_indices = @transform_2, window_bounds = array<i64: 1, 1, 64>}, {transform_indices = @transform_3, window_bounds = array<i64: 1, 2, 64>}, {transform_indices = @transform_4, window_bounds = array<i64: 1, 3, 64, 128>}, {transform_indices = @transform_5, window_bounds = array<i64: 1, 1, 128>}, {transform_indices = @transform_6, window_bounds = array<i64: 1, 2, 128>}, {transform_indices = @transform_7, window_bounds = array<i64: 1, 1, 28, 128>}]} {
    %c0 = arith.constant 0 : index
    %c0_0 = arith.constant 0 : index
    %c0_1 = arith.constant 0 : index
    %c0_2 = arith.constant 0 : index
    %0 = vector.load %arg2[%c0, %c0_0, %c0_1, %c0_2] : memref<1x1x32x13xf32, #tpu.memory_space<vmem>>, vector<1x1x32x13xf32>
    %1 = vector.shape_cast %0 : vector<1x1x32x13xf32> to vector<32x13xf32>
    %c0_3 = arith.constant 0 : index
    %c0_4 = arith.constant 0 : index
    %c0_5 = arith.constant 0 : index
    %c0_6 = arith.constant 0 : index
    %2 = vector.load %arg3[%c0_3, %c0_4, %c0_5, %c0_6] : memref<1x3x13x64xbf16, #tpu.memory_space<vmem>>, vector<1x1x13x64xbf16>
    %3 = vector.shape_cast %2 : vector<1x1x13x64xbf16> to vector<13x64xbf16>
    %c0_7 = arith.constant 0 : index
    %c1 = arith.constant 1 : index
    %c0_8 = arith.constant 0 : index
    %c0_9 = arith.constant 0 : index
    %4 = vector.load %arg3[%c0_7, %c1, %c0_8, %c0_9] : memref<1x3x13x64xbf16, #tpu.memory_space<vmem>>, vector<1x1x13x64xbf16>
    %5 = vector.shape_cast %4 : vector<1x1x13x64xbf16> to vector<13x64xbf16>
    %c0_10 = arith.constant 0 : index
    %c2 = arith.constant 2 : index
    %c0_11 = arith.constant 0 : index
    %c0_12 = arith.constant 0 : index
    %6 = vector.load %arg3[%c0_10, %c2, %c0_11, %c0_12] : memref<1x3x13x64xbf16, #tpu.memory_space<vmem>>, vector<1x1x13x64xbf16>
    %7 = vector.shape_cast %6 : vector<1x1x13x64xbf16> to vector<13x64xbf16>
    %c0_13 = arith.constant 0 : index
    %c0_14 = arith.constant 0 : index
    %c0_15 = arith.constant 0 : index
    %8 = vector.load %arg4[%c0_13, %c0_14, %c0_15] : memref<1x1x64xf32, #tpu.memory_space<vmem>>, vector<1x1x64xf32>
    %9 = vector.shape_cast %8 : vector<1x1x64xf32> to vector<1x64xf32>
    %10 = vector.extract_strided_slice %1 {offsets = [0, 0], sizes = [30, 13], strides = [1, 1]} : vector<32x13xf32> to vector<30x13xf32>
    %11 = arith.truncf %10 : vector<30x13xf32> to vector<30x13xbf16>
    %cst = arith.constant dense<0.000000e+00> : vector<30x64xf32>
    %12 = tpu.matmul %11, %3, %cst {dimension_numbers = #tpu.dot_dimension_numbers<[1], [0], [0], [1], [0, 0, 1, 1], [], []>} : vector<30x13xbf16>, vector<13x64xbf16>, vector<30x64xf32> -> vector<30x64xf32>
    %13 = vector.extract_strided_slice %1 {offsets = [1, 0], sizes = [30, 13], strides = [1, 1]} : vector<32x13xf32> to vector<30x13xf32>
    %14 = arith.truncf %13 : vector<30x13xf32> to vector<30x13xbf16>
    %cst_16 = arith.constant dense<0.000000e+00> : vector<30x64xf32>
    %15 = tpu.matmul %14, %5, %cst_16 {dimension_numbers = #tpu.dot_dimension_numbers<[1], [0], [0], [1], [0, 0, 1, 1], [], []>} : vector<30x13xbf16>, vector<13x64xbf16>, vector<30x64xf32> -> vector<30x64xf32>
    %16 = arith.addf %12, %15 : vector<30x64xf32>
    %17 = vector.extract_strided_slice %1 {offsets = [2, 0], sizes = [30, 13], strides = [1, 1]} : vector<32x13xf32> to vector<30x13xf32>
    %18 = arith.truncf %17 : vector<30x13xf32> to vector<30x13xbf16>
    %cst_17 = arith.constant dense<0.000000e+00> : vector<30x64xf32>
    %19 = tpu.matmul %18, %7, %cst_17 {dimension_numbers = #tpu.dot_dimension_numbers<[1], [0], [0], [1], [0, 0, 1, 1], [], []>} : vector<30x13xbf16>, vector<13x64xbf16>, vector<30x64xf32> -> vector<30x64xf32>
    %20 = arith.addf %16, %19 : vector<30x64xf32>
    %21 = vector.broadcast %9 : vector<1x64xf32> to vector<30x64xf32>
    %22 = arith.addf %20, %21 : vector<30x64xf32>
    %c0_18 = arith.constant 0 : index
    %c0_19 = arith.constant 0 : index
    %c0_20 = arith.constant 0 : index
    %23 = vector.load %arg5[%c0_18, %c0_19, %c0_20] : memref<1x2x64xf32, #tpu.memory_space<vmem>>, vector<1x1x64xf32>
    %24 = vector.shape_cast %23 : vector<1x1x64xf32> to vector<1x64xf32>
    %c0_21 = arith.constant 0 : index
    %c1_22 = arith.constant 1 : index
    %c0_23 = arith.constant 0 : index
    %25 = vector.load %arg5[%c0_21, %c1_22, %c0_23] : memref<1x2x64xf32, #tpu.memory_space<vmem>>, vector<1x1x64xf32>
    %26 = vector.shape_cast %25 : vector<1x1x64xf32> to vector<1x64xf32>
    %cst_24 = arith.constant dense<0.000000e+00> : vector<30xf32>
    %27 = vector.multi_reduction <add>, %22, %cst_24 [1] : vector<30x64xf32> to vector<30xf32>
    %28 = vector.shape_cast %27 : vector<30xf32> to vector<30x1xf32>
    %cst_25 = arith.constant 6.400000e+01 : f32
    %29 = vector.broadcast %cst_25 : f32 to vector<30x1xf32>
    %30 = arith.divf %28, %29 : vector<30x1xf32>
    %31 = vector.broadcast %30 : vector<30x1xf32> to vector<30x64xf32>
    %32 = arith.subf %22, %31 : vector<30x64xf32>
    %33 = arith.mulf %32, %32 : vector<30x64xf32>
    %cst_26 = arith.constant dense<0.000000e+00> : vector<30xf32>
    %34 = vector.multi_reduction <add>, %33, %cst_26 [1] : vector<30x64xf32> to vector<30xf32>
    %35 = vector.shape_cast %34 : vector<30xf32> to vector<30x1xf32>
    %cst_27 = arith.constant 6.400000e+01 : f32
    %36 = vector.broadcast %cst_27 : f32 to vector<30x1xf32>
    %37 = arith.divf %35, %36 : vector<30x1xf32>
    %38 = vector.broadcast %30 : vector<30x1xf32> to vector<30x64xf32>
    %39 = arith.subf %22, %38 : vector<30x64xf32>
    %cst_28 = arith.constant 9.99999974E-6 : f32
    %40 = vector.broadcast %cst_28 : f32 to vector<30x1xf32>
    %41 = arith.addf %37, %40 : vector<30x1xf32>
    %42 = math.rsqrt %41 : vector<30x1xf32>
    %43 = vector.broadcast %42 : vector<30x1xf32> to vector<30x64xf32>
    %44 = arith.mulf %39, %43 : vector<30x64xf32>
    %45 = vector.broadcast %24 : vector<1x64xf32> to vector<30x64xf32>
    %46 = arith.mulf %44, %45 : vector<30x64xf32>
    %47 = vector.broadcast %26 : vector<1x64xf32> to vector<30x64xf32>
    %48 = arith.addf %46, %47 : vector<30x64xf32>
    %cst_29 = arith.constant 0.000000e+00 : f32
    %49 = vector.broadcast %cst_29 : f32 to vector<30x64xf32>
    %50 = arith.maximumf %48, %49 : vector<30x64xf32>
    %c0_30 = arith.constant 0 : index
    %c0_31 = arith.constant 0 : index
    %c0_32 = arith.constant 0 : index
    %c0_33 = arith.constant 0 : index
    %51 = vector.load %arg6[%c0_30, %c0_31, %c0_32, %c0_33] : memref<1x3x64x128xbf16, #tpu.memory_space<vmem>>, vector<1x1x64x128xbf16>
    %52 = vector.shape_cast %51 : vector<1x1x64x128xbf16> to vector<64x128xbf16>
    %c0_34 = arith.constant 0 : index
    %c1_35 = arith.constant 1 : index
    %c0_36 = arith.constant 0 : index
    %c0_37 = arith.constant 0 : index
    %53 = vector.load %arg6[%c0_34, %c1_35, %c0_36, %c0_37] : memref<1x3x64x128xbf16, #tpu.memory_space<vmem>>, vector<1x1x64x128xbf16>
    %54 = vector.shape_cast %53 : vector<1x1x64x128xbf16> to vector<64x128xbf16>
    %c0_38 = arith.constant 0 : index
    %c2_39 = arith.constant 2 : index
    %c0_40 = arith.constant 0 : index
    %c0_41 = arith.constant 0 : index
    %55 = vector.load %arg6[%c0_38, %c2_39, %c0_40, %c0_41] : memref<1x3x64x128xbf16, #tpu.memory_space<vmem>>, vector<1x1x64x128xbf16>
    %56 = vector.shape_cast %55 : vector<1x1x64x128xbf16> to vector<64x128xbf16>
    %c0_42 = arith.constant 0 : index
    %c0_43 = arith.constant 0 : index
    %c0_44 = arith.constant 0 : index
    %57 = vector.load %arg7[%c0_42, %c0_43, %c0_44] : memref<1x1x128xf32, #tpu.memory_space<vmem>>, vector<1x1x128xf32>
    %58 = vector.shape_cast %57 : vector<1x1x128xf32> to vector<1x128xf32>
    %59 = vector.extract_strided_slice %50 {offsets = [0, 0], sizes = [28, 64], strides = [1, 1]} : vector<30x64xf32> to vector<28x64xf32>
    %60 = arith.truncf %59 : vector<28x64xf32> to vector<28x64xbf16>
    %cst_45 = arith.constant dense<0.000000e+00> : vector<28x128xf32>
    %61 = tpu.matmul %60, %52, %cst_45 {dimension_numbers = #tpu.dot_dimension_numbers<[1], [0], [0], [1], [0, 0, 1, 1], [], []>} : vector<28x64xbf16>, vector<64x128xbf16>, vector<28x128xf32> -> vector<28x128xf32>
    %62 = vector.extract_strided_slice %50 {offsets = [1, 0], sizes = [28, 64], strides = [1, 1]} : vector<30x64xf32> to vector<28x64xf32>
    %63 = arith.truncf %62 : vector<28x64xf32> to vector<28x64xbf16>
    %cst_46 = arith.constant dense<0.000000e+00> : vector<28x128xf32>
    %64 = tpu.matmul %63, %54, %cst_46 {dimension_numbers = #tpu.dot_dimension_numbers<[1], [0], [0], [1], [0, 0, 1, 1], [], []>} : vector<28x64xbf16>, vector<64x128xbf16>, vector<28x128xf32> -> vector<28x128xf32>
    %65 = arith.addf %61, %64 : vector<28x128xf32>
    %66 = vector.extract_strided_slice %50 {offsets = [2, 0], sizes = [28, 64], strides = [1, 1]} : vector<30x64xf32> to vector<28x64xf32>
    %67 = arith.truncf %66 : vector<28x64xf32> to vector<28x64xbf16>
    %cst_47 = arith.constant dense<0.000000e+00> : vector<28x128xf32>
    %68 = tpu.matmul %67, %56, %cst_47 {dimension_numbers = #tpu.dot_dimension_numbers<[1], [0], [0], [1], [0, 0, 1, 1], [], []>} : vector<28x64xbf16>, vector<64x128xbf16>, vector<28x128xf32> -> vector<28x128xf32>
    %69 = arith.addf %65, %68 : vector<28x128xf32>
    %70 = vector.broadcast %58 : vector<1x128xf32> to vector<28x128xf32>
    %71 = arith.addf %69, %70 : vector<28x128xf32>
    %c0_48 = arith.constant 0 : index
    %c0_49 = arith.constant 0 : index
    %c0_50 = arith.constant 0 : index
    %72 = vector.load %arg8[%c0_48, %c0_49, %c0_50] : memref<1x2x128xf32, #tpu.memory_space<vmem>>, vector<1x1x128xf32>
    %73 = vector.shape_cast %72 : vector<1x1x128xf32> to vector<1x128xf32>
    %c0_51 = arith.constant 0 : index
    %c1_52 = arith.constant 1 : index
    %c0_53 = arith.constant 0 : index
    %74 = vector.load %arg8[%c0_51, %c1_52, %c0_53] : memref<1x2x128xf32, #tpu.memory_space<vmem>>, vector<1x1x128xf32>
    %75 = vector.shape_cast %74 : vector<1x1x128xf32> to vector<1x128xf32>
    %cst_54 = arith.constant dense<0.000000e+00> : vector<28xf32>
    %76 = vector.multi_reduction <add>, %71, %cst_54 [1] : vector<28x128xf32> to vector<28xf32>
    %77 = vector.shape_cast %76 : vector<28xf32> to vector<28x1xf32>
    %cst_55 = arith.constant 1.280000e+02 : f32
    %78 = vector.broadcast %cst_55 : f32 to vector<28x1xf32>
    %79 = arith.divf %77, %78 : vector<28x1xf32>
    %80 = vector.broadcast %79 : vector<28x1xf32> to vector<28x128xf32>
    %81 = arith.subf %71, %80 : vector<28x128xf32>
    %82 = arith.mulf %81, %81 : vector<28x128xf32>
    %cst_56 = arith.constant dense<0.000000e+00> : vector<28xf32>
    %83 = vector.multi_reduction <add>, %82, %cst_56 [1] : vector<28x128xf32> to vector<28xf32>
    %84 = vector.shape_cast %83 : vector<28xf32> to vector<28x1xf32>
    %cst_57 = arith.constant 1.280000e+02 : f32
    %85 = vector.broadcast %cst_57 : f32 to vector<28x1xf32>
    %86 = arith.divf %84, %85 : vector<28x1xf32>
    %87 = vector.broadcast %79 : vector<28x1xf32> to vector<28x128xf32>
    %88 = arith.subf %71, %87 : vector<28x128xf32>
    %cst_58 = arith.constant 9.99999974E-6 : f32
    %89 = vector.broadcast %cst_58 : f32 to vector<28x1xf32>
    %90 = arith.addf %86, %89 : vector<28x1xf32>
    %91 = math.rsqrt %90 : vector<28x1xf32>
    %92 = vector.broadcast %91 : vector<28x1xf32> to vector<28x128xf32>
    %93 = arith.mulf %88, %92 : vector<28x128xf32>
    %94 = vector.broadcast %73 : vector<1x128xf32> to vector<28x128xf32>
    %95 = arith.mulf %93, %94 : vector<28x128xf32>
    %96 = vector.broadcast %75 : vector<1x128xf32> to vector<28x128xf32>
    %97 = arith.addf %95, %96 : vector<28x128xf32>
    %cst_59 = arith.constant 0.000000e+00 : f32
    %98 = vector.broadcast %cst_59 : f32 to vector<28x128xf32>
    %99 = arith.maximumf %97, %98 : vector<28x128xf32>
    %c0_60 = arith.constant 0 : index
    %c0_61 = arith.constant 0 : index
    %c0_62 = arith.constant 0 : index
    %c0_63 = arith.constant 0 : index
    %100 = vector.load %arg9[%c0_60, %c0_61, %c0_62, %c0_63] : memref<1x1x28x128xf32, #tpu.memory_space<vmem>>, vector<1x1x28x128xf32>
    %101 = vector.shape_cast %100 : vector<1x1x28x128xf32> to vector<28x128xf32>
    %102 = vector.shape_cast %99 : vector<28x128xf32> to vector<1x1x28x128xf32>
    tpu.vector_store %arg9[%c0_60, %c0_61, %c0_62, %c0_63], %102 {strides = array<i32>} : memref<1x1x28x128xf32, #tpu.memory_space<vmem>>, vector<1x1x28x128xf32>,
    return
  }
  func.func @transform_0(%arg0: i32, %arg1: i32) -> (i32, i32, i32, i32) {
    %c0_i32 = arith.constant 0 : i32
    %c0_i32_0 = arith.constant 0 : i32
    %c0_i32_1 = arith.constant 0 : i32
    return %arg0, %arg1, %c0_i32, %c0_i32_0 : i32, i32, i32, i32
  }
  func.func @transform_1(%arg0: i32, %arg1: i32) -> (i32, i32, i32, i32) {
    %c0_i32 = arith.constant 0 : i32
    %c0_i32_0 = arith.constant 0 : i32
    %c0_i32_1 = arith.constant 0 : i32
    %c0_i32_2 = arith.constant 0 : i32
    return %arg0, %c0_i32, %c0_i32_0, %c0_i32_1 : i32, i32, i32, i32
  }
  func.func @transform_2(%arg0: i32, %arg1: i32) -> (i32, i32, i32) {
    %c0_i32 = arith.constant 0 : i32
    %c0_i32_0 = arith.constant 0 : i32
    %c0_i32_1 = arith.constant 0 : i32
    return %arg0, %c0_i32, %c0_i32_0 : i32, i32, i32
  }
  func.func @transform_3(%arg0: i32, %arg1: i32) -> (i32, i32, i32) {
    %c0_i32 = arith.constant 0 : i32
    %c0_i32_0 = arith.constant 0 : i32
    %c0_i32_1 = arith.constant 0 : i32
    return %arg0, %c0_i32, %c0_i32_0 : i32, i32, i32
  }
  func.func @transform_4(%arg0: i32, %arg1: i32) -> (i32, i32, i32, i32) {
    %c0_i32 = arith.constant 0 : i32
    %c0_i32_0 = arith.constant 0 : i32
    %c0_i32_1 = arith.constant 0 : i32
    %c0_i32_2 = arith.constant 0 : i32
    return %arg0, %c0_i32, %c0_i32_0, %c0_i32_1 : i32, i32, i32, i32
  }
  func.func @transform_5(%arg0: i32, %arg1: i32) -> (i32, i32, i32) {
    %c0_i32 = arith.constant 0 : i32
    %c0_i32_0 = arith.constant 0 : i32
    %c0_i32_1 = arith.constant 0 : i32
    return %arg0, %c0_i32, %c0_i32_0 : i32, i32, i32
  }
  func.func @transform_6(%arg0: i32, %arg1: i32) -> (i32, i32, i32) {
    %c0_i32 = arith.constant 0 : i32
    %c0_i32_0 = arith.constant 0 : i32
    %c0_i32_1 = arith.constant 0 : i32
    return %arg0, %c0_i32, %c0_i32_0 : i32, i32, i32
  }
  func.func @transform_7(%arg0: i32, %arg1: i32) -> (i32, i32, i32, i32) {
    %c0_i32 = arith.constant 0 : i32
    %c0_i32_0 = arith.constant 0 : i32
    %c0_i32_1 = arith.constant 0 : i32
    return %arg0, %arg1, %c0_i32, %c0_i32_0 : i32, i32, i32, i32
  }
}

module attributes {stable_mosaic.version = 11 : i64} {
  func.func @_decoder_layer_kernel(%arg0: i32, %arg1: memref<1x2x28x128xf32, #tpu.memory_space<vmem>>, %arg2: memref<1x2x28x128xf32, #tpu.memory_space<vmem>>, %arg3: memref<128x4xf32, #tpu.memory_space<vmem>>, %arg4: memref<4x128xf32, #tpu.memory_space<vmem>>, %arg5: memref<1x128x384xbf16, #tpu.memory_space<vmem>>, %arg6: memref<1x1x384xf32, #tpu.memory_space<vmem>>, %arg7: memref<1x128x128xbf16, #tpu.memory_space<vmem>>, %arg8: memref<1x1x128xf32, #tpu.memory_space<vmem>>, %arg9: memref<1x128x128xbf16, #tpu.memory_space<vmem>>, %arg10: memref<1x1x128xf32, #tpu.memory_space<vmem>>, %arg11: memref<1x128x256xbf16, #tpu.memory_space<vmem>>, %arg12: memref<1x1x256xf32, #tpu.memory_space<vmem>>, %arg13: memref<1x128x128xbf16, #tpu.memory_space<vmem>>, %arg14: memref<1x1x128xf32, #tpu.memory_space<vmem>>, %arg15: memref<1x128x32xbf16, #tpu.memory_space<vmem>>, %arg16: memref<1x1x32xf32, #tpu.memory_space<vmem>>, %arg17: memref<1x32x128xbf16, #tpu.memory_space<vmem>>, %arg18: memref<1x1x128xf32, #tpu.memory_space<vmem>>, %arg19: memref<1x6x128xf32, #tpu.memory_space<vmem>>, %arg20: memref<1x2x28x128xf32, #tpu.memory_space<vmem>>) attributes {dimension_semantics = [#tpu.dimension_semantics<parallel>], iteration_bounds = array<i64: 2>, scalar_prefetch = 0 : i64, scratch_operands = 0 : i64, tpu.core_type = #tpu.core_type<tc>, window_params = [{transform_indices = @transform_0, window_bounds = array<i64: 1, 2, 28, 128>}, {transform_indices = @transform_1, window_bounds = array<i64: 1, 2, 28, 128>}, {pipeline_mode = #tpu.pipeline_mode<synchronous>, transform_indices = @transform_2, window_bounds = array<i64: 128, 4>}, {pipeline_mode = #tpu.pipeline_mode<synchronous>, transform_indices = @transform_3, window_bounds = array<i64: 4, 128>}, {transform_indices = @transform_4, window_bounds = array<i64: 1, 128, 384>}, {transform_indices = @transform_5, window_bounds = array<i64: 1, 1, 384>}, {transform_indices = @transform_6, window_bounds = array<i64: 1, 128, 128>}, {transform_indices = @transform_7, window_bounds = array<i64: 1, 1, 128>}, {transform_indices = @transform_8, window_bounds = array<i64: 1, 128, 128>}, {transform_indices = @transform_9, window_bounds = array<i64: 1, 1, 128>}, {transform_indices = @transform_10, window_bounds = array<i64: 1, 128, 256>}, {transform_indices = @transform_11, window_bounds = array<i64: 1, 1, 256>}, {transform_indices = @transform_12, window_bounds = array<i64: 1, 128, 128>}, {transform_indices = @transform_13, window_bounds = array<i64: 1, 1, 128>}, {transform_indices = @transform_14, window_bounds = array<i64: 1, 128, 32>}, {transform_indices = @transform_15, window_bounds = array<i64: 1, 1, 32>}, {transform_indices = @transform_16, window_bounds = array<i64: 1, 32, 128>}, {transform_indices = @transform_17, window_bounds = array<i64: 1, 1, 128>}, {transform_indices = @transform_18, window_bounds = array<i64: 1, 6, 128>}, {transform_indices = @transform_19, window_bounds = array<i64: 1, 2, 28, 128>}]} {
    %c0 = arith.constant 0 : index
    %c0_0 = arith.constant 0 : index
    %0 = vector.load %arg3[%c0, %c0_0] : memref<128x4xf32, #tpu.memory_space<vmem>>, vector<128x4xf32>
    %c0_1 = arith.constant 0 : index
    %c0_2 = arith.constant 0 : index
    %1 = vector.load %arg4[%c0_1, %c0_2] : memref<4x128xf32, #tpu.memory_space<vmem>>, vector<4x128xf32>
    %c0_3 = arith.constant 0 : index
    %c0_4 = arith.constant 0 : index
    %c0_5 = arith.constant 0 : index
    %2 = vector.load %arg19[%c0_3, %c0_4, %c0_5] : memref<1x6x128xf32, #tpu.memory_space<vmem>>, vector<1x6x128xf32>
    %3 = vector.shape_cast %2 : vector<1x6x128xf32> to vector<6x128xf32>
    %c0_6 = arith.constant 0 : index
    %c0_7 = arith.constant 0 : index
    %c0_8 = arith.constant 0 : index
    %c0_9 = arith.constant 0 : index
    %4 = vector.load %arg1[%c0_6, %c0_7, %c0_8, %c0_9] : memref<1x2x28x128xf32, #tpu.memory_space<vmem>>, vector<1x1x28x128xf32>
    %5 = vector.shape_cast %4 : vector<1x1x28x128xf32> to vector<28x128xf32>
    %c0_10 = arith.constant 0 : index
    %c1 = arith.constant 1 : index
    %c0_11 = arith.constant 0 : index
    %c0_12 = arith.constant 0 : index
    %6 = vector.load %arg1[%c0_10, %c1, %c0_11, %c0_12] : memref<1x2x28x128xf32, #tpu.memory_space<vmem>>, vector<1x1x28x128xf32>
    %7 = vector.shape_cast %6 : vector<1x1x28x128xf32> to vector<28x128xf32>
    %c0_13 = arith.constant 0 : index
    %c0_14 = arith.constant 0 : index
    %c0_15 = arith.constant 0 : index
    %c0_16 = arith.constant 0 : index
    %8 = vector.load %arg2[%c0_13, %c0_14, %c0_15, %c0_16] : memref<1x2x28x128xf32, #tpu.memory_space<vmem>>, vector<1x1x28x128xf32>
    %9 = vector.shape_cast %8 : vector<1x1x28x128xf32> to vector<28x128xf32>
    %c0_17 = arith.constant 0 : index
    %c1_18 = arith.constant 1 : index
    %c0_19 = arith.constant 0 : index
    %c0_20 = arith.constant 0 : index
    %10 = vector.load %arg2[%c0_17, %c1_18, %c0_19, %c0_20] : memref<1x2x28x128xf32, #tpu.memory_space<vmem>>, vector<1x1x28x128xf32>
    %11 = vector.shape_cast %10 : vector<1x1x28x128xf32> to vector<28x128xf32>
    %12 = arith.truncf %5 : vector<28x128xf32> to vector<28x128xbf16>
    %c0_21 = arith.constant 0 : index
    %c0_22 = arith.constant 0 : index
    %c0_23 = arith.constant 0 : index
    %13 = vector.load %arg5[%c0_21, %c0_22, %c0_23] : memref<1x128x384xbf16, #tpu.memory_space<vmem>>, vector<1x128x384xbf16>
    %14 = vector.shape_cast %13 : vector<1x128x384xbf16> to vector<128x384xbf16>
    %cst = arith.constant dense<0.000000e+00> : vector<28x384xf32>
    %15 = tpu.matmul %12, %14, %cst {dimension_numbers = #tpu.dot_dimension_numbers<[1], [0], [0], [1], [0, 0, 1, 1], [], []>} : vector<28x128xbf16>, vector<128x384xbf16>, vector<28x384xf32> -> vector<28x384xf32>
    %c0_24 = arith.constant 0 : index
    %c0_25 = arith.constant 0 : index
    %c0_26 = arith.constant 0 : index
    %16 = vector.load %arg6[%c0_24, %c0_25, %c0_26] : memref<1x1x384xf32, #tpu.memory_space<vmem>>, vector<1x1x384xf32>
    %17 = vector.shape_cast %16 : vector<1x1x384xf32> to vector<1x384xf32>
    %18 = vector.broadcast %17 : vector<1x384xf32> to vector<28x384xf32>
    %19 = arith.addf %15, %18 : vector<28x384xf32>
    %20 = arith.truncf %7 : vector<28x128xf32> to vector<28x128xbf16>
    %c0_27 = arith.constant 0 : index
    %c0_28 = arith.constant 0 : index
    %c0_29 = arith.constant 0 : index
    %21 = vector.load %arg5[%c0_27, %c0_28, %c0_29] : memref<1x128x384xbf16, #tpu.memory_space<vmem>>, vector<1x128x384xbf16>
    %22 = vector.shape_cast %21 : vector<1x128x384xbf16> to vector<128x384xbf16>
    %cst_30 = arith.constant dense<0.000000e+00> : vector<28x384xf32>
    %23 = tpu.matmul %20, %22, %cst_30 {dimension_numbers = #tpu.dot_dimension_numbers<[1], [0], [0], [1], [0, 0, 1, 1], [], []>} : vector<28x128xbf16>, vector<128x384xbf16>, vector<28x384xf32> -> vector<28x384xf32>
    %c0_31 = arith.constant 0 : index
    %c0_32 = arith.constant 0 : index
    %c0_33 = arith.constant 0 : index
    %24 = vector.load %arg6[%c0_31, %c0_32, %c0_33] : memref<1x1x384xf32, #tpu.memory_space<vmem>>, vector<1x1x384xf32>
    %25 = vector.shape_cast %24 : vector<1x1x384xf32> to vector<1x384xf32>
    %26 = vector.broadcast %25 : vector<1x384xf32> to vector<28x384xf32>
    %27 = arith.addf %23, %26 : vector<28x384xf32>
    %28 = vector.extract_strided_slice %19 {offsets = [0, 0], sizes = [28, 128], strides = [1, 1]} : vector<28x384xf32> to vector<28x128xf32>
    %29 = vector.extract_strided_slice %27 {offsets = [0, 0], sizes = [28, 128], strides = [1, 1]} : vector<28x384xf32> to vector<28x128xf32>
    %30 = vector.extract_strided_slice %19 {offsets = [0, 128], sizes = [28, 128], strides = [1, 1]} : vector<28x384xf32> to vector<28x128xf32>
    %31 = vector.extract_strided_slice %27 {offsets = [0, 128], sizes = [28, 128], strides = [1, 1]} : vector<28x384xf32> to vector<28x128xf32>
    %32 = vector.extract_strided_slice %19 {offsets = [0, 256], sizes = [28, 128], strides = [1, 1]} : vector<28x384xf32> to vector<28x128xf32>
    %33 = vector.extract_strided_slice %27 {offsets = [0, 256], sizes = [28, 128], strides = [1, 1]} : vector<28x384xf32> to vector<28x128xf32>
    %34 = arith.mulf %28, %30 : vector<28x128xf32>
    %cst_34 = arith.constant dense<0.000000e+00> : vector<28x4xf32>
    %35 = tpu.matmul %34, %0, %cst_34 {dimension_numbers = #tpu.dot_dimension_numbers<[1], [0], [0], [1], [0, 0, 1, 1], [], []>} : vector<28x128xf32>, vector<128x4xf32>, vector<28x4xf32> -> vector<28x4xf32>
    %cst_35 = arith.constant 0.176776692 : f32
    %36 = vector.broadcast %cst_35 : f32 to vector<28x4xf32>
    %37 = arith.mulf %35, %36 : vector<28x4xf32>
    %38 = arith.mulf %28, %31 : vector<28x128xf32>
    %cst_36 = arith.constant dense<0.000000e+00> : vector<28x4xf32>
    %39 = tpu.matmul %38, %0, %cst_36 {dimension_numbers = #tpu.dot_dimension_numbers<[1], [0], [0], [1], [0, 0, 1, 1], [], []>} : vector<28x128xf32>, vector<128x4xf32>, vector<28x4xf32> -> vector<28x4xf32>
    %cst_37 = arith.constant 0.176776692 : f32
    %40 = vector.broadcast %cst_37 : f32 to vector<28x4xf32>
    %41 = arith.mulf %39, %40 : vector<28x4xf32>
    %42 = arith.maximumf %37, %41 : vector<28x4xf32>
    %43 = arith.subf %37, %42 : vector<28x4xf32>
    %44 = math.exp %43 : vector<28x4xf32>
    %45 = arith.subf %41, %42 : vector<28x4xf32>
    %46 = math.exp %45 : vector<28x4xf32>
    %47 = arith.addf %44, %46 : vector<28x4xf32>
    %cst_38 = arith.constant 1.000000e+00 : f32
    %48 = vector.broadcast %cst_38 : f32 to vector<28x4xf32>
    %49 = arith.divf %48, %47 : vector<28x4xf32>
    %50 = arith.mulf %44, %49 : vector<28x4xf32>
    %cst_39 = arith.constant dense<0.000000e+00> : vector<28x128xf32>
    %51 = tpu.matmul %50, %1, %cst_39 {dimension_numbers = #tpu.dot_dimension_numbers<[1], [0], [0], [1], [0, 0, 1, 1], [], []>} : vector<28x4xf32>, vector<4x128xf32>, vector<28x128xf32> -> vector<28x128xf32>
    %52 = arith.mulf %51, %32 : vector<28x128xf32>
    %53 = arith.mulf %46, %49 : vector<28x4xf32>
    %cst_40 = arith.constant dense<0.000000e+00> : vector<28x128xf32>
    %54 = tpu.matmul %53, %1, %cst_40 {dimension_numbers = #tpu.dot_dimension_numbers<[1], [0], [0], [1], [0, 0, 1, 1], [], []>} : vector<28x4xf32>, vector<4x128xf32>, vector<28x128xf32> -> vector<28x128xf32>
    %55 = arith.mulf %54, %33 : vector<28x128xf32>
    %56 = arith.addf %52, %55 : vector<28x128xf32>
    %57 = arith.mulf %29, %30 : vector<28x128xf32>
    %cst_41 = arith.constant dense<0.000000e+00> : vector<28x4xf32>
    %58 = tpu.matmul %57, %0, %cst_41 {dimension_numbers = #tpu.dot_dimension_numbers<[1], [0], [0], [1], [0, 0, 1, 1], [], []>} : vector<28x128xf32>, vector<128x4xf32>, vector<28x4xf32> -> vector<28x4xf32>
    %cst_42 = arith.constant 0.176776692 : f32
    %59 = vector.broadcast %cst_42 : f32 to vector<28x4xf32>
    %60 = arith.mulf %58, %59 : vector<28x4xf32>
    %61 = arith.mulf %29, %31 : vector<28x128xf32>
    %cst_43 = arith.constant dense<0.000000e+00> : vector<28x4xf32>
    %62 = tpu.matmul %61, %0, %cst_43 {dimension_numbers = #tpu.dot_dimension_numbers<[1], [0], [0], [1], [0, 0, 1, 1], [], []>} : vector<28x128xf32>, vector<128x4xf32>, vector<28x4xf32> -> vector<28x4xf32>
    %cst_44 = arith.constant 0.176776692 : f32
    %63 = vector.broadcast %cst_44 : f32 to vector<28x4xf32>
    %64 = arith.mulf %62, %63 : vector<28x4xf32>
    %65 = arith.maximumf %60, %64 : vector<28x4xf32>
    %66 = arith.subf %60, %65 : vector<28x4xf32>
    %67 = math.exp %66 : vector<28x4xf32>
    %68 = arith.subf %64, %65 : vector<28x4xf32>
    %69 = math.exp %68 : vector<28x4xf32>
    %70 = arith.addf %67, %69 : vector<28x4xf32>
    %cst_45 = arith.constant 1.000000e+00 : f32
    %71 = vector.broadcast %cst_45 : f32 to vector<28x4xf32>
    %72 = arith.divf %71, %70 : vector<28x4xf32>
    %73 = arith.mulf %67, %72 : vector<28x4xf32>
    %cst_46 = arith.constant dense<0.000000e+00> : vector<28x128xf32>
    %74 = tpu.matmul %73, %1, %cst_46 {dimension_numbers = #tpu.dot_dimension_numbers<[1], [0], [0], [1], [0, 0, 1, 1], [], []>} : vector<28x4xf32>, vector<4x128xf32>, vector<28x128xf32> -> vector<28x128xf32>
    %75 = arith.mulf %74, %32 : vector<28x128xf32>
    %76 = arith.mulf %69, %72 : vector<28x4xf32>
    %cst_47 = arith.constant dense<0.000000e+00> : vector<28x128xf32>
    %77 = tpu.matmul %76, %1, %cst_47 {dimension_numbers = #tpu.dot_dimension_numbers<[1], [0], [0], [1], [0, 0, 1, 1], [], []>} : vector<28x4xf32>, vector<4x128xf32>, vector<28x128xf32> -> vector<28x128xf32>
    %78 = arith.mulf %77, %33 : vector<28x128xf32>
    %79 = arith.addf %75, %78 : vector<28x128xf32>
    %80 = arith.truncf %56 : vector<28x128xf32> to vector<28x128xbf16>
    %c0_48 = arith.constant 0 : index
    %c0_49 = arith.constant 0 : index
    %c0_50 = arith.constant 0 : index
    %81 = vector.load %arg7[%c0_48, %c0_49, %c0_50] : memref<1x128x128xbf16, #tpu.memory_space<vmem>>, vector<1x128x128xbf16>
    %82 = vector.shape_cast %81 : vector<1x128x128xbf16> to vector<128x128xbf16>
    %cst_51 = arith.constant dense<0.000000e+00> : vector<28x128xf32>
    %83 = tpu.matmul %80, %82, %cst_51 {dimension_numbers = #tpu.dot_dimension_numbers<[1], [0], [0], [1], [0, 0, 1, 1], [], []>} : vector<28x128xbf16>, vector<128x128xbf16>, vector<28x128xf32> -> vector<28x128xf32>
    %c0_52 = arith.constant 0 : index
    %c0_53 = arith.constant 0 : index
    %c0_54 = arith.constant 0 : index
    %84 = vector.load %arg8[%c0_52, %c0_53, %c0_54] : memref<1x1x128xf32, #tpu.memory_space<vmem>>, vector<1x1x128xf32>
    %85 = vector.shape_cast %84 : vector<1x1x128xf32> to vector<1x128xf32>
    %86 = vector.broadcast %85 : vector<1x128xf32> to vector<28x128xf32>
    %87 = arith.addf %83, %86 : vector<28x128xf32>
    %88 = arith.addf %5, %87 : vector<28x128xf32>
    %89 = vector.extract_strided_slice %3 {offsets = [0, 0], sizes = [1, 128], strides = [1, 1]} : vector<6x128xf32> to vector<1x128xf32>
    %90 = vector.extract_strided_slice %3 {offsets = [1, 0], sizes = [1, 128], strides = [1, 1]} : vector<6x128xf32> to vector<1x128xf32>
    %cst_55 = arith.constant dense<0.000000e+00> : vector<28xf32>
    %91 = vector.multi_reduction <add>, %88, %cst_55 [1] : vector<28x128xf32> to vector<28xf32>
    %92 = vector.shape_cast %91 : vector<28xf32> to vector<28x1xf32>
    %cst_56 = arith.constant 1.280000e+02 : f32
    %93 = vector.broadcast %cst_56 : f32 to vector<28x1xf32>
    %94 = arith.divf %92, %93 : vector<28x1xf32>
    %95 = vector.broadcast %94 : vector<28x1xf32> to vector<28x128xf32>
    %96 = arith.subf %88, %95 : vector<28x128xf32>
    %97 = arith.mulf %96, %96 : vector<28x128xf32>
    %cst_57 = arith.constant dense<0.000000e+00> : vector<28xf32>
    %98 = vector.multi_reduction <add>, %97, %cst_57 [1] : vector<28x128xf32> to vector<28xf32>
    %99 = vector.shape_cast %98 : vector<28xf32> to vector<28x1xf32>
    %cst_58 = arith.constant 1.280000e+02 : f32
    %100 = vector.broadcast %cst_58 : f32 to vector<28x1xf32>
    %101 = arith.divf %99, %100 : vector<28x1xf32>
    %102 = vector.broadcast %94 : vector<28x1xf32> to vector<28x128xf32>
    %103 = arith.subf %88, %102 : vector<28x128xf32>
    %cst_59 = arith.constant 9.99999974E-6 : f32
    %104 = vector.broadcast %cst_59 : f32 to vector<28x1xf32>
    %105 = arith.addf %101, %104 : vector<28x1xf32>
    %106 = math.rsqrt %105 : vector<28x1xf32>
    %107 = vector.broadcast %106 : vector<28x1xf32> to vector<28x128xf32>
    %108 = arith.mulf %103, %107 : vector<28x128xf32>
    %109 = vector.broadcast %89 : vector<1x128xf32> to vector<28x128xf32>
    %110 = arith.mulf %108, %109 : vector<28x128xf32>
    %111 = vector.broadcast %90 : vector<1x128xf32> to vector<28x128xf32>
    %112 = arith.addf %110, %111 : vector<28x128xf32>
    %113 = arith.truncf %79 : vector<28x128xf32> to vector<28x128xbf16>
    %c0_60 = arith.constant 0 : index
    %c0_61 = arith.constant 0 : index
    %c0_62 = arith.constant 0 : index
    %114 = vector.load %arg7[%c0_60, %c0_61, %c0_62] : memref<1x128x128xbf16, #tpu.memory_space<vmem>>, vector<1x128x128xbf16>
    %115 = vector.shape_cast %114 : vector<1x128x128xbf16> to vector<128x128xbf16>
    %cst_63 = arith.constant dense<0.000000e+00> : vector<28x128xf32>
    %116 = tpu.matmul %113, %115, %cst_63 {dimension_numbers = #tpu.dot_dimension_numbers<[1], [0], [0], [1], [0, 0, 1, 1], [], []>} : vector<28x128xbf16>, vector<128x128xbf16>, vector<28x128xf32> -> vector<28x128xf32>
    %c0_64 = arith.constant 0 : index
    %c0_65 = arith.constant 0 : index
    %c0_66 = arith.constant 0 : index
    %117 = vector.load %arg8[%c0_64, %c0_65, %c0_66] : memref<1x1x128xf32, #tpu.memory_space<vmem>>, vector<1x1x128xf32>
    %118 = vector.shape_cast %117 : vector<1x1x128xf32> to vector<1x128xf32>
    %119 = vector.broadcast %118 : vector<1x128xf32> to vector<28x128xf32>
    %120 = arith.addf %116, %119 : vector<28x128xf32>
    %121 = arith.addf %7, %120 : vector<28x128xf32>
    %122 = vector.extract_strided_slice %3 {offsets = [0, 0], sizes = [1, 128], strides = [1, 1]} : vector<6x128xf32> to vector<1x128xf32>
    %123 = vector.extract_strided_slice %3 {offsets = [1, 0], sizes = [1, 128], strides = [1, 1]} : vector<6x128xf32> to vector<1x128xf32>
    %cst_67 = arith.constant dense<0.000000e+00> : vector<28xf32>
    %124 = vector.multi_reduction <add>, %121, %cst_67 [1] : vector<28x128xf32> to vector<28xf32>
    %125 = vector.shape_cast %124 : vector<28xf32> to vector<28x1xf32>
    %cst_68 = arith.constant 1.280000e+02 : f32
    %126 = vector.broadcast %cst_68 : f32 to vector<28x1xf32>
    %127 = arith.divf %125, %126 : vector<28x1xf32>
    %128 = vector.broadcast %127 : vector<28x1xf32> to vector<28x128xf32>
    %129 = arith.subf %121, %128 : vector<28x128xf32>
    %130 = arith.mulf %129, %129 : vector<28x128xf32>
    %cst_69 = arith.constant dense<0.000000e+00> : vector<28xf32>
    %131 = vector.multi_reduction <add>, %130, %cst_69 [1] : vector<28x128xf32> to vector<28xf32>
    %132 = vector.shape_cast %131 : vector<28xf32> to vector<28x1xf32>
    %cst_70 = arith.constant 1.280000e+02 : f32
    %133 = vector.broadcast %cst_70 : f32 to vector<28x1xf32>
    %134 = arith.divf %132, %133 : vector<28x1xf32>
    %135 = vector.broadcast %127 : vector<28x1xf32> to vector<28x128xf32>
    %136 = arith.subf %121, %135 : vector<28x128xf32>
    %cst_71 = arith.constant 9.99999974E-6 : f32
    %137 = vector.broadcast %cst_71 : f32 to vector<28x1xf32>
    %138 = arith.addf %134, %137 : vector<28x1xf32>
    %139 = math.rsqrt %138 : vector<28x1xf32>
    %140 = vector.broadcast %139 : vector<28x1xf32> to vector<28x128xf32>
    %141 = arith.mulf %136, %140 : vector<28x128xf32>
    %142 = vector.broadcast %122 : vector<1x128xf32> to vector<28x128xf32>
    %143 = arith.mulf %141, %142 : vector<28x128xf32>
    %144 = vector.broadcast %123 : vector<1x128xf32> to vector<28x128xf32>
    %145 = arith.addf %143, %144 : vector<28x128xf32>
    %146 = arith.truncf %112 : vector<28x128xf32> to vector<28x128xbf16>
    %c0_72 = arith.constant 0 : index
    %c0_73 = arith.constant 0 : index
    %c0_74 = arith.constant 0 : index
    %147 = vector.load %arg9[%c0_72, %c0_73, %c0_74] : memref<1x128x128xbf16, #tpu.memory_space<vmem>>, vector<1x128x128xbf16>
    %148 = vector.shape_cast %147 : vector<1x128x128xbf16> to vector<128x128xbf16>
    %cst_75 = arith.constant dense<0.000000e+00> : vector<28x128xf32>
    %149 = tpu.matmul %146, %148, %cst_75 {dimension_numbers = #tpu.dot_dimension_numbers<[1], [0], [0], [1], [0, 0, 1, 1], [], []>} : vector<28x128xbf16>, vector<128x128xbf16>, vector<28x128xf32> -> vector<28x128xf32>
    %c0_76 = arith.constant 0 : index
    %c0_77 = arith.constant 0 : index
    %c0_78 = arith.constant 0 : index
    %150 = vector.load %arg10[%c0_76, %c0_77, %c0_78] : memref<1x1x128xf32, #tpu.memory_space<vmem>>, vector<1x1x128xf32>
    %151 = vector.shape_cast %150 : vector<1x1x128xf32> to vector<1x128xf32>
    %152 = vector.broadcast %151 : vector<1x128xf32> to vector<28x128xf32>
    %153 = arith.addf %149, %152 : vector<28x128xf32>
    %154 = arith.truncf %145 : vector<28x128xf32> to vector<28x128xbf16>
    %c0_79 = arith.constant 0 : index
    %c0_80 = arith.constant 0 : index
    %c0_81 = arith.constant 0 : index
    %155 = vector.load %arg9[%c0_79, %c0_80, %c0_81] : memref<1x128x128xbf16, #tpu.memory_space<vmem>>, vector<1x128x128xbf16>
    %156 = vector.shape_cast %155 : vector<1x128x128xbf16> to vector<128x128xbf16>
    %cst_82 = arith.constant dense<0.000000e+00> : vector<28x128xf32>
    %157 = tpu.matmul %154, %156, %cst_82 {dimension_numbers = #tpu.dot_dimension_numbers<[1], [0], [0], [1], [0, 0, 1, 1], [], []>} : vector<28x128xbf16>, vector<128x128xbf16>, vector<28x128xf32> -> vector<28x128xf32>
    %c0_83 = arith.constant 0 : index
    %c0_84 = arith.constant 0 : index
    %c0_85 = arith.constant 0 : index
    %158 = vector.load %arg10[%c0_83, %c0_84, %c0_85] : memref<1x1x128xf32, #tpu.memory_space<vmem>>, vector<1x1x128xf32>
    %159 = vector.shape_cast %158 : vector<1x1x128xf32> to vector<1x128xf32>
    %160 = vector.broadcast %159 : vector<1x128xf32> to vector<28x128xf32>
    %161 = arith.addf %157, %160 : vector<28x128xf32>
    %162 = arith.truncf %9 : vector<28x128xf32> to vector<28x128xbf16>
    %c0_86 = arith.constant 0 : index
    %c0_87 = arith.constant 0 : index
    %c0_88 = arith.constant 0 : index
    %163 = vector.load %arg11[%c0_86, %c0_87, %c0_88] : memref<1x128x256xbf16, #tpu.memory_space<vmem>>, vector<1x128x256xbf16>
    %164 = vector.shape_cast %163 : vector<1x128x256xbf16> to vector<128x256xbf16>
    %cst_89 = arith.constant dense<0.000000e+00> : vector<28x256xf32>
    %165 = tpu.matmul %162, %164, %cst_89 {dimension_numbers = #tpu.dot_dimension_numbers<[1], [0], [0], [1], [0, 0, 1, 1], [], []>} : vector<28x128xbf16>, vector<128x256xbf16>, vector<28x256xf32> -> vector<28x256xf32>
    %c0_90 = arith.constant 0 : index
    %c0_91 = arith.constant 0 : index
    %c0_92 = arith.constant 0 : index
    %166 = vector.load %arg12[%c0_90, %c0_91, %c0_92] : memref<1x1x256xf32, #tpu.memory_space<vmem>>, vector<1x1x256xf32>
    %167 = vector.shape_cast %166 : vector<1x1x256xf32> to vector<1x256xf32>
    %168 = vector.broadcast %167 : vector<1x256xf32> to vector<28x256xf32>
    %169 = arith.addf %165, %168 : vector<28x256xf32>
    %170 = arith.truncf %11 : vector<28x128xf32> to vector<28x128xbf16>
    %c0_93 = arith.constant 0 : index
    %c0_94 = arith.constant 0 : index
    %c0_95 = arith.constant 0 : index
    %171 = vector.load %arg11[%c0_93, %c0_94, %c0_95] : memref<1x128x256xbf16, #tpu.memory_space<vmem>>, vector<1x128x256xbf16>
    %172 = vector.shape_cast %171 : vector<1x128x256xbf16> to vector<128x256xbf16>
    %cst_96 = arith.constant dense<0.000000e+00> : vector<28x256xf32>
    %173 = tpu.matmul %170, %172, %cst_96 {dimension_numbers = #tpu.dot_dimension_numbers<[1], [0], [0], [1], [0, 0, 1, 1], [], []>} : vector<28x128xbf16>, vector<128x256xbf16>, vector<28x256xf32> -> vector<28x256xf32>
    %c0_97 = arith.constant 0 : index
    %c0_98 = arith.constant 0 : index
    %c0_99 = arith.constant 0 : index
    %174 = vector.load %arg12[%c0_97, %c0_98, %c0_99] : memref<1x1x256xf32, #tpu.memory_space<vmem>>, vector<1x1x256xf32>
    %175 = vector.shape_cast %174 : vector<1x1x256xf32> to vector<1x256xf32>
    %176 = vector.broadcast %175 : vector<1x256xf32> to vector<28x256xf32>
    %177 = arith.addf %173, %176 : vector<28x256xf32>
    %178 = vector.extract_strided_slice %169 {offsets = [0, 0], sizes = [28, 128], strides = [1, 1]} : vector<28x256xf32> to vector<28x128xf32>
    %179 = vector.extract_strided_slice %177 {offsets = [0, 0], sizes = [28, 128], strides = [1, 1]} : vector<28x256xf32> to vector<28x128xf32>
    %180 = vector.extract_strided_slice %169 {offsets = [0, 128], sizes = [28, 128], strides = [1, 1]} : vector<28x256xf32> to vector<28x128xf32>
    %181 = vector.extract_strided_slice %177 {offsets = [0, 128], sizes = [28, 128], strides = [1, 1]} : vector<28x256xf32> to vector<28x128xf32>
    %182 = arith.mulf %153, %178 : vector<28x128xf32>
    %cst_100 = arith.constant dense<0.000000e+00> : vector<28x4xf32>
    %183 = tpu.matmul %182, %0, %cst_100 {dimension_numbers = #tpu.dot_dimension_numbers<[1], [0], [0], [1], [0, 0, 1, 1], [], []>} : vector<28x128xf32>, vector<128x4xf32>, vector<28x4xf32> -> vector<28x4xf32>
    %cst_101 = arith.constant 0.176776692 : f32
    %184 = vector.broadcast %cst_101 : f32 to vector<28x4xf32>
    %185 = arith.mulf %183, %184 : vector<28x4xf32>
    %186 = arith.mulf %153, %179 : vector<28x128xf32>
    %cst_102 = arith.constant dense<0.000000e+00> : vector<28x4xf32>
    %187 = tpu.matmul %186, %0, %cst_102 {dimension_numbers = #tpu.dot_dimension_numbers<[1], [0], [0], [1], [0, 0, 1, 1], [], []>} : vector<28x128xf32>, vector<128x4xf32>, vector<28x4xf32> -> vector<28x4xf32>
    %cst_103 = arith.constant 0.176776692 : f32
    %188 = vector.broadcast %cst_103 : f32 to vector<28x4xf32>
    %189 = arith.mulf %187, %188 : vector<28x4xf32>
    %190 = arith.maximumf %185, %189 : vector<28x4xf32>
    %191 = arith.subf %185, %190 : vector<28x4xf32>
    %192 = math.exp %191 : vector<28x4xf32>
    %193 = arith.subf %189, %190 : vector<28x4xf32>
    %194 = math.exp %193 : vector<28x4xf32>
    %195 = arith.addf %192, %194 : vector<28x4xf32>
    %cst_104 = arith.constant 1.000000e+00 : f32
    %196 = vector.broadcast %cst_104 : f32 to vector<28x4xf32>
    %197 = arith.divf %196, %195 : vector<28x4xf32>
    %198 = arith.mulf %192, %197 : vector<28x4xf32>
    %cst_105 = arith.constant dense<0.000000e+00> : vector<28x128xf32>
    %199 = tpu.matmul %198, %1, %cst_105 {dimension_numbers = #tpu.dot_dimension_numbers<[1], [0], [0], [1], [0, 0, 1, 1], [], []>} : vector<28x4xf32>, vector<4x128xf32>, vector<28x128xf32> -> vector<28x128xf32>
    %200 = arith.mulf %199, %180 : vector<28x128xf32>
    %201 = arith.mulf %194, %197 : vector<28x4xf32>
    %cst_106 = arith.constant dense<0.000000e+00> : vector<28x128xf32>
    %202 = tpu.matmul %201, %1, %cst_106 {dimension_numbers = #tpu.dot_dimension_numbers<[1], [0], [0], [1], [0, 0, 1, 1], [], []>} : vector<28x4xf32>, vector<4x128xf32>, vector<28x128xf32> -> vector<28x128xf32>
    %203 = arith.mulf %202, %181 : vector<28x128xf32>
    %204 = arith.addf %200, %203 : vector<28x128xf32>
    %205 = arith.mulf %161, %178 : vector<28x128xf32>
    %cst_107 = arith.constant dense<0.000000e+00> : vector<28x4xf32>
    %206 = tpu.matmul %205, %0, %cst_107 {dimension_numbers = #tpu.dot_dimension_numbers<[1], [0], [0], [1], [0, 0, 1, 1], [], []>} : vector<28x128xf32>, vector<128x4xf32>, vector<28x4xf32> -> vector<28x4xf32>
    %cst_108 = arith.constant 0.176776692 : f32
    %207 = vector.broadcast %cst_108 : f32 to vector<28x4xf32>
    %208 = arith.mulf %206, %207 : vector<28x4xf32>
    %209 = arith.mulf %161, %179 : vector<28x128xf32>
    %cst_109 = arith.constant dense<0.000000e+00> : vector<28x4xf32>
    %210 = tpu.matmul %209, %0, %cst_109 {dimension_numbers = #tpu.dot_dimension_numbers<[1], [0], [0], [1], [0, 0, 1, 1], [], []>} : vector<28x128xf32>, vector<128x4xf32>, vector<28x4xf32> -> vector<28x4xf32>
    %cst_110 = arith.constant 0.176776692 : f32
    %211 = vector.broadcast %cst_110 : f32 to vector<28x4xf32>
    %212 = arith.mulf %210, %211 : vector<28x4xf32>
    %213 = arith.maximumf %208, %212 : vector<28x4xf32>
    %214 = arith.subf %208, %213 : vector<28x4xf32>
    %215 = math.exp %214 : vector<28x4xf32>
    %216 = arith.subf %212, %213 : vector<28x4xf32>
    %217 = math.exp %216 : vector<28x4xf32>
    %218 = arith.addf %215, %217 : vector<28x4xf32>
    %cst_111 = arith.constant 1.000000e+00 : f32
    %219 = vector.broadcast %cst_111 : f32 to vector<28x4xf32>
    %220 = arith.divf %219, %218 : vector<28x4xf32>
    %221 = arith.mulf %215, %220 : vector<28x4xf32>
    %cst_112 = arith.constant dense<0.000000e+00> : vector<28x128xf32>
    %222 = tpu.matmul %221, %1, %cst_112 {dimension_numbers = #tpu.dot_dimension_numbers<[1], [0], [0], [1], [0, 0, 1, 1], [], []>} : vector<28x4xf32>, vector<4x128xf32>, vector<28x128xf32> -> vector<28x128xf32>
    %223 = arith.mulf %222, %180 : vector<28x128xf32>
    %224 = arith.mulf %217, %220 : vector<28x4xf32>
    %cst_113 = arith.constant dense<0.000000e+00> : vector<28x128xf32>
    %225 = tpu.matmul %224, %1, %cst_113 {dimension_numbers = #tpu.dot_dimension_numbers<[1], [0], [0], [1], [0, 0, 1, 1], [], []>} : vector<28x4xf32>, vector<4x128xf32>, vector<28x128xf32> -> vector<28x128xf32>
    %226 = arith.mulf %225, %181 : vector<28x128xf32>
    %227 = arith.addf %223, %226 : vector<28x128xf32>
    %228 = arith.truncf %204 : vector<28x128xf32> to vector<28x128xbf16>
    %c0_114 = arith.constant 0 : index
    %c0_115 = arith.constant 0 : index
    %c0_116 = arith.constant 0 : index
    %229 = vector.load %arg13[%c0_114, %c0_115, %c0_116] : memref<1x128x128xbf16, #tpu.memory_space<vmem>>, vector<1x128x128xbf16>
    %230 = vector.shape_cast %229 : vector<1x128x128xbf16> to vector<128x128xbf16>
    %cst_117 = arith.constant dense<0.000000e+00> : vector<28x128xf32>
    %231 = tpu.matmul %228, %230, %cst_117 {dimension_numbers = #tpu.dot_dimension_numbers<[1], [0], [0], [1], [0, 0, 1, 1], [], []>} : vector<28x128xbf16>, vector<128x128xbf16>, vector<28x128xf32> -> vector<28x128xf32>
    %c0_118 = arith.constant 0 : index
    %c0_119 = arith.constant 0 : index
    %c0_120 = arith.constant 0 : index
    %232 = vector.load %arg14[%c0_118, %c0_119, %c0_120] : memref<1x1x128xf32, #tpu.memory_space<vmem>>, vector<1x1x128xf32>
    %233 = vector.shape_cast %232 : vector<1x1x128xf32> to vector<1x128xf32>
    %234 = vector.broadcast %233 : vector<1x128xf32> to vector<28x128xf32>
    %235 = arith.addf %231, %234 : vector<28x128xf32>
    %236 = arith.addf %112, %235 : vector<28x128xf32>
    %237 = vector.extract_strided_slice %3 {offsets = [2, 0], sizes = [1, 128], strides = [1, 1]} : vector<6x128xf32> to vector<1x128xf32>
    %238 = vector.extract_strided_slice %3 {offsets = [3, 0], sizes = [1, 128], strides = [1, 1]} : vector<6x128xf32> to vector<1x128xf32>
    %cst_121 = arith.constant dense<0.000000e+00> : vector<28xf32>
    %239 = vector.multi_reduction <add>, %236, %cst_121 [1] : vector<28x128xf32> to vector<28xf32>
    %240 = vector.shape_cast %239 : vector<28xf32> to vector<28x1xf32>
    %cst_122 = arith.constant 1.280000e+02 : f32
    %241 = vector.broadcast %cst_122 : f32 to vector<28x1xf32>
    %242 = arith.divf %240, %241 : vector<28x1xf32>
    %243 = vector.broadcast %242 : vector<28x1xf32> to vector<28x128xf32>
    %244 = arith.subf %236, %243 : vector<28x128xf32>
    %245 = arith.mulf %244, %244 : vector<28x128xf32>
    %cst_123 = arith.constant dense<0.000000e+00> : vector<28xf32>
    %246 = vector.multi_reduction <add>, %245, %cst_123 [1] : vector<28x128xf32> to vector<28xf32>
    %247 = vector.shape_cast %246 : vector<28xf32> to vector<28x1xf32>
    %cst_124 = arith.constant 1.280000e+02 : f32
    %248 = vector.broadcast %cst_124 : f32 to vector<28x1xf32>
    %249 = arith.divf %247, %248 : vector<28x1xf32>
    %250 = vector.broadcast %242 : vector<28x1xf32> to vector<28x128xf32>
    %251 = arith.subf %236, %250 : vector<28x128xf32>
    %cst_125 = arith.constant 9.99999974E-6 : f32
    %252 = vector.broadcast %cst_125 : f32 to vector<28x1xf32>
    %253 = arith.addf %249, %252 : vector<28x1xf32>
    %254 = math.rsqrt %253 : vector<28x1xf32>
    %255 = vector.broadcast %254 : vector<28x1xf32> to vector<28x128xf32>
    %256 = arith.mulf %251, %255 : vector<28x128xf32>
    %257 = vector.broadcast %237 : vector<1x128xf32> to vector<28x128xf32>
    %258 = arith.mulf %256, %257 : vector<28x128xf32>
    %259 = vector.broadcast %238 : vector<1x128xf32> to vector<28x128xf32>
    %260 = arith.addf %258, %259 : vector<28x128xf32>
    %261 = arith.truncf %227 : vector<28x128xf32> to vector<28x128xbf16>
    %c0_126 = arith.constant 0 : index
    %c0_127 = arith.constant 0 : index
    %c0_128 = arith.constant 0 : index
    %262 = vector.load %arg13[%c0_126, %c0_127, %c0_128] : memref<1x128x128xbf16, #tpu.memory_space<vmem>>, vector<1x128x128xbf16>
    %263 = vector.shape_cast %262 : vector<1x128x128xbf16> to vector<128x128xbf16>
    %cst_129 = arith.constant dense<0.000000e+00> : vector<28x128xf32>
    %264 = tpu.matmul %261, %263, %cst_129 {dimension_numbers = #tpu.dot_dimension_numbers<[1], [0], [0], [1], [0, 0, 1, 1], [], []>} : vector<28x128xbf16>, vector<128x128xbf16>, vector<28x128xf32> -> vector<28x128xf32>
    %c0_130 = arith.constant 0 : index
    %c0_131 = arith.constant 0 : index
    %c0_132 = arith.constant 0 : index
    %265 = vector.load %arg14[%c0_130, %c0_131, %c0_132] : memref<1x1x128xf32, #tpu.memory_space<vmem>>, vector<1x1x128xf32>
    %266 = vector.shape_cast %265 : vector<1x1x128xf32> to vector<1x128xf32>
    %267 = vector.broadcast %266 : vector<1x128xf32> to vector<28x128xf32>
    %268 = arith.addf %264, %267 : vector<28x128xf32>
    %269 = arith.addf %145, %268 : vector<28x128xf32>
    %270 = vector.extract_strided_slice %3 {offsets = [2, 0], sizes = [1, 128], strides = [1, 1]} : vector<6x128xf32> to vector<1x128xf32>
    %271 = vector.extract_strided_slice %3 {offsets = [3, 0], sizes = [1, 128], strides = [1, 1]} : vector<6x128xf32> to vector<1x128xf32>
    %cst_133 = arith.constant dense<0.000000e+00> : vector<28xf32>
    %272 = vector.multi_reduction <add>, %269, %cst_133 [1] : vector<28x128xf32> to vector<28xf32>
    %273 = vector.shape_cast %272 : vector<28xf32> to vector<28x1xf32>
    %cst_134 = arith.constant 1.280000e+02 : f32
    %274 = vector.broadcast %cst_134 : f32 to vector<28x1xf32>
    %275 = arith.divf %273, %274 : vector<28x1xf32>
    %276 = vector.broadcast %275 : vector<28x1xf32> to vector<28x128xf32>
    %277 = arith.subf %269, %276 : vector<28x128xf32>
    %278 = arith.mulf %277, %277 : vector<28x128xf32>
    %cst_135 = arith.constant dense<0.000000e+00> : vector<28xf32>
    %279 = vector.multi_reduction <add>, %278, %cst_135 [1] : vector<28x128xf32> to vector<28xf32>
    %280 = vector.shape_cast %279 : vector<28xf32> to vector<28x1xf32>
    %cst_136 = arith.constant 1.280000e+02 : f32
    %281 = vector.broadcast %cst_136 : f32 to vector<28x1xf32>
    %282 = arith.divf %280, %281 : vector<28x1xf32>
    %283 = vector.broadcast %275 : vector<28x1xf32> to vector<28x128xf32>
    %284 = arith.subf %269, %283 : vector<28x128xf32>
    %cst_137 = arith.constant 9.99999974E-6 : f32
    %285 = vector.broadcast %cst_137 : f32 to vector<28x1xf32>
    %286 = arith.addf %282, %285 : vector<28x1xf32>
    %287 = math.rsqrt %286 : vector<28x1xf32>
    %288 = vector.broadcast %287 : vector<28x1xf32> to vector<28x128xf32>
    %289 = arith.mulf %284, %288 : vector<28x128xf32>
    %290 = vector.broadcast %270 : vector<1x128xf32> to vector<28x128xf32>
    %291 = arith.mulf %289, %290 : vector<28x128xf32>
    %292 = vector.broadcast %271 : vector<1x128xf32> to vector<28x128xf32>
    %293 = arith.addf %291, %292 : vector<28x128xf32>
    %294 = arith.truncf %260 : vector<28x128xf32> to vector<28x128xbf16>
    %c0_138 = arith.constant 0 : index
    %c0_139 = arith.constant 0 : index
    %c0_140 = arith.constant 0 : index
    %295 = vector.load %arg15[%c0_138, %c0_139, %c0_140] : memref<1x128x32xbf16, #tpu.memory_space<vmem>>, vector<1x128x32xbf16>
    %296 = vector.shape_cast %295 : vector<1x128x32xbf16> to vector<128x32xbf16>
    %cst_141 = arith.constant dense<0.000000e+00> : vector<28x32xf32>
    %297 = tpu.matmul %294, %296, %cst_141 {dimension_numbers = #tpu.dot_dimension_numbers<[1], [0], [0], [1], [0, 0, 1, 1], [], []>} : vector<28x128xbf16>, vector<128x32xbf16>, vector<28x32xf32> -> vector<28x32xf32>
    %c0_142 = arith.constant 0 : index
    %c0_143 = arith.constant 0 : index
    %c0_144 = arith.constant 0 : index
    %298 = vector.load %arg16[%c0_142, %c0_143, %c0_144] : memref<1x1x32xf32, #tpu.memory_space<vmem>>, vector<1x1x32xf32>
    %299 = vector.shape_cast %298 : vector<1x1x32xf32> to vector<1x32xf32>
    %300 = vector.broadcast %299 : vector<1x32xf32> to vector<28x32xf32>
    %301 = arith.addf %297, %300 : vector<28x32xf32>
    %cst_145 = arith.constant 0.000000e+00 : f32
    %302 = vector.broadcast %cst_145 : f32 to vector<28x32xf32>
    %303 = arith.maximumf %301, %302 : vector<28x32xf32>
    %304 = arith.truncf %303 : vector<28x32xf32> to vector<28x32xbf16>
    %c0_146 = arith.constant 0 : index
    %c0_147 = arith.constant 0 : index
    %c0_148 = arith.constant 0 : index
    %305 = vector.load %arg17[%c0_146, %c0_147, %c0_148] : memref<1x32x128xbf16, #tpu.memory_space<vmem>>, vector<1x32x128xbf16>
    %306 = vector.shape_cast %305 : vector<1x32x128xbf16> to vector<32x128xbf16>
    %cst_149 = arith.constant dense<0.000000e+00> : vector<28x128xf32>
    %307 = tpu.matmul %304, %306, %cst_149 {dimension_numbers = #tpu.dot_dimension_numbers<[1], [0], [0], [1], [0, 0, 1, 1], [], []>} : vector<28x32xbf16>, vector<32x128xbf16>, vector<28x128xf32> -> vector<28x128xf32>
    %c0_150 = arith.constant 0 : index
    %c0_151 = arith.constant 0 : index
    %c0_152 = arith.constant 0 : index
    %308 = vector.load %arg18[%c0_150, %c0_151, %c0_152] : memref<1x1x128xf32, #tpu.memory_space<vmem>>, vector<1x1x128xf32>
    %309 = vector.shape_cast %308 : vector<1x1x128xf32> to vector<1x128xf32>
    %310 = vector.broadcast %309 : vector<1x128xf32> to vector<28x128xf32>
    %311 = arith.addf %307, %310 : vector<28x128xf32>
    %312 = arith.truncf %293 : vector<28x128xf32> to vector<28x128xbf16>
    %c0_153 = arith.constant 0 : index
    %c0_154 = arith.constant 0 : index
    %c0_155 = arith.constant 0 : index
    %313 = vector.load %arg15[%c0_153, %c0_154, %c0_155] : memref<1x128x32xbf16, #tpu.memory_space<vmem>>, vector<1x128x32xbf16>
    %314 = vector.shape_cast %313 : vector<1x128x32xbf16> to vector<128x32xbf16>
    %cst_156 = arith.constant dense<0.000000e+00> : vector<28x32xf32>
    %315 = tpu.matmul %312, %314, %cst_156 {dimension_numbers = #tpu.dot_dimension_numbers<[1], [0], [0], [1], [0, 0, 1, 1], [], []>} : vector<28x128xbf16>, vector<128x32xbf16>, vector<28x32xf32> -> vector<28x32xf32>
    %c0_157 = arith.constant 0 : index
    %c0_158 = arith.constant 0 : index
    %c0_159 = arith.constant 0 : index
    %316 = vector.load %arg16[%c0_157, %c0_158, %c0_159] : memref<1x1x32xf32, #tpu.memory_space<vmem>>, vector<1x1x32xf32>
    %317 = vector.shape_cast %316 : vector<1x1x32xf32> to vector<1x32xf32>
    %318 = vector.broadcast %317 : vector<1x32xf32> to vector<28x32xf32>
    %319 = arith.addf %315, %318 : vector<28x32xf32>
    %cst_160 = arith.constant 0.000000e+00 : f32
    %320 = vector.broadcast %cst_160 : f32 to vector<28x32xf32>
    %321 = arith.maximumf %319, %320 : vector<28x32xf32>
    %322 = arith.truncf %321 : vector<28x32xf32> to vector<28x32xbf16>
    %c0_161 = arith.constant 0 : index
    %c0_162 = arith.constant 0 : index
    %c0_163 = arith.constant 0 : index
    %323 = vector.load %arg17[%c0_161, %c0_162, %c0_163] : memref<1x32x128xbf16, #tpu.memory_space<vmem>>, vector<1x32x128xbf16>
    %324 = vector.shape_cast %323 : vector<1x32x128xbf16> to vector<32x128xbf16>
    %cst_164 = arith.constant dense<0.000000e+00> : vector<28x128xf32>
    %325 = tpu.matmul %322, %324, %cst_164 {dimension_numbers = #tpu.dot_dimension_numbers<[1], [0], [0], [1], [0, 0, 1, 1], [], []>} : vector<28x32xbf16>, vector<32x128xbf16>, vector<28x128xf32> -> vector<28x128xf32>
    %c0_165 = arith.constant 0 : index
    %c0_166 = arith.constant 0 : index
    %c0_167 = arith.constant 0 : index
    %326 = vector.load %arg18[%c0_165, %c0_166, %c0_167] : memref<1x1x128xf32, #tpu.memory_space<vmem>>, vector<1x1x128xf32>
    %327 = vector.shape_cast %326 : vector<1x1x128xf32> to vector<1x128xf32>
    %328 = vector.broadcast %327 : vector<1x128xf32> to vector<28x128xf32>
    %329 = arith.addf %325, %328 : vector<28x128xf32>
    %330 = arith.addf %260, %311 : vector<28x128xf32>
    %331 = vector.extract_strided_slice %3 {offsets = [4, 0], sizes = [1, 128], strides = [1, 1]} : vector<6x128xf32> to vector<1x128xf32>
    %332 = vector.extract_strided_slice %3 {offsets = [5, 0], sizes = [1, 128], strides = [1, 1]} : vector<6x128xf32> to vector<1x128xf32>
    %cst_168 = arith.constant dense<0.000000e+00> : vector<28xf32>
    %333 = vector.multi_reduction <add>, %330, %cst_168 [1] : vector<28x128xf32> to vector<28xf32>
    %334 = vector.shape_cast %333 : vector<28xf32> to vector<28x1xf32>
    %cst_169 = arith.constant 1.280000e+02 : f32
    %335 = vector.broadcast %cst_169 : f32 to vector<28x1xf32>
    %336 = arith.divf %334, %335 : vector<28x1xf32>
    %337 = vector.broadcast %336 : vector<28x1xf32> to vector<28x128xf32>
    %338 = arith.subf %330, %337 : vector<28x128xf32>
    %339 = arith.mulf %338, %338 : vector<28x128xf32>
    %cst_170 = arith.constant dense<0.000000e+00> : vector<28xf32>
    %340 = vector.multi_reduction <add>, %339, %cst_170 [1] : vector<28x128xf32> to vector<28xf32>
    %341 = vector.shape_cast %340 : vector<28xf32> to vector<28x1xf32>
    %cst_171 = arith.constant 1.280000e+02 : f32
    %342 = vector.broadcast %cst_171 : f32 to vector<28x1xf32>
    %343 = arith.divf %341, %342 : vector<28x1xf32>
    %344 = vector.broadcast %336 : vector<28x1xf32> to vector<28x128xf32>
    %345 = arith.subf %330, %344 : vector<28x128xf32>
    %cst_172 = arith.constant 9.99999974E-6 : f32
    %346 = vector.broadcast %cst_172 : f32 to vector<28x1xf32>
    %347 = arith.addf %343, %346 : vector<28x1xf32>
    %348 = math.rsqrt %347 : vector<28x1xf32>
    %349 = vector.broadcast %348 : vector<28x1xf32> to vector<28x128xf32>
    %350 = arith.mulf %345, %349 : vector<28x128xf32>
    %351 = vector.broadcast %331 : vector<1x128xf32> to vector<28x128xf32>
    %352 = arith.mulf %350, %351 : vector<28x128xf32>
    %353 = vector.broadcast %332 : vector<1x128xf32> to vector<28x128xf32>
    %354 = arith.addf %352, %353 : vector<28x128xf32>
    %355 = arith.addf %293, %329 : vector<28x128xf32>
    %356 = vector.extract_strided_slice %3 {offsets = [4, 0], sizes = [1, 128], strides = [1, 1]} : vector<6x128xf32> to vector<1x128xf32>
    %357 = vector.extract_strided_slice %3 {offsets = [5, 0], sizes = [1, 128], strides = [1, 1]} : vector<6x128xf32> to vector<1x128xf32>
    %cst_173 = arith.constant dense<0.000000e+00> : vector<28xf32>
    %358 = vector.multi_reduction <add>, %355, %cst_173 [1] : vector<28x128xf32> to vector<28xf32>
    %359 = vector.shape_cast %358 : vector<28xf32> to vector<28x1xf32>
    %cst_174 = arith.constant 1.280000e+02 : f32
    %360 = vector.broadcast %cst_174 : f32 to vector<28x1xf32>
    %361 = arith.divf %359, %360 : vector<28x1xf32>
    %362 = vector.broadcast %361 : vector<28x1xf32> to vector<28x128xf32>
    %363 = arith.subf %355, %362 : vector<28x128xf32>
    %364 = arith.mulf %363, %363 : vector<28x128xf32>
    %cst_175 = arith.constant dense<0.000000e+00> : vector<28xf32>
    %365 = vector.multi_reduction <add>, %364, %cst_175 [1] : vector<28x128xf32> to vector<28xf32>
    %366 = vector.shape_cast %365 : vector<28xf32> to vector<28x1xf32>
    %cst_176 = arith.constant 1.280000e+02 : f32
    %367 = vector.broadcast %cst_176 : f32 to vector<28x1xf32>
    %368 = arith.divf %366, %367 : vector<28x1xf32>
    %369 = vector.broadcast %361 : vector<28x1xf32> to vector<28x128xf32>
    %370 = arith.subf %355, %369 : vector<28x128xf32>
    %cst_177 = arith.constant 9.99999974E-6 : f32
    %371 = vector.broadcast %cst_177 : f32 to vector<28x1xf32>
    %372 = arith.addf %368, %371 : vector<28x1xf32>
    %373 = math.rsqrt %372 : vector<28x1xf32>
    %374 = vector.broadcast %373 : vector<28x1xf32> to vector<28x128xf32>
    %375 = arith.mulf %370, %374 : vector<28x128xf32>
    %376 = vector.broadcast %356 : vector<1x128xf32> to vector<28x128xf32>
    %377 = arith.mulf %375, %376 : vector<28x128xf32>
    %378 = vector.broadcast %357 : vector<1x128xf32> to vector<28x128xf32>
    %379 = arith.addf %377, %378 : vector<28x128xf32>
    %c0_178 = arith.constant 0 : index
    %c0_179 = arith.constant 0 : index
    %c0_180 = arith.constant 0 : index
    %c0_181 = arith.constant 0 : index
    %380 = vector.load %arg20[%c0_178, %c0_179, %c0_180, %c0_181] : memref<1x2x28x128xf32, #tpu.memory_space<vmem>>, vector<1x1x28x128xf32>
    %381 = vector.shape_cast %380 : vector<1x1x28x128xf32> to vector<28x128xf32>
    %382 = vector.shape_cast %354 : vector<28x128xf32> to vector<1x1x28x128xf32>
    tpu.vector_store %arg20[%c0_178, %c0_179, %c0_180, %c0_181], %382 {strides = array<i32>} : memref<1x2x28x128xf32, #tpu.memory_space<vmem>>, vector<1x1x28x128xf32>,
    %c0_182 = arith.constant 0 : index
    %c1_183 = arith.constant 1 : index
    %c0_184 = arith.constant 0 : index
    %c0_185 = arith.constant 0 : index
    %383 = vector.load %arg20[%c0_182, %c1_183, %c0_184, %c0_185] : memref<1x2x28x128xf32, #tpu.memory_space<vmem>>, vector<1x1x28x128xf32>
    %384 = vector.shape_cast %383 : vector<1x1x28x128xf32> to vector<28x128xf32>
    %385 = vector.shape_cast %379 : vector<28x128xf32> to vector<1x1x28x128xf32>
    tpu.vector_store %arg20[%c0_182, %c1_183, %c0_184, %c0_185], %385 {strides = array<i32>} : memref<1x2x28x128xf32, #tpu.memory_space<vmem>>, vector<1x1x28x128xf32>,
    return
  }
  func.func @transform_0(%arg0: i32) -> (i32, i32, i32, i32) {
    %c0_i32 = arith.constant 0 : i32
    %c0_i32_0 = arith.constant 0 : i32
    %c0_i32_1 = arith.constant 0 : i32
    %c0_i32_2 = arith.constant 0 : i32
    return %arg0, %c0_i32, %c0_i32_0, %c0_i32_1 : i32, i32, i32, i32
  }
  func.func @transform_1(%arg0: i32) -> (i32, i32, i32, i32) {
    %c0_i32 = arith.constant 0 : i32
    %c0_i32_0 = arith.constant 0 : i32
    %c0_i32_1 = arith.constant 0 : i32
    %c0_i32_2 = arith.constant 0 : i32
    return %arg0, %c0_i32, %c0_i32_0, %c0_i32_1 : i32, i32, i32, i32
  }
  func.func @transform_2(%arg0: i32) -> (i32, i32) {
    %c0_i32 = arith.constant 0 : i32
    %c0_i32_0 = arith.constant 0 : i32
    %c0_i32_1 = arith.constant 0 : i32
    return %c0_i32, %c0_i32_0 : i32, i32
  }
  func.func @transform_3(%arg0: i32) -> (i32, i32) {
    %c0_i32 = arith.constant 0 : i32
    %c0_i32_0 = arith.constant 0 : i32
    %c0_i32_1 = arith.constant 0 : i32
    return %c0_i32, %c0_i32_0 : i32, i32
  }
  func.func @transform_4(%arg0: i32) -> (i32, i32, i32) {
    %c0_i32 = arith.constant 0 : i32
    %c0_i32_0 = arith.constant 0 : i32
    %c0_i32_1 = arith.constant 0 : i32
    return %arg0, %c0_i32, %c0_i32_0 : i32, i32, i32
  }
  func.func @transform_5(%arg0: i32) -> (i32, i32, i32) {
    %c0_i32 = arith.constant 0 : i32
    %c0_i32_0 = arith.constant 0 : i32
    %c0_i32_1 = arith.constant 0 : i32
    return %arg0, %c0_i32, %c0_i32_0 : i32, i32, i32
  }
  func.func @transform_6(%arg0: i32) -> (i32, i32, i32) {
    %c0_i32 = arith.constant 0 : i32
    %c0_i32_0 = arith.constant 0 : i32
    %c0_i32_1 = arith.constant 0 : i32
    return %arg0, %c0_i32, %c0_i32_0 : i32, i32, i32
  }
  func.func @transform_7(%arg0: i32) -> (i32, i32, i32) {
    %c0_i32 = arith.constant 0 : i32
    %c0_i32_0 = arith.constant 0 : i32
    %c0_i32_1 = arith.constant 0 : i32
    return %arg0, %c0_i32, %c0_i32_0 : i32, i32, i32
  }
  func.func @transform_8(%arg0: i32) -> (i32, i32, i32) {
    %c0_i32 = arith.constant 0 : i32
    %c0_i32_0 = arith.constant 0 : i32
    %c0_i32_1 = arith.constant 0 : i32
    return %arg0, %c0_i32, %c0_i32_0 : i32, i32, i32
  }
  func.func @transform_9(%arg0: i32) -> (i32, i32, i32) {
    %c0_i32 = arith.constant 0 : i32
    %c0_i32_0 = arith.constant 0 : i32
    %c0_i32_1 = arith.constant 0 : i32
    return %arg0, %c0_i32, %c0_i32_0 : i32, i32, i32
  }
  func.func @transform_10(%arg0: i32) -> (i32, i32, i32) {
    %c0_i32 = arith.constant 0 : i32
    %c0_i32_0 = arith.constant 0 : i32
    %c0_i32_1 = arith.constant 0 : i32
    return %arg0, %c0_i32, %c0_i32_0 : i32, i32, i32
  }
  func.func @transform_11(%arg0: i32) -> (i32, i32, i32) {
    %c0_i32 = arith.constant 0 : i32
    %c0_i32_0 = arith.constant 0 : i32
    %c0_i32_1 = arith.constant 0 : i32
    return %arg0, %c0_i32, %c0_i32_0 : i32, i32, i32
  }
  func.func @transform_12(%arg0: i32) -> (i32, i32, i32) {
    %c0_i32 = arith.constant 0 : i32
    %c0_i32_0 = arith.constant 0 : i32
    %c0_i32_1 = arith.constant 0 : i32
    return %arg0, %c0_i32, %c0_i32_0 : i32, i32, i32
  }
  func.func @transform_13(%arg0: i32) -> (i32, i32, i32) {
    %c0_i32 = arith.constant 0 : i32
    %c0_i32_0 = arith.constant 0 : i32
    %c0_i32_1 = arith.constant 0 : i32
    return %arg0, %c0_i32, %c0_i32_0 : i32, i32, i32
  }
  func.func @transform_14(%arg0: i32) -> (i32, i32, i32) {
    %c0_i32 = arith.constant 0 : i32
    %c0_i32_0 = arith.constant 0 : i32
    %c0_i32_1 = arith.constant 0 : i32
    return %arg0, %c0_i32, %c0_i32_0 : i32, i32, i32
  }
  func.func @transform_15(%arg0: i32) -> (i32, i32, i32) {
    %c0_i32 = arith.constant 0 : i32
    %c0_i32_0 = arith.constant 0 : i32
    %c0_i32_1 = arith.constant 0 : i32
    return %arg0, %c0_i32, %c0_i32_0 : i32, i32, i32
  }
  func.func @transform_16(%arg0: i32) -> (i32, i32, i32) {
    %c0_i32 = arith.constant 0 : i32
    %c0_i32_0 = arith.constant 0 : i32
    %c0_i32_1 = arith.constant 0 : i32
    return %arg0, %c0_i32, %c0_i32_0 : i32, i32, i32
  }
  func.func @transform_17(%arg0: i32) -> (i32, i32, i32) {
    %c0_i32 = arith.constant 0 : i32
    %c0_i32_0 = arith.constant 0 : i32
    %c0_i32_1 = arith.constant 0 : i32
    return %arg0, %c0_i32, %c0_i32_0 : i32, i32, i32
  }
  func.func @transform_18(%arg0: i32) -> (i32, i32, i32) {
    %c0_i32 = arith.constant 0 : i32
    %c0_i32_0 = arith.constant 0 : i32
    %c0_i32_1 = arith.constant 0 : i32
    return %arg0, %c0_i32, %c0_i32_0 : i32, i32, i32
  }
  func.func @transform_19(%arg0: i32) -> (i32, i32, i32, i32) {
    %c0_i32 = arith.constant 0 : i32
    %c0_i32_0 = arith.constant 0 : i32
    %c0_i32_1 = arith.constant 0 : i32
    %c0_i32_2 = arith.constant 0 : i32
    return %arg0, %c0_i32, %c0_i32_0, %c0_i32_1 : i32, i32, i32, i32
  }
}

module attributes {stable_mosaic.version = 11 : i64} {
  func.func @_tail_kernel(%arg0: i32, %arg1: memref<2xi32, #tpu.memory_space<smem>>, %arg2: memref<2x1x28x128xf32, #tpu.memory_space<vmem>>, %arg3: memref<1x32x12xf32, #tpu.memory_space<vmem>>, %arg4: memref<2x2x128xf32, #tpu.memory_space<vmem>>, %arg5: memref<2x3x128x64xbf16, #tpu.memory_space<vmem>>, %arg6: memref<2x1x64xf32, #tpu.memory_space<vmem>>, %arg7: memref<2x2x64xf32, #tpu.memory_space<vmem>>, %arg8: memref<2x3x64x12xbf16, #tpu.memory_space<vmem>>, %arg9: memref<2x1x12xf32, #tpu.memory_space<vmem>>, %arg10: memref<1x32x12xf32, #tpu.memory_space<vmem>>, %arg11: memref<32x128xf32, #tpu.memory_space<vmem>>, %arg12: memref<34x64xf32, #tpu.memory_space<vmem>>) attributes {dimension_semantics = [#tpu.dimension_semantics<parallel>], iteration_bounds = array<i64: 2>, scalar_prefetch = 1 : i64, scratch_operands = 2 : i64, tpu.core_type = #tpu.core_type<tc>, window_params = [{transform_indices = @transform_0, window_bounds = array<i64: 2, 1, 28, 128>}, {transform_indices = @transform_1, window_bounds = array<i64: 1, 32, 12>}, {pipeline_mode = #tpu.pipeline_mode<synchronous>, transform_indices = @transform_2, window_bounds = array<i64: 2, 2, 128>}, {pipeline_mode = #tpu.pipeline_mode<synchronous>, transform_indices = @transform_3, window_bounds = array<i64: 2, 3, 128, 64>}, {pipeline_mode = #tpu.pipeline_mode<synchronous>, transform_indices = @transform_4, window_bounds = array<i64: 2, 1, 64>}, {pipeline_mode = #tpu.pipeline_mode<synchronous>, transform_indices = @transform_5, window_bounds = array<i64: 2, 2, 64>}, {pipeline_mode = #tpu.pipeline_mode<synchronous>, transform_indices = @transform_6, window_bounds = array<i64: 2, 3, 64, 12>}, {pipeline_mode = #tpu.pipeline_mode<synchronous>, transform_indices = @transform_7, window_bounds = array<i64: 2, 1, 12>}, {transform_indices = @transform_8, window_bounds = array<i64: 1, 32, 12>}]} {
    %c0 = arith.constant 0 : index
    %c0_0 = arith.constant 0 : index
    %c0_1 = arith.constant 0 : index
    %c0_2 = arith.constant 0 : index
    %0 = vector.load %arg2[%c0, %c0_0, %c0_1, %c0_2] : memref<2x1x28x128xf32, #tpu.memory_space<vmem>>, vector<1x1x28x128xf32>
    %1 = vector.shape_cast %0 : vector<1x1x28x128xf32> to vector<28x128xf32>
    %c0_3 = arith.constant 0 : index
    %c0_4 = arith.constant 0 : index
    %c0_5 = arith.constant 0 : index
    %2 = vector.load %arg4[%c0_3, %c0_4, %c0_5] : memref<2x2x128xf32, #tpu.memory_space<vmem>>, vector<1x1x128xf32>
    %3 = vector.shape_cast %2 : vector<1x1x128xf32> to vector<1x128xf32>
    %c0_6 = arith.constant 0 : index
    %c1 = arith.constant 1 : index
    %c0_7 = arith.constant 0 : index
    %4 = vector.load %arg4[%c0_6, %c1, %c0_7] : memref<2x2x128xf32, #tpu.memory_space<vmem>>, vector<1x1x128xf32>
    %5 = vector.shape_cast %4 : vector<1x1x128xf32> to vector<1x128xf32>
    %cst = arith.constant dense<0.000000e+00> : vector<28xf32>
    %6 = vector.multi_reduction <add>, %1, %cst [1] : vector<28x128xf32> to vector<28xf32>
    %7 = vector.shape_cast %6 : vector<28xf32> to vector<28x1xf32>
    %cst_8 = arith.constant 1.280000e+02 : f32
    %8 = vector.broadcast %cst_8 : f32 to vector<28x1xf32>
    %9 = arith.divf %7, %8 : vector<28x1xf32>
    %10 = vector.broadcast %9 : vector<28x1xf32> to vector<28x128xf32>
    %11 = arith.subf %1, %10 : vector<28x128xf32>
    %12 = arith.mulf %11, %11 : vector<28x128xf32>
    %cst_9 = arith.constant dense<0.000000e+00> : vector<28xf32>
    %13 = vector.multi_reduction <add>, %12, %cst_9 [1] : vector<28x128xf32> to vector<28xf32>
    %14 = vector.shape_cast %13 : vector<28xf32> to vector<28x1xf32>
    %cst_10 = arith.constant 1.280000e+02 : f32
    %15 = vector.broadcast %cst_10 : f32 to vector<28x1xf32>
    %16 = arith.divf %14, %15 : vector<28x1xf32>
    %17 = vector.broadcast %9 : vector<28x1xf32> to vector<28x128xf32>
    %18 = arith.subf %1, %17 : vector<28x128xf32>
    %cst_11 = arith.constant 9.99999974E-6 : f32
    %19 = vector.broadcast %cst_11 : f32 to vector<28x1xf32>
    %20 = arith.addf %16, %19 : vector<28x1xf32>
    %21 = math.rsqrt %20 : vector<28x1xf32>
    %22 = vector.broadcast %21 : vector<28x1xf32> to vector<28x128xf32>
    %23 = arith.mulf %18, %22 : vector<28x128xf32>
    %24 = vector.broadcast %3 : vector<1x128xf32> to vector<28x128xf32>
    %25 = arith.mulf %23, %24 : vector<28x128xf32>
    %26 = vector.broadcast %5 : vector<1x128xf32> to vector<28x128xf32>
    %27 = arith.addf %25, %26 : vector<28x128xf32>
    %cst_12 = arith.constant 0.000000e+00 : f32
    %28 = vector.broadcast %cst_12 : f32 to vector<28x128xf32>
    %29 = arith.maximumf %27, %28 : vector<28x128xf32>
    %cst_13 = arith.constant 0.000000e+00 : f32
    %30 = vector.broadcast %cst_13 : f32 to vector<32x128xf32>
    %c0_14 = arith.constant 0 : index
    %c0_15 = arith.constant 0 : index
    %31 = vector.load %arg11[%c0_14, %c0_15] : memref<32x128xf32, #tpu.memory_space<vmem>>, vector<32x128xf32>
    tpu.vector_store %arg11[%c0_14, %c0_15], %30 {strides = array<i32>} : memref<32x128xf32, #tpu.memory_space<vmem>>, vector<32x128xf32>,
    %c2 = arith.constant 2 : index
    %c0_16 = arith.constant 0 : index
    %32 = vector.load %arg11[%c2, %c0_16] : memref<32x128xf32, #tpu.memory_space<vmem>>, vector<28x128xf32>
    tpu.vector_store %arg11[%c2, %c0_16], %29 {strides = array<i32>} : memref<32x128xf32, #tpu.memory_space<vmem>>, vector<28x128xf32>,
    %c0_17 = arith.constant 0 : index
    %c0_18 = arith.constant 0 : index
    %33 = vector.load %arg11[%c0_17, %c0_18] : memref<32x128xf32, #tpu.memory_space<vmem>>, vector<32x128xf32>
    %c0_19 = arith.constant 0 : index
    %c0_20 = arith.constant 0 : index
    %c0_21 = arith.constant 0 : index
    %c0_22 = arith.constant 0 : index
    %34 = vector.load %arg5[%c0_19, %c0_20, %c0_21, %c0_22] : memref<2x3x128x64xbf16, #tpu.memory_space<vmem>>, vector<1x1x128x64xbf16>
    %35 = vector.shape_cast %34 : vector<1x1x128x64xbf16> to vector<128x64xbf16>
    %c0_23 = arith.constant 0 : index
    %c1_24 = arith.constant 1 : index
    %c0_25 = arith.constant 0 : index
    %c0_26 = arith.constant 0 : index
    %36 = vector.load %arg5[%c0_23, %c1_24, %c0_25, %c0_26] : memref<2x3x128x64xbf16, #tpu.memory_space<vmem>>, vector<1x1x128x64xbf16>
    %37 = vector.shape_cast %36 : vector<1x1x128x64xbf16> to vector<128x64xbf16>
    %c0_27 = arith.constant 0 : index
    %c2_28 = arith.constant 2 : index
    %c0_29 = arith.constant 0 : index
    %c0_30 = arith.constant 0 : index
    %38 = vector.load %arg5[%c0_27, %c2_28, %c0_29, %c0_30] : memref<2x3x128x64xbf16, #tpu.memory_space<vmem>>, vector<1x1x128x64xbf16>
    %39 = vector.shape_cast %38 : vector<1x1x128x64xbf16> to vector<128x64xbf16>
    %c0_31 = arith.constant 0 : index
    %c0_32 = arith.constant 0 : index
    %c0_33 = arith.constant 0 : index
    %40 = vector.load %arg6[%c0_31, %c0_32, %c0_33] : memref<2x1x64xf32, #tpu.memory_space<vmem>>, vector<1x1x64xf32>
    %41 = vector.shape_cast %40 : vector<1x1x64xf32> to vector<1x64xf32>
    %42 = vector.extract_strided_slice %33 {offsets = [0, 0], sizes = [30, 128], strides = [1, 1]} : vector<32x128xf32> to vector<30x128xf32>
    %43 = arith.truncf %42 : vector<30x128xf32> to vector<30x128xbf16>
    %cst_34 = arith.constant dense<0.000000e+00> : vector<30x64xf32>
    %44 = tpu.matmul %43, %35, %cst_34 {dimension_numbers = #tpu.dot_dimension_numbers<[1], [0], [0], [1], [0, 0, 1, 1], [], []>} : vector<30x128xbf16>, vector<128x64xbf16>, vector<30x64xf32> -> vector<30x64xf32>
    %45 = vector.extract_strided_slice %33 {offsets = [1, 0], sizes = [30, 128], strides = [1, 1]} : vector<32x128xf32> to vector<30x128xf32>
    %46 = arith.truncf %45 : vector<30x128xf32> to vector<30x128xbf16>
    %cst_35 = arith.constant dense<0.000000e+00> : vector<30x64xf32>
    %47 = tpu.matmul %46, %37, %cst_35 {dimension_numbers = #tpu.dot_dimension_numbers<[1], [0], [0], [1], [0, 0, 1, 1], [], []>} : vector<30x128xbf16>, vector<128x64xbf16>, vector<30x64xf32> -> vector<30x64xf32>
    %48 = arith.addf %44, %47 : vector<30x64xf32>
    %49 = vector.extract_strided_slice %33 {offsets = [2, 0], sizes = [30, 128], strides = [1, 1]} : vector<32x128xf32> to vector<30x128xf32>
    %50 = arith.truncf %49 : vector<30x128xf32> to vector<30x128xbf16>
    %cst_36 = arith.constant dense<0.000000e+00> : vector<30x64xf32>
    %51 = tpu.matmul %50, %39, %cst_36 {dimension_numbers = #tpu.dot_dimension_numbers<[1], [0], [0], [1], [0, 0, 1, 1], [], []>} : vector<30x128xbf16>, vector<128x64xbf16>, vector<30x64xf32> -> vector<30x64xf32>
    %52 = arith.addf %48, %51 : vector<30x64xf32>
    %53 = vector.broadcast %41 : vector<1x64xf32> to vector<30x64xf32>
    %54 = arith.addf %52, %53 : vector<30x64xf32>
    %c0_37 = arith.constant 0 : index
    %c0_38 = arith.constant 0 : index
    %c0_39 = arith.constant 0 : index
    %55 = vector.load %arg7[%c0_37, %c0_38, %c0_39] : memref<2x2x64xf32, #tpu.memory_space<vmem>>, vector<1x1x64xf32>
    %56 = vector.shape_cast %55 : vector<1x1x64xf32> to vector<1x64xf32>
    %c0_40 = arith.constant 0 : index
    %c1_41 = arith.constant 1 : index
    %c0_42 = arith.constant 0 : index
    %57 = vector.load %arg7[%c0_40, %c1_41, %c0_42] : memref<2x2x64xf32, #tpu.memory_space<vmem>>, vector<1x1x64xf32>
    %58 = vector.shape_cast %57 : vector<1x1x64xf32> to vector<1x64xf32>
    %cst_43 = arith.constant dense<0.000000e+00> : vector<30xf32>
    %59 = vector.multi_reduction <add>, %54, %cst_43 [1] : vector<30x64xf32> to vector<30xf32>
    %60 = vector.shape_cast %59 : vector<30xf32> to vector<30x1xf32>
    %cst_44 = arith.constant 6.400000e+01 : f32
    %61 = vector.broadcast %cst_44 : f32 to vector<30x1xf32>
    %62 = arith.divf %60, %61 : vector<30x1xf32>
    %63 = vector.broadcast %62 : vector<30x1xf32> to vector<30x64xf32>
    %64 = arith.subf %54, %63 : vector<30x64xf32>
    %65 = arith.mulf %64, %64 : vector<30x64xf32>
    %cst_45 = arith.constant dense<0.000000e+00> : vector<30xf32>
    %66 = vector.multi_reduction <add>, %65, %cst_45 [1] : vector<30x64xf32> to vector<30xf32>
    %67 = vector.shape_cast %66 : vector<30xf32> to vector<30x1xf32>
    %cst_46 = arith.constant 6.400000e+01 : f32
    %68 = vector.broadcast %cst_46 : f32 to vector<30x1xf32>
    %69 = arith.divf %67, %68 : vector<30x1xf32>
    %70 = vector.broadcast %62 : vector<30x1xf32> to vector<30x64xf32>
    %71 = arith.subf %54, %70 : vector<30x64xf32>
    %cst_47 = arith.constant 9.99999974E-6 : f32
    %72 = vector.broadcast %cst_47 : f32 to vector<30x1xf32>
    %73 = arith.addf %69, %72 : vector<30x1xf32>
    %74 = math.rsqrt %73 : vector<30x1xf32>
    %75 = vector.broadcast %74 : vector<30x1xf32> to vector<30x64xf32>
    %76 = arith.mulf %71, %75 : vector<30x64xf32>
    %77 = vector.broadcast %56 : vector<1x64xf32> to vector<30x64xf32>
    %78 = arith.mulf %76, %77 : vector<30x64xf32>
    %79 = vector.broadcast %58 : vector<1x64xf32> to vector<30x64xf32>
    %80 = arith.addf %78, %79 : vector<30x64xf32>
    %cst_48 = arith.constant 0.000000e+00 : f32
    %81 = vector.broadcast %cst_48 : f32 to vector<30x64xf32>
    %82 = arith.maximumf %80, %81 : vector<30x64xf32>
    %cst_49 = arith.constant 0.000000e+00 : f32
    %83 = vector.broadcast %cst_49 : f32 to vector<34x64xf32>
    %c0_50 = arith.constant 0 : index
    %c0_51 = arith.constant 0 : index
    %84 = vector.load %arg12[%c0_50, %c0_51] : memref<34x64xf32, #tpu.memory_space<vmem>>, vector<34x64xf32>
    tpu.vector_store %arg12[%c0_50, %c0_51], %83 {strides = array<i32>} : memref<34x64xf32, #tpu.memory_space<vmem>>, vector<34x64xf32>,
    %c2_52 = arith.constant 2 : index
    %c0_53 = arith.constant 0 : index
    %85 = vector.load %arg12[%c2_52, %c0_53] : memref<34x64xf32, #tpu.memory_space<vmem>>, vector<30x64xf32>
    tpu.vector_store %arg12[%c2_52, %c0_53], %82 {strides = array<i32>} : memref<34x64xf32, #tpu.memory_space<vmem>>, vector<30x64xf32>,
    %c0_54 = arith.constant 0 : index
    %c0_55 = arith.constant 0 : index
    %86 = vector.load %arg12[%c0_54, %c0_55] : memref<34x64xf32, #tpu.memory_space<vmem>>, vector<34x64xf32>
    %c0_56 = arith.constant 0 : index
    %c0_57 = arith.constant 0 : index
    %c0_58 = arith.constant 0 : index
    %c0_59 = arith.constant 0 : index
    %87 = vector.load %arg8[%c0_56, %c0_57, %c0_58, %c0_59] : memref<2x3x64x12xbf16, #tpu.memory_space<vmem>>, vector<1x1x64x12xbf16>
    %88 = vector.shape_cast %87 : vector<1x1x64x12xbf16> to vector<64x12xbf16>
    %c0_60 = arith.constant 0 : index
    %c1_61 = arith.constant 1 : index
    %c0_62 = arith.constant 0 : index
    %c0_63 = arith.constant 0 : index
    %89 = vector.load %arg8[%c0_60, %c1_61, %c0_62, %c0_63] : memref<2x3x64x12xbf16, #tpu.memory_space<vmem>>, vector<1x1x64x12xbf16>
    %90 = vector.shape_cast %89 : vector<1x1x64x12xbf16> to vector<64x12xbf16>
    %c0_64 = arith.constant 0 : index
    %c2_65 = arith.constant 2 : index
    %c0_66 = arith.constant 0 : index
    %c0_67 = arith.constant 0 : index
    %91 = vector.load %arg8[%c0_64, %c2_65, %c0_66, %c0_67] : memref<2x3x64x12xbf16, #tpu.memory_space<vmem>>, vector<1x1x64x12xbf16>
    %92 = vector.shape_cast %91 : vector<1x1x64x12xbf16> to vector<64x12xbf16>
    %c0_68 = arith.constant 0 : index
    %c0_69 = arith.constant 0 : index
    %c0_70 = arith.constant 0 : index
    %93 = vector.load %arg9[%c0_68, %c0_69, %c0_70] : memref<2x1x12xf32, #tpu.memory_space<vmem>>, vector<1x1x12xf32>
    %94 = vector.shape_cast %93 : vector<1x1x12xf32> to vector<1x12xf32>
    %95 = vector.extract_strided_slice %86 {offsets = [0, 0], sizes = [32, 64], strides = [1, 1]} : vector<34x64xf32> to vector<32x64xf32>
    %96 = arith.truncf %95 : vector<32x64xf32> to vector<32x64xbf16>
    %cst_71 = arith.constant dense<0.000000e+00> : vector<32x12xf32>
    %97 = tpu.matmul %96, %88, %cst_71 {dimension_numbers = #tpu.dot_dimension_numbers<[1], [0], [0], [1], [0, 0, 1, 1], [], []>} : vector<32x64xbf16>, vector<64x12xbf16>, vector<32x12xf32> -> vector<32x12xf32>
    %98 = vector.extract_strided_slice %86 {offsets = [1, 0], sizes = [32, 64], strides = [1, 1]} : vector<34x64xf32> to vector<32x64xf32>
    %99 = arith.truncf %98 : vector<32x64xf32> to vector<32x64xbf16>
    %cst_72 = arith.constant dense<0.000000e+00> : vector<32x12xf32>
    %100 = tpu.matmul %99, %90, %cst_72 {dimension_numbers = #tpu.dot_dimension_numbers<[1], [0], [0], [1], [0, 0, 1, 1], [], []>} : vector<32x64xbf16>, vector<64x12xbf16>, vector<32x12xf32> -> vector<32x12xf32>
    %101 = arith.addf %97, %100 : vector<32x12xf32>
    %102 = vector.extract_strided_slice %86 {offsets = [2, 0], sizes = [32, 64], strides = [1, 1]} : vector<34x64xf32> to vector<32x64xf32>
    %103 = arith.truncf %102 : vector<32x64xf32> to vector<32x64xbf16>
    %cst_73 = arith.constant dense<0.000000e+00> : vector<32x12xf32>
    %104 = tpu.matmul %103, %92, %cst_73 {dimension_numbers = #tpu.dot_dimension_numbers<[1], [0], [0], [1], [0, 0, 1, 1], [], []>} : vector<32x64xbf16>, vector<64x12xbf16>, vector<32x12xf32> -> vector<32x12xf32>
    %105 = arith.addf %101, %104 : vector<32x12xf32>
    %106 = vector.broadcast %94 : vector<1x12xf32> to vector<32x12xf32>
    %107 = arith.addf %105, %106 : vector<32x12xf32>
    %c1_74 = arith.constant 1 : index
    %c0_75 = arith.constant 0 : index
    %c0_76 = arith.constant 0 : index
    %c0_77 = arith.constant 0 : index
    %108 = vector.load %arg2[%c1_74, %c0_75, %c0_76, %c0_77] : memref<2x1x28x128xf32, #tpu.memory_space<vmem>>, vector<1x1x28x128xf32>
    %109 = vector.shape_cast %108 : vector<1x1x28x128xf32> to vector<28x128xf32>
    %c1_78 = arith.constant 1 : index
    %c0_79 = arith.constant 0 : index
    %c0_80 = arith.constant 0 : index
    %110 = vector.load %arg4[%c1_78, %c0_79, %c0_80] : memref<2x2x128xf32, #tpu.memory_space<vmem>>, vector<1x1x128xf32>
    %111 = vector.shape_cast %110 : vector<1x1x128xf32> to vector<1x128xf32>
    %c1_81 = arith.constant 1 : index
    %c1_82 = arith.constant 1 : index
    %c0_83 = arith.constant 0 : index
    %112 = vector.load %arg4[%c1_81, %c1_82, %c0_83] : memref<2x2x128xf32, #tpu.memory_space<vmem>>, vector<1x1x128xf32>
    %113 = vector.shape_cast %112 : vector<1x1x128xf32> to vector<1x128xf32>
    %cst_84 = arith.constant dense<0.000000e+00> : vector<28xf32>
    %114 = vector.multi_reduction <add>, %109, %cst_84 [1] : vector<28x128xf32> to vector<28xf32>
    %115 = vector.shape_cast %114 : vector<28xf32> to vector<28x1xf32>
    %cst_85 = arith.constant 1.280000e+02 : f32
    %116 = vector.broadcast %cst_85 : f32 to vector<28x1xf32>
    %117 = arith.divf %115, %116 : vector<28x1xf32>
    %118 = vector.broadcast %117 : vector<28x1xf32> to vector<28x128xf32>
    %119 = arith.subf %109, %118 : vector<28x128xf32>
    %120 = arith.mulf %119, %119 : vector<28x128xf32>
    %cst_86 = arith.constant dense<0.000000e+00> : vector<28xf32>
    %121 = vector.multi_reduction <add>, %120, %cst_86 [1] : vector<28x128xf32> to vector<28xf32>
    %122 = vector.shape_cast %121 : vector<28xf32> to vector<28x1xf32>
    %cst_87 = arith.constant 1.280000e+02 : f32
    %123 = vector.broadcast %cst_87 : f32 to vector<28x1xf32>
    %124 = arith.divf %122, %123 : vector<28x1xf32>
    %125 = vector.broadcast %117 : vector<28x1xf32> to vector<28x128xf32>
    %126 = arith.subf %109, %125 : vector<28x128xf32>
    %cst_88 = arith.constant 9.99999974E-6 : f32
    %127 = vector.broadcast %cst_88 : f32 to vector<28x1xf32>
    %128 = arith.addf %124, %127 : vector<28x1xf32>
    %129 = math.rsqrt %128 : vector<28x1xf32>
    %130 = vector.broadcast %129 : vector<28x1xf32> to vector<28x128xf32>
    %131 = arith.mulf %126, %130 : vector<28x128xf32>
    %132 = vector.broadcast %111 : vector<1x128xf32> to vector<28x128xf32>
    %133 = arith.mulf %131, %132 : vector<28x128xf32>
    %134 = vector.broadcast %113 : vector<1x128xf32> to vector<28x128xf32>
    %135 = arith.addf %133, %134 : vector<28x128xf32>
    %cst_89 = arith.constant 0.000000e+00 : f32
    %136 = vector.broadcast %cst_89 : f32 to vector<28x128xf32>
    %137 = arith.maximumf %135, %136 : vector<28x128xf32>
    %cst_90 = arith.constant 0.000000e+00 : f32
    %138 = vector.broadcast %cst_90 : f32 to vector<32x128xf32>
    %c0_91 = arith.constant 0 : index
    %c0_92 = arith.constant 0 : index
    %139 = vector.load %arg11[%c0_91, %c0_92] : memref<32x128xf32, #tpu.memory_space<vmem>>, vector<32x128xf32>
    tpu.vector_store %arg11[%c0_91, %c0_92], %138 {strides = array<i32>} : memref<32x128xf32, #tpu.memory_space<vmem>>, vector<32x128xf32>,
    %c2_93 = arith.constant 2 : index
    %c0_94 = arith.constant 0 : index
    %140 = vector.load %arg11[%c2_93, %c0_94] : memref<32x128xf32, #tpu.memory_space<vmem>>, vector<28x128xf32>
    tpu.vector_store %arg11[%c2_93, %c0_94], %137 {strides = array<i32>} : memref<32x128xf32, #tpu.memory_space<vmem>>, vector<28x128xf32>,
    %c0_95 = arith.constant 0 : index
    %c0_96 = arith.constant 0 : index
    %141 = vector.load %arg11[%c0_95, %c0_96] : memref<32x128xf32, #tpu.memory_space<vmem>>, vector<32x128xf32>
    %c1_97 = arith.constant 1 : index
    %c0_98 = arith.constant 0 : index
    %c0_99 = arith.constant 0 : index
    %c0_100 = arith.constant 0 : index
    %142 = vector.load %arg5[%c1_97, %c0_98, %c0_99, %c0_100] : memref<2x3x128x64xbf16, #tpu.memory_space<vmem>>, vector<1x1x128x64xbf16>
    %143 = vector.shape_cast %142 : vector<1x1x128x64xbf16> to vector<128x64xbf16>
    %c1_101 = arith.constant 1 : index
    %c1_102 = arith.constant 1 : index
    %c0_103 = arith.constant 0 : index
    %c0_104 = arith.constant 0 : index
    %144 = vector.load %arg5[%c1_101, %c1_102, %c0_103, %c0_104] : memref<2x3x128x64xbf16, #tpu.memory_space<vmem>>, vector<1x1x128x64xbf16>
    %145 = vector.shape_cast %144 : vector<1x1x128x64xbf16> to vector<128x64xbf16>
    %c1_105 = arith.constant 1 : index
    %c2_106 = arith.constant 2 : index
    %c0_107 = arith.constant 0 : index
    %c0_108 = arith.constant 0 : index
    %146 = vector.load %arg5[%c1_105, %c2_106, %c0_107, %c0_108] : memref<2x3x128x64xbf16, #tpu.memory_space<vmem>>, vector<1x1x128x64xbf16>
    %147 = vector.shape_cast %146 : vector<1x1x128x64xbf16> to vector<128x64xbf16>
    %c1_109 = arith.constant 1 : index
    %c0_110 = arith.constant 0 : index
    %c0_111 = arith.constant 0 : index
    %148 = vector.load %arg6[%c1_109, %c0_110, %c0_111] : memref<2x1x64xf32, #tpu.memory_space<vmem>>, vector<1x1x64xf32>
    %149 = vector.shape_cast %148 : vector<1x1x64xf32> to vector<1x64xf32>
    %150 = vector.extract_strided_slice %141 {offsets = [0, 0], sizes = [30, 128], strides = [1, 1]} : vector<32x128xf32> to vector<30x128xf32>
    %151 = arith.truncf %150 : vector<30x128xf32> to vector<30x128xbf16>
    %cst_112 = arith.constant dense<0.000000e+00> : vector<30x64xf32>
    %152 = tpu.matmul %151, %143, %cst_112 {dimension_numbers = #tpu.dot_dimension_numbers<[1], [0], [0], [1], [0, 0, 1, 1], [], []>} : vector<30x128xbf16>, vector<128x64xbf16>, vector<30x64xf32> -> vector<30x64xf32>
    %153 = vector.extract_strided_slice %141 {offsets = [1, 0], sizes = [30, 128], strides = [1, 1]} : vector<32x128xf32> to vector<30x128xf32>
    %154 = arith.truncf %153 : vector<30x128xf32> to vector<30x128xbf16>
    %cst_113 = arith.constant dense<0.000000e+00> : vector<30x64xf32>
    %155 = tpu.matmul %154, %145, %cst_113 {dimension_numbers = #tpu.dot_dimension_numbers<[1], [0], [0], [1], [0, 0, 1, 1], [], []>} : vector<30x128xbf16>, vector<128x64xbf16>, vector<30x64xf32> -> vector<30x64xf32>
    %156 = arith.addf %152, %155 : vector<30x64xf32>
    %157 = vector.extract_strided_slice %141 {offsets = [2, 0], sizes = [30, 128], strides = [1, 1]} : vector<32x128xf32> to vector<30x128xf32>
    %158 = arith.truncf %157 : vector<30x128xf32> to vector<30x128xbf16>
    %cst_114 = arith.constant dense<0.000000e+00> : vector<30x64xf32>
    %159 = tpu.matmul %158, %147, %cst_114 {dimension_numbers = #tpu.dot_dimension_numbers<[1], [0], [0], [1], [0, 0, 1, 1], [], []>} : vector<30x128xbf16>, vector<128x64xbf16>, vector<30x64xf32> -> vector<30x64xf32>
    %160 = arith.addf %156, %159 : vector<30x64xf32>
    %161 = vector.broadcast %149 : vector<1x64xf32> to vector<30x64xf32>
    %162 = arith.addf %160, %161 : vector<30x64xf32>
    %c1_115 = arith.constant 1 : index
    %c0_116 = arith.constant 0 : index
    %c0_117 = arith.constant 0 : index
    %163 = vector.load %arg7[%c1_115, %c0_116, %c0_117] : memref<2x2x64xf32, #tpu.memory_space<vmem>>, vector<1x1x64xf32>
    %164 = vector.shape_cast %163 : vector<1x1x64xf32> to vector<1x64xf32>
    %c1_118 = arith.constant 1 : index
    %c1_119 = arith.constant 1 : index
    %c0_120 = arith.constant 0 : index
    %165 = vector.load %arg7[%c1_118, %c1_119, %c0_120] : memref<2x2x64xf32, #tpu.memory_space<vmem>>, vector<1x1x64xf32>
    %166 = vector.shape_cast %165 : vector<1x1x64xf32> to vector<1x64xf32>
    %cst_121 = arith.constant dense<0.000000e+00> : vector<30xf32>
    %167 = vector.multi_reduction <add>, %162, %cst_121 [1] : vector<30x64xf32> to vector<30xf32>
    %168 = vector.shape_cast %167 : vector<30xf32> to vector<30x1xf32>
    %cst_122 = arith.constant 6.400000e+01 : f32
    %169 = vector.broadcast %cst_122 : f32 to vector<30x1xf32>
    %170 = arith.divf %168, %169 : vector<30x1xf32>
    %171 = vector.broadcast %170 : vector<30x1xf32> to vector<30x64xf32>
    %172 = arith.subf %162, %171 : vector<30x64xf32>
    %173 = arith.mulf %172, %172 : vector<30x64xf32>
    %cst_123 = arith.constant dense<0.000000e+00> : vector<30xf32>
    %174 = vector.multi_reduction <add>, %173, %cst_123 [1] : vector<30x64xf32> to vector<30xf32>
    %175 = vector.shape_cast %174 : vector<30xf32> to vector<30x1xf32>
    %cst_124 = arith.constant 6.400000e+01 : f32
    %176 = vector.broadcast %cst_124 : f32 to vector<30x1xf32>
    %177 = arith.divf %175, %176 : vector<30x1xf32>
    %178 = vector.broadcast %170 : vector<30x1xf32> to vector<30x64xf32>
    %179 = arith.subf %162, %178 : vector<30x64xf32>
    %cst_125 = arith.constant 9.99999974E-6 : f32
    %180 = vector.broadcast %cst_125 : f32 to vector<30x1xf32>
    %181 = arith.addf %177, %180 : vector<30x1xf32>
    %182 = math.rsqrt %181 : vector<30x1xf32>
    %183 = vector.broadcast %182 : vector<30x1xf32> to vector<30x64xf32>
    %184 = arith.mulf %179, %183 : vector<30x64xf32>
    %185 = vector.broadcast %164 : vector<1x64xf32> to vector<30x64xf32>
    %186 = arith.mulf %184, %185 : vector<30x64xf32>
    %187 = vector.broadcast %166 : vector<1x64xf32> to vector<30x64xf32>
    %188 = arith.addf %186, %187 : vector<30x64xf32>
    %cst_126 = arith.constant 0.000000e+00 : f32
    %189 = vector.broadcast %cst_126 : f32 to vector<30x64xf32>
    %190 = arith.maximumf %188, %189 : vector<30x64xf32>
    %cst_127 = arith.constant 0.000000e+00 : f32
    %191 = vector.broadcast %cst_127 : f32 to vector<34x64xf32>
    %c0_128 = arith.constant 0 : index
    %c0_129 = arith.constant 0 : index
    %192 = vector.load %arg12[%c0_128, %c0_129] : memref<34x64xf32, #tpu.memory_space<vmem>>, vector<34x64xf32>
    tpu.vector_store %arg12[%c0_128, %c0_129], %191 {strides = array<i32>} : memref<34x64xf32, #tpu.memory_space<vmem>>, vector<34x64xf32>,
    %c2_130 = arith.constant 2 : index
    %c0_131 = arith.constant 0 : index
    %193 = vector.load %arg12[%c2_130, %c0_131] : memref<34x64xf32, #tpu.memory_space<vmem>>, vector<30x64xf32>
    tpu.vector_store %arg12[%c2_130, %c0_131], %190 {strides = array<i32>} : memref<34x64xf32, #tpu.memory_space<vmem>>, vector<30x64xf32>,
    %c0_132 = arith.constant 0 : index
    %c0_133 = arith.constant 0 : index
    %194 = vector.load %arg12[%c0_132, %c0_133] : memref<34x64xf32, #tpu.memory_space<vmem>>, vector<34x64xf32>
    %c1_134 = arith.constant 1 : index
    %c0_135 = arith.constant 0 : index
    %c0_136 = arith.constant 0 : index
    %c0_137 = arith.constant 0 : index
    %195 = vector.load %arg8[%c1_134, %c0_135, %c0_136, %c0_137] : memref<2x3x64x12xbf16, #tpu.memory_space<vmem>>, vector<1x1x64x12xbf16>
    %196 = vector.shape_cast %195 : vector<1x1x64x12xbf16> to vector<64x12xbf16>
    %c1_138 = arith.constant 1 : index
    %c1_139 = arith.constant 1 : index
    %c0_140 = arith.constant 0 : index
    %c0_141 = arith.constant 0 : index
    %197 = vector.load %arg8[%c1_138, %c1_139, %c0_140, %c0_141] : memref<2x3x64x12xbf16, #tpu.memory_space<vmem>>, vector<1x1x64x12xbf16>
    %198 = vector.shape_cast %197 : vector<1x1x64x12xbf16> to vector<64x12xbf16>
    %c1_142 = arith.constant 1 : index
    %c2_143 = arith.constant 2 : index
    %c0_144 = arith.constant 0 : index
    %c0_145 = arith.constant 0 : index
    %199 = vector.load %arg8[%c1_142, %c2_143, %c0_144, %c0_145] : memref<2x3x64x12xbf16, #tpu.memory_space<vmem>>, vector<1x1x64x12xbf16>
    %200 = vector.shape_cast %199 : vector<1x1x64x12xbf16> to vector<64x12xbf16>
    %c1_146 = arith.constant 1 : index
    %c0_147 = arith.constant 0 : index
    %c0_148 = arith.constant 0 : index
    %201 = vector.load %arg9[%c1_146, %c0_147, %c0_148] : memref<2x1x12xf32, #tpu.memory_space<vmem>>, vector<1x1x12xf32>
    %202 = vector.shape_cast %201 : vector<1x1x12xf32> to vector<1x12xf32>
    %203 = vector.extract_strided_slice %194 {offsets = [0, 0], sizes = [32, 64], strides = [1, 1]} : vector<34x64xf32> to vector<32x64xf32>
    %204 = arith.truncf %203 : vector<32x64xf32> to vector<32x64xbf16>
    %cst_149 = arith.constant dense<0.000000e+00> : vector<32x12xf32>
    %205 = tpu.matmul %204, %196, %cst_149 {dimension_numbers = #tpu.dot_dimension_numbers<[1], [0], [0], [1], [0, 0, 1, 1], [], []>} : vector<32x64xbf16>, vector<64x12xbf16>, vector<32x12xf32> -> vector<32x12xf32>
    %206 = vector.extract_strided_slice %194 {offsets = [1, 0], sizes = [32, 64], strides = [1, 1]} : vector<34x64xf32> to vector<32x64xf32>
    %207 = arith.truncf %206 : vector<32x64xf32> to vector<32x64xbf16>
    %cst_150 = arith.constant dense<0.000000e+00> : vector<32x12xf32>
    %208 = tpu.matmul %207, %198, %cst_150 {dimension_numbers = #tpu.dot_dimension_numbers<[1], [0], [0], [1], [0, 0, 1, 1], [], []>} : vector<32x64xbf16>, vector<64x12xbf16>, vector<32x12xf32> -> vector<32x12xf32>
    %209 = arith.addf %205, %208 : vector<32x12xf32>
    %210 = vector.extract_strided_slice %194 {offsets = [2, 0], sizes = [32, 64], strides = [1, 1]} : vector<34x64xf32> to vector<32x64xf32>
    %211 = arith.truncf %210 : vector<32x64xf32> to vector<32x64xbf16>
    %cst_151 = arith.constant dense<0.000000e+00> : vector<32x12xf32>
    %212 = tpu.matmul %211, %200, %cst_151 {dimension_numbers = #tpu.dot_dimension_numbers<[1], [0], [0], [1], [0, 0, 1, 1], [], []>} : vector<32x64xbf16>, vector<64x12xbf16>, vector<32x12xf32> -> vector<32x12xf32>
    %213 = arith.addf %209, %212 : vector<32x12xf32>
    %214 = vector.broadcast %202 : vector<1x12xf32> to vector<32x12xf32>
    %215 = arith.addf %213, %214 : vector<32x12xf32>
    %216 = arith.addf %107, %215 : vector<32x12xf32>
    %217 = math.absf %216 : vector<32x12xf32>
    %cst_152 = arith.constant dense<0.000000e+00> : vector<32xf32>
    %218 = vector.multi_reduction <add>, %217, %cst_152 [1] : vector<32x12xf32> to vector<32xf32>
    %219 = vector.shape_cast %218 : vector<32xf32> to vector<32x1xf32>
    %cst_153 = arith.constant 1.200000e+01 : f32
    %220 = vector.broadcast %cst_153 : f32 to vector<32x1xf32>
    %221 = arith.divf %219, %220 : vector<32x1xf32>
    %cst_154 = arith.constant dense<0.000000e+00> : vector<1xf32>
    %222 = vector.multi_reduction <add>, %221, %cst_154 [0] : vector<32x1xf32> to vector<1xf32>
    %223 = vector.shape_cast %222 : vector<1xf32> to vector<1x1xf32>
    %cst_155 = arith.constant 3.200000e+01 : f32
    %224 = vector.broadcast %cst_155 : f32 to vector<1x1xf32>
    %225 = arith.divf %223, %224 : vector<1x1xf32>
    %cst_156 = arith.constant 9.99999974E-5 : f32
    %226 = vector.broadcast %cst_156 : f32 to vector<1x1xf32>
    %227 = arith.addf %225, %226 : vector<1x1xf32>
    %cst_157 = arith.constant 5.000000e-02 : f32
    %228 = vector.broadcast %cst_157 : f32 to vector<1x1xf32>
    %229 = arith.divf %228, %227 : vector<1x1xf32>
    %230 = vector.broadcast %229 : vector<1x1xf32> to vector<32x12xf32>
    %231 = arith.mulf %216, %230 : vector<32x12xf32>
    %232 = tpu.iota {dimensions = array<i32: 1>} : vector<32x12xi32>
    %c5_i32 = arith.constant 5 : i32
    %233 = vector.broadcast %c5_i32 : i32 to vector<32x12xi32>
    %234 = arith.cmpi eq, %232, %233 : vector<32x12xi32>
    %c8_i32 = arith.constant 8 : i32
    %235 = vector.broadcast %c8_i32 : i32 to vector<32x12xi32>
    %236 = arith.cmpi eq, %232, %235 : vector<32x12xi32>
    %237 = arith.ori %234, %236 : vector<32x12xi1>
    %c11_i32 = arith.constant 11 : i32
    %238 = vector.broadcast %c11_i32 : i32 to vector<32x12xi32>
    %239 = arith.cmpi eq, %232, %238 : vector<32x12xi32>
    %240 = arith.ori %237, %239 : vector<32x12xi1>
    %cst_158 = arith.constant 0.000000e+00 : f32
    %241 = vector.broadcast %cst_158 : f32 to vector<32x12xf32>
    %242 = arith.select %240, %241, %231 : vector<32x12xi1>, vector<32x12xf32>
    %c0_159 = arith.constant 0 : index
    %c0_160 = arith.constant 0 : index
    %c0_161 = arith.constant 0 : index
    %243 = vector.load %arg3[%c0_159, %c0_160, %c0_161] : memref<1x32x12xf32, #tpu.memory_space<vmem>>, vector<1x32x12xf32>
    %244 = vector.shape_cast %243 : vector<1x32x12xf32> to vector<32x12xf32>
    %245 = arith.addf %244, %242 : vector<32x12xf32>
    %246 = tpu.iota {dimensions = array<i32: 0>} : vector<32x12xi32>
    %247 = arith.index_cast %arg0 : i32 to index
    %248 = memref.load %arg1[%247] : memref<2xi32, #tpu.memory_space<smem>>
    %249 = vector.broadcast %248 : i32 to vector<32x12xi32>
    %250 = arith.cmpi sge, %246, %249 : vector<32x12xi32>
    %cst_162 = arith.constant -1.000000e+02 : f32
    %251 = vector.broadcast %cst_162 : f32 to vector<32x12xf32>
    %252 = arith.select %250, %251, %245 : vector<32x12xi1>, vector<32x12xf32>
    %c0_163 = arith.constant 0 : index
    %c0_164 = arith.constant 0 : index
    %c0_165 = arith.constant 0 : index
    %253 = vector.load %arg10[%c0_163, %c0_164, %c0_165] : memref<1x32x12xf32, #tpu.memory_space<vmem>>, vector<1x32x12xf32>
    %254 = vector.shape_cast %253 : vector<1x32x12xf32> to vector<32x12xf32>
    %255 = vector.shape_cast %252 : vector<32x12xf32> to vector<1x32x12xf32>
    tpu.vector_store %arg10[%c0_163, %c0_164, %c0_165], %255 {strides = array<i32>} : memref<1x32x12xf32, #tpu.memory_space<vmem>>, vector<1x32x12xf32>,
    return
  }
  func.func @transform_0(%arg0: i32, %arg1: memref<2xi32, #tpu.memory_space<smem>>) -> (i32, i32, i32, i32) {
    %c0_i32 = arith.constant 0 : i32
    %c0_i32_0 = arith.constant 0 : i32
    %c0_i32_1 = arith.constant 0 : i32
    %c0_i32_2 = arith.constant 0 : i32
    return %c0_i32, %arg0, %c0_i32_0, %c0_i32_1 : i32, i32, i32, i32
  }
  func.func @transform_1(%arg0: i32, %arg1: memref<2xi32, #tpu.memory_space<smem>>) -> (i32, i32, i32) {
    %c0_i32 = arith.constant 0 : i32
    %c0_i32_0 = arith.constant 0 : i32
    %c0_i32_1 = arith.constant 0 : i32
    return %arg0, %c0_i32, %c0_i32_0 : i32, i32, i32
  }
  func.func @transform_2(%arg0: i32, %arg1: memref<2xi32, #tpu.memory_space<smem>>) -> (i32, i32, i32) {
    %c0_i32 = arith.constant 0 : i32
    %c0_i32_0 = arith.constant 0 : i32
    %c0_i32_1 = arith.constant 0 : i32
    %c0_i32_2 = arith.constant 0 : i32
    return %c0_i32, %c0_i32_0, %c0_i32_1 : i32, i32, i32
  }
  func.func @transform_3(%arg0: i32, %arg1: memref<2xi32, #tpu.memory_space<smem>>) -> (i32, i32, i32, i32) {
    %c0_i32 = arith.constant 0 : i32
    %c0_i32_0 = arith.constant 0 : i32
    %c0_i32_1 = arith.constant 0 : i32
    %c0_i32_2 = arith.constant 0 : i32
    %c0_i32_3 = arith.constant 0 : i32
    return %c0_i32, %c0_i32_0, %c0_i32_1, %c0_i32_2 : i32, i32, i32, i32
  }
  func.func @transform_4(%arg0: i32, %arg1: memref<2xi32, #tpu.memory_space<smem>>) -> (i32, i32, i32) {
    %c0_i32 = arith.constant 0 : i32
    %c0_i32_0 = arith.constant 0 : i32
    %c0_i32_1 = arith.constant 0 : i32
    %c0_i32_2 = arith.constant 0 : i32
    return %c0_i32, %c0_i32_0, %c0_i32_1 : i32, i32, i32
  }
  func.func @transform_5(%arg0: i32, %arg1: memref<2xi32, #tpu.memory_space<smem>>) -> (i32, i32, i32) {
    %c0_i32 = arith.constant 0 : i32
    %c0_i32_0 = arith.constant 0 : i32
    %c0_i32_1 = arith.constant 0 : i32
    %c0_i32_2 = arith.constant 0 : i32
    return %c0_i32, %c0_i32_0, %c0_i32_1 : i32, i32, i32
  }
  func.func @transform_6(%arg0: i32, %arg1: memref<2xi32, #tpu.memory_space<smem>>) -> (i32, i32, i32, i32) {
    %c0_i32 = arith.constant 0 : i32
    %c0_i32_0 = arith.constant 0 : i32
    %c0_i32_1 = arith.constant 0 : i32
    %c0_i32_2 = arith.constant 0 : i32
    %c0_i32_3 = arith.constant 0 : i32
    return %c0_i32, %c0_i32_0, %c0_i32_1, %c0_i32_2 : i32, i32, i32, i32
  }
  func.func @transform_7(%arg0: i32, %arg1: memref<2xi32, #tpu.memory_space<smem>>) -> (i32, i32, i32) {
    %c0_i32 = arith.constant 0 : i32
    %c0_i32_0 = arith.constant 0 : i32
    %c0_i32_1 = arith.constant 0 : i32
    %c0_i32_2 = arith.constant 0 : i32
    return %c0_i32, %c0_i32_0, %c0_i32_1 : i32, i32, i32
  }
  func.func @transform_8(%arg0: i32, %arg1: memref<2xi32, #tpu.memory_space<smem>>) -> (i32, i32, i32) {
    %c0_i32 = arith.constant 0 : i32
    %c0_i32_0 = arith.constant 0 : i32
    %c0_i32_1 = arith.constant 0 : i32
    return %arg0, %c0_i32, %c0_i32_0 : i32, i32, i32
  }
}

</mosaic_0001>

<bundles_post_ra>
// kernel: viewmaker_forward.6
= control target key start
LH: loop header
LB: loop body
LE: loop exit
PB: predicated region body
PF: predicated region fallthrough
CT: control target
= control target key end

     0   :  { %s645_s12 = smov 0   ;;  %s647_s13 = smov 0   ;;  %s741_s0 = inlined_call_operand.vmem [shape: f32[32,32], index: 0, kind: input, shape index: {}]   ;;  %s742_s1 = inlined_call_operand.vmem [shape: f32[2,32,12], index: 1, kind: input, shape index: {}]   ;;  %s743_s2 = inlined_call_operand.vmem [shape: f32[2,2,32,1], index: 2, kind: input, shape index: {}]   ;;  %s744_s3 = inlined_call_operand.vmem [shape: f32[2,2,32,13], index: 3, kind: output, shape index: {}]  }
   0x1   :  { %s649_s14 = smov 0   ;;  %s651_s15 = smov 0  }
   0x2   :  { %s653_s16 = smov 0  }
   0x3 LB: > { %s22_s17 = sadd.s32 1, %s614_s14  ;;  %s25_s18 = sadd.s32 1, %s618_s15  ;;  %s622_s16 = sphi %s653_s16, %s13_s16   ;;  %s618_s15 = sphi %s651_s15, %s748_s15   ;;  %s614_s14 = sphi %s649_s14, %s747_s14   ;;  %s610_s13 = sphi %s647_s13, %s746_s13   ;;  %s606_s12 = sphi %s645_s12, %s745_s12  }
   0x4   : > { %p23_p0 = scmp.ge.s32.totalorder %s22_s17, 2  ;;  %p491_p1 = scmp.ge.s32.totalorder %s622_s16, 1 }
   0x5   : > { %p167_p2 = scmp.lt.s32.totalorder %s622_s16, 5 }
   0x6   : > { %s750_s17 = smov (%p23_p0, %s22_s17), 0  ;;  %s752_s18 = smov (!%p23_p0, %s25_s18), %s618_s15 }
   0x7   : > { %p168_p3 = pnand %p491_p1, %p167_p2  ;;  %p27_p4 = scmp.ge.s32.totalorder %s752_s18, 2 }
   0x8   : > { %p204_p5 = scmp.lt.s32.totalorder (!%p168_p3), %s606_s12, 1  ;;  %p209_p6 = scmp.lt.s32.totalorder (!%p168_p3), %s610_s13, 1  ;;  %v231_v0 = vld [vmem:[%s741_s0] sm:$0xff] (!%p168_p3)  ;;  %vm235_vm0 = vcmask (!%p168_p3), 261120   ;;  %v233_v1 = vld [vmem:[%s741_s0 + $0x10] sm:$0xff] (!%p168_p3)  ;;  %v232_v8 = vld [vmem:[%s741_s0 + $0x8] sm:$0xff] (!%p168_p3) }
   0x9   : > { %s754_s18 = smov (%p27_p4, %s752_s18), 0  ;;  %171 = sbr.rel (%p168_p3) target bundleno = 377 (0x179), region = 32 }
   0xa   : > { %525 = vmatprep.mubr.msk.f32.mxu0 (!%p168_p3), %vm235_vm0, %v231_v0  ;;  %528 = vmatprep.mubr.msk.f32.mxu1 (!%p168_p3), %vm235_vm0, %v233_v1  ;;  %v234_v9 = vld [vmem:[%s741_s0 + $0x18] sm:$0xff] (!%p168_p3)  ;;  %p504_p7 = scmp.ne.s32.totalorder (!%p168_p3), %s610_s13, 0 }
  0x10   : > { %s756_s12 = smov (!%p204_p5, %s606_s12), 1  ;;  %vm341_vm1 = vcmask (!%p504_p7), 97280  }
  0x11   : > { %s210_s23 = scalar_select %p209_p6, %s610_s13, 1 }
  0x12   : > { %s508_s24 = sshll.u32 %s756_s12, 5  ;;  %s494_s25 = sshll.u32 %s756_s12, 2 }
  0x13   : > { %s208_s28 = scalar_lea.vmem %s742_s1, %s508_s24  ;;  %s495_s29 = sshll.u32 %s210_s23, 3 }
  0x14   : > { %s215_s30 = sadd.s32 %s495_s29, %s494_s25  ;;  %v227_v2 = vld [vmem:[%s208_s28] sm:$0xff]  ;;  %v228_v3 = vld [vmem:[%s208_s28 + $0x8] sm:$0xff]  ;;  %v229_v4 = vld [vmem:[%s208_s28 + $0x10] sm:$0xff] }
  0x15   : > { %s496_s4 = sshll.u32 %s215_s30, 3  ;;  %v531_v5 = vpack.c.bf16 %v228_v3, %v227_v2  ;;  %v230_v6 = vld [vmem:[%s208_s28 + $0x18] sm:$0xff] }
  0x16   : > { %s693_s7 = scalar_lea.vmem %s743_s2, %s496_s4  ;;  %s698_s10 = scalar_lea.vmem %s744_s3, %s496_s4  ;;  %v535_v7 = vpack.c.bf16 %v230_v6, %v229_v4 }
  0x17   : > { %532 = vmatprep.subr.bf16.mxu0 %v531_v5  ;;  %539 = vmatprep.subr.bf16.mxu1 %v531_v5 }
  0x18   : > { %534 = vmatpush3.bf16.msra.mxu0 %v531_v5  ;;  %541 = vmatpush3.bf16.msra.mxu1 %v531_v5 }
  0x19   : > { %536 = vmatprep.subr.bf16.mxu0 %v535_v7  ;;  %540 = vmatprep.subr.bf16.mxu1 %v535_v7 }
  0x1c   : > { %538 = vmatpush3.bf16.msra.mxu0 %v535_v7  ;;  %542 = vmatpush3.bf16.msra.mxu1 %v535_v7 }
  0x1f   : > { %526 = vmatmul.mubr.msk.f32.vlgmr.msra.gmra.mrb[0].mxu0 %vm235_vm0, %v232_v8  ;;  %529 = vmatmul.mubr.msk.f32.vlgmr.msra.gmra.mrb[0].mxu1 %vm235_vm0, %v234_v9 }
  0xed   : > { %336 = sbr.rel (%p504_p7) target bundleno = 247 (0xf7), region = 36 }
  0xf2   : > { %v527_v10 = vpop.f32.mrb[0].mxu0  ;;  %v530_v11 = vpop.f32.mrb[0].mxu1 }
  0xf3   : > { %v314_v12 = vpop.f32.mrb[1].mxu0  ;;  %v324_v13 = vpop.f32.mrb[1].mxu1  ;;  %v338_v15 = vsub.f32 (!%p504_p7), %v228_v3, %v527_v10  ;;  %v340_v17 = vsub.f32 (!%p504_p7), %v230_v6, %v530_v11 }
  0xf4   : > { %v337_v14 = vsub.f32 %v227_v2, %v314_v12  ;;  %v339_v16 = vsub.f32 %v229_v4, %v324_v13 }
  0xf5   : > { %343 = vst.msk [vmem:[%s698_s10 + $0x8] sm:$0xff] %vm341_vm1, %v338_v15  ;;  %345 = vst.msk [vmem:[%s698_s10 + $0x18] sm:$0xff] %vm341_vm1, %v340_v17 }
  0xf6   : > { %342 = vst.msk [vmem:[%s698_s10] sm:$0xff] %vm341_vm1, %v337_v14  ;;  %344 = vst.msk [vmem:[%s698_s10 + $0x10] sm:$0xff] %vm341_vm1, %v339_v16 }
  0xf7 PF: > { %p505_p8 = scmp.le.s32.totalorder %s610_s13, 0 }
  0xf8   : > { %vm350_vm2 = vcmask (!%p505_p8), 97280  }
  0xf9   : > { %349 = sbr.rel (%p505_p8) target bundleno = 256 (0x100), region = 40  ;;  %351 = vst.msk [vmem:[%s698_s10] sm:$0xff] (!%p505_p8), %vm350_vm2, %v314_v12  ;;  %352 = vst.msk [vmem:[%s698_s10 + $0x8] sm:$0xff] (!%p505_p8), %vm350_vm2, %v527_v10 }
  0xfa   : > { %353 = vst.msk [vmem:[%s698_s10 + $0x10] sm:$0xff] (!%p505_p8), %vm350_vm2, %v324_v13  ;;  %354 = vst.msk [vmem:[%s698_s10 + $0x18] sm:$0xff] (!%p505_p8), %vm350_vm2, %v530_v11 }
 0x100 PF: > { %v357_v18 = vld [vmem:[%s693_s7 + $0x10] sm:$0xff]  ;;  %v355_v19 = vld [vmem:[%s693_s7] sm:$0xff]  ;;  %s624_s13 = smov 12   ;;  %v358_v20 = vld [vmem:[%s693_s7 + $0x18] sm:$0xff]  ;;  %vm375_vm3 = vcmask 105568  }
 0x101   : > { %367 = vrot.lane.b32.xlu1 %v357_v18, %s624_s13  ;;  %363 = vrot.lane.b32.xlu0 %v355_v19, %s624_s13  ;;  %v356_v21 = vld [vmem:[%s693_s7 + $0x8] sm:$0xff] }
 0x105   : > { %369 = vrot.lane.b32.xlu1 %v358_v20, %s624_s13  ;;  %365 = vrot.lane.b32.xlu0 %v356_v21, %s624_s13 }
 0x173   : > { %v368_v22 = vpop.permute.xlu1 %367  ;;  %v364_v23 = vpop.permute.xlu0 %363 }
 0x174   : > { %378 = vst.msk [vmem:[%s698_s10 + $0x10] sm:$0xff] %vm375_vm3, %v368_v22  ;;  %376 = vst.msk [vmem:[%s698_s10] sm:$0xff] %vm375_vm3, %v364_v23 }
 0x177   : > { %v370_v24 = vpop.permute.xlu1 %369  ;;  %v366_v25 = vpop.permute.xlu0 %365 }
 0x178   : > { %379 = vst.msk [vmem:[%s698_s10 + $0x18] sm:$0xff] %vm375_vm3, %v370_v24  ;;  %377 = vst.msk [vmem:[%s698_s10 + $0x8] sm:$0xff] %vm375_vm3, %v366_v25 }
 0x179 PF: > { %s13_s16 = sadd.s32 1, %s622_s16   ;;  %s745_s12 = smov %s614_s14 }
 0x17a   : > { %p10_p9 = scmp.ge.s32.totalorder %s13_s16, 6   ;;  %s746_s13 = smov %s618_s15 }
 0x17b   : > { %s747_s14 = smov %s750_s17  ;;  %s748_s15 = smov %s754_s18 }
 0x17c   :  { %12 = sbr.rel (!%p10_p9) target bundleno = 3 (0x3), region = 73 }

// kernel: viewmaker_forward.7
= control target key start
LH: loop header
LB: loop body
LE: loop exit
PB: predicated region body
PF: predicated region fallthrough
CT: control target
= control target key end

     0   :  { %s1593_s24 = smov 0   ;;  %s1595_s25 = smov 0   ;;  %s1742_s0 = inlined_call_operand.vmem [shape: f32[2,2,32,13], index: 0, kind: input, shape index: {}]   ;;  %s1743_s1 = inlined_call_operand.vmem [shape: bf16[2,3,13,64], index: 1, kind: input, shape index: {}]   ;;  %s1744_s2 = inlined_call_operand.vmem [shape: f32[2,1,64], index: 2, kind: input, shape index: {}]   ;;  %s1745_s3 = inlined_call_operand.vmem [shape: f32[2,2,64], index: 3, kind: input, shape index: {}]   ;;  %s1746_s4 = inlined_call_operand.vmem [shape: bf16[2,3,64,128], index: 4, kind: input, shape index: {}]   ;;  %s1747_s5 = inlined_call_operand.vmem [shape: f32[2,1,128], index: 5, kind: input, shape index: {}]   ;;  %s1748_s6 = inlined_call_operand.vmem [shape: f32[2,2,128], index: 6, kind: input, shape index: {}]   ;;  %s1749_s7 = inlined_call_operand.vmem [shape: f32[2,2,28,128], index: 7, kind: output, shape index: {}]  }
   0x1   :  { %s1597_s26 = smov 0   ;;  %s1599_s27 = smov 0  }
   0x2   :  { %s1601_s28 = smov 0  }
   0x3 LB: > { %s26_s29 = sadd.s32 1, %s1542_s26  ;;  %s29_s30 = sadd.s32 1, %s1546_s27  ;;  %s1550_s28 = sphi %s1601_s28, %s17_s28   ;;  %s1546_s27 = sphi %s1599_s27, %s1753_s27   ;;  %s1542_s26 = sphi %s1597_s26, %s1752_s26   ;;  %s1538_s25 = sphi %s1595_s25, %s1751_s25   ;;  %s1534_s24 = sphi %s1593_s24, %s1750_s24  }
   0x4   : > { %p27_p0 = scmp.ge.s32.totalorder %s26_s29, 2  ;;  %p1275_p1 = scmp.ge.s32.totalorder %s1550_s28, 1 }
   0x5   : > { %p311_p2 = scmp.lt.s32.totalorder %s1550_s28, 5 }
   0x6   : > { %s1755_s29 = smov (%p27_p0, %s26_s29), 0  ;;  %s1757_s30 = smov (!%p27_p0, %s29_s30), %s1546_s27 }
   0x7   : > { %p312_p3 = pnand %p1275_p1, %p311_p2  ;;  %p31_p4 = scmp.ge.s32.totalorder %s1757_s30, 2 }
   0x8   : > { %p375_p5 = scmp.lt.s32.totalorder (!%p312_p3), %s1538_s25, 1  ;;  %vm461_vm0 = vcmask (!%p312_p3), 1045504   ;;  %p377_p6 = scmp.lt.s32.totalorder (!%p312_p3), %s1534_s24, 1  ;;  %vm462_vm1 = vcmask (!%p312_p3), 1046528   ;;  %v1552_v0 = vmov (!%p312_p3), 65535   ;;  %vm454_vm3 = vcmask (!%p312_p3), 105472  }
   0x9   : > { %s1759_s30 = smov (%p31_p4, %s1757_s30), 0  ;;  %315 = sbr.rel (%p312_p3) target bundleno = 1154 (0x482), region = 48 }
   0xa   : > { %v463_v1 = vsel (!%p312_p3), %vm461_vm0, 4294967295, %v1552_v0  ;;  %vm433_vm2 = vsmask.f32 (!%p312_p3), 7424  ;;  %vm663_vm4 = vcmask (!%p312_p3), 523264   ;;  %vm673_vm5 = vcmask (!%p312_p3), 521216  }
   0xb   : > { %v464_v2 = vsel (!%p312_p3), %vm462_vm1, %v463_v1, 0  ;;  %vm1044_vm6 = vcmask (!%p312_p3), 1043456  }
  0x10   : > { %s1761_s25 = smov (!%p375_p5, %s1538_s25), 1  ;;  %s1763_s24 = smov (!%p377_p6, %s1534_s24), 1 }
  0x11   : > { %s1438_s8 = smul.u32 24, %s1761_s25  ;;  %s1277_s9 = sshll.u32 %s1761_s25, 3 }
  0x12   : > { %s1439_s10 = smul.u32 96, %s1761_s25  ;;  %s1276_s11 = sshll.u32 %s1763_s24, 2 }
  0x13   : > { %s388_s14 = scalar_lea.vmem %s1743_s1, %s1438_s8  ;;  %s1632_s15 = sadd.s32 %s1277_s9, %s1276_s11 }
  0x14   : > { %v1481_v3 = vld [vmem:[%s388_s14 + $0x8] sm:$0x7f]   ;;  %s1278_s16 = sshll.u32 %s1632_s15, 3  ;;  %v1482_v5 = vld [vmem:[%s388_s14] sm:$0x7f]   ;;  %s1643_s22 = scalar_lea.vmem %s1746_s4, %s1439_s10 }
  0x15   : > { %v466_v4 = vand.u32 %v1481_v3, %v464_v2  ;;  %s383_s19 = scalar_lea.vmem %s1742_s0, %s1278_s16  ;;  %v527_v11 = vand.u32 %v1482_v5, %v464_v2  ;;  %v1483_v17 = vld [vmem:[%s388_s14 + $0x10] sm:$0x7f]   ;;  %s391_s8 = scalar_lea.vmem %s1744_s2, %s1761_s25  ;;  %v1484_v60 = vld [vmem:[%s1643_s22] sm:$0xff]   ;;  %v1485_v61 = vld [vmem:[%s1643_s22 + $0x8] sm:$0xff]  }
  0x16   : > { %v418_v6 = vld [vmem:[%s383_s19] sm:$0xff]  ;;  %v419_v7 = vld [vmem:[%s383_s19 + $0x8] sm:$0xff]  ;;  %v420_v8 = vld [vmem:[%s383_s19 + $0x10] sm:$0xff]  ;;  %v596_v23 = vand.u32 %v1483_v17, %v464_v2  ;;  %1398 = vmatprep.subr.bf16.mxu1 %v1484_v60  ;;  %s1280_s9 = sshll.u32 %s1761_s25, 1  ;;  %s403_s17 = scalar_lea.vmem %s1747_s5, %s1761_s25 }
  0x17   : > { %1368 = vmatprep.subr.bf16.mxu0 %v466_v4  ;;  %v421_v9 = vld [vmem:[%s383_s19 + $0x18] sm:$0xff]  ;;  %v431_v10 = vpack.c.bf16 %v419_v7, %v418_v6  ;;  %v1299_v27 = vld [vmem:[%s391_s8] ss:$0 sm:$0xff]  ;;  %1399 = vmatpush3.bf16.msra.mxu1 %v1484_v60  ;;  %v1487_v63 = vld [vmem:[%s1643_s22 + $0x10] sm:$0xff]   ;;  %s395_s12 = scalar_lea.vmem %s1745_s3, %s1280_s9  ;;  %s407_s20 = scalar_lea.vmem %s1748_s6, %s1280_s9 }
  0x18   : > { %1369 = vmatpush3.bf16.msra.mxu0 %v466_v4  ;;  %v432_v12 = vpack.c.bf16 %v421_v9, %v420_v8  ;;  %1400 = vmatprep.subr.bf16.mxu1 %v1485_v61  ;;  %v1486_v62 = vld [vmem:[%s1643_s22 + $0x20] sm:$0xff]   ;;  %v1488_v0 = vld [vmem:[%s1643_s22 + $0x28] sm:$0xff]   ;;  %v1489_v1 = vld [vmem:[%s1643_s22 + $0x18] sm:$0xff]   ;;  %s416_s25 = scalar_lea.vmem %s1749_s7, %s1278_s16 }
  0x19   : > { %v435_v13 = vshrl.u32 %v431_v10, 16  ;;  %v437_v14 = vshll.u32 %v431_v10, 16  ;;  %1374 = vmatprep.subr.bf16.mxu0 %v527_v11  ;;  %v581_v24 = vrot.slane %v431_v10, 1  ;;  %v1490_v2 = vld [vmem:[%s1643_s22 + $0x30] sm:$0xff]   ;;  %v1491_v3 = vld [vmem:[%s1643_s22 + $0x40] sm:$0xff]   ;;  %v1492_v4 = vld [vmem:[%s1643_s22 + $0x38] sm:$0xff]  }
  0x1a   : > { %v442_v15 = vshll.u32 %v432_v12, 16  ;;  %v446_v16 = vshrl.u32 %v432_v12, 16  ;;  %v582_v25 = vrot.slane %v432_v12, 1 }
  0x1b   : > { %v439_v18 = vrot.slane %v437_v14, 1  ;;  %1401 = vmatpush3.bf16.msra.mxu1 %v1485_v61 }
  0x1c   : > { %v444_v19 = vrot.slane %v442_v15, 1  ;;  %v583_v26 = vsel %vm462_vm1, %v581_v24, %v582_v25  ;;  %1402 = vmatprep.subr.bf16.mxu1 %v1487_v63 }
  0x1d   : > { %v440_v20 = vor.u32 %v439_v18, %v435_v13  ;;  %v1300_v18 = vld [vmem:[%s395_s12] ss:$0 sm:$0xff] }
  0x1e   : > { %v448_v21 = vor.u32 %v446_v16, %v444_v19 }
  0x1f   : > { %v445_v22 = vsel %vm433_vm2, %v440_v20, %v444_v19  ;;  %1403 = vmatpush3.bf16.msra.mxu1 %v1487_v63  ;;  %v1336_v63 = vld [vmem:[%s403_s17] ss:$0 sm:$0xff] }
  0x20   : > { %1370 = vmatprep.mubr.msk.bf16.mxu0 %vm454_vm3, %v445_v22  ;;  %1404 = vmatprep.subr.bf16.mxu1 %v1489_v1  ;;  %v1301_v22 = vld [vmem:[%s395_s12 + $0x1] ss:$0 sm:$0xff] }
  0x21   : > { %1371 = vmatmul.mubr.msk.bf16.vlgmr.msra.gmra.mrb[0].mxu0 %vm454_vm3, %v448_v21 }
  0x22   : > { %1375 = vmatpush3.bf16.msra.mxu0 %v527_v11  ;;  %1376 = vmatprep.mubr.msk.bf16.mxu0 %vm454_vm3, %v431_v10 }
  0x23   : > { %1380 = vmatprep.subr.bf16.mxu0 %v596_v23  ;;  %1405 = vmatpush3.bf16.msra.mxu1 %v1489_v1 }
  0x24   : > { %1410 = vmatprep.subr.bf16.mxu1 %v1491_v3 }
  0x2d   : > { %1377 = vmatmul.mubr.msk.bf16.vlgmr.msra.gmra.mrb[0].mxu0 %vm454_vm3, %v432_v12 }
  0x2e   : > { %1381 = vmatpush3.bf16.msra.mxu0 %v596_v23  ;;  %1382 = vmatprep.mubr.msk.bf16.mxu0 %vm454_vm3, %v583_v26 }
  0x2f   : > { %1386 = vmatprep.subr.bf16.mxu0 %v1486_v62 }
  0x39   : > { %1383 = vmatmul.mubr.msk.bf16.vlgmr.msra.gmra.mrb[0].mxu0 %vm454_vm3, %v582_v25 }
  0x3a   : > { %1387 = vmatpush3.bf16.msra.mxu0 %v1486_v62 }
  0x3b   : > { %1388 = vmatprep.subr.bf16.mxu0 %v1488_v0 }
  0x3e   : > { %1389 = vmatpush3.bf16.msra.mxu0 %v1488_v0 }
  0x3f   : > { %1390 = vmatprep.subr.bf16.mxu0 %v1490_v2 }
  0x42   : > { %1391 = vmatpush3.bf16.msra.mxu0 %v1490_v2 }
  0x43   : > { %1392 = vmatprep.subr.bf16.mxu0 %v1492_v4 }
  0x46   : > { %1393 = vmatpush3.bf16.msra.mxu0 %v1492_v4 }
 0x10c   : > { %v1384_v28 = vpop.f32.mrb[0].mxu0 }
 0x10d   : > { %v659_v29 = vadd.f32 %v1384_v28, %v1299_v27  ;;  %v632_v30 = vpop.f32.mrb[1].mxu0 }
 0x10e   : > { %v657_v31 = vadd.f32 %v1299_v27, %v632_v30  ;;  %v1385_v32 = vpop.f32.mrb[2].mxu0 }
 0x10f   : > { %v660_v33 = vadd.f32 %v1385_v32, %v1299_v27  ;;  %v635_v34 = vpop.f32.mrb[3].mxu0  ;;  %v670_v35 = vsel %vm663_vm4, %v659_v29, 0.0 }
 0x110   : > { %v658_v36 = vadd.f32 %v1299_v27, %v635_v34  ;;  %671 = vadd.xlane.f32.xlu1 %v670_v35  ;;  %v664_v37 = vsel %vm663_vm4, %v657_v31, 0.0 }
 0x111   : > { %665 = vadd.xlane.f32.xlu0 %v664_v37  ;;  %v674_v38 = vsel %vm673_vm5, %v660_v33, 0.0 }
 0x112   : > { %v667_v39 = vsel %vm663_vm4, %v658_v36, 0.0 }
 0x114   : > { %675 = vadd.xlane.f32.xlu1 %v674_v38 }
 0x115   : > { %668 = vadd.xlane.f32.xlu0 %v667_v39 }
 0x19d   : > { %v672_v40 = vpop.xlane.xlu1 %671 }
 0x19e   : > { %v680_v41 = vmul.f32 0.015625, %v672_v40  ;;  %v666_v42 = vpop.xlane.xlu0 %665 }
 0x19f   : > { %v678_v43 = vmul.f32 0.015625, %v666_v42  ;;  %v1493_v42 = vld [vmem:[%s1643_s22 + $0x48] sm:$0xff]  }
 0x1a0   : > { %v1661_v44 = vsub.f32 %v659_v29, %v680_v41 }
 0x1a1   : > { %v1663_v45 = vsub.f32 %v657_v31, %v678_v43  ;;  %v676_v46 = vpop.xlane.xlu1 %675 }
 0x1a2   : > { %v681_v47 = vmul.f32 0.015625, %v676_v46  ;;  %v669_v48 = vpop.xlane.xlu0 %668  ;;  %v688_v54 = vmul.f32 %v1661_v44, %v1661_v44 }
 0x1a3   : > { %v679_v49 = vmul.f32 0.015625, %v669_v48  ;;  %v686_v50 = vmul.f32 %v1663_v45, %v1663_v45 }
 0x1a4   : > { %v1667_v51 = vsub.f32 %v660_v33, %v681_v47  ;;  %v696_v56 = vsel %vm663_vm4, %v688_v54, 0.0 }
 0x1a5   : > { %v1669_v52 = vsub.f32 %v658_v36, %v679_v49  ;;  %v690_v53 = vsel %vm663_vm4, %v686_v50, 0.0 }
 0x1a6   : > { %691 = vadd.xlane.f32.xlu0 %v690_v53  ;;  %v689_v58 = vmul.f32 %v1667_v51, %v1667_v51 }
 0x1a7   : > { %v687_v55 = vmul.f32 %v1669_v52, %v1669_v52 }
 0x1a8   : > { %v699_v59 = vsel %vm673_vm5, %v689_v58, 0.0 }
 0x1a9   : > { %v693_v57 = vsel %vm663_vm4, %v687_v55, 0.0  ;;  %v1495_v55 = vld [vmem:[%s1643_s22 + $0x58] sm:$0xff]  }
 0x1aa   : > { %697 = vadd.xlane.f32.xlu0 %v696_v56  ;;  %694 = vadd.xlane.f32.xlu1 %v693_v57 }
 0x1ae   : > { %700 = vadd.xlane.f32.xlu1 %v699_v59 }
 0x233   : > { %v692_v5 = vpop.xlane.xlu0 %691 }
 0x234   : > { %v702_v6 = vmul.f32 0.015625, %v692_v5 }
 0x236   : > { %v706_v7 = vadd.f32 1e-05, %v702_v6 }
 0x237   : > { %v695_v8 = vpop.xlane.xlu1 %694  ;;  %v698_v9 = vpop.xlane.xlu0 %697 }
 0x238   : > { %1496 = vrsqrt.f32 %v706_v7  ;;  %v703_v10 = vmul.f32 0.015625, %v695_v8  ;;  %v704_v11 = vmul.f32 0.015625, %v698_v9 }
 0x23a   : > { %v707_v12 = vadd.f32 1e-05, %v703_v10  ;;  %v708_v13 = vadd.f32 1e-05, %v704_v11 }
 0x23b   : > { %v701_v14 = vpop.xlane.xlu1 %700 }
 0x23c   : > { %1498 = vrsqrt.f32 %v707_v12  ;;  %v705_v15 = vmul.f32 0.015625, %v701_v14 }
 0x23d   : > { %1500 = vrsqrt.f32 %v708_v13 }
 0x23e   : > { %v709_v16 = vadd.f32 1e-05, %v705_v15 }
 0x240   : > { %1502 = vrsqrt.f32 %v709_v16 }
 0x242   : > { %v1497_v17 = vpop.eup %1496 }
 0x243   : > { %v714_v19 = vmul.f32 %v1497_v17, %v1663_v45 }
 0x245   : > { %v722_v20 = vmul.f32 %v1300_v18, %v714_v19 }
 0x246   : > { %v1499_v21 = vpop.eup %1498 }
 0x247   : > { %v1501_v23 = vpop.eup %1500  ;;  %v715_v24 = vmul.f32 %v1499_v21, %v1669_v52  ;;  %v730_v27 = vadd.f32 %v1301_v22, %v722_v20  ;;  %v1494_v52 = vld [vmem:[%s1643_s22 + $0x50] sm:$0xff]  }
 0x248   : > { %v716_v25 = vmul.f32 %v1501_v23, %v1661_v44 }
 0x249   : > { %v723_v26 = vmul.f32 %v1300_v18, %v715_v24  ;;  %v734_v32 = vmax.f32 %v730_v27, 0.0 }
 0x24a   : > { %v1503_v28 = vpop.eup %1502  ;;  %v724_v29 = vmul.f32 %v1300_v18, %v716_v25 }
 0x24b   : > { %v717_v30 = vmul.f32 %v1503_v28, %v1667_v51  ;;  %v731_v31 = vadd.f32 %v1301_v22, %v723_v26 }
 0x24c   : > { %v732_v35 = vadd.f32 %v1301_v22, %v724_v29 }
 0x24d   : > { %v735_v33 = vmax.f32 %v731_v31, 0.0  ;;  %v725_v34 = vmul.f32 %v1300_v18, %v717_v30 }
 0x24e   : > { %v736_v38 = vmax.f32 %v732_v35, 0.0 }
 0x24f   : > { %v765_v36 = vpack.c.bf16 %v735_v33, %v734_v32  ;;  %v733_v37 = vadd.f32 %v1301_v22, %v725_v34 }
 0x251   : > { %1406 = vmatprep.mubr.msk.bf16.mxu1 %vm663_vm4, %v765_v36  ;;  %v737_v39 = vmax.f32 %v733_v37, 0.0  ;;  %v770_v40 = vshll.u32 %v765_v36, 16  ;;  %v940_v44 = vrot.slane %v765_v36, 1  ;;  %v768_v46 = vshrl.u32 %v765_v36, 16 }
 0x253   : > { %v766_v41 = vpack.c.bf16 %v737_v39, %v736_v38  ;;  %v772_v43 = vrot.slane %v770_v40, 1  ;;  %v1337_v40 = vld [vmem:[%s407_s20] ss:$0 sm:$0xff] }
 0x255   : > { %1407 = vmatmul.mubr.msk.bf16.vlgmr.msra.gmra.mrb[0].mxu1 %vm663_vm4, %v766_v41  ;;  %v941_v45 = vrot.slane %v766_v41, 1  ;;  %v775_v47 = vshll.u32 %v766_v41, 16  ;;  %v773_v49 = vor.u32 %v772_v43, %v768_v46  ;;  %v779_v51 = vshrl.u32 %v766_v41, 16 }
 0x256   : > { %1411 = vmatpush3.bf16.msra.mxu1 %v1491_v3 }
 0x257   : > { %1412 = vmatprep.subr.bf16.mxu1 %v1493_v42  ;;  %v942_v48 = vsel %vm462_vm1, %v940_v44, %v941_v45  ;;  %v777_v50 = vrot.slane %v775_v47, 1 }
 0x258   : > { %1418 = vmatprep.mubr.msk.bf16.mxu1 %vm663_vm4, %v942_v48 }
 0x259   : > { %v778_v53 = vsel %vm433_vm2, %v773_v49, %v777_v50  ;;  %v781_v54 = vor.u32 %v779_v51, %v777_v50 }
 0x25a   : > { %1413 = vmatpush3.bf16.msra.mxu1 %v1493_v42  ;;  %1394 = vmatprep.mubr.msk.bf16.mxu0 %vm663_vm4, %v778_v53  ;;  %v1338_v42 = vld [vmem:[%s407_s20 + $0x1] ss:$0 sm:$0xff] }
 0x25b   : > { %1395 = vmatmul.mubr.msk.bf16.vlgmr.msra.gmra.mrb[4].mxu0 %vm663_vm4, %v781_v54  ;;  %1414 = vmatprep.subr.bf16.mxu1 %v1494_v52 }
 0x25e   : > { %1415 = vmatpush3.bf16.msra.mxu1 %v1494_v52 }
 0x25f   : > { %1416 = vmatprep.subr.bf16.mxu1 %v1495_v55 }
 0x262   : > { %1417 = vmatpush3.bf16.msra.mxu1 %v1495_v55 }
 0x265   : > { %1419 = vmatmul.mubr.msk.bf16.vlgmr.msra.gmra.mrb[0].mxu1 %vm663_vm4, %v941_v45 }
 0x32e   : > { %v1396_v56 = vpop.f32.mrb[4].mxu0 }
 0x32f   : > { %v846_v57 = vpop.f32.mrb[5].mxu0 }
 0x330   : > { %v1397_v58 = vpop.f32.mrb[6].mxu0 }
 0x331   : > { %v849_v59 = vpop.f32.mrb[7].mxu0 }
 0x338   : > { %v1420_v60 = vpop.f32.mrb[0].mxu1 }
 0x339   : > { %v1422_v61 = vadd.f32 %v1420_v60, %v1396_v56  ;;  %v1007_v62 = vpop.f32.mrb[1].mxu1 }
 0x33a   : > { %v1423_v0 = vadd.f32 %v1007_v62, %v846_v57  ;;  %v1421_v1 = vpop.f32.mrb[2].mxu1 }
 0x33b   : > { %v1424_v2 = vadd.f32 %v1421_v1, %v1397_v58  ;;  %v1010_v3 = vpop.f32.mrb[3].mxu1  ;;  %v1034_v8 = vadd.f32 %v1422_v61, %v1336_v63 }
 0x33c   : > { %v1425_v4 = vadd.f32 %v1010_v3, %v849_v59  ;;  %v1032_v5 = vadd.f32 %v1423_v0, %v1336_v63 }
 0x33d   : > { %v1035_v6 = vadd.f32 %v1424_v2, %v1336_v63 }
 0x33e   : > { %1038 = vadd.xlane.f32.xlu1 %v1032_v5  ;;  %v1033_v9 = vadd.f32 %v1425_v4, %v1336_v63 }
 0x33f   : > { %v1045_v7 = vsel %vm1044_vm6, %v1035_v6, 0.0 }
 0x340   : > { %1046 = vadd.xlane.f32.xlu0 %v1045_v7 }
 0x342   : > { %1042 = vadd.xlane.f32.xlu1 %v1034_v8 }
 0x344   : > { %1040 = vadd.xlane.f32.xlu0 %v1033_v9 }
 0x3cb   : > { %v1039_v10 = vpop.xlane.xlu1 %1038 }
 0x3cc   : > { %v1049_v11 = vmul.f32 0.0078125, %v1039_v10 }
 0x3cd   : > { %v1047_v12 = vpop.xlane.xlu0 %1046 }
 0x3ce   : > { %v1053_v13 = vsub.f32 %v1032_v5, %v1049_v11  ;;  %v1052_v14 = vmul.f32 0.0078125, %v1047_v12 }
 0x3cf   : > { %v1043_v15 = vpop.xlane.xlu1 %1042 }
 0x3d0   : > { %v1051_v16 = vmul.f32 0.0078125, %v1043_v15  ;;  %v1057_v17 = vmul.f32 %v1053_v13, %v1053_v13  ;;  %v1056_v21 = vsub.f32 %v1035_v6, %v1052_v14 }
 0x3d1   : > { %v1041_v18 = vpop.xlane.xlu0 %1040 }
 0x3d2   : > { %v1055_v19 = vsub.f32 %v1034_v8, %v1051_v16  ;;  %v1050_v20 = vmul.f32 0.0078125, %v1041_v18  ;;  %1061 = vadd.xlane.f32.xlu0 %v1057_v17  ;;  %v1060_v25 = vmul.f32 %v1056_v21, %v1056_v21 }
 0x3d4   : > { %v1054_v22 = vsub.f32 %v1033_v9, %v1050_v20  ;;  %v1059_v23 = vmul.f32 %v1055_v19, %v1055_v19  ;;  %v1067_v26 = vsel %vm1044_vm6, %v1060_v25, 0.0 }
 0x3d6   : > { %1065 = vadd.xlane.f32.xlu0 %v1059_v23  ;;  %v1058_v24 = vmul.f32 %v1054_v22, %v1054_v22 }
 0x3d8   : > { %1063 = vadd.xlane.f32.xlu1 %v1058_v24 }
 0x3dc   : > { %1068 = vadd.xlane.f32.xlu1 %v1067_v26 }
 0x45f   : > { %v1062_v27 = vpop.xlane.xlu0 %1061 }
 0x460   : > { %v1070_v28 = vmul.f32 0.0078125, %v1062_v27 }
 0x462   : > { %v1074_v29 = vadd.f32 1e-05, %v1070_v28 }
 0x463   : > { %v1066_v30 = vpop.xlane.xlu0 %1065 }
 0x464   : > { %1504 = vrsqrt.f32 %v1074_v29  ;;  %v1072_v31 = vmul.f32 0.0078125, %v1066_v30 }
 0x465   : > { %v1064_v32 = vpop.xlane.xlu1 %1063 }
 0x466   : > { %v1076_v33 = vadd.f32 1e-05, %v1072_v31  ;;  %v1071_v34 = vmul.f32 0.0078125, %v1064_v32 }
 0x468   : > { %1506 = vrsqrt.f32 %v1076_v33  ;;  %v1075_v35 = vadd.f32 1e-05, %v1071_v34 }
 0x469   : > { %v1069_v36 = vpop.xlane.xlu1 %1068 }
 0x46a   : > { %1508 = vrsqrt.f32 %v1075_v35  ;;  %v1073_v37 = vmul.f32 0.0078125, %v1069_v36 }
 0x46c   : > { %v1077_v38 = vadd.f32 1e-05, %v1073_v37 }
 0x46e   : > { %v1505_v39 = vpop.eup %1504  ;;  %1510 = vrsqrt.f32 %v1077_v38 }
 0x46f   : > { %v1082_v41 = vmul.f32 %v1505_v39, %v1053_v13 }
 0x471   : > { %v1090_v43 = vmul.f32 %v1337_v40, %v1082_v41 }
 0x472   : > { %v1507_v44 = vpop.eup %1506 }
 0x473   : > { %v1098_v45 = vadd.f32 %v1338_v42, %v1090_v43  ;;  %v1084_v46 = vmul.f32 %v1507_v44, %v1055_v19 }
 0x474   : > { %v1509_v47 = vpop.eup %1508 }
 0x475   : > { %v1102_v48 = vmax.f32 %v1098_v45, 0.0  ;;  %v1092_v49 = vmul.f32 %v1337_v40, %v1084_v46  ;;  %v1083_v50 = vmul.f32 %v1509_v47, %v1054_v22 }
 0x477   : > { %1106 = vst [vmem:[%s416_s25] sm:$0xff] %v1102_v48  ;;  %v1100_v51 = vadd.f32 %v1338_v42, %v1092_v49  ;;  %v1091_v52 = vmul.f32 %v1337_v40, %v1083_v50 }
 0x478   : > { %v1511_v53 = vpop.eup %1510 }
 0x479   : > { %v1104_v54 = vmax.f32 %v1100_v51, 0.0  ;;  %v1099_v55 = vadd.f32 %v1338_v42, %v1091_v52  ;;  %v1085_v56 = vmul.f32 %v1511_v53, %v1056_v21 }
 0x47b   : > { %1108 = vst [vmem:[%s416_s25 + $0x10] sm:$0xff] %v1104_v54  ;;  %v1103_v57 = vmax.f32 %v1099_v55, 0.0  ;;  %v1093_v58 = vmul.f32 %v1337_v40, %v1085_v56 }
 0x47d   : > { %1107 = vst [vmem:[%s416_s25 + $0x8] sm:$0xff] %v1103_v57  ;;  %v1101_v59 = vadd.f32 %v1338_v42, %v1093_v58 }
 0x47f   : > { %v1105_v60 = vmax.f32 %v1101_v59, 0.0 }
 0x481   : > { %1109 = vst [vmem:[%s416_s25 + $0x18] sm:$0xf] %v1105_v60 }
 0x482 PF: > { %s17_s28 = sadd.s32 1, %s1550_s28   ;;  %s1750_s24 = smov %s1542_s26 }
 0x483   : > { %p14_p7 = scmp.ge.s32.totalorder %s17_s28, 6   ;;  %s1751_s25 = smov %s1546_s27 }
 0x484   : > { %s1752_s26 = smov %s1755_s29  ;;  %s1753_s27 = smov %s1759_s30 }
 0x485   :  { %16 = sbr.rel (!%p14_p7) target bundleno = 3 (0x3), region = 100 }

// kernel: viewmaker_forward.8
= control target key start
LH: loop header
LB: loop body
LE: loop exit
PB: predicated region body
PF: predicated region fallthrough
CT: control target
= control target key end

     0   :  { %s7495_s0 = inlined_call_operand.vmem [shape: f32[2,2,28,128], index: 0, kind: input, shape index: {}]   ;;  %s7496_s1 = inlined_call_operand.vmem [shape: f32[2,2,28,128], index: 1, kind: input, shape index: {}]   ;;  %s7497_s2 = inlined_call_operand.vmem [shape: f32[128,4], index: 2, kind: input, shape index: {}]   ;;  %s7498_s3 = inlined_call_operand.vmem [shape: f32[4,128], index: 3, kind: input, shape index: {}]   ;;  %s7499_s4 = inlined_call_operand.vmem [shape: bf16[2,128,384], index: 4, kind: input, shape index: {}]   ;;  %s7500_s5 = inlined_call_operand.vmem [shape: f32[2,1,384], index: 5, kind: input, shape index: {}]   ;;  %s7501_s6 = inlined_call_operand.vmem [shape: bf16[2,128,128], index: 6, kind: input, shape index: {}]   ;;  %s7502_s7 = inlined_call_operand.vmem [shape: f32[2,1,128], index: 7, kind: input, shape index: {}]   ;;  %s7503_s8 = inlined_call_operand.vmem [shape: bf16[2,128,128], index: 8, kind: input, shape index: {}]   ;;  %s7504_s9 = inlined_call_operand.vmem [shape: f32[2,1,128], index: 9, kind: input, shape index: {}]   ;;  %s7505_s10 = inlined_call_operand.vmem [shape: bf16[2,128,256], index: 10, kind: input, shape index: {}]   ;;  %s7506_s11 = inlined_call_operand.vmem [shape: f32[2,1,256], index: 11, kind: input, shape index: {}]   ;;  %s7507_s12 = inlined_call_operand.vmem [shape: bf16[2,128,128], index: 12, kind: input, shape index: {}]   ;;  %s7508_s13 = inlined_call_operand.vmem [shape: f32[2,1,128], index: 13, kind: input, shape index: {}]   ;;  %s7509_s14 = inlined_call_operand.vmem [shape: bf16[2,128,32], index: 14, kind: input, shape index: {}]   ;;  %s7510_s15 = inlined_call_operand.vmem [shape: f32[2,1,32], index: 15, kind: input, shape index: {}]   ;;  %s7511_s16 = inlined_call_operand.vmem [shape: bf16[2,32,128], index: 16, kind: input, shape index: {}]   ;;  %s7512_s17 = inlined_call_operand.vmem [shape: f32[2,1,128], index: 17, kind: input, shape index: {}]   ;;  %s7513_s18 = inlined_call_operand.vmem [shape: f32[2,6,128], index: 18, kind: input, shape index: {}]   ;;  %s7514_s19 = inlined_call_operand.vmem [shape: f32[2,2,28,128], index: 19, kind: output, shape index: {}]  }
   0x1   :  { %7517 = sst [smem:[#allocation2_spill]] %s7495_s0  ;;  %s6421_s0 = smov 0  }
   0x2   :  { %7518 = sst [smem:[#allocation3_spill]] %s7496_s1 }
   0x3   :  { %7519 = sst [smem:[#allocation4_spill]] %s7497_s2 }
   0x4   :  { %7520 = sst [smem:[#allocation5_spill]] %s7498_s3 }
   0x5   :  { %7521 = sst [smem:[#allocation6_spill]] %s7499_s4 }
   0x6 LB: > { %s4741_s30 = sadd.s32 4294967295, %s6318_s0   ;;  %p4745_p0 = scmp.ge.s32.totalorder %s6318_s0, 1  ;;  %s6318_s0 = sphi %s6421_s0, %s29_s0  }
   0x7   : > { %p684_p1 = scmp.lt.s32.totalorder %s6318_s0, 3 }
   0x9   : > { %p685_p2 = pnand %p4745_p0, %p684_p1 }
   0xa   : > { %p807_p3 = scmp.lt.s32.totalorder (!%p685_p2), %s4741_s30, 1  ;;  %v6320_v0 = vmov (!%p685_p2), 0   ;;  %s7522_s2 = sld [smem:[#allocation2_spill]] (!%p685_p2)  ;;  %v957_v61 = vlaneseq (!%p685_p2)  ;;  %vm1549_vm0 = vcmask (!%p685_p2), 1043456   ;;  %vm1536_vm1 = vcmask (!%p685_p2), 31744  }
   0xb   : > { %688 = sbr.rel (%p685_p2) target bundleno = 3969 (0xf81), region = 96  ;;  %1132 = vmatprep.mubr.bf16.mxu0 (!%p685_p2), %v6320_v0  ;;  %s7523_s4 = sld [smem:[#allocation6_spill]] (!%p685_p2)  ;;  %vm4208_vm2 = vcmask (!%p685_p2), 261120  }
   0xc   : > { %v6675_v62 = vshrl.u32 (!%p685_p2), %v957_v61, 7 }
   0xe   : > { %v6681_v63 = vsub.s32 (!%p685_p2), 0, %v6675_v62 }
  0x12   : > { %s7528_s30 = smov (!%p807_p3, %s4741_s30), 1 }
  0x13   : > { %s6061_s20 = smul.u32 192, %s7528_s30  ;;  %s6434_s21 = sshll.u32 %s7528_s30, 6 }
  0x14   : > { %s6440_s23 = scalar_lea.vmem %s7522_s2, %s6434_s21  ;;  %s6486_s28 = scalar_lea.vmem %s7501_s6, %s6434_s21 }
  0x15   : > { %s6445_s3 = scalar_lea.vmem %s7523_s4, %s6061_s20  ;;  %v903_v1 = vld [vmem:[%s6440_s23] sm:$0xff]  ;;  %v904_v2 = vld [vmem:[%s6440_s23 + $0x8] sm:$0xff]  ;;  %s6505_s1 = scalar_lea.vmem %s7503_s8, %s6434_s21  ;;  %v905_v27 = vld [vmem:[%s6440_s23 + $0x10] sm:$0xff] }
  0x16   : > { %v6072_v3 = vld [vmem:[%s6445_s3 + $0x4] ss:$12 sps:$4 sm:$0xff]   ;;  %v921_v4 = vpack.c.bf16 %v904_v2, %v903_v1  ;;  %v6074_v5 = vld [vmem:[%s6445_s3] ss:$12 sps:$4 sm:$0xff]   ;;  %v6075_v6 = vld [vmem:[%s6445_s3 + $0x1c] ss:$12 sps:$4 sm:$0xff]   ;;  %s6517_s24 = scalar_lea.vmem %s7507_s12, %s6434_s21  ;;  %s6530_s27 = scalar_lea.vmem %s7509_s14, %s6434_s21 }
  0x17   : > { %1100 = vmatprep.subr.bf16.mxu0 %v6072_v3  ;;  %v6077_v7 = vld [vmem:[%s6445_s3 + $0x18] ss:$12 sps:$4 sm:$0xff]   ;;  %v6078_v8 = vld [vmem:[%s6445_s3 + $0x34] ss:$12 sps:$4 sm:$0xff]   ;;  %v6080_v9 = vld [vmem:[%s6445_s3 + $0x30] ss:$12 sps:$4 sm:$0xff]   ;;  %s833_s26 = scalar_lea.vmem %s7502_s7, %s7528_s30 }
  0x18   : > { %5237 = vmatprep.mubr.bf16.mxu1 %v921_v4  ;;  %1101 = vmatpush1.bf16.msra.mxu0 %v6074_v5  ;;  %v6081_v10 = vld [vmem:[%s6445_s3 + $0x4c] ss:$12 sps:$4 sm:$0xff]   ;;  %v6457_v11 = vld [vmem:[%s6445_s3 + $0x48] ss:$12 sps:$4 sm:$0xff]   ;;  %v6460_v12 = vld [vmem:[%s6445_s3 + $0x64] ss:$12 sps:$4 sm:$0xff]  }
  0x19   : > { %1102 = vmatprep.subr.bf16.mxu0 %v6075_v6  ;;  %v6463_v13 = vld [vmem:[%s6445_s3 + $0x8] ss:$12 sps:$4 sm:$0xff]   ;;  %v6466_v14 = vld [vmem:[%s6445_s3 + $0x20] ss:$12 sps:$4 sm:$0xff]   ;;  %v6478_v17 = vld [vmem:[%s6445_s3 + $0x38] ss:$12 sps:$4 sm:$0xff]  }
  0x1a   : > { %v6470_v15 = vld [vmem:[%s6445_s3 + $0x60] ss:$12 sps:$4 sm:$0xff]   ;;  %5221 = vmatprep.subr.bf16.mxu1 %v6463_v13  ;;  %v6087_v16 = vld [vmem:[%s6445_s3 + $0x7c] ss:$12 sps:$4 sm:$0xff]   ;;  %v6089_v18 = vld [vmem:[%s6445_s3 + $0x78] ss:$12 sps:$4 sm:$0xff]  }
  0x1b   : > { %5222 = vmatpush3.bf16.msra.mxu1 %v6463_v13  ;;  %v6090_v19 = vld [vmem:[%s6445_s3 + $0x94] ss:$12 sps:$4 sm:$0xff]   ;;  %v6491_v20 = vld [vmem:[%s6445_s3 + $0x50] ss:$12 sps:$4 sm:$0xff]   ;;  %v6093_v22 = vld [vmem:[%s6445_s3 + $0xac] ss:$12 sps:$4 sm:$0xff]  }
  0x1c   : > { %1103 = vmatpush1.bf16.msra.mxu0 %v6077_v7  ;;  %5223 = vmatprep.subr.bf16.mxu1 %v6466_v14  ;;  %v6092_v21 = vld [vmem:[%s6445_s3 + $0x90] ss:$12 sps:$4 sm:$0xff]   ;;  %v6497_v23 = vld [vmem:[%s6445_s3 + $0x68] ss:$12 sps:$4 sm:$0xff]   ;;  %v6509_v25 = vld [vmem:[%s6445_s3 + $0x80] ss:$12 sps:$4 sm:$0xff]  }
  0x1d   : > { %1104 = vmatprep.subr.bf16.mxu0 %v6078_v8  ;;  %v6095_v24 = vld [vmem:[%s6445_s3 + $0xa8] ss:$12 sps:$4 sm:$0xff]   ;;  %v6520_v26 = vld [vmem:[%s6445_s3 + $0x98] ss:$12 sps:$4 sm:$0xff]   ;;  %v6534_v29 = vld [vmem:[%s6445_s3 + $0xb0] ss:$12 sps:$4 sm:$0xff]  }
  0x1e   : > { %v906_v28 = vld [vmem:[%s6440_s23 + $0x18] sm:$0xf]  ;;  %v6542_v31 = vld [vmem:[%s6440_s23 + $0x20] sm:$0xff]  ;;  %v6545_v32 = vld [vmem:[%s6440_s23 + $0x28] sm:$0xff]  ;;  %s7524_s20 = sld [smem:[#allocation4_spill]]  ;;  %s6062_s25 = smul.u32 3, %s7528_s30 }
  0x1f   : > { %5224 = vmatpush3.bf16.msra.mxu1 %v6466_v14  ;;  %v922_v30 = vpack.c.bf16 %v906_v28, %v905_v27  ;;  %v1202_v33 = vpack.c.bf16 %v6545_v32, %v6542_v31  ;;  %v6589_v42 = vld [vmem:[%s6440_s23 + $0x30] sm:$0xff]  ;;  %v6592_v43 = vld [vmem:[%s6440_s23 + $0x38] sm:$0xf]  ;;  %v6686_v2 = vsub.s32 1, %v6675_v62  ;;  %s7525_s2 = sld [smem:[#allocation5_spill]]  ;;  %s4908_s22 = sshll.u32 %s7528_s30, 7 }
  0x20   : > { %1105 = vmatpush1.bf16.msra.mxu0 %v6080_v9  ;;  %5225 = vmatprep.subr.bf16.mxu1 %v6478_v17  ;;  %v1203_v47 = vpack.c.bf16 %v6592_v43, %v6589_v42  ;;  %s825_s3 = scalar_lea.vmem %s7500_s5, %s6062_s25  ;;  %s7526_s4 = sld [smem:[#allocation3_spill]] }
  0x21   : > { %1106 = vmatprep.subr.bf16.mxu0 %v6081_v10  ;;  %v6683_v1 = vld [vmem:[%s825_s3] sm:$0x7]  ;;  %s858_s25 = scalar_lea.vmem %s7508_s13, %s7528_s30 }
  0x23   : > { %5226 = vmatpush3.bf16.msra.mxu1 %v6478_v17 }
  0x24   : > { %1107 = vmatpush1.bf16.msra.mxu0 %v6457_v11  ;;  %5227 = vmatprep.subr.bf16.mxu1 %v6491_v20  ;;  %v885_v34 = vld [vmem:[%s7524_s20] sm:$0xff]  ;;  %v886_v35 = vld [vmem:[%s7524_s20 + $0x8] sm:$0xff]  ;;  %v887_v37 = vld [vmem:[%s7524_s20 + $0x10] sm:$0xff] }
  0x25   : > { %1108 = vmatprep.subr.bf16.mxu0 %v6460_v12  ;;  %v6566_v36 = vpack.c.bf16 %v886_v35, %v885_v34  ;;  %v888_v38 = vld [vmem:[%s7524_s20 + $0x18] sm:$0xff]  ;;  %v889_v40 = vld [vmem:[%s7524_s20 + $0x20] sm:$0xff]  ;;  %v890_v41 = vld [vmem:[%s7524_s20 + $0x28] sm:$0xff] }
  0x26   : > { %v6577_v39 = vpack.c.bf16 %v888_v38, %v887_v37  ;;  %v6596_v44 = vpack.c.bf16 %v890_v41, %v889_v40  ;;  %v891_v45 = vld [vmem:[%s7524_s20 + $0x30] sm:$0xff]  ;;  %v892_v46 = vld [vmem:[%s7524_s20 + $0x38] sm:$0xff]  ;;  %v893_v49 = vld [vmem:[%s7524_s20 + $0x40] sm:$0xff]  ;;  %s7021_s3 = scalar_lea.vmem %s7526_s4, %s6434_s21 }
  0x27   : > { %5228 = vmatpush3.bf16.msra.mxu1 %v6491_v20  ;;  %v6610_v48 = vpack.c.bf16 %v892_v46, %v891_v45  ;;  %v894_v50 = vld [vmem:[%s7524_s20 + $0x48] sm:$0xff]  ;;  %v895_v52 = vld [vmem:[%s7524_s20 + $0x50] sm:$0xff]  ;;  %v896_v53 = vld [vmem:[%s7524_s20 + $0x58] sm:$0xff] }
  0x28   : > { %1109 = vmatpush1.bf16.msra.mxu0 %v6470_v15  ;;  %5229 = vmatprep.subr.bf16.mxu1 %v6497_v23  ;;  %v6622_v51 = vpack.c.bf16 %v894_v50, %v893_v49  ;;  %v6634_v54 = vpack.c.bf16 %v896_v53, %v895_v52  ;;  %v897_v55 = vld [vmem:[%s7524_s20 + $0x60] sm:$0xff]  ;;  %v898_v56 = vld [vmem:[%s7524_s20 + $0x68] sm:$0xff]  ;;  %v899_v58 = vld [vmem:[%s7524_s20 + $0x70] sm:$0xff] }
  0x29   : > { %1110 = vmatprep.subr.bf16.mxu0 %v6087_v16  ;;  %v6656_v57 = vpack.c.bf16 %v898_v56, %v897_v55  ;;  %v900_v59 = vld [vmem:[%s7524_s20 + $0x78] sm:$0xff] }
  0x2a   : > { %v6668_v60 = vpack.c.bf16 %v900_v59, %v899_v58 }
  0x2b   : > { %5230 = vmatpush3.bf16.msra.mxu1 %v6497_v23 }
  0x2c   : > { %1111 = vmatpush1.bf16.msra.mxu0 %v6089_v18  ;;  %5231 = vmatprep.subr.bf16.mxu1 %v6509_v25 }
  0x2d   : > { %1112 = vmatprep.subr.bf16.mxu0 %v6090_v19 }
  0x2f   : > { %5232 = vmatpush3.bf16.msra.mxu1 %v6509_v25 }
  0x30   : > { %1113 = vmatpush1.bf16.msra.mxu0 %v6092_v21  ;;  %5233 = vmatprep.subr.bf16.mxu1 %v6520_v26 }
  0x31   : > { %1114 = vmatprep.subr.bf16.mxu0 %v6093_v22 }
  0x33   : > { %5234 = vmatpush3.bf16.msra.mxu1 %v6520_v26 }
  0x34   : > { %1115 = vmatpush1.bf16.msra.mxu0 %v6095_v24  ;;  %5235 = vmatprep.subr.bf16.mxu1 %v6534_v29 }
  0x35   : > { %1204 = vmatprep.subr.bf16.mxu0 %v6072_v3  ;;  %v960_v3 = vrot.slane %v6683_v1, %v6681_v63 }
  0x37   : > { %1133 = vmatmul.mubr.bf16.vlgmr.msra.gmra.mrb[0].mxu0 %v921_v4  ;;  %5236 = vmatpush3.bf16.msra.mxu1 %v6534_v29  ;;  %v964_v4 = vrot.slane %v6683_v1, %v6686_v2 }
  0x38   : > { %1205 = vmatpush1.bf16.msra.mxu0 %v6074_v5  ;;  %1142 = vmatprep.mubr.bf16.mxu0 %v6320_v0 }
  0x39   : > { %1206 = vmatprep.subr.bf16.mxu0 %v6075_v6  ;;  %5241 = vmatprep.subr.bf16.mxu1 %v6463_v13 }
  0x3a   : > { %5238 = vmatmul.mubr.bf16.vlgmr.msra.gmra.mrb[0].mxu1 %v922_v30 }
  0x3b   : > { %5242 = vmatpush3.bf16.msra.mxu1 %v6463_v13  ;;  %5257 = vmatprep.mubr.bf16.mxu1 %v1202_v33 }
  0x3c   : > { %1207 = vmatpush1.bf16.msra.mxu0 %v6077_v7  ;;  %5243 = vmatprep.subr.bf16.mxu1 %v6466_v14 }
  0x3d   : > { %1208 = vmatprep.subr.bf16.mxu0 %v6078_v8 }
  0x3f   : > { %1143 = vmatmul.mubr.bf16.gmra.mrb[4].mxu0 %v922_v30  ;;  %5244 = vmatpush3.bf16.msra.mxu1 %v6466_v14 }
  0x40   : > { %1209 = vmatpush1.bf16.msra.mxu0 %v6080_v9  ;;  %1236 = vmatprep.mubr.bf16.mxu0 %v6320_v0 }
  0x41   : > { %1210 = vmatprep.subr.bf16.mxu0 %v6081_v10  ;;  %5245 = vmatprep.subr.bf16.mxu1 %v6478_v17 }
  0x43   : > { %5246 = vmatpush3.bf16.msra.mxu1 %v6478_v17 }
  0x44   : > { %1211 = vmatpush1.bf16.msra.mxu0 %v6457_v11  ;;  %5247 = vmatprep.subr.bf16.mxu1 %v6491_v20 }
  0x45   : > { %1212 = vmatprep.subr.bf16.mxu0 %v6460_v12 }
  0x47   : > { %5248 = vmatpush3.bf16.msra.mxu1 %v6491_v20 }
  0x48   : > { %1213 = vmatpush1.bf16.msra.mxu0 %v6470_v15  ;;  %5249 = vmatprep.subr.bf16.mxu1 %v6497_v23 }
  0x49   : > { %1214 = vmatprep.subr.bf16.mxu0 %v6087_v16 }
  0x4b   : > { %5250 = vmatpush3.bf16.msra.mxu1 %v6497_v23 }
  0x4c   : > { %1215 = vmatpush1.bf16.msra.mxu0 %v6089_v18  ;;  %5251 = vmatprep.subr.bf16.mxu1 %v6509_v25 }
  0x4d   : > { %1216 = vmatprep.subr.bf16.mxu0 %v6090_v19 }
  0x4f   : > { %5252 = vmatpush3.bf16.msra.mxu1 %v6509_v25 }
  0x50   : > { %1217 = vmatpush1.bf16.msra.mxu0 %v6092_v21  ;;  %5253 = vmatprep.subr.bf16.mxu1 %v6520_v26 }
  0x51   : > { %1218 = vmatprep.subr.bf16.mxu0 %v6093_v22 }
  0x53   : > { %5254 = vmatpush3.bf16.msra.mxu1 %v6520_v26 }
  0x54   : > { %1219 = vmatpush1.bf16.msra.mxu0 %v6095_v24  ;;  %5255 = vmatprep.subr.bf16.mxu1 %v6534_v29 }
  0x55   : > { %5806 = vmatprep.subr.bf16.mxu0 %v6566_v36 }
  0x57   : > { %1237 = vmatmul.mubr.bf16.vlgmr.msra.gmra.mrb[8].mxu0 %v1202_v33  ;;  %5256 = vmatpush3.bf16.msra.mxu1 %v6534_v29 }
  0x58   : > { %1246 = vmatprep.mubr.bf16.mxu0 %v6320_v0  ;;  %5808 = vmatpush3.bf16.msra.mxu0 %v6566_v36 }
  0x59   : > { %5810 = vmatprep.subr.bf16.mxu0 %v6577_v39  ;;  %5838 = vmatprep.subr.bf16.mxu1 %v6566_v36 }
  0x5a   : > { %5258 = vmatmul.mubr.bf16.vlgmr.msra.gmra.mrb[4].mxu1 %v1203_v47 }
  0x5b   : > { %5840 = vmatpush3.bf16.msra.mxu1 %v6566_v36 }
  0x5c   : > { %5812 = vmatpush3.bf16.msra.mxu0 %v6577_v39  ;;  %5842 = vmatprep.subr.bf16.mxu1 %v6577_v39 }
  0x5d   : > { %5814 = vmatprep.subr.bf16.mxu0 %v6596_v44 }
  0x5f   : > { %1247 = vmatmul.mubr.bf16.gmra.mrb[12].mxu0 %v1203_v47  ;;  %5844 = vmatpush3.bf16.msra.mxu1 %v6577_v39 }
  0x60   : > { %5816 = vmatpush3.bf16.msra.mxu0 %v6596_v44  ;;  %5846 = vmatprep.subr.bf16.mxu1 %v6596_v44 }
  0x61   : > { %5818 = vmatprep.subr.bf16.mxu0 %v6610_v48 }
  0x63   : > { %5848 = vmatpush3.bf16.msra.mxu1 %v6596_v44 }
  0x64   : > { %5820 = vmatpush3.bf16.msra.mxu0 %v6610_v48  ;;  %5850 = vmatprep.subr.bf16.mxu1 %v6610_v48 }
  0x65   : > { %5822 = vmatprep.subr.bf16.mxu0 %v6622_v51 }
  0x67   : > { %5852 = vmatpush3.bf16.msra.mxu1 %v6610_v48 }
  0x68   : > { %5824 = vmatpush3.bf16.msra.mxu0 %v6622_v51  ;;  %5854 = vmatprep.subr.bf16.mxu1 %v6622_v51 }
  0x69   : > { %5826 = vmatprep.subr.bf16.mxu0 %v6634_v54 }
  0x6b   : > { %5856 = vmatpush3.bf16.msra.mxu1 %v6622_v51 }
  0x6c   : > { %5828 = vmatpush3.bf16.msra.mxu0 %v6634_v54  ;;  %5858 = vmatprep.subr.bf16.mxu1 %v6634_v54 }
  0x6d   : > { %5830 = vmatprep.subr.bf16.mxu0 %v6656_v57 }
  0x6f   : > { %5860 = vmatpush3.bf16.msra.mxu1 %v6634_v54 }
  0x70   : > { %5862 = vmatprep.subr.bf16.mxu1 %v6656_v57  ;;  %5832 = vmatpush3.bf16.msra.mxu0 %v6656_v57 }
  0x71   : > { %5834 = vmatprep.subr.bf16.mxu0 %v6668_v60 }
  0x73   : > { %5864 = vmatpush3.bf16.msra.mxu1 %v6656_v57 }
  0x74   : > { %5866 = vmatprep.subr.bf16.mxu1 %v6668_v60  ;;  %5836 = vmatpush3.bf16.msra.mxu0 %v6668_v60 }
  0x77   : > { %5868 = vmatpush3.bf16.msra.mxu1 %v6668_v60 }
 0x10a   : > { %v1134_v5 = vpop.f32.mrb[0].mxu0 }
 0x10b   : > { %v1135_v6 = vadd.f32 %v1134_v5, %v960_v3  ;;  %v1136_v7 = vpop.f32.mrb[1].mxu0 }
 0x10c   : > { %v1137_v8 = vadd.f32 %v1136_v7, %v964_v4  ;;  %v1138_v9 = vpop.f32.mrb[2].mxu0 }
 0x10d   : > { %v1139_v10 = vadd.f32 %v1138_v9, %v960_v3  ;;  %v1140_v11 = vpop.f32.mrb[3].mxu0  ;;  %v6692_v24 = vpop.f32.mrb[0].mxu1 }
 0x10e   : > { %v1306_v12 = vmul.f32 %v1137_v8, %v1135_v6  ;;  %v1141_v13 = vadd.f32 %v1140_v11, %v964_v4  ;;  %v6694_v26 = vpop.f32.mrb[1].mxu1 }
 0x10f   : > { %v6696_v27 = vpop.f32.mrb[2].mxu1 }
 0x110   : > { %v1307_v14 = vmul.f32 %v1141_v13, %v1139_v10  ;;  %5293 = vmatprep.mubr.f32.mxu0 %v1306_v12  ;;  %v6698_v28 = vpop.f32.mrb[3].mxu1 }
 0x112   : > { %5294 = vmatmul.mubr.f32.vlgmr.msra.gmra.mrb[16].mxu0 %v1307_v14  ;;  %v1144_v15 = vpop.f32.mrb[4].mxu0 }
 0x113   : > { %v1145_v16 = vadd.f32 %v1144_v15, %v960_v3  ;;  %v1146_v17 = vpop.f32.mrb[5].mxu0 }
 0x114   : > { %v1147_v18 = vadd.f32 %v1146_v17, %v964_v4  ;;  %v1148_v19 = vpop.f32.mrb[6].mxu0 }
 0x115   : > { %v1149_v20 = vadd.f32 %v1148_v19, %v960_v3  ;;  %v1150_v21 = vpop.f32.mrb[7].mxu0 }
 0x116   : > { %v1308_v22 = vmul.f32 %v1147_v18, %v1145_v16  ;;  %v1151_v23 = vadd.f32 %v1150_v21, %v964_v4 }
 0x118   : > { %v1309_v25 = vmul.f32 %v1151_v23, %v1149_v20  ;;  %5296 = vmatprep.mubr.f32.mxu0 %v1308_v22 }
 0x11a   : > { %5297 = vmatmul.mubr.f32.gmra.mrb[18].mxu0 %v1309_v25 }
 0x12a   : > { %v1238_v29 = vpop.f32.mrb[8].mxu0 }
 0x12b   : > { %v1239_v30 = vadd.f32 %v1238_v29, %v960_v3  ;;  %v1240_v33 = vpop.f32.mrb[9].mxu0 }
 0x12c   : > { %v1241_v34 = vadd.f32 %v1240_v33, %v964_v4  ;;  %v1242_v35 = vpop.f32.mrb[10].mxu0 }
 0x12d   : > { %v6700_v37 = vmul.f32 %v1239_v30, %v1137_v8  ;;  %v1243_v38 = vadd.f32 %v1242_v35, %v960_v3  ;;  %v1244_v40 = vpop.f32.mrb[11].mxu0 }
 0x12e   : > { %v1399_v41 = vmul.f32 %v1241_v34, %v1135_v6  ;;  %v6702_v45 = vmul.f32 %v1241_v34, %v1239_v30  ;;  %v1245_v46 = vadd.f32 %v1244_v40, %v964_v4 }
 0x12f   : > { %v6704_v47 = vmul.f32 %v1243_v38, %v1141_v13 }
 0x130   : > { %v1400_v49 = vmul.f32 %v1245_v46, %v1139_v10  ;;  %v6706_v50 = vmul.f32 %v1245_v46, %v1243_v38  ;;  %5331 = vmatprep.mubr.f32.mxu1 %v1399_v41  ;;  %v6714_v10 = vpop.f32.mrb[4].mxu1 }
 0x131   : > { %v6718_v13 = vpop.f32.mrb[5].mxu1 }
 0x132   : > { %v1248_v52 = vpop.f32.mrb[12].mxu0  ;;  %5332 = vmatmul.mubr.f32.vlgmr.msra.gmra.mrb[8].mxu1 %v1400_v49  ;;  %v6720_v14 = vpop.f32.mrb[6].mxu1 }
 0x133   : > { %v1249_v53 = vadd.f32 %v1248_v52, %v960_v3  ;;  %v1250_v55 = vpop.f32.mrb[13].mxu0  ;;  %v6722_v15 = vpop.f32.mrb[7].mxu1 }
 0x134   : > { %v1251_v56 = vadd.f32 %v1250_v55, %v964_v4  ;;  %v1252_v58 = vpop.f32.mrb[14].mxu0 }
 0x135   : > { %v6708_v59 = vmul.f32 %v1249_v53, %v1147_v18  ;;  %v1253_v61 = vadd.f32 %v1252_v58, %v960_v3  ;;  %v1254_v5 = vpop.f32.mrb[15].mxu0  ;;  %v6727_v3 = vld [vmem:[%s7525_s2] sm:$0xf] }
 0x136   : > { %v1401_v6 = vmul.f32 %v1251_v56, %v1145_v16  ;;  %v6710_v7 = vmul.f32 %v1251_v56, %v1249_v53  ;;  %v1255_v8 = vadd.f32 %v1254_v5, %v964_v4  ;;  %5337 = vmatprep.subr.msk.mxu0 %vm1549_vm0, %v6727_v3  ;;  %5345 = vmatprep.subr.msk.mxu1 %vm1549_vm0, %v6727_v3 }
 0x137   : > { %v6712_v9 = vmul.f32 %v1253_v61, %v1151_v23  ;;  %5338 = vmatpush3.msk.msra.mxu0 %vm1549_vm0, %v6727_v3  ;;  %5346 = vmatpush3.msk.msra.mxu1 %vm1549_vm0, %v6727_v3 }
 0x138   : > { %v1402_v11 = vmul.f32 %v1255_v8, %v1149_v20  ;;  %v6716_v12 = vmul.f32 %v1255_v8, %v1253_v61  ;;  %5334 = vmatprep.mubr.f32.mxu1 %v1401_v6  ;;  %5870 = vmatprep.subr.bf16.mxu0 %v6566_v36 }
 0x139   : > { %5902 = vmatprep.subr.bf16.mxu1 %v6566_v36 }
 0x13a   : > { %5335 = vmatmul.mubr.f32.gmra.mrb[10].mxu1 %v1402_v11 }
 0x1e5   : > { %v5295_v4 = vpop.f32.mrb[16].mxu0 }
 0x1e6   : > { %v1376_v16 = vpop.f32.mrb[17].mxu0  ;;  %v1396_v20 = vmul.f32 0.17677669, %v5295_v4 }
 0x1e7   : > { %v1395_v23 = vmul.f32 0.17677669, %v1376_v16 }
 0x1ed   : > { %v5298_v17 = vpop.f32.mrb[18].mxu0 }
 0x1ee   : > { %v1386_v18 = vpop.f32.mrb[19].mxu0  ;;  %v1398_v53 = vmul.f32 0.17677669, %v5298_v17 }
 0x1ef   : > { %v1397_v58 = vmul.f32 0.17677669, %v1386_v18 }
 0x205   : > { %v5333_v19 = vpop.f32.mrb[8].mxu1 }
 0x206   : > { %v1489_v21 = vmul.f32 0.17677669, %v5333_v19  ;;  %v1469_v22 = vpop.f32.mrb[9].mxu1 }
 0x207   : > { %v1488_v25 = vmul.f32 0.17677669, %v1469_v22 }
 0x208   : > { %v1493_v29 = vmax.f32 %v1396_v20, %v1489_v21 }
 0x209   : > { %v1492_v30 = vmax.f32 %v1395_v23, %v1488_v25 }
 0x20a   : > { %v1497_v33 = vsub.f32 %v1396_v20, %v1493_v29  ;;  %v1509_v34 = vsub.f32 %v1489_v21, %v1493_v29 }
 0x20b   : > { %v1496_v35 = vsub.f32 %v1395_v23, %v1492_v30  ;;  %v1508_v38 = vsub.f32 %v1488_v25, %v1492_v30 }
 0x20c   : > { %v1502_v40 = vmul.f32 1.442695, %v1497_v33  ;;  %v1514_v41 = vmul.f32 1.442695, %v1509_v34 }
 0x20d   : > { %v1500_v46 = vmul.f32 1.442695, %v1496_v35  ;;  %v1512_v49 = vmul.f32 1.442695, %v1508_v38  ;;  %v5336_v52 = vpop.f32.mrb[10].mxu1 }
 0x20e   : > { %6162 = vpow2.f32 %v1502_v40  ;;  %v1491_v55 = vmul.f32 0.17677669, %v5336_v52  ;;  %v1479_v56 = vpop.f32.mrb[11].mxu1 }
 0x20f   : > { %6164 = vpow2.f32 %v1514_v41  ;;  %v1490_v61 = vmul.f32 0.17677669, %v1479_v56 }
 0x210   : > { %6166 = vpow2.f32 %v1500_v46  ;;  %v1495_v5 = vmax.f32 %v1398_v53, %v1491_v55 }
 0x211   : > { %6168 = vpow2.f32 %v1512_v49  ;;  %v1494_v6 = vmax.f32 %v1397_v58, %v1490_v61 }
 0x212   : > { %v1499_v8 = vsub.f32 %v1398_v53, %v1495_v5  ;;  %v1511_v11 = vsub.f32 %v1491_v55, %v1495_v5 }
 0x213   : > { %v1498_v4 = vsub.f32 %v1397_v58, %v1494_v6  ;;  %v1510_v16 = vsub.f32 %v1490_v61, %v1494_v6 }
 0x214   : > { %v1506_v19 = vmul.f32 1.442695, %v1499_v8  ;;  %v1518_v20 = vmul.f32 1.442695, %v1511_v11 }
 0x215   : > { %v1504_v21 = vmul.f32 1.442695, %v1498_v4  ;;  %v1516_v22 = vmul.f32 1.442695, %v1510_v16 }
 0x216   : > { %6170 = vpow2.f32 %v1506_v19 }
 0x217   : > { %6172 = vpow2.f32 %v1518_v20 }
 0x218   : > { %v6163_v17 = vpop.eup %6162  ;;  %6174 = vpow2.f32 %v1504_v21 }
 0x219   : > { %v6165_v23 = vpop.eup %6164  ;;  %6176 = vpow2.f32 %v1516_v22 }
 0x21a   : > { %v6167_v18 = vpop.eup %6166  ;;  %v1521_v25 = vadd.f32 %v6165_v23, %v6163_v17 }
 0x21b   : > { %v6169_v29 = vpop.eup %6168 }
 0x21c   : > { %6178 = vrcp.f32 %v1521_v25  ;;  %v1520_v30 = vadd.f32 %v6169_v29, %v6167_v18 }
 0x21e   : > { %6180 = vrcp.f32 %v1520_v30 }
 0x220   : > { %v6171_v33 = vpop.eup %6170 }
 0x221   : > { %v6173_v34 = vpop.eup %6172 }
 0x222   : > { %v6175_v35 = vpop.eup %6174  ;;  %v1523_v38 = vadd.f32 %v6173_v34, %v6171_v33 }
 0x223   : > { %v6177_v40 = vpop.eup %6176 }
 0x224   : > { %6182 = vrcp.f32 %v1523_v38  ;;  %v1522_v41 = vadd.f32 %v6177_v40, %v6175_v35 }
 0x226   : > { %v6179_v46 = vpop.eup %6178  ;;  %6184 = vrcp.f32 %v1522_v41 }
 0x227   : > { %v1533_v49 = vmul.f32 %v6179_v46, %v6163_v17  ;;  %v1643_v52 = vmul.f32 %v6179_v46, %v6165_v23 }
 0x228   : > { %v6181_v53 = vpop.eup %6180 }
 0x229   : > { %v1532_v55 = vmul.f32 %v6181_v53, %v6167_v18  ;;  %v1642_v56 = vmul.f32 %v6181_v53, %v6169_v29 }
 0x22b   : > { %5339 = vmatprep.mubr.msk.f32.mxu0 %vm1536_vm1, %v1532_v55  ;;  %5347 = vmatprep.mubr.msk.f32.mxu1 %vm1536_vm1, %v1642_v56 }
 0x22c   : > { %5340 = vmatmul.mubr.msk.f32.vlgmr.msra.gmra.mrb[20].mxu0 %vm1536_vm1, %v1533_v49  ;;  %5348 = vmatmul.mubr.msk.f32.vlgmr.msra.gmra.mrb[12].mxu1 %vm1536_vm1, %v1643_v52 }
 0x22d   : > { %5872 = vmatpush3.bf16.msra.mxu0 %v6566_v36  ;;  %5904 = vmatpush3.bf16.msra.mxu1 %v6566_v36 }
 0x22e   : > { %v6183_v58 = vpop.eup %6182  ;;  %5874 = vmatprep.subr.bf16.mxu0 %v6577_v39  ;;  %5906 = vmatprep.subr.bf16.mxu1 %v6577_v39 }
 0x22f   : > { %v1535_v61 = vmul.f32 %v6183_v58, %v6171_v33  ;;  %v1645_v5 = vmul.f32 %v6183_v58, %v6173_v34 }
 0x230   : > { %v6185_v6 = vpop.eup %6184 }
 0x231   : > { %5876 = vmatpush3.bf16.msra.mxu0 %v6577_v39  ;;  %5908 = vmatpush3.bf16.msra.mxu1 %v6577_v39  ;;  %v1534_v8 = vmul.f32 %v6185_v6, %v6175_v35  ;;  %v1644_v11 = vmul.f32 %v6185_v6, %v6177_v40 }
 0x232   : > { %5878 = vmatprep.subr.bf16.mxu0 %v6596_v44  ;;  %5910 = vmatprep.subr.bf16.mxu1 %v6596_v44 }
 0x233   : > { %5342 = vmatprep.mubr.msk.f32.mxu0 %vm1536_vm1, %v1534_v8  ;;  %5350 = vmatprep.mubr.msk.f32.mxu1 %vm1536_vm1, %v1644_v11 }
 0x234   : > { %5343 = vmatmul.mubr.msk.f32.gmra.mrb[22].mxu0 %vm1536_vm1, %v1535_v61  ;;  %5351 = vmatmul.mubr.msk.f32.gmra.mrb[14].mxu1 %vm1536_vm1, %v1645_v5 }
 0x235   : > { %5880 = vmatpush3.bf16.msra.mxu0 %v6596_v44  ;;  %5912 = vmatpush3.bf16.msra.mxu1 %v6596_v44 }
 0x236   : > { %5385 = vmatprep.mubr.f32.mxu0 %v6700_v37  ;;  %5423 = vmatprep.mubr.f32.mxu1 %v6702_v45  ;;  %v6794_v37 = vld [vmem:[%s6486_s28] sm:$0xff]   ;;  %v967_v45 = vsub.s32 2, %v6675_v62 }
 0x237   : > { %5882 = vmatprep.subr.bf16.mxu0 %v6610_v48  ;;  %5914 = vmatprep.subr.bf16.mxu1 %v6610_v48 }
 0x239   : > { %5884 = vmatpush3.bf16.msra.mxu0 %v6610_v48  ;;  %5916 = vmatpush3.bf16.msra.mxu1 %v6610_v48 }
 0x23a   : > { %5886 = vmatprep.subr.bf16.mxu0 %v6622_v51  ;;  %5918 = vmatprep.subr.bf16.mxu1 %v6622_v51 }
 0x23d   : > { %5888 = vmatpush3.bf16.msra.mxu0 %v6622_v51  ;;  %5920 = vmatpush3.bf16.msra.mxu1 %v6622_v51 }
 0x23e   : > { %5890 = vmatprep.subr.bf16.mxu0 %v6634_v54  ;;  %5922 = vmatprep.subr.bf16.mxu1 %v6634_v54 }
 0x241   : > { %5892 = vmatpush3.bf16.msra.mxu0 %v6634_v54  ;;  %5924 = vmatpush3.bf16.msra.mxu1 %v6634_v54 }
 0x242   : > { %5894 = vmatprep.subr.bf16.mxu0 %v6656_v57  ;;  %5926 = vmatprep.subr.bf16.mxu1 %v6656_v57 }
 0x245   : > { %5896 = vmatpush3.bf16.msra.mxu0 %v6656_v57  ;;  %5928 = vmatpush3.bf16.msra.mxu1 %v6656_v57 }
 0x246   : > { %5898 = vmatprep.subr.bf16.mxu0 %v6668_v60  ;;  %5930 = vmatprep.subr.bf16.mxu1 %v6668_v60 }
 0x249   : > { %5900 = vmatpush3.bf16.msra.mxu0 %v6668_v60  ;;  %5932 = vmatpush3.bf16.msra.mxu1 %v6668_v60 }
 0x24a   : > { %5429 = vmatprep.subr.msk.mxu0 %vm1549_vm0, %v6727_v3  ;;  %5437 = vmatprep.subr.msk.mxu1 %vm1549_vm0, %v6727_v3 }
 0x24c   : > { %5386 = vmatmul.mubr.f32.vlgmr.msra.gmra.mrb[24].mxu0 %v6704_v47  ;;  %5424 = vmatmul.mubr.f32.vlgmr.msra.gmra.mrb[16].mxu1 %v6706_v50  ;;  %v968_v47 = vrot.slane %v6683_v1, %v967_v45 }
 0x24d   : > { %5388 = vmatprep.mubr.f32.mxu0 %v6708_v59  ;;  %5426 = vmatprep.mubr.f32.mxu1 %v6710_v7 }
 0x24e   : > { %5430 = vmatpush3.msk.msra.mxu0 %vm1549_vm0, %v6727_v3  ;;  %5438 = vmatpush3.msk.msra.mxu1 %vm1549_vm0, %v6727_v3  ;;  %v6803_v50 = vadd.f32 %v6698_v28, %v968_v47  ;;  %v6806_v59 = vadd.f32 %v6722_v15, %v968_v47  ;;  %v6809_v7 = vadd.f32 %v6694_v26, %v968_v47 }
 0x24f   : > { %5445 = vmatprep.subr.bf16.mxu0 %v6794_v37  ;;  %5465 = vmatprep.subr.bf16.mxu1 %v6794_v37  ;;  %v6828_v22 = vadd.f32 %v6720_v14, %v968_v47  ;;  %v6831_v17 = vadd.f32 %v6692_v24, %v968_v47  ;;  %v6834_v23 = vadd.f32 %v6714_v10, %v968_v47 }
 0x250   : > { %5389 = vmatmul.mubr.f32.gmra.mrb[26].mxu0 %v6712_v9  ;;  %5427 = vmatmul.mubr.f32.gmra.mrb[18].mxu1 %v6716_v12  ;;  %v6812_v9 = vadd.f32 %v6718_v13, %v968_v47  ;;  %v6825_v13 = vadd.f32 %v6696_v27, %v968_v47 }
 0x2ff   : > { %v5341_v12 = vpop.f32.mrb[20].mxu0  ;;  %v5349_v3 = vpop.f32.mrb[12].mxu1 }
 0x300   : > { %v1639_v4 = vmul.f32 %v5341_v12, %v6803_v50  ;;  %v1744_v16 = vmul.f32 %v5349_v3, %v6806_v59  ;;  %v1619_v19 = vpop.f32.mrb[21].mxu0  ;;  %v1724_v1 = vpop.f32.mrb[13].mxu1 }
 0x301   : > { %v1638_v28 = vmul.f32 %v1619_v19, %v6809_v7  ;;  %v1743_v20 = vmul.f32 %v1724_v1, %v6812_v9 }
 0x302   : > { %v6818_v15 = vadd.f32 %v1744_v16, %v1639_v4 }
 0x303   : > { %v6820_v21 = vadd.f32 %v1743_v20, %v1638_v28 }
 0x305   : > { %v2191_v26 = vpack.c.bf16 %v6818_v15, %v6820_v21  ;;  %v6110_v15 = vld [vmem:[%s6486_s28 + $0x30] sm:$0xff]   ;;  %v6111_v21 = vld [vmem:[%s6486_s28 + $0x38] sm:$0xff]  }
 0x307   : > { %v5344_v18 = vpop.f32.mrb[22].mxu0  ;;  %v5352_v25 = vpop.f32.mrb[14].mxu1 }
 0x308   : > { %v1641_v29 = vmul.f32 %v5344_v18, %v6825_v13  ;;  %v1746_v30 = vmul.f32 %v5352_v25, %v6828_v22  ;;  %v1629_v33 = vpop.f32.mrb[23].mxu0  ;;  %v1734_v34 = vpop.f32.mrb[15].mxu1 }
 0x309   : > { %v1640_v27 = vmul.f32 %v1629_v33, %v6831_v17  ;;  %v1745_v35 = vmul.f32 %v1734_v34, %v6834_v23 }
 0x30a   : > { %v6840_v14 = vadd.f32 %v1746_v30, %v1641_v29 }
 0x30b   : > { %v6842_v38 = vadd.f32 %v1745_v35, %v1640_v27 }
 0x30d   : > { %v2192_v24 = vpack.c.bf16 %v6840_v14, %v6842_v38 }
 0x31f   : > { %v5387_v10 = vpop.f32.mrb[24].mxu0  ;;  %v5425_v40 = vpop.f32.mrb[16].mxu1 }
 0x320   : > { %v1841_v41 = vmul.f32 0.17677669, %v5387_v10  ;;  %v1934_v46 = vmul.f32 0.17677669, %v5425_v40  ;;  %v1821_v49 = vpop.f32.mrb[25].mxu0  ;;  %v1914_v52 = vpop.f32.mrb[17].mxu1 }
 0x321   : > { %v1840_v53 = vmul.f32 0.17677669, %v1821_v49  ;;  %v1933_v55 = vmul.f32 0.17677669, %v1914_v52 }
 0x322   : > { %v1938_v56 = vmax.f32 %v1841_v41, %v1934_v46 }
 0x323   : > { %v1937_v58 = vmax.f32 %v1840_v53, %v1933_v55  ;;  %v5390_v61 = vpop.f32.mrb[26].mxu0  ;;  %v5428_v5 = vpop.f32.mrb[18].mxu1 }
 0x324   : > { %v1942_v6 = vsub.f32 %v1841_v41, %v1938_v56  ;;  %v1954_v8 = vsub.f32 %v1934_v46, %v1938_v56  ;;  %v1843_v11 = vmul.f32 0.17677669, %v5390_v61  ;;  %v1936_v47 = vmul.f32 0.17677669, %v5428_v5  ;;  %v1831_v12 = vpop.f32.mrb[27].mxu0  ;;  %v1924_v3 = vpop.f32.mrb[19].mxu1 }
 0x325   : > { %v1941_v4 = vsub.f32 %v1840_v53, %v1937_v58  ;;  %v1953_v16 = vsub.f32 %v1933_v55, %v1937_v58  ;;  %v1842_v19 = vmul.f32 0.17677669, %v1831_v12  ;;  %v1935_v1 = vmul.f32 0.17677669, %v1924_v3 }
 0x326   : > { %v1947_v28 = vmul.f32 1.442695, %v1942_v6  ;;  %v1959_v20 = vmul.f32 1.442695, %v1954_v8  ;;  %v1940_v18 = vmax.f32 %v1843_v11, %v1936_v47 }
 0x327   : > { %v1945_v25 = vmul.f32 1.442695, %v1941_v4  ;;  %v1957_v29 = vmul.f32 1.442695, %v1953_v16  ;;  %v1939_v30 = vmax.f32 %v1842_v19, %v1935_v1 }
 0x328   : > { %6186 = vpow2.f32 %v1947_v28  ;;  %v1944_v33 = vsub.f32 %v1843_v11, %v1940_v18  ;;  %v1956_v34 = vsub.f32 %v1936_v47, %v1940_v18 }
 0x329   : > { %6188 = vpow2.f32 %v1959_v20  ;;  %v1943_v27 = vsub.f32 %v1842_v19, %v1939_v30  ;;  %v1955_v35 = vsub.f32 %v1935_v1, %v1939_v30  ;;  %v6105_v20 = vld [vmem:[%s6486_s28 + $0x8] sm:$0xff]  }
 0x32a   : > { %6190 = vpow2.f32 %v1945_v25  ;;  %v1951_v10 = vmul.f32 1.442695, %v1944_v33  ;;  %v1963_v40 = vmul.f32 1.442695, %v1956_v34  ;;  %v6106_v34 = vld [vmem:[%s6486_s28 + $0x10] sm:$0xff]  }
 0x32b   : > { %6192 = vpow2.f32 %v1957_v29  ;;  %v1949_v41 = vmul.f32 1.442695, %v1943_v27  ;;  %v1961_v46 = vmul.f32 1.442695, %v1955_v35  ;;  %v6108_v27 = vld [vmem:[%s6486_s28 + $0x20] sm:$0xff]   ;;  %v6109_v35 = vld [vmem:[%s6486_s28 + $0x28] sm:$0xff]  }
 0x32c   : > { %6194 = vpow2.f32 %v1951_v10 }
 0x32d   : > { %6196 = vpow2.f32 %v1963_v40 }
 0x32e   : > { %6198 = vpow2.f32 %v1949_v41 }
 0x32f   : > { %6200 = vpow2.f32 %v1961_v46 }
 0x332   : > { %v6187_v49 = vpop.eup %6186 }
 0x333   : > { %v6189_v52 = vpop.eup %6188 }
 0x334   : > { %v6191_v53 = vpop.eup %6190  ;;  %v1966_v55 = vadd.f32 %v6189_v52, %v6187_v49 }
 0x335   : > { %v6193_v56 = vpop.eup %6192 }
 0x336   : > { %v6195_v58 = vpop.eup %6194  ;;  %6202 = vrcp.f32 %v1966_v55  ;;  %v1965_v61 = vadd.f32 %v6193_v56, %v6191_v53 }
 0x337   : > { %v6197_v5 = vpop.eup %6196 }
 0x338   : > { %v6199_v6 = vpop.eup %6198  ;;  %6204 = vrcp.f32 %v1965_v61  ;;  %v1968_v8 = vadd.f32 %v6197_v5, %v6195_v58 }
 0x339   : > { %v6201_v11 = vpop.eup %6200 }
 0x33a   : > { %6206 = vrcp.f32 %v1968_v8  ;;  %v1967_v47 = vadd.f32 %v6201_v11, %v6199_v6 }
 0x33c   : > { %6208 = vrcp.f32 %v1967_v47 }
 0x340   : > { %v6203_v12 = vpop.eup %6202 }
 0x341   : > { %v1978_v3 = vmul.f32 %v6203_v12, %v6187_v49  ;;  %v2083_v4 = vmul.f32 %v6203_v12, %v6189_v52 }
 0x342   : > { %v6205_v16 = vpop.eup %6204 }
 0x343   : > { %v1977_v19 = vmul.f32 %v6205_v16, %v6191_v53  ;;  %v2082_v1 = vmul.f32 %v6205_v16, %v6193_v56 }
 0x344   : > { %v6207_v28 = vpop.eup %6206 }
 0x345   : > { %5431 = vmatprep.mubr.msk.f32.mxu0 %vm1536_vm1, %v1977_v19  ;;  %5439 = vmatprep.mubr.msk.f32.mxu1 %vm1536_vm1, %v2082_v1  ;;  %v1980_v18 = vmul.f32 %v6207_v28, %v6195_v58  ;;  %v2085_v25 = vmul.f32 %v6207_v28, %v6197_v5  ;;  %v6307_v19 = vld [vmem:[%s6440_s23 + $0x18] sm:$0xf] }
 0x346   : > { %v6209_v29 = vpop.eup %6208  ;;  %5432 = vmatmul.mubr.msk.f32.vlgmr.msra.gmra.mrb[28].mxu0 %vm1536_vm1, %v1978_v3  ;;  %5440 = vmatmul.mubr.msk.f32.vlgmr.msra.gmra.mrb[20].mxu1 %vm1536_vm1, %v2083_v4  ;;  %v6306_v4 = vld [vmem:[%s6440_s23] sm:$0xff] }
 0x347   : > { %5446 = vmatpush3.bf16.msra.mxu0 %v6794_v37  ;;  %v1979_v30 = vmul.f32 %v6209_v29, %v6199_v6  ;;  %v2084_v33 = vmul.f32 %v6209_v29, %v6201_v11  ;;  %5466 = vmatpush3.bf16.msra.mxu1 %v6794_v37  ;;  %v6107_v37 = vld [vmem:[%s6486_s28 + $0x18] sm:$0xff]   ;;  %s874_s28 = scalar_lea.vmem %s7512_s17, %s7528_s30 }
 0x348   : > { %5447 = vmatprep.subr.bf16.mxu0 %v6105_v20  ;;  %5467 = vmatprep.subr.bf16.mxu1 %v6105_v20 }
 0x349   : > { %5434 = vmatprep.mubr.msk.f32.mxu0 %vm1536_vm1, %v1979_v30  ;;  %5442 = vmatprep.mubr.msk.f32.mxu1 %vm1536_vm1, %v2084_v33 }
 0x34a   : > { %5435 = vmatmul.mubr.msk.f32.gmra.mrb[30].mxu0 %vm1536_vm1, %v1980_v18  ;;  %5443 = vmatmul.mubr.msk.f32.gmra.mrb[22].mxu1 %vm1536_vm1, %v2085_v25 }
 0x34b   : > { %5448 = vmatpush3.bf16.msra.mxu0 %v6105_v20  ;;  %5461 = vmatprep.mubr.bf16.mxu0 %v2191_v26 }
 0x34c   : > { %5449 = vmatprep.subr.bf16.mxu0 %v6106_v34  ;;  %5468 = vmatpush3.bf16.msra.mxu1 %v6105_v20  ;;  %v6308_v20 = vld [vmem:[%s6440_s23 + $0x8] sm:$0xff] }
 0x34d   : > { %5469 = vmatprep.subr.bf16.mxu1 %v6106_v34 }
 0x34f   : > { %5450 = vmatpush3.bf16.msra.mxu0 %v6106_v34 }
 0x350   : > { %5451 = vmatprep.subr.bf16.mxu0 %v6107_v37  ;;  %5470 = vmatpush3.bf16.msra.mxu1 %v6106_v34 }
 0x351   : > { %5471 = vmatprep.subr.bf16.mxu1 %v6107_v37 }
 0x353   : > { %5452 = vmatpush3.bf16.msra.mxu0 %v6107_v37 }
 0x354   : > { %5453 = vmatprep.subr.bf16.mxu0 %v6108_v27  ;;  %5472 = vmatpush3.bf16.msra.mxu1 %v6107_v37 }
 0x355   : > { %5473 = vmatprep.subr.bf16.mxu1 %v6108_v27 }
 0x357   : > { %5454 = vmatpush3.bf16.msra.mxu0 %v6108_v27 }
 0x358   : > { %5455 = vmatprep.subr.bf16.mxu0 %v6109_v35  ;;  %5474 = vmatpush3.bf16.msra.mxu1 %v6108_v27 }
 0x359   : > { %5475 = vmatprep.subr.bf16.mxu1 %v6109_v35 }
 0x35b   : > { %5456 = vmatpush3.bf16.msra.mxu0 %v6109_v35 }
 0x35c   : > { %5457 = vmatprep.subr.bf16.mxu0 %v6110_v15  ;;  %5476 = vmatpush3.bf16.msra.mxu1 %v6109_v35 }
 0x35d   : > { %5477 = vmatprep.subr.bf16.mxu1 %v6110_v15 }
 0x35f   : > { %5458 = vmatpush3.bf16.msra.mxu0 %v6110_v15 }
 0x360   : > { %5459 = vmatprep.subr.bf16.mxu0 %v6111_v21  ;;  %5478 = vmatpush3.bf16.msra.mxu1 %v6110_v15 }
 0x361   : > { %5479 = vmatprep.subr.bf16.mxu1 %v6111_v21 }
 0x363   : > { %5460 = vmatpush3.bf16.msra.mxu0 %v6111_v21 }
 0x364   : > { %5480 = vmatpush3.bf16.msra.mxu1 %v6111_v21 }
 0x366   : > { %5462 = vmatmul.mubr.bf16.vlgmr.msra.gmra.mrb[32].mxu0 %v2192_v24 }
 0x419   : > { %v5433_v26 = vpop.f32.mrb[28].mxu0  ;;  %v5441_v10 = vpop.f32.mrb[20].mxu1 }
 0x41a   : > { %v2079_v40 = vmul.f32 %v5433_v26, %v6803_v50  ;;  %v2184_v41 = vmul.f32 %v5441_v10, %v6806_v59  ;;  %v2059_v46 = vpop.f32.mrb[29].mxu0  ;;  %v2164_v49 = vpop.f32.mrb[21].mxu1 }
 0x41b   : > { %v2078_v52 = vmul.f32 %v2059_v46, %v6809_v7  ;;  %v2183_v53 = vmul.f32 %v2164_v49, %v6812_v9 }
 0x41c   : > { %v2188_v55 = vadd.f32 %v2184_v41, %v2079_v40 }
 0x41d   : > { %v2187_v56 = vadd.f32 %v2183_v53, %v2078_v52  ;;  %v5436_v58 = vpop.f32.mrb[30].mxu0  ;;  %v5444_v61 = vpop.f32.mrb[22].mxu1 }
 0x41e   : > { %v2081_v14 = vmul.f32 %v5436_v58, %v6825_v13  ;;  %v2186_v38 = vmul.f32 %v5444_v61, %v6828_v22  ;;  %v2069_v24 = vpop.f32.mrb[31].mxu0  ;;  %v2174_v5 = vpop.f32.mrb[23].mxu1  ;;  %v4819_v13 = vld [vmem:[%s833_s26] ss:$0 sm:$0xff]  ;;  %s6962_s26 = scalar_lea.vmem %s7505_s10, %s4908_s22 }
 0x41f   : > { %v2080_v50 = vmul.f32 %v2069_v24, %v6831_v17  ;;  %v2185_v59 = vmul.f32 %v2174_v5, %v6834_v23  ;;  %v2380_v6 = vpack.c.bf16 %v2188_v55, %v2187_v56 }
 0x420   : > { %v2190_v7 = vadd.f32 %v2186_v38, %v2081_v14 }
 0x421   : > { %v2189_v9 = vadd.f32 %v2185_v59, %v2080_v50  ;;  %5481 = vmatprep.mubr.bf16.mxu1 %v2380_v6  ;;  %v6112_v50 = vld [vmem:[%s6505_s1] sm:$0xff]   ;;  %v6113_v59 = vld [vmem:[%s6505_s1 + $0x8] sm:$0xff]  }
 0x422   : > { %5485 = vmatprep.subr.bf16.mxu0 %v6112_v50  ;;  %5505 = vmatprep.subr.bf16.mxu1 %v6112_v50 }
 0x423   : > { %v2381_v8 = vpack.c.bf16 %v2190_v7, %v2189_v9  ;;  %5486 = vmatpush3.bf16.msra.mxu0 %v6112_v50 }
 0x424   : > { %5487 = vmatprep.subr.bf16.mxu0 %v6113_v59 }
 0x425   : > { %5482 = vmatmul.mubr.bf16.vlgmr.msra.gmra.mrb[24].mxu1 %v2381_v8 }
 0x426   : > { %5506 = vmatpush3.bf16.msra.mxu1 %v6112_v50 }
 0x427   : > { %5507 = vmatprep.subr.bf16.mxu1 %v6113_v59  ;;  %5488 = vmatpush3.bf16.msra.mxu0 %v6113_v59 }
 0x42a   : > { %5508 = vmatpush3.bf16.msra.mxu1 %v6113_v59 }
 0x439   : > { %v5463_v22 = vpop.f32.mrb[32].mxu0 }
 0x43a   : > { %v2298_v11 = vpop.f32.mrb[33].mxu0  ;;  %v2307_v10 = vadd.f32 %v5463_v22, %v4819_v13 }
 0x43b   : > { %v2299_v47 = vadd.f32 %v4819_v13, %v2298_v11  ;;  %v5464_v17 = vpop.f32.mrb[34].mxu0 }
 0x43c   : > { %v2310_v12 = vadd.f32 %v5464_v17, %v4819_v13  ;;  %v2301_v23 = vpop.f32.mrb[35].mxu0 }
 0x43d   : > { %v2302_v3 = vadd.f32 %v4819_v13, %v2301_v23  ;;  %v2313_v16 = vadd.f32 %v6306_v4, %v2299_v47 }
 0x43e   : > { %v2316_v1 = vadd.f32 %v6307_v19, %v2310_v12 }
 0x43f   : > { %2317 = vadd.xlane.f32.xlu0 %v2313_v16  ;;  %v2314_v18 = vadd.f32 %v6308_v20, %v2302_v3 }
 0x440   : > { %v2323_v28 = vsel %vm1549_vm0, %v2316_v1, 0.0 }
 0x441   : > { %2324 = vadd.xlane.f32.xlu1 %v2323_v28 }
 0x443   : > { %2319 = vadd.xlane.f32.xlu0 %v2314_v18 }
 0x4cc   : > { %v2318_v25 = vpop.xlane.xlu0 %2317 }
 0x4cd   : > { %v2327_v40 = vmul.f32 0.0078125, %v2318_v25 }
 0x4ce   : > { %v2325_v41 = vpop.xlane.xlu1 %2324 }
 0x4cf   : > { %v2330_v53 = vmul.f32 0.0078125, %v2325_v41  ;;  %v6889_v56 = vsub.f32 %v2313_v16, %v2327_v40 }
 0x4d0   : > { %v2320_v21 = vpop.xlane.xlu0 %2319 }
 0x4d1   : > { %v2328_v49 = vmul.f32 0.0078125, %v2320_v21  ;;  %v6895_v14 = vsub.f32 %v2316_v1, %v2330_v53  ;;  %v6114_v21 = vld [vmem:[%s6505_s1 + $0x10] sm:$0xff]  }
 0x4d2   : > { %5489 = vmatprep.subr.bf16.mxu0 %v6114_v21  ;;  %5509 = vmatprep.subr.bf16.mxu1 %v6114_v21 }
 0x4d3   : > { %v2338_v24 = vmul.f32 %v6895_v14, %v6895_v14  ;;  %5490 = vmatpush3.bf16.msra.mxu0 %v6114_v21  ;;  %5510 = vmatpush3.bf16.msra.mxu1 %v6114_v21 }
 0x4d5   : > { %v2345_v5 = vsel %vm1549_vm0, %v2338_v24, 0.0 }
 0x4f8   : > { %v5483_v29 = vpop.f32.mrb[24].mxu1 }
 0x4f9   : > { %v2416_v30 = vpop.f32.mrb[25].mxu1  ;;  %v2425_v52 = vadd.f32 %v5483_v29, %v4819_v13 }
 0x4fa   : > { %v2417_v33 = vadd.f32 %v4819_v13, %v2416_v30  ;;  %v5484_v34 = vpop.f32.mrb[26].mxu1 }
 0x4fb   : > { %v2428_v37 = vadd.f32 %v5484_v34, %v4819_v13  ;;  %v2419_v27 = vpop.f32.mrb[27].mxu1  ;;  %v2433_v61 = vadd.f32 %v6589_v42, %v2425_v52  ;;  %v6115_v52 = vld [vmem:[%s6505_s1 + $0x18] sm:$0xff]  }
 0x4fc   : > { %v2420_v35 = vadd.f32 %v4819_v13, %v2419_v27  ;;  %v2431_v15 = vadd.f32 %v6542_v31, %v2417_v33  ;;  %v6309_v31 = vld [vmem:[%s6440_s23 + $0x10] sm:$0xff]  ;;  %s4764_s23 = sshll.u32 %s7528_s30, 3  ;;  %5491 = vmatprep.subr.bf16.mxu0 %v6115_v52  ;;  %5511 = vmatprep.subr.bf16.mxu1 %v6115_v52 }
 0x4fd   : > { %v2434_v26 = vadd.f32 %v6592_v43, %v2428_v37  ;;  %v2315_v58 = vadd.f32 %v6309_v31, %v2307_v10  ;;  %v6892_v43 = vsub.f32 %v2314_v18, %v2328_v49  ;;  %s6929_s29 = scalar_lea.vmem %s7513_s18, %s4764_s23  ;;  %5492 = vmatpush3.bf16.msra.mxu0 %v6115_v52  ;;  %5512 = vmatpush3.bf16.msra.mxu1 %v6115_v52  ;;  %v6116_v31 = vld [vmem:[%s6505_s1 + $0x20] sm:$0xff]   ;;  %s4757_s23 = sshll.u32 %s7528_s30, 1 }
 0x4fe   : > { %2435 = vadd.xlane.f32.xlu1 %v2431_v15  ;;  %v2432_v46 = vadd.f32 %v6545_v32, %v2420_v35  ;;  %v2335_v32 = vmul.f32 %v6889_v56, %v6889_v56  ;;  %v902_v35 = vld [vmem:[%s6929_s29] sm:$0x3f]  ;;  %5493 = vmatprep.subr.bf16.mxu0 %v6116_v31  ;;  %s850_s22 = scalar_lea.vmem %s7506_s11, %s4757_s23 }
 0x4ff   : > { %v2441_v55 = vsel %vm1549_vm0, %v2434_v26, 0.0  ;;  %v2336_v38 = vmul.f32 %v6892_v43, %v6892_v43  ;;  %v6942_v49 = vrot.slane %v902_v35, %v6686_v2  ;;  %5513 = vmatprep.subr.bf16.mxu1 %v6116_v31 }
 0x500   : > { %2437 = vadd.xlane.f32.xlu0 %v2432_v46 }
 0x501   : > { %5494 = vmatpush3.bf16.msra.mxu0 %v6116_v31  ;;  %5514 = vmatpush3.bf16.msra.mxu1 %v6116_v31 }
 0x502   : > { %2442 = vadd.xlane.f32.xlu1 %v2441_v55 }
 0x504   : > { %2321 = vadd.xlane.f32.xlu0 %v2315_v58 }
 0x506   : > { %2439 = vadd.xlane.f32.xlu1 %v2433_v61 }
 0x508   : > { %2339 = vadd.xlane.f32.xlu0 %v2335_v32  ;;  %v6119_v32 = vld [vmem:[%s6505_s1 + $0x38] sm:$0xff]  }
 0x50a   : > { %2341 = vadd.xlane.f32.xlu1 %v2336_v38  ;;  %v6122_v38 = vld [vmem:[%s6962_s26 + $0x4] ss:$8 sps:$4 sm:$0xff]  }
 0x50e   : > { %2346 = vadd.xlane.f32.xlu1 %v2345_v5 }
 0x58b   : > { %v2436_v42 = vpop.xlane.xlu1 %2435 }
 0x58c   : > { %v2444_v22 = vmul.f32 0.0078125, %v2436_v42 }
 0x58d   : > { %v2438_v6 = vpop.xlane.xlu0 %2437 }
 0x58e   : > { %v2445_v7 = vmul.f32 0.0078125, %v2438_v6  ;;  %v6916_v16 = vsub.f32 %v2431_v15, %v2444_v22  ;;  %v6935_v15 = vrot.slane %v902_v35, %v6681_v63 }
 0x58f   : > { %v2443_v9 = vpop.xlane.xlu1 %2442 }
 0x590   : > { %v6906_v8 = vsub.f32 %v2432_v46, %v2445_v7  ;;  %v2447_v13 = vmul.f32 0.0078125, %v2443_v9  ;;  %v2452_v37 = vmul.f32 %v6916_v16, %v6916_v16 }
 0x591   : > { %v2322_v11 = vpop.xlane.xlu0 %2321 }
 0x592   : > { %v6908_v47 = vsub.f32 %v2434_v26, %v2447_v13  ;;  %v2329_v17 = vmul.f32 0.0078125, %v2322_v11  ;;  %v2453_v12 = vmul.f32 %v6906_v8, %v6906_v8 }
 0x593   : > { %v2440_v23 = vpop.xlane.xlu1 %2439 }
 0x594   : > { %v6912_v3 = vsub.f32 %v2315_v58, %v2329_v17  ;;  %2458 = vadd.xlane.f32.xlu1 %v2453_v12  ;;  %v2455_v4 = vmul.f32 %v6908_v47, %v6908_v47  ;;  %v2446_v1 = vmul.f32 0.0078125, %v2440_v23 }
 0x595   : > { %v2340_v19 = vpop.xlane.xlu0 %2339 }
 0x596   : > { %v2348_v28 = vmul.f32 0.0078125, %v2340_v19  ;;  %v2462_v20 = vsel %vm1549_vm0, %v2455_v4, 0.0  ;;  %v2337_v18 = vmul.f32 %v6912_v3, %v6912_v3  ;;  %v6922_v33 = vsub.f32 %v2433_v61, %v2446_v1  ;;  %v6118_v61 = vld [vmem:[%s6505_s1 + $0x30] sm:$0xff]  }
 0x597   : > { %v2342_v25 = vpop.xlane.xlu1 %2341 }
 0x598   : > { %v2352_v29 = vadd.f32 1e-05, %v2348_v28  ;;  %v2349_v30 = vmul.f32 0.0078125, %v2342_v25  ;;  %2463 = vadd.xlane.f32.xlu1 %v2462_v20  ;;  %2343 = vadd.xlane.f32.xlu0 %v2337_v18  ;;  %v2454_v27 = vmul.f32 %v6922_v33, %v6922_v33 }
 0x59a   : > { %6210 = vrsqrt.f32 %v2352_v29  ;;  %v2353_v34 = vadd.f32 1e-05, %v2349_v30 }
 0x59b   : > { %v2347_v24 = vpop.xlane.xlu1 %2346 }
 0x59c   : > { %6212 = vrsqrt.f32 %v2353_v34  ;;  %2456 = vadd.xlane.f32.xlu0 %v2452_v37  ;;  %v2351_v5 = vmul.f32 0.0078125, %v2347_v24 }
 0x59e   : > { %v2355_v50 = vadd.f32 1e-05, %v2351_v5  ;;  %v6126_v5 = vld [vmem:[%s6962_s26 + $0x20] ss:$8 sps:$4 sm:$0xff]  }
 0x5a0   : > { %2460 = vadd.xlane.f32.xlu0 %v2454_v27  ;;  %6214 = vrsqrt.f32 %v2355_v50 }
 0x5a4   : > { %v6211_v26 = vpop.eup %6210 }
 0x5a5   : > { %v2360_v10 = vmul.f32 %v6211_v26, %v6889_v56 }
 0x5a6   : > { %v6213_v40 = vpop.eup %6212 }
 0x5a7   : > { %v2361_v41 = vmul.f32 %v6213_v40, %v6892_v43  ;;  %v2368_v46 = vmul.f32 %v6935_v15, %v2360_v10  ;;  %v6117_v43 = vld [vmem:[%s6505_s1 + $0x28] sm:$0xff]   ;;  %s841_s1 = scalar_lea.vmem %s7504_s9, %s7528_s30 }
 0x5a8   : > { %5495 = vmatprep.subr.bf16.mxu0 %v6117_v43  ;;  %5515 = vmatprep.subr.bf16.mxu1 %v6117_v43 }
 0x5a9   : > { %v2369_v53 = vmul.f32 %v6935_v15, %v2361_v41  ;;  %v6947_v55 = vadd.f32 %v6942_v49, %v2368_v46  ;;  %5496 = vmatpush3.bf16.msra.mxu0 %v6117_v43  ;;  %5516 = vmatpush3.bf16.msra.mxu1 %v6117_v43  ;;  %v6120_v41 = vld [vmem:[%s6962_s26] ss:$8 sps:$4 sm:$0xff]   ;;  %v6123_v43 = vld [vmem:[%s6962_s26 + $0x10] ss:$8 sps:$4 sm:$0xff]  }
 0x5aa   : > { %5497 = vmatprep.subr.bf16.mxu0 %v6118_v61  ;;  %5517 = vmatprep.subr.bf16.mxu1 %v6118_v61  ;;  %v6215_v28 = vpop.eup %6214 }
 0x5ab   : > { %v6950_v56 = vadd.f32 %v6942_v49, %v2369_v53  ;;  %v2363_v25 = vmul.f32 %v6215_v28, %v6895_v14  ;;  %v915_v28 = vld [vmem:[%s7021_s3 + $0x18] sm:$0xf] }
 0x5ad   : > { %v2489_v58 = vpack.c.bf16 %v6950_v56, %v6947_v55  ;;  %5498 = vmatpush3.bf16.msra.mxu0 %v6118_v61  ;;  %5518 = vmatpush3.bf16.msra.mxu1 %v6118_v61  ;;  %v2371_v27 = vmul.f32 %v6935_v15, %v2363_v25  ;;  %v4773_v25 = vld [vmem:[%s7021_s3 + $0x30] sm:$0xff] }
 0x5ae   : > { %5499 = vmatprep.subr.bf16.mxu0 %v6119_v32  ;;  %5519 = vmatprep.subr.bf16.mxu1 %v6119_v32 }
 0x5af   : > { %5501 = vmatprep.mubr.bf16.mxu0 %v2489_v58 }
 0x5b1   : > { %5500 = vmatpush3.bf16.msra.mxu0 %v6119_v32  ;;  %5520 = vmatpush3.bf16.msra.mxu1 %v6119_v32 }
 0x5b2   : > { %2772 = vmatprep.subr.bf16.mxu0 %v6122_v38  ;;  %2827 = vmatprep.subr.bf16.mxu1 %v6122_v38 }
 0x621   : > { %v2459_v59 = vpop.xlane.xlu1 %2458 }
 0x622   : > { %v2466_v42 = vmul.f32 0.0078125, %v2459_v59  ;;  %v6129_v59 = vld [vmem:[%s6962_s26 + $0x30] ss:$8 sps:$4 sm:$0xff]  }
 0x624   : > { %v2470_v6 = vadd.f32 1e-05, %v2466_v42  ;;  %v6132_v42 = vld [vmem:[%s6962_s26 + $0x40] ss:$8 sps:$4 sm:$0xff]  }
 0x625   : > { %v2464_v7 = vpop.xlane.xlu1 %2463  ;;  %v2344_v9 = vpop.xlane.xlu0 %2343 }
 0x626   : > { %v2468_v13 = vmul.f32 0.0078125, %v2464_v7  ;;  %v2350_v22 = vmul.f32 0.0078125, %v2344_v9  ;;  %6216 = vrsqrt.f32 %v2470_v6  ;;  %v6137_v6 = vld [vmem:[%s6962_s26 + $0x54] ss:$8 sps:$4 sm:$0xff]   ;;  %v6135_v7 = vld [vmem:[%s6962_s26 + $0x50] ss:$8 sps:$4 sm:$0xff]  }
 0x627   : > { %v6140_v9 = vld [vmem:[%s6962_s26 + $0x64] ss:$8 sps:$4 sm:$0xff]  }
 0x628   : > { %v2472_v11 = vadd.f32 1e-05, %v2468_v13  ;;  %v2354_v17 = vadd.f32 1e-05, %v2350_v22  ;;  %v6138_v13 = vld [vmem:[%s6962_s26 + $0x60] ss:$8 sps:$4 sm:$0xff]  }
 0x629   : > { %v2457_v12 = vpop.xlane.xlu0 %2456  ;;  %v6143_v22 = vld [vmem:[%s6962_s26 + $0x74] ss:$8 sps:$4 sm:$0xff]  }
 0x62a   : > { %v2465_v23 = vmul.f32 0.0078125, %v2457_v12  ;;  %6218 = vrsqrt.f32 %v2354_v17  ;;  %v912_v17 = vld [vmem:[%s7021_s3] sm:$0xff]  ;;  %v913_v12 = vld [vmem:[%s7021_s3 + $0x8] sm:$0xff] }
 0x62b   : > { %6220 = vrsqrt.f32 %v2472_v11  ;;  %v6141_v11 = vld [vmem:[%s6962_s26 + $0x70] ss:$8 sps:$4 sm:$0xff]  }
 0x62c   : > { %v2469_v4 = vadd.f32 1e-05, %v2465_v23  ;;  %v2662_v23 = vpack.c.bf16 %v913_v12, %v912_v17 }
 0x62d   : > { %v2461_v19 = vpop.xlane.xlu0 %2460 }
 0x62e   : > { %6222 = vrsqrt.f32 %v2469_v4  ;;  %v2467_v1 = vmul.f32 0.0078125, %v2461_v19  ;;  %v4771_v4 = vld [vmem:[%s7021_s3 + $0x20] sm:$0xff]  ;;  %v4772_v19 = vld [vmem:[%s7021_s3 + $0x28] sm:$0xff] }
 0x630   : > { %v2471_v20 = vadd.f32 1e-05, %v2467_v1  ;;  %v6217_v18 = vpop.eup %6216  ;;  %v914_v1 = vld [vmem:[%s7021_s3 + $0x10] sm:$0xff] }
 0x631   : > { %v2478_v30 = vmul.f32 %v6217_v18, %v6906_v8  ;;  %v6977_v8 = vadd.f32 %v6942_v49, %v2371_v27  ;;  %v2663_v18 = vpack.c.bf16 %v915_v28, %v914_v1 }
 0x632   : > { %6224 = vrsqrt.f32 %v2471_v20  ;;  %v2825_v20 = vpack.c.bf16 %v4772_v19, %v4771_v4 }
 0x633   : > { %v2482_v14 = vmul.f32 %v2478_v30, %v6935_v15 }
 0x634   : > { %v6219_v29 = vpop.eup %6218 }
 0x635   : > { %v6221_v34 = vpop.eup %6220  ;;  %v2362_v37 = vmul.f32 %v6219_v29, %v6912_v3  ;;  %v6989_v31 = vadd.f32 %v2482_v14, %v6942_v49  ;;  %v4774_v29 = vld [vmem:[%s7021_s3 + $0x38] sm:$0xf]  ;;  %s866_s3 = scalar_lea.vmem %s7510_s15, %s7528_s30 }
 0x636   : > { %v2480_v26 = vmul.f32 %v6221_v34, %v6908_v47  ;;  %v6125_v47 = vld [vmem:[%s6962_s26 + $0x14] ss:$8 sps:$4 sm:$0xff]   ;;  %v2826_v30 = vpack.c.bf16 %v4774_v29, %v4773_v25 }
 0x637   : > { %v2370_v21 = vmul.f32 %v6935_v15, %v2362_v37 }
 0x638   : > { %v6223_v35 = vpop.eup %6222  ;;  %v2484_v58 = vmul.f32 %v2480_v26, %v6935_v15 }
 0x639   : > { %v2477_v10 = vmul.f32 %v6223_v35, %v6916_v16  ;;  %v6974_v40 = vadd.f32 %v6942_v49, %v2370_v21  ;;  %v4828_v21 = vld [vmem:[%s841_s1] ss:$0 sm:$0xff] }
 0x63a   : > { %v7002_v24 = vadd.f32 %v2484_v58, %v6942_v49 }
 0x63b   : > { %v2481_v3 = vmul.f32 %v2477_v10, %v6935_v15  ;;  %v2490_v52 = vpack.c.bf16 %v6977_v8, %v6974_v40 }
 0x63c   : > { %v6225_v46 = vpop.eup %6224 }
 0x63d   : > { %v2479_v53 = vmul.f32 %v6225_v46, %v6922_v33  ;;  %v6986_v16 = vadd.f32 %v2481_v3, %v6942_v49  ;;  %5502 = vmatmul.mubr.bf16.vlgmr.msra.gmra.mrb[36].mxu0 %v2490_v52  ;;  %v6128_v33 = vld [vmem:[%s6962_s26 + $0x24] ss:$8 sps:$4 sm:$0xff]  }
 0x63e   : > { %2773 = vmatpush1.bf16.msra.mxu0 %v6120_v41  ;;  %2804 = vmatprep.mubr.bf16.mxu0 %v6320_v0 }
 0x63f   : > { %v2611_v61 = vpack.c.bf16 %v6989_v31, %v6986_v16  ;;  %v2483_v32 = vmul.f32 %v2479_v53, %v6935_v15  ;;  %2774 = vmatprep.subr.bf16.mxu0 %v6125_v47  ;;  %v6131_v15 = vld [vmem:[%s6962_s26 + $0x34] ss:$8 sps:$4 sm:$0xff]   ;;  %v2680_v53 = vld [vmem:[%s850_s22] sm:$0x3] }
 0x640   : > { %v2685_v58 = vrot.slane %v2680_v53, %v6681_v63 }
 0x641   : > { %5521 = vmatprep.mubr.bf16.mxu1 %v2611_v61  ;;  %v6999_v38 = vadd.f32 %v2483_v32, %v6942_v49  ;;  %v6134_v49 = vld [vmem:[%s6962_s26 + $0x44] ss:$8 sps:$4 sm:$0xff]  }
 0x642   : > { %2775 = vmatpush1.bf16.msra.mxu0 %v6123_v43 }
 0x643   : > { %v2612_v50 = vpack.c.bf16 %v7002_v24, %v6999_v38  ;;  %2776 = vmatprep.subr.bf16.mxu0 %v6128_v33 }
 0x645   : > { %5522 = vmatmul.mubr.bf16.vlgmr.msra.gmra.mrb[28].mxu1 %v2612_v50 }
 0x646   : > { %2828 = vmatpush1.bf16.msra.mxu1 %v6120_v41  ;;  %2859 = vmatprep.mubr.bf16.mxu1 %v6320_v0 }
 0x647   : > { %2777 = vmatpush1.bf16.msra.mxu0 %v6126_v5  ;;  %2829 = vmatprep.subr.bf16.mxu1 %v6125_v47 }
 0x648   : > { %2778 = vmatprep.subr.bf16.mxu0 %v6131_v15 }
 0x64a   : > { %2830 = vmatpush1.bf16.msra.mxu1 %v6123_v43  ;;  %v2689_v43 = vrot.slane %v2680_v53, %v6686_v2 }
 0x64b   : > { %2779 = vmatpush1.bf16.msra.mxu0 %v6129_v59  ;;  %2831 = vmatprep.subr.bf16.mxu1 %v6128_v33 }
 0x64c   : > { %2780 = vmatprep.subr.bf16.mxu0 %v6134_v49 }
 0x64e   : > { %2832 = vmatpush1.bf16.msra.mxu1 %v6126_v5 }
 0x64f   : > { %2781 = vmatpush1.bf16.msra.mxu0 %v6132_v42  ;;  %2833 = vmatprep.subr.bf16.mxu1 %v6131_v15 }
 0x650   : > { %2782 = vmatprep.subr.bf16.mxu0 %v6137_v6 }
 0x652   : > { %2834 = vmatpush1.bf16.msra.mxu1 %v6129_v59 }
 0x653   : > { %2783 = vmatpush1.bf16.msra.mxu0 %v6135_v7  ;;  %2835 = vmatprep.subr.bf16.mxu1 %v6134_v49 }
 0x654   : > { %2784 = vmatprep.subr.bf16.mxu0 %v6140_v9 }
 0x656   : > { %2836 = vmatpush1.bf16.msra.mxu1 %v6132_v42 }
 0x657   : > { %2785 = vmatpush1.bf16.msra.mxu0 %v6138_v13  ;;  %2837 = vmatprep.subr.bf16.mxu1 %v6137_v6 }
 0x658   : > { %2786 = vmatprep.subr.bf16.mxu0 %v6143_v22 }
 0x65a   : > { %2838 = vmatpush1.bf16.msra.mxu1 %v6135_v7 }
 0x65b   : > { %2787 = vmatpush1.bf16.msra.mxu0 %v6141_v11  ;;  %2839 = vmatprep.subr.bf16.mxu1 %v6140_v9 }
 0x65c   : > { %5934 = vmatprep.subr.bf16.mxu0 %v6566_v36 }
 0x65e   : > { %2805 = vmatmul.mubr.bf16.vlgmr.msra.gmra.mrb[40].mxu0 %v2662_v23  ;;  %2840 = vmatpush1.bf16.msra.mxu1 %v6138_v13 }
 0x65f   : > { %2841 = vmatprep.subr.bf16.mxu1 %v6143_v22  ;;  %2814 = vmatprep.mubr.bf16.mxu0 %v6320_v0 }
 0x660   : > { %5936 = vmatpush3.bf16.msra.mxu0 %v6566_v36 }
 0x661   : > { %5938 = vmatprep.subr.bf16.mxu0 %v6577_v39 }
 0x662   : > { %2842 = vmatpush1.bf16.msra.mxu1 %v6141_v11 }
 0x663   : > { %5966 = vmatprep.subr.bf16.mxu1 %v6566_v36 }
 0x664   : > { %5940 = vmatpush3.bf16.msra.mxu0 %v6577_v39 }
 0x665   : > { %2860 = vmatmul.mubr.bf16.vlgmr.msra.gmra.mrb[32].mxu1 %v2825_v20  ;;  %5942 = vmatprep.subr.bf16.mxu0 %v6596_v44 }
 0x666   : > { %2815 = vmatmul.mubr.bf16.gmra.mrb[44].mxu0 %v2663_v18  ;;  %2869 = vmatprep.mubr.bf16.mxu1 %v6320_v0  ;;  %v7066_v0 = vld [vmem:[%s7525_s2] sm:$0xf] }
 0x667   : > { %5968 = vmatpush3.bf16.msra.mxu1 %v6566_v36 }
 0x668   : > { %5944 = vmatpush3.bf16.msra.mxu0 %v6596_v44  ;;  %5970 = vmatprep.subr.bf16.mxu1 %v6577_v39 }
 0x669   : > { %5946 = vmatprep.subr.bf16.mxu0 %v6610_v48 }
 0x66b   : > { %5972 = vmatpush3.bf16.msra.mxu1 %v6577_v39 }
 0x66c   : > { %5948 = vmatpush3.bf16.msra.mxu0 %v6610_v48  ;;  %5974 = vmatprep.subr.bf16.mxu1 %v6596_v44 }
 0x66d   : > { %2870 = vmatmul.mubr.bf16.gmra.mrb[36].mxu1 %v2826_v30  ;;  %5950 = vmatprep.subr.bf16.mxu0 %v6622_v51 }
 0x66f   : > { %5976 = vmatpush3.bf16.msra.mxu1 %v6596_v44 }
 0x670   : > { %5952 = vmatpush3.bf16.msra.mxu0 %v6622_v51  ;;  %5978 = vmatprep.subr.bf16.mxu1 %v6610_v48 }
 0x671   : > { %5954 = vmatprep.subr.bf16.mxu0 %v6634_v54 }
 0x673   : > { %5980 = vmatpush3.bf16.msra.mxu1 %v6610_v48 }
 0x674   : > { %5956 = vmatpush3.bf16.msra.mxu0 %v6634_v54  ;;  %5982 = vmatprep.subr.bf16.mxu1 %v6622_v51 }
 0x675   : > { %5958 = vmatprep.subr.bf16.mxu0 %v6656_v57 }
 0x677   : > { %5984 = vmatpush3.bf16.msra.mxu1 %v6622_v51 }
 0x678   : > { %5960 = vmatpush3.bf16.msra.mxu0 %v6656_v57  ;;  %5986 = vmatprep.subr.bf16.mxu1 %v6634_v54 }
 0x679   : > { %5962 = vmatprep.subr.bf16.mxu0 %v6668_v60 }
 0x67b   : > { %5988 = vmatpush3.bf16.msra.mxu1 %v6634_v54 }
 0x67c   : > { %5964 = vmatpush3.bf16.msra.mxu0 %v6668_v60  ;;  %5990 = vmatprep.subr.bf16.mxu1 %v6656_v57 }
 0x67d   : > { %5601 = vmatprep.subr.msk.mxu0 %vm1549_vm0, %v7066_v0 }
 0x67f   : > { %5992 = vmatpush3.bf16.msra.mxu1 %v6656_v57 }
 0x680   : > { %5994 = vmatprep.subr.bf16.mxu1 %v6668_v60 }
 0x683   : > { %5996 = vmatpush3.bf16.msra.mxu1 %v6668_v60 }
 0x684   : > { %5609 = vmatprep.subr.msk.mxu1 %vm1549_vm0, %v7066_v0 }
 0x710   : > { %v5503_v34 = vpop.f32.mrb[36].mxu0 }
 0x711   : > { %v2596_v37 = vpop.f32.mrb[37].mxu0  ;;  %v2605_v12 = vadd.f32 %v5503_v34, %v4828_v21 }
 0x712   : > { %v5504_v27 = vpop.f32.mrb[38].mxu0  ;;  %v2597_v32 = vadd.f32 %v4828_v21, %v2596_v37 }
 0x713   : > { %v2599_v35 = vpop.f32.mrb[39].mxu0  ;;  %v2608_v23 = vadd.f32 %v5504_v27, %v4828_v21 }
 0x714   : > { %v2600_v59 = vadd.f32 %v4828_v21, %v2599_v35 }
 0x718   : > { %v5523_v26 = vpop.f32.mrb[28].mxu1 }
 0x719   : > { %v7079_v10 = vadd.f32 %v5523_v26, %v4828_v21  ;;  %v2647_v14 = vpop.f32.mrb[29].mxu1 }
 0x71a   : > { %v2648_v41 = vadd.f32 %v4828_v21, %v2647_v14  ;;  %v5524_v3 = vpop.f32.mrb[30].mxu1 }
 0x71b   : > { %v7081_v46 = vadd.f32 %v5524_v3, %v4828_v21  ;;  %v2650_v52 = vpop.f32.mrb[31].mxu1 }
 0x71c   : > { %v2651_v47 = vadd.f32 %v4828_v21, %v2650_v52 }
 0x731   : > { %v2806_v61 = vpop.f32.mrb[40].mxu0 }
 0x732   : > { %v2807_v33 = vadd.f32 %v2806_v61, %v2685_v58  ;;  %v2808_v5 = vpop.f32.mrb[41].mxu0 }
 0x733   : > { %v7089_v50 = vadd.f32 %v2808_v5, %v2689_v43  ;;  %v2810_v15 = vpop.f32.mrb[42].mxu0 }
 0x734   : > { %v2880_v49 = vmul.f32 %v2807_v33, %v2597_v32  ;;  %v7091_v42 = vmul.f32 %v2807_v33, %v2648_v41  ;;  %v2811_v6 = vadd.f32 %v2810_v15, %v2685_v58  ;;  %v2812_v7 = vpop.f32.mrb[43].mxu0 }
 0x735   : > { %v7093_v9 = vadd.f32 %v2812_v7, %v2689_v43 }
 0x736   : > { %v2881_v13 = vmul.f32 %v2811_v6, %v2600_v59  ;;  %v7095_v22 = vmul.f32 %v2811_v6, %v2651_v47  ;;  %5557 = vmatprep.mubr.f32.mxu0 %v2880_v49 }
 0x738   : > { %5558 = vmatmul.mubr.f32.vlgmr.msra.gmra.mrb[48].mxu0 %v2881_v13  ;;  %v2861_v63 = vpop.f32.mrb[32].mxu1 }
 0x739   : > { %v2816_v2 = vpop.f32.mrb[44].mxu0  ;;  %v2862_v11 = vadd.f32 %v2861_v63, %v2685_v58  ;;  %v2863_v17 = vpop.f32.mrb[33].mxu1  ;;  %5602 = vmatpush3.msk.msra.mxu0 %vm1549_vm0, %v7066_v0 }
 0x73a   : > { %v2817_v4 = vadd.f32 %v2816_v2, %v2685_v58  ;;  %v2818_v19 = vpop.f32.mrb[45].mxu0  ;;  %v7099_v1 = vadd.f32 %v2863_v17, %v2689_v43  ;;  %v2865_v28 = vpop.f32.mrb[34].mxu1  ;;  %5998 = vmatprep.subr.bf16.mxu0 %v6566_v36 }
 0x73b   : > { %v2973_v20 = vmul.f32 %v2862_v11, %v2597_v32  ;;  %v7102_v18 = vmul.f32 %v2862_v11, %v2648_v41  ;;  %v7104_v25 = vadd.f32 %v2818_v19, %v2689_v43  ;;  %v2820_v29 = vpop.f32.mrb[46].mxu0  ;;  %v2866_v30 = vadd.f32 %v2865_v28, %v2685_v58  ;;  %v2867_v37 = vpop.f32.mrb[35].mxu1 }
 0x73c   : > { %v2882_v35 = vmul.f32 %v2817_v4, %v2605_v12  ;;  %v7107_v26 = vmul.f32 %v2817_v4, %v7079_v10  ;;  %v2821_v34 = vadd.f32 %v2820_v29, %v2685_v58  ;;  %v7109_v27 = vadd.f32 %v2867_v37, %v2689_v43  ;;  %v2822_v21 = vpop.f32.mrb[47].mxu0 }
 0x73d   : > { %v2974_v14 = vmul.f32 %v2866_v30, %v2600_v59  ;;  %v7111_v3 = vmul.f32 %v2866_v30, %v2651_v47  ;;  %5595 = vmatprep.mubr.f32.mxu1 %v2973_v20  ;;  %v7113_v52 = vadd.f32 %v2822_v21, %v2689_v43 }
 0x73e   : > { %v2883_v41 = vmul.f32 %v2821_v34, %v2608_v23  ;;  %v7116_v53 = vmul.f32 %v2821_v34, %v7081_v46  ;;  %5560 = vmatprep.mubr.f32.mxu0 %v2882_v35 }
 0x73f   : > { %5596 = vmatmul.mubr.f32.vlgmr.msra.gmra.mrb[40].mxu1 %v2974_v14 }
 0x740   : > { %5561 = vmatmul.mubr.f32.gmra.mrb[50].mxu0 %v2883_v41  ;;  %v2871_v61 = vpop.f32.mrb[36].mxu1  ;;  %5610 = vmatpush3.msk.msra.mxu1 %vm1549_vm0, %v7066_v0 }
 0x741   : > { %v2872_v32 = vadd.f32 %v2871_v61, %v2685_v58  ;;  %v2873_v33 = vpop.f32.mrb[37].mxu1  ;;  %6030 = vmatprep.subr.bf16.mxu1 %v6566_v36 }
 0x742   : > { %v7121_v47 = vadd.f32 %v2873_v33, %v2689_v43  ;;  %v2875_v5 = vpop.f32.mrb[38].mxu1 }
 0x743   : > { %v2975_v15 = vmul.f32 %v2872_v32, %v2605_v12  ;;  %v7124_v59 = vmul.f32 %v2872_v32, %v7079_v10  ;;  %v2876_v49 = vadd.f32 %v2875_v5, %v2685_v58  ;;  %v2877_v6 = vpop.f32.mrb[39].mxu1 }
 0x744   : > { %v7126_v7 = vadd.f32 %v2877_v6, %v2689_v43 }
 0x745   : > { %v2976_v13 = vmul.f32 %v2876_v49, %v2608_v23  ;;  %v7129_v63 = vmul.f32 %v2876_v49, %v7081_v46  ;;  %5598 = vmatprep.mubr.f32.mxu1 %v2975_v15 }
 0x747   : > { %5599 = vmatmul.mubr.f32.gmra.mrb[42].mxu1 %v2976_v13 }
 0x80b   : > { %v5559_v2 = vpop.f32.mrb[48].mxu0 }
 0x80c   : > { %v2950_v11 = vpop.f32.mrb[49].mxu0  ;;  %v2970_v4 = vmul.f32 0.17677669, %v5559_v2 }
 0x80d   : > { %v2969_v20 = vmul.f32 0.17677669, %v2950_v11 }
 0x812   : > { %v5597_v17 = vpop.f32.mrb[40].mxu1 }
 0x813   : > { %v5562_v19 = vpop.f32.mrb[50].mxu0  ;;  %v3063_v28 = vmul.f32 0.17677669, %v5597_v17  ;;  %v3043_v12 = vpop.f32.mrb[41].mxu1 }
 0x814   : > { %v2960_v10 = vpop.f32.mrb[51].mxu0  ;;  %v3062_v29 = vmul.f32 0.17677669, %v3043_v12  ;;  %v2972_v61 = vmul.f32 0.17677669, %v5562_v19 }
 0x815   : > { %v3067_v58 = vmax.f32 %v2970_v4, %v3063_v28  ;;  %v2971_v5 = vmul.f32 0.17677669, %v2960_v10 }
 0x816   : > { %v3066_v30 = vmax.f32 %v2969_v20, %v3062_v29 }
 0x817   : > { %v3071_v43 = vsub.f32 %v2970_v4, %v3067_v58  ;;  %v3083_v37 = vsub.f32 %v3063_v28, %v3067_v58 }
 0x818   : > { %v3070_v23 = vsub.f32 %v2969_v20, %v3066_v30  ;;  %v3082_v35 = vsub.f32 %v3062_v29, %v3066_v30 }
 0x819   : > { %v3076_v46 = vmul.f32 1.442695, %v3071_v43  ;;  %v3088_v34 = vmul.f32 1.442695, %v3083_v37 }
 0x81a   : > { %v3074_v21 = vmul.f32 1.442695, %v3070_v23  ;;  %v3086_v14 = vmul.f32 1.442695, %v3082_v35  ;;  %v5600_v41 = vpop.f32.mrb[42].mxu1 }
 0x81b   : > { %6226 = vpow2.f32 %v3076_v46  ;;  %v3065_v32 = vmul.f32 0.17677669, %v5600_v41  ;;  %v3053_v33 = vpop.f32.mrb[43].mxu1 }
 0x81c   : > { %6228 = vpow2.f32 %v3088_v34  ;;  %v3064_v15 = vmul.f32 0.17677669, %v3053_v33 }
 0x81d   : > { %6230 = vpow2.f32 %v3074_v21  ;;  %v3069_v49 = vmax.f32 %v2972_v61, %v3065_v32 }
 0x81e   : > { %6232 = vpow2.f32 %v3086_v14  ;;  %v3068_v6 = vmax.f32 %v2971_v5, %v3064_v15 }
 0x81f   : > { %v3073_v13 = vsub.f32 %v2972_v61, %v3069_v49  ;;  %v3085_v2 = vsub.f32 %v3065_v32, %v3069_v49 }
 0x820   : > { %v3072_v11 = vsub.f32 %v2971_v5, %v3068_v6  ;;  %v3084_v17 = vsub.f32 %v3064_v15, %v3068_v6 }
 0x821   : > { %v3080_v4 = vmul.f32 1.442695, %v3073_v13  ;;  %v3092_v28 = vmul.f32 1.442695, %v3085_v2 }
 0x822   : > { %v3078_v12 = vmul.f32 1.442695, %v3072_v11  ;;  %v3090_v20 = vmul.f32 1.442695, %v3084_v17 }
 0x823   : > { %6234 = vpow2.f32 %v3080_v4 }
 0x824   : > { %6236 = vpow2.f32 %v3092_v28 }
 0x825   : > { %v6227_v19 = vpop.eup %6226  ;;  %6238 = vpow2.f32 %v3078_v12 }
 0x826   : > { %v6229_v29 = vpop.eup %6228  ;;  %6240 = vpow2.f32 %v3090_v20 }
 0x827   : > { %v6231_v10 = vpop.eup %6230  ;;  %v3095_v58 = vadd.f32 %v6229_v29, %v6227_v19 }
 0x828   : > { %v6233_v30 = vpop.eup %6232 }
 0x829   : > { %6242 = vrcp.f32 %v3095_v58  ;;  %v3094_v43 = vadd.f32 %v6233_v30, %v6231_v10 }
 0x82b   : > { %6244 = vrcp.f32 %v3094_v43 }
 0x82d   : > { %v6235_v37 = vpop.eup %6234 }
 0x82e   : > { %v6237_v23 = vpop.eup %6236 }
 0x82f   : > { %v6239_v35 = vpop.eup %6238  ;;  %v3097_v46 = vadd.f32 %v6237_v23, %v6235_v37 }
 0x830   : > { %v6241_v34 = vpop.eup %6240 }
 0x831   : > { %6246 = vrcp.f32 %v3097_v46  ;;  %v3096_v21 = vadd.f32 %v6241_v34, %v6239_v35 }
 0x833   : > { %v6243_v14 = vpop.eup %6242  ;;  %6248 = vrcp.f32 %v3096_v21 }
 0x834   : > { %v3107_v41 = vmul.f32 %v6243_v14, %v6227_v19  ;;  %v3212_v61 = vmul.f32 %v6243_v14, %v6229_v29 }
 0x835   : > { %v6245_v32 = vpop.eup %6244 }
 0x836   : > { %v3106_v33 = vmul.f32 %v6245_v32, %v6231_v10  ;;  %v3211_v5 = vmul.f32 %v6245_v32, %v6233_v30 }
 0x838   : > { %5603 = vmatprep.mubr.msk.f32.mxu0 %vm1536_vm1, %v3106_v33  ;;  %5611 = vmatprep.mubr.msk.f32.mxu1 %vm1536_vm1, %v3211_v5 }
 0x839   : > { %5604 = vmatmul.mubr.msk.f32.vlgmr.msra.gmra.mrb[52].mxu0 %vm1536_vm1, %v3107_v41  ;;  %5612 = vmatmul.mubr.msk.f32.vlgmr.msra.gmra.mrb[44].mxu1 %vm1536_vm1, %v3212_v61 }
 0x83a   : > { %6000 = vmatpush3.bf16.msra.mxu0 %v6566_v36  ;;  %6032 = vmatpush3.bf16.msra.mxu1 %v6566_v36  ;;  %v7186_v36 = vld [vmem:[%s6517_s24] sm:$0xff]  }
 0x83b   : > { %v6247_v15 = vpop.eup %6246  ;;  %6002 = vmatprep.subr.bf16.mxu0 %v6577_v39  ;;  %6034 = vmatprep.subr.bf16.mxu1 %v6577_v39 }
 0x83c   : > { %v3109_v49 = vmul.f32 %v6247_v15, %v6235_v37  ;;  %v3214_v6 = vmul.f32 %v6247_v15, %v6237_v23 }
 0x83d   : > { %v6249_v13 = vpop.eup %6248 }
 0x83e   : > { %6004 = vmatpush3.bf16.msra.mxu0 %v6577_v39  ;;  %6036 = vmatpush3.bf16.msra.mxu1 %v6577_v39  ;;  %v3108_v2 = vmul.f32 %v6249_v13, %v6239_v35  ;;  %v3213_v11 = vmul.f32 %v6249_v13, %v6241_v34 }
 0x83f   : > { %6006 = vmatprep.subr.bf16.mxu0 %v6596_v44  ;;  %6038 = vmatprep.subr.bf16.mxu1 %v6596_v44 }
 0x840   : > { %5606 = vmatprep.mubr.msk.f32.mxu0 %vm1536_vm1, %v3108_v2  ;;  %5614 = vmatprep.mubr.msk.f32.mxu1 %vm1536_vm1, %v3213_v11 }
 0x841   : > { %5607 = vmatmul.mubr.msk.f32.gmra.mrb[54].mxu0 %vm1536_vm1, %v3109_v49  ;;  %5615 = vmatmul.mubr.msk.f32.gmra.mrb[46].mxu1 %vm1536_vm1, %v3214_v6 }
 0x842   : > { %6008 = vmatpush3.bf16.msra.mxu0 %v6596_v44  ;;  %6040 = vmatpush3.bf16.msra.mxu1 %v6596_v44 }
 0x843   : > { %5649 = vmatprep.mubr.f32.mxu0 %v7091_v42  ;;  %5687 = vmatprep.mubr.f32.mxu1 %v7102_v18 }
 0x844   : > { %6010 = vmatprep.subr.bf16.mxu0 %v6610_v48  ;;  %6042 = vmatprep.subr.bf16.mxu1 %v6610_v48 }
 0x846   : > { %6012 = vmatpush3.bf16.msra.mxu0 %v6610_v48  ;;  %6044 = vmatpush3.bf16.msra.mxu1 %v6610_v48 }
 0x847   : > { %6014 = vmatprep.subr.bf16.mxu0 %v6622_v51  ;;  %6046 = vmatprep.subr.bf16.mxu1 %v6622_v51 }
 0x84a   : > { %6016 = vmatpush3.bf16.msra.mxu0 %v6622_v51  ;;  %6048 = vmatpush3.bf16.msra.mxu1 %v6622_v51 }
 0x84b   : > { %6018 = vmatprep.subr.bf16.mxu0 %v6634_v54  ;;  %6050 = vmatprep.subr.bf16.mxu1 %v6634_v54 }
 0x84e   : > { %6020 = vmatpush3.bf16.msra.mxu0 %v6634_v54  ;;  %6052 = vmatpush3.bf16.msra.mxu1 %v6634_v54 }
 0x84f   : > { %6022 = vmatprep.subr.bf16.mxu0 %v6656_v57  ;;  %6054 = vmatprep.subr.bf16.mxu1 %v6656_v57 }
 0x852   : > { %6024 = vmatpush3.bf16.msra.mxu0 %v6656_v57  ;;  %6056 = vmatpush3.bf16.msra.mxu1 %v6656_v57 }
 0x853   : > { %6026 = vmatprep.subr.bf16.mxu0 %v6668_v60  ;;  %6058 = vmatprep.subr.bf16.mxu1 %v6668_v60 }
 0x856   : > { %6028 = vmatpush3.bf16.msra.mxu0 %v6668_v60  ;;  %6060 = vmatpush3.bf16.msra.mxu1 %v6668_v60 }
 0x857   : > { %5693 = vmatprep.subr.msk.mxu0 %vm1549_vm0, %v7066_v0  ;;  %5701 = vmatprep.subr.msk.mxu1 %vm1549_vm0, %v7066_v0 }
 0x859   : > { %5650 = vmatmul.mubr.f32.vlgmr.msra.gmra.mrb[56].mxu0 %v7095_v22  ;;  %5688 = vmatmul.mubr.f32.vlgmr.msra.gmra.mrb[48].mxu1 %v7111_v3 }
 0x85a   : > { %5652 = vmatprep.mubr.f32.mxu0 %v7107_v26  ;;  %5690 = vmatprep.mubr.f32.mxu1 %v7124_v59 }
 0x85b   : > { %5694 = vmatpush3.msk.msra.mxu0 %vm1549_vm0, %v7066_v0  ;;  %5702 = vmatpush3.msk.msra.mxu1 %vm1549_vm0, %v7066_v0 }
 0x85c   : > { %5709 = vmatprep.subr.bf16.mxu0 %v7186_v36  ;;  %5729 = vmatprep.subr.bf16.mxu1 %v7186_v36 }
 0x85d   : > { %5653 = vmatmul.mubr.f32.gmra.mrb[58].mxu0 %v7116_v53  ;;  %5691 = vmatmul.mubr.f32.gmra.mrb[50].mxu1 %v7129_v63 }
 0x90c   : > { %v5605_v39 = vpop.f32.mrb[52].mxu0  ;;  %v5613_v44 = vpop.f32.mrb[44].mxu1 }
 0x90d   : > { %v3208_v48 = vmul.f32 %v5605_v39, %v7093_v9  ;;  %v3313_v51 = vmul.f32 %v5613_v44, %v7109_v27  ;;  %v3188_v54 = vpop.f32.mrb[53].mxu0  ;;  %v3293_v57 = vpop.f32.mrb[45].mxu1 }
 0x90e   : > { %v3207_v60 = vmul.f32 %v3188_v54, %v7089_v50  ;;  %v3312_v0 = vmul.f32 %v3293_v57, %v7099_v1 }
 0x90f   : > { %v7194_v42 = vadd.f32 %v3313_v51, %v3208_v48 }
 0x910   : > { %v7196_v22 = vadd.f32 %v3312_v0, %v3207_v60 }
 0x912   : > { %v3760_v18 = vpack.c.bf16 %v7194_v42, %v7196_v22  ;;  %v6150_v42 = vld [vmem:[%s6517_s24 + $0x30] sm:$0xff]   ;;  %v6151_v22 = vld [vmem:[%s6517_s24 + $0x38] sm:$0xff]  }
 0x914   : > { %v5608_v26 = vpop.f32.mrb[54].mxu0  ;;  %v5616_v3 = vpop.f32.mrb[46].mxu1 }
 0x915   : > { %v3210_v53 = vmul.f32 %v5608_v26, %v7113_v52  ;;  %v3315_v59 = vmul.f32 %v5616_v3, %v7126_v7  ;;  %v3198_v63 = vpop.f32.mrb[55].mxu0  ;;  %v3303_v17 = vpop.f32.mrb[47].mxu1 }
 0x916   : > { %v3209_v4 = vmul.f32 %v3198_v63, %v7104_v25  ;;  %v3314_v28 = vmul.f32 %v3303_v17, %v7121_v47 }
 0x917   : > { %v7204_v12 = vadd.f32 %v3315_v59, %v3210_v53 }
 0x918   : > { %v7206_v20 = vadd.f32 %v3314_v28, %v3209_v4 }
 0x91a   : > { %v3761_v19 = vpack.c.bf16 %v7204_v12, %v7206_v20 }
 0x92c   : > { %v5651_v29 = vpop.f32.mrb[56].mxu0  ;;  %v5689_v10 = vpop.f32.mrb[48].mxu1 }
 0x92d   : > { %v3410_v58 = vmul.f32 0.17677669, %v5651_v29  ;;  %v3503_v30 = vmul.f32 0.17677669, %v5689_v10  ;;  %v3390_v43 = vpop.f32.mrb[57].mxu0  ;;  %v3483_v37 = vpop.f32.mrb[49].mxu1 }
 0x92e   : > { %v3409_v23 = vmul.f32 0.17677669, %v3390_v43  ;;  %v3502_v35 = vmul.f32 0.17677669, %v3483_v37 }
 0x92f   : > { %v3507_v46 = vmax.f32 %v3410_v58, %v3503_v30 }
 0x930   : > { %v3506_v34 = vmax.f32 %v3409_v23, %v3502_v35  ;;  %v5654_v21 = vpop.f32.mrb[58].mxu0  ;;  %v5692_v14 = vpop.f32.mrb[50].mxu1 }
 0x931   : > { %v3511_v41 = vsub.f32 %v3410_v58, %v3507_v46  ;;  %v3523_v61 = vsub.f32 %v3503_v30, %v3507_v46  ;;  %v3412_v32 = vmul.f32 0.17677669, %v5654_v21  ;;  %v3505_v33 = vmul.f32 0.17677669, %v5692_v14  ;;  %v3400_v5 = vpop.f32.mrb[59].mxu0  ;;  %v3493_v15 = vpop.f32.mrb[51].mxu1 }
 0x932   : > { %v3510_v49 = vsub.f32 %v3409_v23, %v3506_v34  ;;  %v3522_v6 = vsub.f32 %v3502_v35, %v3506_v34  ;;  %v3411_v13 = vmul.f32 0.17677669, %v3400_v5  ;;  %v3504_v2 = vmul.f32 0.17677669, %v3493_v15  ;;  %v6145_v5 = vld [vmem:[%s6517_s24 + $0x8] sm:$0xff]  }
 0x933   : > { %v3516_v11 = vmul.f32 1.442695, %v3511_v41  ;;  %v3528_v39 = vmul.f32 1.442695, %v3523_v61  ;;  %v3509_v44 = vmax.f32 %v3412_v32, %v3505_v33 }
 0x934   : > { %v3514_v48 = vmul.f32 1.442695, %v3510_v49  ;;  %v3526_v51 = vmul.f32 1.442695, %v3522_v6  ;;  %v3508_v54 = vmax.f32 %v3411_v13, %v3504_v2 }
 0x935   : > { %6250 = vpow2.f32 %v3516_v11  ;;  %v3513_v57 = vsub.f32 %v3412_v32, %v3509_v44  ;;  %v3525_v60 = vsub.f32 %v3505_v33, %v3509_v44  ;;  %v6146_v11 = vld [vmem:[%s6517_s24 + $0x10] sm:$0xff]   ;;  %v6149_v44 = vld [vmem:[%s6517_s24 + $0x28] sm:$0xff]  }
 0x936   : > { %6252 = vpow2.f32 %v3528_v39  ;;  %v3512_v0 = vsub.f32 %v3411_v13, %v3508_v54  ;;  %v3524_v26 = vsub.f32 %v3504_v2, %v3508_v54  ;;  %v6148_v39 = vld [vmem:[%s6517_s24 + $0x20] sm:$0xff]  }
 0x937   : > { %6254 = vpow2.f32 %v3514_v48  ;;  %v3520_v3 = vmul.f32 1.442695, %v3513_v57  ;;  %v3532_v53 = vmul.f32 1.442695, %v3525_v60 }
 0x938   : > { %6256 = vpow2.f32 %v3526_v51  ;;  %v3518_v59 = vmul.f32 1.442695, %v3512_v0  ;;  %v3530_v63 = vmul.f32 1.442695, %v3524_v26 }
 0x939   : > { %6258 = vpow2.f32 %v3520_v3 }
 0x93a   : > { %6260 = vpow2.f32 %v3532_v53 }
 0x93b   : > { %6262 = vpow2.f32 %v3518_v59 }
 0x93c   : > { %6264 = vpow2.f32 %v3530_v63 }
 0x93f   : > { %v6251_v17 = vpop.eup %6250 }
 0x940   : > { %v6253_v4 = vpop.eup %6252 }
 0x941   : > { %v6255_v28 = vpop.eup %6254  ;;  %v3535_v29 = vadd.f32 %v6253_v4, %v6251_v17 }
 0x942   : > { %v6257_v10 = vpop.eup %6256 }
 0x943   : > { %v6259_v58 = vpop.eup %6258  ;;  %6266 = vrcp.f32 %v3535_v29  ;;  %v3534_v30 = vadd.f32 %v6257_v10, %v6255_v28  ;;  %v7245_v29 = vld [vmem:[%s858_s25] ss:$0 sm:$0xff] }
 0x944   : > { %v6261_v43 = vpop.eup %6260 }
 0x945   : > { %v6263_v37 = vpop.eup %6262  ;;  %6268 = vrcp.f32 %v3534_v30  ;;  %v3537_v23 = vadd.f32 %v6261_v43, %v6259_v58 }
 0x946   : > { %v6265_v35 = vpop.eup %6264 }
 0x947   : > { %6270 = vrcp.f32 %v3537_v23  ;;  %v3536_v46 = vadd.f32 %v6265_v35, %v6263_v37 }
 0x949   : > { %6272 = vrcp.f32 %v3536_v46 }
 0x94d   : > { %v6267_v34 = vpop.eup %6266 }
 0x94e   : > { %v3547_v21 = vmul.f32 %v6267_v34, %v6251_v17  ;;  %v3652_v14 = vmul.f32 %v6267_v34, %v6253_v4 }
 0x94f   : > { %v6269_v41 = vpop.eup %6268 }
 0x950   : > { %v3546_v61 = vmul.f32 %v6269_v41, %v6255_v28  ;;  %v3651_v32 = vmul.f32 %v6269_v41, %v6257_v10 }
 0x951   : > { %v6271_v33 = vpop.eup %6270 }
 0x952   : > { %5695 = vmatprep.mubr.msk.f32.mxu0 %vm1536_vm1, %v3546_v61  ;;  %5703 = vmatprep.mubr.msk.f32.mxu1 %vm1536_vm1, %v3651_v32  ;;  %v3549_v15 = vmul.f32 %v6271_v33, %v6259_v58  ;;  %v3654_v49 = vmul.f32 %v6271_v33, %v6261_v43 }
 0x953   : > { %v6273_v6 = vpop.eup %6272  ;;  %5696 = vmatmul.mubr.msk.f32.vlgmr.msra.gmra.mrb[60].mxu0 %vm1536_vm1, %v3547_v21  ;;  %5704 = vmatmul.mubr.msk.f32.vlgmr.msra.gmra.mrb[52].mxu1 %vm1536_vm1, %v3652_v14  ;;  %v7257_v21 = vld [vmem:[%s6530_s27] sm:$0xff]  }
 0x954   : > { %5710 = vmatpush3.bf16.msra.mxu0 %v7186_v36  ;;  %v3548_v13 = vmul.f32 %v6273_v6, %v6263_v37  ;;  %v3653_v2 = vmul.f32 %v6273_v6, %v6265_v35  ;;  %5730 = vmatpush3.bf16.msra.mxu1 %v7186_v36  ;;  %v6147_v36 = vld [vmem:[%s6517_s24 + $0x18] sm:$0xff]  }
 0x955   : > { %5711 = vmatprep.subr.bf16.mxu0 %v6145_v5  ;;  %5731 = vmatprep.subr.bf16.mxu1 %v6145_v5 }
 0x956   : > { %5698 = vmatprep.mubr.msk.f32.mxu0 %vm1536_vm1, %v3548_v13  ;;  %5706 = vmatprep.mubr.msk.f32.mxu1 %vm1536_vm1, %v3653_v2 }
 0x957   : > { %5699 = vmatmul.mubr.msk.f32.gmra.mrb[62].mxu0 %vm1536_vm1, %v3549_v15  ;;  %5707 = vmatmul.mubr.msk.f32.gmra.mrb[54].mxu1 %vm1536_vm1, %v3654_v49 }
 0x958   : > { %5712 = vmatpush3.bf16.msra.mxu0 %v6145_v5  ;;  %5725 = vmatprep.mubr.bf16.mxu0 %v3760_v18 }
 0x959   : > { %5713 = vmatprep.subr.bf16.mxu0 %v6146_v11  ;;  %5732 = vmatpush3.bf16.msra.mxu1 %v6145_v5 }
 0x95a   : > { %5733 = vmatprep.subr.bf16.mxu1 %v6146_v11 }
 0x95c   : > { %5714 = vmatpush3.bf16.msra.mxu0 %v6146_v11 }
 0x95d   : > { %5715 = vmatprep.subr.bf16.mxu0 %v6147_v36  ;;  %5734 = vmatpush3.bf16.msra.mxu1 %v6146_v11 }
 0x95e   : > { %5735 = vmatprep.subr.bf16.mxu1 %v6147_v36 }
 0x960   : > { %5716 = vmatpush3.bf16.msra.mxu0 %v6147_v36 }
 0x961   : > { %5717 = vmatprep.subr.bf16.mxu0 %v6148_v39  ;;  %5736 = vmatpush3.bf16.msra.mxu1 %v6147_v36 }
 0x962   : > { %5737 = vmatprep.subr.bf16.mxu1 %v6148_v39 }
 0x964   : > { %5718 = vmatpush3.bf16.msra.mxu0 %v6148_v39 }
 0x965   : > { %5719 = vmatprep.subr.bf16.mxu0 %v6149_v44  ;;  %5738 = vmatpush3.bf16.msra.mxu1 %v6148_v39  ;;  %v7279_v39 = vld [vmem:[%s6530_s27 + $0x8] sm:$0xff]  }
 0x966   : > { %5739 = vmatprep.subr.bf16.mxu1 %v6149_v44 }
 0x968   : > { %5720 = vmatpush3.bf16.msra.mxu0 %v6149_v44 }
 0x969   : > { %5721 = vmatprep.subr.bf16.mxu0 %v6150_v42  ;;  %5740 = vmatpush3.bf16.msra.mxu1 %v6149_v44  ;;  %v7284_v44 = vld [vmem:[%s6530_s27 + $0x10] sm:$0xff]  }
 0x96a   : > { %5741 = vmatprep.subr.bf16.mxu1 %v6150_v42 }
 0x96c   : > { %5722 = vmatpush3.bf16.msra.mxu0 %v6150_v42 }
 0x96d   : > { %5723 = vmatprep.subr.bf16.mxu0 %v6151_v22  ;;  %5742 = vmatpush3.bf16.msra.mxu1 %v6150_v42  ;;  %v7289_v42 = vld [vmem:[%s6530_s27 + $0x18] sm:$0xff]  }
 0x96e   : > { %5743 = vmatprep.subr.bf16.mxu1 %v6151_v22 }
 0x970   : > { %5724 = vmatpush3.bf16.msra.mxu0 %v6151_v22 }
 0x971   : > { %5744 = vmatpush3.bf16.msra.mxu1 %v6151_v22  ;;  %5749 = vmatprep.subr.bf16.mxu0 %v7257_v21  ;;  %v7294_v22 = vld [vmem:[%s6530_s27 + $0x20] sm:$0xff]  }
 0x973   : > { %5726 = vmatmul.mubr.bf16.vlgmr.msra.gmra.mrb[64].mxu0 %v3761_v19 }
 0x974   : > { %5750 = vmatpush3.bf16.msra.mxu0 %v7257_v21 }
 0x975   : > { %5751 = vmatprep.subr.bf16.mxu0 %v7279_v39 }
 0x978   : > { %5752 = vmatpush3.bf16.msra.mxu0 %v7279_v39 }
 0x979   : > { %5753 = vmatprep.subr.bf16.mxu0 %v7284_v44 }
 0x97c   : > { %5754 = vmatpush3.bf16.msra.mxu0 %v7284_v44 }
 0x97d   : > { %5755 = vmatprep.subr.bf16.mxu0 %v7289_v42 }
 0x980   : > { %5756 = vmatpush3.bf16.msra.mxu0 %v7289_v42 }
 0x981   : > { %5757 = vmatprep.subr.bf16.mxu0 %v7294_v22 }
 0x984   : > { %5758 = vmatpush3.bf16.msra.mxu0 %v7294_v22 }
 0xa26   : > { %v5697_v18 = vpop.f32.mrb[60].mxu0  ;;  %v5705_v48 = vpop.f32.mrb[52].mxu1 }
 0xa27   : > { %v3648_v51 = vmul.f32 %v5697_v18, %v7093_v9  ;;  %v3753_v54 = vmul.f32 %v5705_v48, %v7109_v27  ;;  %v3628_v57 = vpop.f32.mrb[61].mxu0  ;;  %v3733_v60 = vpop.f32.mrb[53].mxu1  ;;  %v7299_v18 = vld [vmem:[%s6530_s27 + $0x28] sm:$0xff]   ;;  %v7304_v48 = vld [vmem:[%s6530_s27 + $0x30] sm:$0xff]  }
 0xa28   : > { %v3647_v0 = vmul.f32 %v3628_v57, %v7089_v50  ;;  %v3752_v26 = vmul.f32 %v3733_v60, %v7099_v1  ;;  %5759 = vmatprep.subr.bf16.mxu0 %v7299_v18 }
 0xa29   : > { %v3757_v3 = vadd.f32 %v3753_v54, %v3648_v51  ;;  %5760 = vmatpush3.bf16.msra.mxu0 %v7299_v18  ;;  %v7308_v51 = vld [vmem:[%s6530_s27 + $0x38] sm:$0xff]   ;;  %s4911_s27 = sshll.u32 %s7528_s30, 4 }
 0xa2a   : > { %v3756_v53 = vadd.f32 %v3752_v26, %v3647_v0  ;;  %v5700_v59 = vpop.f32.mrb[62].mxu0  ;;  %v5708_v63 = vpop.f32.mrb[54].mxu1  ;;  %5761 = vmatprep.subr.bf16.mxu0 %v7304_v48  ;;  %s871_s1 = scalar_lea.vmem %s7511_s16, %s4911_s27  ;;  %s7476_s27 = scalar_lea.vmem %s7514_s19, %s6434_s21 }
 0xa2b   : > { %v3650_v12 = vmul.f32 %v5700_v59, %v7113_v52  ;;  %v3755_v20 = vmul.f32 %v5708_v63, %v7126_v7  ;;  %v3638_v19 = vpop.f32.mrb[63].mxu0  ;;  %v3743_v17 = vpop.f32.mrb[55].mxu1 }
 0xa2c   : > { %v3649_v9 = vmul.f32 %v3638_v19, %v7104_v25  ;;  %v3754_v27 = vmul.f32 %v3743_v17, %v7121_v47  ;;  %v3948_v4 = vpack.c.bf16 %v3757_v3, %v3756_v53 }
 0xa2d   : > { %v3759_v28 = vadd.f32 %v3755_v20, %v3650_v12  ;;  %5762 = vmatpush3.bf16.msra.mxu0 %v7304_v48 }
 0xa2e   : > { %v3758_v50 = vadd.f32 %v3754_v27, %v3649_v9  ;;  %5745 = vmatprep.mubr.bf16.mxu1 %v3948_v4  ;;  %5763 = vmatprep.subr.bf16.mxu0 %v7308_v51 }
 0xa30   : > { %v3949_v1 = vpack.c.bf16 %v3759_v28, %v3758_v50 }
 0xa31   : > { %5764 = vmatpush3.bf16.msra.mxu0 %v7308_v51 }
 0xa32   : > { %5746 = vmatmul.mubr.bf16.vlgmr.msra.gmra.mrb[56].mxu1 %v3949_v1 }
 0xa46   : > { %v5727_v52 = vpop.f32.mrb[64].mxu0 }
 0xa47   : > { %v3867_v7 = vpop.f32.mrb[65].mxu0  ;;  %v3876_v23 = vadd.f32 %v5727_v52, %v7245_v29 }
 0xa48   : > { %v3868_v10 = vadd.f32 %v7245_v29, %v3867_v7  ;;  %v5728_v25 = vpop.f32.mrb[66].mxu0 }
 0xa49   : > { %v3879_v47 = vadd.f32 %v5728_v25, %v7245_v29  ;;  %v3870_v58 = vpop.f32.mrb[67].mxu0  ;;  %v3884_v34 = vadd.f32 %v3876_v23, %v6974_v40  ;;  %v3942_v25 = vsub.s32 3, %v6675_v62 }
 0xa4a   : > { %v3871_v30 = vadd.f32 %v7245_v29, %v3870_v58  ;;  %v3882_v43 = vadd.f32 %v3868_v10, %v6947_v55  ;;  %v7323_v10 = vld [vmem:[%s6929_s29] sm:$0x3f] }
 0xa4b   : > { %v3885_v37 = vadd.f32 %v3879_v47, %v6977_v8  ;;  %v7335_v23 = vrot.slane %v7323_v10, %v3942_v25 }
 0xa4c   : > { %3886 = vadd.xlane.f32.xlu0 %v3882_v43  ;;  %v3883_v35 = vadd.f32 %v3871_v30, %v6950_v56 }
 0xa4d   : > { %v3892_v46 = vsel %vm1549_vm0, %v3885_v37, 0.0 }
 0xa4e   : > { %3888 = vadd.xlane.f32.xlu1 %v3883_v35 }
 0xa50   : > { %3893 = vadd.xlane.f32.xlu0 %v3892_v46 }
 0xa52   : > { %3890 = vadd.xlane.f32.xlu1 %v3884_v34 }
 0xad9   : > { %v3887_v55 = vpop.xlane.xlu0 %3886 }
 0xada   : > { %v3895_v8 = vmul.f32 0.0078125, %v3887_v55 }
 0xadb   : > { %v3889_v14 = vpop.xlane.xlu1 %3888 }
 0xadc   : > { %v7261_v41 = vsub.f32 %v3882_v43, %v3895_v8  ;;  %v3896_v61 = vmul.f32 0.0078125, %v3889_v14 }
 0xadd   : > { %v3894_v56 = vpop.xlane.xlu0 %3893 }
 0xade   : > { %v7263_v32 = vsub.f32 %v3883_v35, %v3896_v61  ;;  %v3898_v33 = vmul.f32 0.0078125, %v3894_v56  ;;  %v3903_v40 = vmul.f32 %v7261_v41, %v7261_v41 }
 0xadf   : > { %v3891_v5 = vpop.xlane.xlu1 %3890 }
 0xae0   : > { %v7267_v15 = vsub.f32 %v3885_v37, %v3898_v33  ;;  %v3897_v49 = vmul.f32 0.0078125, %v3891_v5  ;;  %3907 = vadd.xlane.f32.xlu0 %v3903_v40  ;;  %v3904_v6 = vmul.f32 %v7263_v32, %v7263_v32 }
 0xae2   : > { %v7271_v13 = vsub.f32 %v3884_v34, %v3897_v49  ;;  %3909 = vadd.xlane.f32.xlu1 %v3904_v6  ;;  %v3906_v2 = vmul.f32 %v7267_v15, %v7267_v15 }
 0xae4   : > { %v3905_v11 = vmul.f32 %v7271_v13, %v7271_v13  ;;  %v3913_v36 = vsel %vm1549_vm0, %v3906_v2, 0.0 }
 0xae6   : > { %3911 = vadd.xlane.f32.xlu0 %v3905_v11  ;;  %3914 = vadd.xlane.f32.xlu1 %v3913_v36 }
 0xb05   : > { %v5747_v54 = vpop.f32.mrb[56].mxu1 }
 0xb06   : > { %v3984_v57 = vpop.f32.mrb[57].mxu1  ;;  %v3993_v12 = vadd.f32 %v5747_v54, %v7245_v29 }
 0xb07   : > { %v3985_v60 = vadd.f32 %v7245_v29, %v3984_v57  ;;  %v5748_v0 = vpop.f32.mrb[58].mxu1 }
 0xb08   : > { %v3996_v26 = vadd.f32 %v5748_v0, %v7245_v29  ;;  %v3987_v3 = vpop.f32.mrb[59].mxu1  ;;  %v4001_v17 = vadd.f32 %v3993_v12, %v6999_v38  ;;  %v7328_v38 = vrot.slane %v7323_v10, %v967_v45 }
 0xb09   : > { %v3988_v53 = vadd.f32 %v7245_v29, %v3987_v3  ;;  %v3999_v59 = vadd.f32 %v3985_v60, %v6986_v16 }
 0xb0a   : > { %v4002_v63 = vadd.f32 %v3996_v26, %v7002_v24 }
 0xb0b   : > { %4003 = vadd.xlane.f32.xlu0 %v3999_v59  ;;  %v4000_v20 = vadd.f32 %v3988_v53, %v6989_v31 }
 0xb0c   : > { %v4009_v19 = vsel %vm1549_vm0, %v4002_v63, 0.0 }
 0xb0d   : > { %4005 = vadd.xlane.f32.xlu1 %v4000_v20 }
 0xb0f   : > { %4010 = vadd.xlane.f32.xlu0 %v4009_v19 }
 0xb11   : > { %4007 = vadd.xlane.f32.xlu1 %v4001_v17 }
 0xb6d   : > { %v3908_v9 = vpop.xlane.xlu0 %3907 }
 0xb6e   : > { %v3916_v27 = vmul.f32 0.0078125, %v3908_v9 }
 0xb6f   : > { %v3910_v16 = vpop.xlane.xlu1 %3909 }
 0xb70   : > { %v3920_v4 = vadd.f32 1e-05, %v3916_v27  ;;  %v3917_v28 = vmul.f32 0.0078125, %v3910_v16 }
 0xb72   : > { %6274 = vrsqrt.f32 %v3920_v4  ;;  %v3921_v24 = vadd.f32 1e-05, %v3917_v28 }
 0xb73   : > { %v3915_v50 = vpop.xlane.xlu1 %3914  ;;  %v3912_v1 = vpop.xlane.xlu0 %3911 }
 0xb74   : > { %6276 = vrsqrt.f32 %v3921_v24  ;;  %v3919_v29 = vmul.f32 0.0078125, %v3915_v50  ;;  %v3918_v31 = vmul.f32 0.0078125, %v3912_v1  ;;  %v7376_v50 = vld [vmem:[%s866_s3] ss:$0 sm:$0xff] }
 0xb76   : > { %v3923_v52 = vadd.f32 1e-05, %v3919_v29  ;;  %v3922_v7 = vadd.f32 1e-05, %v3918_v31 }
 0xb78   : > { %6278 = vrsqrt.f32 %v3923_v52 }
 0xb79   : > { %6280 = vrsqrt.f32 %v3922_v7 }
 0xb7c   : > { %v6275_v47 = vpop.eup %6274 }
 0xb7d   : > { %v3928_v58 = vmul.f32 %v6275_v47, %v7261_v41 }
 0xb7e   : > { %v6277_v30 = vpop.eup %6276 }
 0xb7f   : > { %v3929_v43 = vmul.f32 %v6277_v30, %v7263_v32  ;;  %v3936_v37 = vmul.f32 %v7328_v38, %v3928_v58 }
 0xb81   : > { %v3937_v35 = vmul.f32 %v7328_v38, %v3929_v43  ;;  %v7340_v55 = vadd.f32 %v7335_v23, %v3936_v37 }
 0xb82   : > { %v6279_v46 = vpop.eup %6278 }
 0xb83   : > { %v6281_v34 = vpop.eup %6280  ;;  %v3931_v45 = vmul.f32 %v6279_v46, %v7267_v15  ;;  %v7343_v8 = vadd.f32 %v7335_v23, %v3937_v35 }
 0xb84   : > { %v3930_v14 = vmul.f32 %v6281_v34, %v7271_v13 }
 0xb85   : > { %v4057_v41 = vpack.c.bf16 %v7343_v8, %v7340_v55  ;;  %v3939_v61 = vmul.f32 %v7328_v38, %v3931_v45 }
 0xb86   : > { %v3938_v56 = vmul.f32 %v7328_v38, %v3930_v14 }
 0xb87   : > { %5765 = vmatprep.mubr.bf16.mxu0 %v4057_v41  ;;  %v7351_v32 = vadd.f32 %v7335_v23, %v3939_v61 }
 0xb88   : > { %v7354_v33 = vadd.f32 %v7335_v23, %v3938_v56 }
 0xb8a   : > { %v4058_v40 = vpack.c.bf16 %v7351_v32, %v7354_v33 }
 0xb8c   : > { %5766 = vmatmul.mubr.bf16.vlgmr.msra.gmra.mrb[68].mxu0 %v4058_v40 }
 0xb98   : > { %v4004_v5 = vpop.xlane.xlu0 %4003 }
 0xb99   : > { %v4012_v15 = vmul.f32 0.0078125, %v4004_v5 }
 0xb9a   : > { %v4006_v49 = vpop.xlane.xlu1 %4005 }
 0xb9b   : > { %v4016_v6 = vsub.f32 %v3999_v59, %v4012_v15  ;;  %v4013_v13 = vmul.f32 0.0078125, %v4006_v49 }
 0xb9c   : > { %v4011_v2 = vpop.xlane.xlu0 %4010 }
 0xb9d   : > { %v4017_v11 = vsub.f32 %v4000_v20, %v4013_v13  ;;  %v4015_v36 = vmul.f32 0.0078125, %v4011_v2  ;;  %v4020_v54 = vmul.f32 %v4016_v6, %v4016_v6  ;;  %v6161_v20 = vld [vmem:[%s871_s1 + $0x8] sm:$0xff]  }
 0xb9e   : > { %v4008_v57 = vpop.xlane.xlu1 %4007 }
 0xb9f   : > { %v7358_v60 = vsub.f32 %v4002_v63, %v4015_v36  ;;  %v4014_v0 = vmul.f32 0.0078125, %v4008_v57  ;;  %4024 = vadd.xlane.f32.xlu0 %v4020_v54  ;;  %v4021_v26 = vmul.f32 %v4017_v11, %v4017_v11  ;;  %v6160_v63 = vld [vmem:[%s871_s1] sm:$0xff]  }
 0xba0   : > { %5769 = vmatprep.subr.bf16.mxu1 %v6160_v63  ;;  %5797 = vmatprep.subr.bf16.mxu0 %v6160_v63 }
 0xba1   : > { %v7360_v3 = vsub.f32 %v4001_v17, %v4014_v0  ;;  %4026 = vadd.xlane.f32.xlu1 %v4021_v26  ;;  %v4023_v53 = vmul.f32 %v7358_v60, %v7358_v60  ;;  %5770 = vmatpush3.bf16.msra.mxu1 %v6160_v63 }
 0xba2   : > { %5798 = vmatpush3.bf16.msra.mxu0 %v6160_v63  ;;  %5771 = vmatprep.subr.bf16.mxu1 %v6161_v20 }
 0xba3   : > { %v4022_v59 = vmul.f32 %v7360_v3, %v7360_v3  ;;  %v4030_v12 = vsel %vm1549_vm0, %v4023_v53, 0.0  ;;  %5799 = vmatprep.subr.bf16.mxu0 %v6161_v20 }
 0xba5   : > { %4028 = vadd.xlane.f32.xlu0 %v4022_v59  ;;  %4031 = vadd.xlane.f32.xlu1 %v4030_v12 }
 0xba6   : > { %5772 = vmatpush3.bf16.msra.mxu1 %v6161_v20  ;;  %5800 = vmatpush3.bf16.msra.mxu0 %v6161_v20 }
 0xba7   : > { %5777 = vmatprep.subr.bf16.mxu1 %v7257_v21 }
 0xc2c   : > { %v4025_v17 = vpop.xlane.xlu0 %4024 }
 0xc2d   : > { %v4033_v27 = vmul.f32 0.0078125, %v4025_v17 }
 0xc2e   : > { %v4027_v19 = vpop.xlane.xlu1 %4026 }
 0xc2f   : > { %v4034_v9 = vmul.f32 0.0078125, %v4027_v19  ;;  %v4037_v4 = vadd.f32 1e-05, %v4033_v27 }
 0xc31   : > { %v4038_v16 = vadd.f32 1e-05, %v4034_v9 }
 0xc32   : > { %v4032_v37 = vpop.xlane.xlu1 %4031  ;;  %v4029_v34 = vpop.xlane.xlu0 %4028 }
 0xc33   : > { %6282 = vrsqrt.f32 %v4038_v16  ;;  %v4036_v40 = vmul.f32 0.0078125, %v4032_v37  ;;  %v4035_v15 = vmul.f32 0.0078125, %v4029_v34 }
 0xc34   : > { %6284 = vrsqrt.f32 %v4037_v4 }
 0xc35   : > { %v4040_v2 = vadd.f32 1e-05, %v4036_v40 }
 0xc37   : > { %6286 = vrsqrt.f32 %v4040_v2 }
 0xc3d   : > { %v6283_v28 = vpop.eup %6282 }
 0xc3e   : > { %v6285_v24 = vpop.eup %6284  ;;  %v4046_v1 = vmul.f32 %v6283_v28, %v4017_v11  ;;  %v4039_v11 = vadd.f32 1e-05, %v4035_v15 }
 0xc3f   : > { %v4045_v31 = vmul.f32 %v6285_v24, %v4016_v6 }
 0xc40   : > { %v4050_v58 = vmul.f32 %v4046_v1, %v7328_v38  ;;  %6288 = vrsqrt.f32 %v4039_v11 }
 0xc41   : > { %v4049_v46 = vmul.f32 %v4045_v31, %v7328_v38  ;;  %v6287_v36 = vpop.eup %6286 }
 0xc42   : > { %v7385_v56 = vadd.f32 %v4050_v58, %v7335_v23 }
 0xc43   : > { %v7388_v6 = vadd.f32 %v4049_v46, %v7335_v23 }
 0xc45   : > { %v4264_v13 = vpack.c.bf16 %v7385_v56, %v7388_v6 }
 0xc4a   : > { %v6289_v54 = vpop.eup %6288 }
 0xc4b   : > { %v4047_v57 = vmul.f32 %v6289_v54, %v7360_v3 }
 0xc5f   : > { %v5767_v29 = vpop.f32.mrb[68].mxu0 }
 0xc60   : > { %v4173_v52 = vadd.f32 %v5767_v29, %v7376_v50  ;;  %v4164_v7 = vpop.f32.mrb[69].mxu0 }
 0xc61   : > { %v4165_v25 = vadd.f32 %v7376_v50, %v4164_v7  ;;  %v5768_v47 = vpop.f32.mrb[70].mxu0 }
 0xc62   : > { %v4176_v30 = vadd.f32 %v5768_v47, %v7376_v50  ;;  %v4167_v43 = vpop.f32.mrb[71].mxu0  ;;  %v4181_v45 = vmax.f32 %v4173_v52, 0.0 }
 0xc63   : > { %v4168_v35 = vadd.f32 %v7376_v50, %v4167_v43  ;;  %v4179_v41 = vmax.f32 %v4165_v25, 0.0 }
 0xc64   : > { %v4182_v14 = vmax.f32 %v4176_v30, 0.0 }
 0xc65   : > { %v4180_v61 = vmax.f32 %v4168_v35, 0.0 }
 0xc66   : > { %v4184_v5 = vpack.c.bf16 %v4182_v14, %v4181_v45 }
 0xc67   : > { %v4183_v49 = vpack.c.bf16 %v4180_v61, %v4179_v41 }
 0xc69   : > { %5773 = vmatprep.mubr.msk.bf16.mxu1 %vm4208_vm2, %v4183_v49 }
 0xc6a   : > { %5774 = vmatmul.mubr.msk.bf16.vlgmr.msra.gmra.mrb[60].mxu1 %vm4208_vm2, %v4184_v5 }
 0xc6b   : > { %5778 = vmatpush3.bf16.msra.mxu1 %v7257_v21  ;;  %5793 = vmatprep.mubr.bf16.mxu1 %v4264_v13  ;;  %v4048_v21 = vmul.f32 %v6287_v36, %v7358_v60 }
 0xc6c   : > { %5779 = vmatprep.subr.bf16.mxu1 %v7279_v39 }
 0xc6f   : > { %5780 = vmatpush3.bf16.msra.mxu1 %v7279_v39  ;;  %v4051_v39 = vmul.f32 %v4047_v57, %v7328_v38 }
 0xc70   : > { %5781 = vmatprep.subr.bf16.mxu1 %v7284_v44 }
 0xc73   : > { %5782 = vmatpush3.bf16.msra.mxu1 %v7284_v44  ;;  %v4052_v44 = vmul.f32 %v4048_v21, %v7328_v38 }
 0xc74   : > { %5783 = vmatprep.subr.bf16.mxu1 %v7289_v42 }
 0xc77   : > { %5784 = vmatpush3.bf16.msra.mxu1 %v7289_v42  ;;  %v7413_v42 = vadd.f32 %v4051_v39, %v7335_v23 }
 0xc78   : > { %5785 = vmatprep.subr.bf16.mxu1 %v7294_v22 }
 0xc7b   : > { %5786 = vmatpush3.bf16.msra.mxu1 %v7294_v22  ;;  %v4056_v22 = vadd.f32 %v4052_v44, %v7335_v23 }
 0xc7c   : > { %5787 = vmatprep.subr.bf16.mxu1 %v7299_v18 }
 0xc7d   : > { %v4265_v60 = vpack.c.bf16 %v4056_v22, %v7413_v42 }
 0xc7f   : > { %5788 = vmatpush3.bf16.msra.mxu1 %v7299_v18  ;;  %v4891_v18 = vld [vmem:[%s874_s28] ss:$0 sm:$0xff] }
 0xc80   : > { %5789 = vmatprep.subr.bf16.mxu1 %v7304_v48 }
 0xc83   : > { %5790 = vmatpush3.bf16.msra.mxu1 %v7304_v48 }
 0xc84   : > { %5791 = vmatprep.subr.bf16.mxu1 %v7308_v51 }
 0xc87   : > { %5792 = vmatpush3.bf16.msra.mxu1 %v7308_v51 }
 0xc8a   : > { %5794 = vmatmul.mubr.bf16.vlgmr.msra.gmra.mrb[64].mxu1 %v4265_v60 }
 0xd3d   : > { %v5775_v38 = vpop.f32.mrb[60].mxu1 }
 0xd3e   : > { %v4258_v0 = vadd.f32 %v5775_v38, %v4891_v18  ;;  %v4249_v48 = vpop.f32.mrb[61].mxu1 }
 0xd3f   : > { %v5776_v26 = vpop.f32.mrb[62].mxu1  ;;  %v4250_v3 = vadd.f32 %v4891_v18, %v4249_v48 }
 0xd40   : > { %v4252_v53 = vpop.f32.mrb[63].mxu1  ;;  %v4378_v59 = vadd.f32 %v4258_v0, %v7354_v33  ;;  %v4261_v12 = vadd.f32 %v5776_v26, %v4891_v18 }
 0xd41   : > { %v4253_v23 = vadd.f32 %v4891_v18, %v4252_v53  ;;  %v4376_v63 = vadd.f32 %v4250_v3, %v7340_v55 }
 0xd42   : > { %4384 = vadd.xlane.f32.xlu0 %v4378_v59  ;;  %v4379_v20 = vadd.f32 %v4261_v12, %v7351_v32 }
 0xd43   : > { %v4377_v51 = vadd.f32 %v4253_v23, %v7343_v8 }
 0xd44   : > { %v4386_v19 = vsel %vm1549_vm0, %v4379_v20, 0.0 }
 0xd45   : > { %4382 = vadd.xlane.f32.xlu1 %v4377_v51 }
 0xd46   : > { %4380 = vadd.xlane.f32.xlu0 %v4376_v63 }
 0xd4a   : > { %4387 = vadd.xlane.f32.xlu0 %v4386_v19 }
 0xd5d   : > { %v5795_v17 = vpop.f32.mrb[64].mxu1 }
 0xd5e   : > { %v4309_v9 = vadd.f32 %v5795_v17, %v7376_v50  ;;  %v4300_v27 = vpop.f32.mrb[65].mxu1 }
 0xd5f   : > { %v4301_v33 = vadd.f32 %v7376_v50, %v4300_v27  ;;  %v5796_v16 = vpop.f32.mrb[66].mxu1 }
 0xd60   : > { %v4312_v4 = vadd.f32 %v5796_v16, %v7376_v50  ;;  %v4303_v28 = vpop.f32.mrb[67].mxu1  ;;  %v4317_v55 = vmax.f32 %v4309_v9, 0.0 }
 0xd61   : > { %v4304_v8 = vadd.f32 %v7376_v50, %v4303_v28  ;;  %v4315_v1 = vmax.f32 %v4301_v33, 0.0 }
 0xd62   : > { %v4318_v24 = vmax.f32 %v4312_v4, 0.0 }
 0xd63   : > { %v4316_v32 = vmax.f32 %v4304_v8, 0.0 }
 0xd64   : > { %v4320_v29 = vpack.c.bf16 %v4318_v24, %v4317_v55  ;;  %v4428_v55 = vsub.s32 4, %v6675_v62 }
 0xd65   : > { %v4319_v31 = vpack.c.bf16 %v4316_v32, %v4315_v1  ;;  %v4436_v32 = vsub.s32 5, %v6675_v62 }
 0xd67   : > { %5801 = vmatprep.mubr.msk.bf16.mxu0 %vm4208_vm2, %v4319_v31  ;;  %v4429_v31 = vrot.slane %v7323_v10, %v4428_v55 }
 0xd68   : > { %5802 = vmatmul.mubr.msk.bf16.vlgmr.msra.gmra.mrb[72].mxu0 %vm4208_vm2, %v4320_v29 }
 0xdcf   : > { %v4385_v52 = vpop.xlane.xlu0 %4384 }
 0xdd0   : > { %v4391_v14 = vmul.f32 0.0078125, %v4385_v52 }
 0xdd2   : > { %v4383_v34 = vpop.xlane.xlu1 %4382  ;;  %v4395_v2 = vsub.f32 %v4378_v59, %v4391_v14 }
 0xdd3   : > { %v4381_v7 = vpop.xlane.xlu0 %4380  ;;  %v4390_v5 = vmul.f32 0.0078125, %v4383_v34 }
 0xdd4   : > { %v4389_v58 = vmul.f32 0.0078125, %v4381_v7  ;;  %v4437_v7 = vrot.slane %v7323_v10, %v4436_v32 }
 0xdd5   : > { %v7440_v11 = vsub.f32 %v4377_v51, %v4390_v5 }
 0xdd6   : > { %v7434_v41 = vsub.f32 %v4376_v63, %v4389_v58 }
 0xdd7   : > { %v4388_v61 = vpop.xlane.xlu0 %4387  ;;  %v4398_v21 = vmul.f32 %v7440_v11, %v7440_v11 }
 0xdd8   : > { %v4392_v49 = vmul.f32 0.0078125, %v4388_v61 }
 0xdda   : > { %v7443_v54 = vsub.f32 %v4379_v20, %v4392_v49 }
 0xddc   : > { %v4400_v57 = vmul.f32 %v7443_v54, %v7443_v54 }
 0xdde   : > { %v4407_v39 = vsel %vm1549_vm0, %v4400_v57, 0.0 }
 0xe3b   : > { %v5803_v25 = vpop.f32.mrb[72].mxu0 }
 0xe3c   : > { %v4361_v47 = vpop.f32.mrb[73].mxu0  ;;  %v4370_v15 = vadd.f32 %v5803_v25, %v4891_v18 }
 0xe3d   : > { %v4362_v30 = vadd.f32 %v4891_v18, %v4361_v47  ;;  %v5804_v43 = vpop.f32.mrb[74].mxu0 }
 0xe3e   : > { %v4373_v37 = vadd.f32 %v5804_v43, %v4891_v18  ;;  %v4364_v35 = vpop.f32.mrb[75].mxu0  ;;  %v4444_v36 = vadd.f32 %v4370_v15, %v7413_v42 }
 0xe3f   : > { %v4365_v50 = vadd.f32 %v4891_v18, %v4364_v35  ;;  %v4442_v46 = vadd.f32 %v4362_v30, %v7388_v6  ;;  %v4397_v6 = vmul.f32 %v7434_v41, %v7434_v41 }
 0xe40   : > { %v4445_v45 = vadd.f32 %v4373_v37, %v4056_v22 }
 0xe41   : > { %4446 = vadd.xlane.f32.xlu1 %v4442_v46  ;;  %v4443_v40 = vadd.f32 %v4365_v50, %v7385_v56  ;;  %v4399_v56 = vmul.f32 %v4395_v2, %v4395_v2 }
 0xe42   : > { %v4452_v13 = vsel %vm1549_vm0, %v4445_v45, 0.0 }
 0xe43   : > { %4448 = vadd.xlane.f32.xlu0 %v4443_v40 }
 0xe45   : > { %4453 = vadd.xlane.f32.xlu1 %v4452_v13 }
 0xe47   : > { %4401 = vadd.xlane.f32.xlu0 %v4397_v6 }
 0xe49   : > { %4450 = vadd.xlane.f32.xlu1 %v4444_v36 }
 0xe4b   : > { %4405 = vadd.xlane.f32.xlu0 %v4399_v56 }
 0xe4d   : > { %4403 = vadd.xlane.f32.xlu1 %v4398_v21 }
 0xe51   : > { %4408 = vadd.xlane.f32.xlu1 %v4407_v39 }
 0xece   : > { %v4447_v44 = vpop.xlane.xlu1 %4446 }
 0xecf   : > { %v4455_v22 = vmul.f32 0.0078125, %v4447_v44 }
 0xed0   : > { %v4449_v60 = vpop.xlane.xlu0 %4448 }
 0xed1   : > { %v7450_v18 = vsub.f32 %v4442_v46, %v4455_v22  ;;  %v4456_v42 = vmul.f32 0.0078125, %v4449_v60 }
 0xed2   : > { %v4454_v38 = vpop.xlane.xlu1 %4453 }
 0xed3   : > { %v7452_v0 = vsub.f32 %v4443_v40, %v4456_v42  ;;  %v4458_v48 = vmul.f32 0.0078125, %v4454_v38  ;;  %v4463_v26 = vmul.f32 %v7450_v18, %v7450_v18 }
 0xed4   : > { %v4402_v3 = vpop.xlane.xlu0 %4401 }
 0xed5   : > { %v7456_v53 = vsub.f32 %v4445_v45, %v4458_v48  ;;  %v4410_v59 = vmul.f32 0.0078125, %v4402_v3  ;;  %4467 = vadd.xlane.f32.xlu0 %v4463_v26  ;;  %v4464_v12 = vmul.f32 %v7452_v0, %v7452_v0 }
 0xed6   : > { %v4451_v23 = vpop.xlane.xlu1 %4450 }
 0xed7   : > { %v4414_v51 = vadd.f32 1e-05, %v4410_v59  ;;  %v4457_v63 = vmul.f32 0.0078125, %v4451_v23  ;;  %4469 = vadd.xlane.f32.xlu1 %v4464_v12  ;;  %v4466_v20 = vmul.f32 %v7456_v53, %v7456_v53 }
 0xed8   : > { %v4406_v19 = vpop.xlane.xlu0 %4405 }
 0xed9   : > { %6290 = vrsqrt.f32 %v4414_v51  ;;  %v7462_v17 = vsub.f32 %v4444_v36, %v4457_v63  ;;  %v4412_v9 = vmul.f32 0.0078125, %v4406_v19  ;;  %v4473_v27 = vsel %vm1549_vm0, %v4466_v20, 0.0 }
 0xeda   : > { %v4404_v33 = vpop.xlane.xlu1 %4403 }
 0xedb   : > { %v4416_v16 = vadd.f32 1e-05, %v4412_v9  ;;  %v4411_v4 = vmul.f32 0.0078125, %v4404_v33  ;;  %4474 = vadd.xlane.f32.xlu1 %v4473_v27  ;;  %v4465_v28 = vmul.f32 %v7462_v17, %v7462_v17 }
 0xedd   : > { %6292 = vrsqrt.f32 %v4416_v16  ;;  %v4415_v8 = vadd.f32 1e-05, %v4411_v4  ;;  %4471 = vadd.xlane.f32.xlu0 %v4465_v28 }
 0xede   : > { %v4409_v24 = vpop.xlane.xlu1 %4408 }
 0xedf   : > { %6294 = vrsqrt.f32 %v4415_v8  ;;  %v4413_v1 = vmul.f32 0.0078125, %v4409_v24 }
 0xee1   : > { %v4417_v29 = vadd.f32 1e-05, %v4413_v1 }
 0xee3   : > { %v6291_v52 = vpop.eup %6290  ;;  %6296 = vrsqrt.f32 %v4417_v29 }
 0xee4   : > { %v4422_v25 = vmul.f32 %v6291_v52, %v7434_v41 }
 0xee6   : > { %v4430_v47 = vmul.f32 %v4429_v31, %v4422_v25 }
 0xee7   : > { %v6293_v58 = vpop.eup %6292 }
 0xee8   : > { %v4438_v62 = vadd.f32 %v4437_v7, %v4430_v47  ;;  %v4424_v30 = vmul.f32 %v6293_v58, %v4395_v2 }
 0xee9   : > { %v6295_v43 = vpop.eup %6294 }
 0xeea   : > { %4500 = vst [vmem:[%s7476_s27] sm:$0xff] %v4438_v62  ;;  %v4432_v37 = vmul.f32 %v4429_v31, %v4424_v30  ;;  %v4423_v10 = vmul.f32 %v6295_v43, %v7440_v11 }
 0xeec   : > { %v4440_v35 = vadd.f32 %v4437_v7, %v4432_v37  ;;  %v4431_v50 = vmul.f32 %v4429_v31, %v4423_v10 }
 0xeed   : > { %v6297_v46 = vpop.eup %6296 }
 0xeee   : > { %4502 = vst [vmem:[%s7476_s27 + $0x10] sm:$0xff] %v4440_v35  ;;  %v4439_v34 = vadd.f32 %v4437_v7, %v4431_v50  ;;  %v4425_v45 = vmul.f32 %v6297_v46, %v7443_v54 }
 0xef0   : > { %4501 = vst [vmem:[%s7476_s27 + $0x8] sm:$0xff] %v4439_v34  ;;  %v4433_v14 = vmul.f32 %v4429_v31, %v4425_v45 }
 0xef2   : > { %v4441_v41 = vadd.f32 %v4437_v7, %v4433_v14 }
 0xef4   : > { %4503 = vst [vmem:[%s7476_s27 + $0x18] sm:$0xf] %v4441_v41 }
 0xf62   : > { %v4468_v61 = vpop.xlane.xlu0 %4467 }
 0xf63   : > { %v4476_v40 = vmul.f32 0.0078125, %v4468_v61 }
 0xf64   : > { %v4470_v5 = vpop.xlane.xlu1 %4469 }
 0xf65   : > { %v4480_v15 = vadd.f32 1e-05, %v4476_v40  ;;  %v4477_v49 = vmul.f32 0.0078125, %v4470_v5 }
 0xf67   : > { %6298 = vrsqrt.f32 %v4480_v15  ;;  %v4481_v13 = vadd.f32 1e-05, %v4477_v49 }
 0xf68   : > { %v4475_v2 = vpop.xlane.xlu1 %4474 }
 0xf69   : > { %6300 = vrsqrt.f32 %v4481_v13  ;;  %v4479_v6 = vmul.f32 0.0078125, %v4475_v2 }
 0xf6a   : > { %v4472_v11 = vpop.xlane.xlu0 %4471 }
 0xf6b   : > { %v4483_v36 = vadd.f32 1e-05, %v4479_v6  ;;  %v4478_v56 = vmul.f32 0.0078125, %v4472_v11 }
 0xf6d   : > { %6302 = vrsqrt.f32 %v4483_v36  ;;  %v4482_v54 = vadd.f32 1e-05, %v4478_v56 }
 0xf6f   : > { %6304 = vrsqrt.f32 %v4482_v54 }
 0xf71   : > { %v6299_v21 = vpop.eup %6298 }
 0xf72   : > { %v4488_v57 = vmul.f32 %v6299_v21, %v7450_v18 }
 0xf73   : > { %v6301_v39 = vpop.eup %6300 }
 0xf74   : > { %v4492_v44 = vmul.f32 %v4488_v57, %v4429_v31  ;;  %v4489_v22 = vmul.f32 %v6301_v39, %v7452_v0 }
 0xf76   : > { %v4496_v60 = vadd.f32 %v4492_v44, %v4437_v7  ;;  %v4493_v42 = vmul.f32 %v4489_v22, %v4429_v31 }
 0xf77   : > { %v6303_v38 = vpop.eup %6302 }
 0xf78   : > { %4898 = vst [vmem:[%s7476_s27 + $0x20] sm:$0xff] %v4496_v60  ;;  %v4497_v48 = vadd.f32 %v4493_v42, %v4437_v7  ;;  %v4491_v26 = vmul.f32 %v6303_v38, %v7456_v53 }
 0xf79   : > { %v6305_v3 = vpop.eup %6304 }
 0xf7a   : > { %4899 = vst [vmem:[%s7476_s27 + $0x28] sm:$0xff] %v4497_v48  ;;  %v4495_v59 = vmul.f32 %v4491_v26, %v4429_v31  ;;  %v4490_v12 = vmul.f32 %v6305_v3, %v7462_v17 }
 0xf7c   : > { %v4499_v23 = vadd.f32 %v4495_v59, %v4437_v7  ;;  %v4494_v18 = vmul.f32 %v4490_v12, %v4429_v31 }
 0xf7e   : > { %4901 = vst [vmem:[%s7476_s27 + $0x38] sm:$0xf] %v4499_v23  ;;  %v4498_v51 = vadd.f32 %v4494_v18, %v4437_v7 }
 0xf80   : > { %4900 = vst [vmem:[%s7476_s27 + $0x30] sm:$0xff] %v4498_v51 }
 0xf81 PF: > { %s29_s0 = sadd.s32 1, %s6318_s0  }
 0xf82   : > { %p26_p4 = scmp.ge.s32.totalorder %s29_s0, 4  }
 0xf84   :  { %28 = sbr.rel (!%p26_p4) target bundleno = 6 (0x6), region = 177 }

// kernel: viewmaker_forward.9
= control target key start
LH: loop header
LB: loop body
LE: loop exit
PB: predicated region body
PF: predicated region fallthrough
CT: control target
= control target key end

     0   :  { %s3620_s0 = inlined_call_operand.vmem [shape: s32[2], index: 0, kind: input, shape index: {}]   ;;  %s3621_s1 = inlined_call_operand.vmem [shape: f32[2,2,28,128], index: 1, kind: input, shape index: {}]   ;;  %s3622_s2 = inlined_call_operand.vmem [shape: f32[2,32,12], index: 2, kind: input, shape index: {}]   ;;  %s3623_s3 = inlined_call_operand.vmem [shape: f32[2,2,128], index: 3, kind: input, shape index: {}]   ;;  %s3624_s4 = inlined_call_operand.vmem [shape: bf16[2,3,128,64], index: 4, kind: input, shape index: {}]   ;;  %s3625_s5 = inlined_call_operand.vmem [shape: f32[2,1,64], index: 5, kind: input, shape index: {}]   ;;  %s3626_s6 = inlined_call_operand.vmem [shape: f32[2,2,64], index: 6, kind: input, shape index: {}]   ;;  %s3627_s7 = inlined_call_operand.vmem [shape: bf16[2,3,64,12], index: 7, kind: input, shape index: {}]   ;;  %s3628_s8 = inlined_call_operand.vmem [shape: f32[2,1,12], index: 8, kind: input, shape index: {}]   ;;  %s3629_s9 = inlined_call_operand.vmem [shape: f32[2,32,12], index: 9, kind: output, shape index: {}]  }
   0x1   :  { %s14_s11 = sshll.u32 %s3620_s0, 4  ;;  %s15_s11 = int_to_ptr.vmem [resolvable:$true] %s14_s11 }
   0x2   :  { %s2997_s12 = scalar_lea.vmem %s15_s11, 16  ;;  %p3002_p1 = scmp.lt.s32.totalorder %s15_s11, %s15_s11 }
   0x3   :  { %p2998_p0 = scmp.ne.s32.totalorder %s15_s11, %s2997_s12  ;;  %p3003_p2 = scmp.lt.s32.totalorder %s2997_s12, %s2997_s12 }
   0x5   :  { %p3004_p3 = por %p3003_p2, %p3002_p1 }
   0x7   :  { %p3005_p4 = pnand %p3004_p3, %p2998_p0 }
   0x9   :  { %3008 = shalt.err (!%p3005_p4)  }
   0xa   :  { %s3035_s13 = smov [#allocation5]  }
   0xb   :  { %17 = dma.vmem_to_smem %s15_s11, 16, %s3035_s13, [#allocation4] }
   0xc   :  { %3021 = dma.done.wait [#allocation4], 16 }
   0xd   :  { %3022 = vsyncadd [#allocation4], 4294967280 }
   0xe   :  { %19 = sfence }
   0xf   :  { %s3090_s14 = smov 0   ;;  %s3092_s15 = smov 0  }
  0x10   :  { %s3094_s16 = smov 0  }
  0x11 LB: > { %s3106_s0 = sadd.s32 4294967295, %s3033_s16   ;;  %s3109_s17 = sadd.s32 1, %s3033_s16   ;;  %s3033_s16 = sphi %s3094_s16, %s3634_s16   ;;  %s3029_s15 = sphi %s3092_s15, %s3633_s15   ;;  %s3025_s14 = sphi %s3090_s14, %s3632_s14  }
  0x12   : > { %s29_s18 = ssub.s32 %s3033_s16, %s3109_s17  ;;  %s32_s19 = sadd.s32 1, %s3029_s15 }
  0x13   : > { %p30_p5 = scmp.eq.s32.totalorder %s29_s18, 0  ;;  %p39_p6 = scmp.ne.s32.totalorder %s3029_s15, %s3025_s14 }
  0x14   : > { %p40_p7 = scmp.eq.s32.totalorder %s3033_s16, 0  ;;  %p2292_p9 = scmp.ge.s32.totalorder %s3033_s16, 2 }
  0x15   : > { %s3118_s20 = scalar_select %p30_p5, %s3029_s15, %s32_s19  }
  0x16   : > { %p41_p8 = por %p40_p7, %p39_p6  ;;  %261 = sbr.rel (%p2292_p9) target bundleno = 37 (0x25), region = 40 }
  0x1d   : > { %264 = sbr.rel (!%p41_p8) target bundleno = 37 (0x25), region = 44  ;;  %s266_s21 = sand.u32 (%p41_p8), 1, %s3029_s15  }
  0x1e   : > { %s2530_s22 = sshll.u32 (%p41_p8), %s3033_s16, 5  ;;  %s2293_s23 = sshll.u32 (%p41_p8), %s266_s21, 6 }
  0x1f   : > { %s271_s26 = scalar_lea.vmem (%p41_p8), %s3621_s1, %s2530_s22  ;;  %s268_s27 = scalar_lea.vmem (%p41_p8), [#allocation6], %s2293_s23 }
  0x20   : > { %v313_v0 = vld [vmem:[%s271_s26] sm:$0xff] (%p41_p8)  ;;  %v315_v1 = vld [vmem:[%s271_s26 + $0x8] sm:$0xff] (%p41_p8)  ;;  %v317_v2 = vld [vmem:[%s271_s26 + $0x10] sm:$0xff] (%p41_p8) }
  0x21   : > { %314 = vst [vmem:[%s268_s27] sm:$0xff] (%p41_p8), %v313_v0  ;;  %316 = vst [vmem:[%s268_s27 + $0x8] sm:$0xff] (%p41_p8), %v315_v1  ;;  %v319_v3 = vld [vmem:[%s271_s26 + $0x18] sm:$0xff] (%p41_p8)  ;;  %v321_v4 = vld [vmem:[%s271_s26 + $0x40] sm:$0xff] (%p41_p8) }
  0x22   : > { %318 = vst [vmem:[%s268_s27 + $0x10] sm:$0xff] (%p41_p8), %v317_v2  ;;  %v323_v5 = vld [vmem:[%s271_s26 + $0x48] sm:$0xff] (%p41_p8)  ;;  %320 = vst [vmem:[%s268_s27 + $0x18] sm:$0xff] (%p41_p8), %v319_v3  ;;  %v325_v6 = vld [vmem:[%s271_s26 + $0x50] sm:$0xff] (%p41_p8) }
  0x23   : > { %322 = vst [vmem:[%s268_s27 + $0x20] sm:$0xff] (%p41_p8), %v321_v4  ;;  %324 = vst [vmem:[%s268_s27 + $0x28] sm:$0xff] (%p41_p8), %v323_v5  ;;  %v327_v7 = vld [vmem:[%s271_s26 + $0x58] sm:$0xff] (%p41_p8) }
  0x24   : > { %326 = vst [vmem:[%s268_s27 + $0x30] sm:$0xff] %v325_v6  ;;  %328 = vst [vmem:[%s268_s27 + $0x38] sm:$0xff] %v327_v7 }
  0x25 PF: > { %p2296_p10 = scmp.ge.s32.totalorder %s3033_s16, 1  ;;  %p341_p11 = scmp.lt.s32.totalorder %s3033_s16, 3 }
  0x27   : > { %p342_p12 = pnand %p2296_p10, %p341_p11 }
  0x28   : > { %s348_s28 = sand.u32 (!%p342_p12), 1, %s3025_s14   ;;  %vm409_vm0 = vcmask (!%p342_p12), 1043456   ;;  %v3036_v13 = vmov (!%p342_p12), 0.0   ;;  %v2891_v31 = vld [vmem:[%s3624_s4 + $0x40] sm:$0xff] (!%p342_p12)   ;;  %v2892_v32 = vld [vmem:[%s3624_s4 + $0x48] sm:$0xff] (!%p342_p12)   ;;  %v2893_v33 = vld [vmem:[%s3624_s4 + $0x50] sm:$0xff] (!%p342_p12)  }
  0x29   : > { %345 = sbr.rel (%p342_p12) target bundleno = 2065 (0x811), region = 86  ;;  %s2297_s29 = sshll.u32 (!%p342_p12), %s348_s28, 6  ;;  %471 = vst [vmem:[#allocation2] sm:$0xff] (!%p342_p12), %v3036_v13  ;;  %472 = vst [vmem:[#allocation2 + $0x8] sm:$0xff] (!%p342_p12), %v3036_v13  ;;  %2629 = vmatprep.subr.bf16.mxu0 (!%p342_p12), %v2891_v31  ;;  %v2894_v34 = vld [vmem:[%s3624_s4 + $0x58] sm:$0xff] (!%p342_p12)   ;;  %v2895_v35 = vld [vmem:[%s3624_s4 + $0x60] sm:$0xff] (!%p342_p12)  }
  0x2a   : > { %s3129_s30 = scalar_lea.vmem (!%p342_p12), [#allocation6], %s2297_s29  ;;  %473 = vst [vmem:[#allocation2 + $0x10] sm:$0xff] (!%p342_p12), %v3036_v13  ;;  %474 = vst [vmem:[#allocation2 + $0x18] sm:$0xff] (!%p342_p12), %v3036_v13  ;;  %2630 = vmatpush3.bf16.msra.mxu0 (!%p342_p12), %v2891_v31  ;;  %v2896_v36 = vld [vmem:[%s3624_s4 + $0x68] sm:$0xff] (!%p342_p12)   ;;  %v2897_v37 = vld [vmem:[%s3624_s4 + $0x70] sm:$0xff] (!%p342_p12)   ;;  %vm750_vm2 = vcmask (!%p342_p12), 1046528  }
  0x2b   : > { %v397_v8 = vld [vmem:[%s3129_s30] sm:$0xff] (!%p342_p12)  ;;  %v400_v9 = vld [vmem:[%s3129_s30 + $0x18] sm:$0xf] (!%p342_p12)  ;;  %v398_v10 = vld [vmem:[%s3129_s30 + $0x8] sm:$0xff] (!%p342_p12)  ;;  %2631 = vmatprep.subr.bf16.mxu0 (!%p342_p12), %v2892_v32  ;;  %vm536_vm1 = vsmask.f32 (!%p342_p12), 7424 }
  0x2c   : > { %403 = vadd.xlane.f32.xlu0 (!%p342_p12), %v397_v8  ;;  %v410_v11 = vsel (!%p342_p12), %vm409_vm0, %v400_v9, 0.0  ;;  %v399_v12 = vld [vmem:[%s3129_s30 + $0x10] sm:$0xff] (!%p342_p12)  ;;  %v3172_v39 = vld [vmem:[%s3624_s4] sm:$0xff] (!%p342_p12)   ;;  %v2905_v31 = vld [vmem:[%s3624_s4 + $0x30] sm:$0xff] (!%p342_p12)   ;;  %vm869_vm3 = vcmask (!%p342_p12), 523264   ;;  %vm879_vm4 = vcmask (!%p342_p12), 521216  }
  0x2d   : > { %411 = vadd.xlane.f32.xlu1 (!%p342_p12), %v410_v11  ;;  %v2898_v38 = vld [vmem:[%s3624_s4 + $0x78] sm:$0xff] (!%p342_p12)   ;;  %v2302_v53 = vld [vmem:[%s3623_s3] ss:$0 sm:$0xff] (!%p342_p12)  ;;  %v2303_v55 = vld [vmem:[%s3623_s3 + $0x1] ss:$0 sm:$0xff] (!%p342_p12)  ;;  %944 = vst.msk [vmem:[#allocation3] sm:$0xff] (!%p342_p12), %vm869_vm3, %v3036_v13 }
  0x2e   : > { %2632 = vmatpush3.bf16.msra.mxu0 (!%p342_p12), %v2892_v32  ;;  %v2906_v32 = vld [vmem:[%s3624_s4 + $0x38] sm:$0xff] (!%p342_p12)   ;;  %945 = vst.msk [vmem:[#allocation3 + $0x8] sm:$0xff] (!%p342_p12), %vm869_vm3, %v3036_v13  ;;  %946 = vst.msk [vmem:[#allocation3 + $0x10] sm:$0xff] (!%p342_p12), %vm869_vm3, %v3036_v13  ;;  %vm948_vm5 = vcmask (!%p342_p12), 517120   ;;  %vm2142_vm6 = vcmask (!%p342_p12), 97280   ;;  %p386_p13 = scmp.lt.s32.totalorder (!%p342_p12), %s3106_s0, 1 }
  0x2f   : > { %2633 = vmatprep.subr.bf16.mxu0 (!%p342_p12), %v2893_v33  ;;  %947 = vst.msk [vmem:[#allocation3 + $0x18] sm:$0xff] (!%p342_p12), %vm869_vm3, %v3036_v13  ;;  %s2202_s22 = sld [smem:[#allocation5 + %s3106_s0]] (!%p342_p12) }
  0x30   : > { %405 = vadd.xlane.f32.xlu0 %v398_v10  ;;  %949 = vst.msk [vmem:[#allocation3 + $0x20] sm:$0x3] %vm948_vm5, %v3036_v13  ;;  %s3579_s21 = scalar_select %p386_p13, %s3106_s0, 1 }
  0x31   : > { %407 = vadd.xlane.f32.xlu1 %v399_v12 }
  0x32   : > { %2634 = vmatpush3.bf16.msra.mxu0 %v2893_v33  ;;  %v2907_v33 = vld [vmem:[%s3624_s4 + $0x80] sm:$0xff]   ;;  %s2531_s23 = sshll.u32 %s3579_s21, 5 }
  0x33   : > { %2635 = vmatprep.subr.bf16.mxu0 %v2894_v34  ;;  %s390_s26 = scalar_lea.vmem %s3622_s2, %s2531_s23  ;;  %s395_s28 = scalar_lea.vmem %s3629_s9, %s2531_s23 }
  0x36   : > { %2636 = vmatpush3.bf16.msra.mxu0 %v2894_v34 }
  0x37   : > { %2637 = vmatprep.subr.bf16.mxu0 %v2895_v35 }
  0x3a   : > { %2638 = vmatpush3.bf16.msra.mxu0 %v2895_v35 }
  0x3b   : > { %2639 = vmatprep.subr.bf16.mxu0 %v2896_v36 }
  0x3e   : > { %2640 = vmatpush3.bf16.msra.mxu0 %v2896_v36  ;;  %v2908_v36 = vld [vmem:[%s3624_s4 + $0x88] sm:$0xff]  }
  0x3f   : > { %2641 = vmatprep.subr.bf16.mxu0 %v2897_v37 }
  0x42   : > { %2642 = vmatpush3.bf16.msra.mxu0 %v2897_v37 }
  0x43   : > { %2643 = vmatprep.subr.bf16.mxu0 %v2898_v38 }
  0x46   : > { %2644 = vmatpush3.bf16.msra.mxu0 %v2898_v38  ;;  %v2909_v38 = vld [vmem:[%s3624_s4 + $0x90] sm:$0xff]  }
  0x47   : > { %2649 = vmatprep.subr.bf16.mxu0 %v3172_v39 }
  0xb9   : > { %v404_v14 = vpop.xlane.xlu0 %403 }
  0xba   : > { %v414_v15 = vmul.f32 0.0078125, %v404_v14  ;;  %v412_v16 = vpop.xlane.xlu1 %411 }
  0xbb   : > { %v417_v17 = vmul.f32 0.0078125, %v412_v16 }
  0xbc   : > { %v418_v18 = vsub.f32 %v397_v8, %v414_v15 }
  0xbd   : > { %v406_v19 = vpop.xlane.xlu0 %405  ;;  %v3140_v23 = vsub.f32 %v400_v9, %v417_v17 }
  0xbe   : > { %v415_v20 = vmul.f32 0.0078125, %v406_v19  ;;  %v408_v21 = vpop.xlane.xlu1 %407  ;;  %v422_v22 = vmul.f32 %v418_v18, %v418_v18 }
  0xbf   : > { %v416_v24 = vmul.f32 0.0078125, %v408_v21  ;;  %v425_v29 = vmul.f32 %v3140_v23, %v3140_v23 }
  0xc0   : > { %v419_v25 = vsub.f32 %v398_v10, %v415_v20  ;;  %426 = vadd.xlane.f32.xlu0 %v422_v22 }
  0xc1   : > { %v420_v26 = vsub.f32 %v399_v12, %v416_v24  ;;  %v432_v30 = vsel %vm409_vm0, %v425_v29, 0.0  ;;  %v2903_v29 = vld [vmem:[%s3624_s4 + $0x20] sm:$0xff]  }
  0xc2   : > { %v423_v27 = vmul.f32 %v419_v25, %v419_v25 }
  0xc3   : > { %v424_v28 = vmul.f32 %v420_v26, %v420_v26 }
  0xc4   : > { %428 = vadd.xlane.f32.xlu1 %v423_v27  ;;  %v2901_v27 = vld [vmem:[%s3624_s4 + $0x10] sm:$0xff]  }
  0xc5   : > { %430 = vadd.xlane.f32.xlu0 %v424_v28  ;;  %v2902_v28 = vld [vmem:[%s3624_s4 + $0x18] sm:$0xff]  }
  0xc8   : > { %433 = vadd.xlane.f32.xlu1 %v432_v30  ;;  %v2904_v30 = vld [vmem:[%s3624_s4 + $0x28] sm:$0xff]  }
 0x14d   : > { %v427_v40 = vpop.xlane.xlu0 %426 }
 0x14e   : > { %v435_v41 = vmul.f32 0.0078125, %v427_v40  ;;  %v2911_v40 = vld [vmem:[%s3624_s4 + $0xa0] sm:$0xff]  }
 0x150   : > { %v439_v42 = vadd.f32 1e-05, %v435_v41  ;;  %v2912_v41 = vld [vmem:[%s3624_s4 + $0xa8] sm:$0xff]  }
 0x151   : > { %v429_v43 = vpop.xlane.xlu1 %428 }
 0x152   : > { %2963 = vrsqrt.f32 %v439_v42  ;;  %v436_v44 = vmul.f32 0.0078125, %v429_v43  ;;  %v431_v45 = vpop.xlane.xlu0 %430  ;;  %v2913_v42 = vld [vmem:[%s3624_s4 + $0xb0] sm:$0xff]   ;;  %v2914_v43 = vld [vmem:[%s3624_s4 + $0xb8] sm:$0xff]  }
 0x153   : > { %v437_v46 = vmul.f32 0.0078125, %v431_v45 }
 0x154   : > { %v440_v47 = vadd.f32 1e-05, %v436_v44  ;;  %v2360_v44 = vld [vmem:[%s3625_s5] ss:$0 sm:$0xff] }
 0x155   : > { %v441_v48 = vadd.f32 1e-05, %v437_v46  ;;  %v434_v49 = vpop.xlane.xlu1 %433 }
 0x156   : > { %2965 = vrsqrt.f32 %v440_v47  ;;  %v438_v50 = vmul.f32 0.0078125, %v434_v49 }
 0x157   : > { %2967 = vrsqrt.f32 %v441_v48 }
 0x158   : > { %v442_v51 = vadd.f32 1e-05, %v438_v50 }
 0x15a   : > { %2969 = vrsqrt.f32 %v442_v51 }
 0x15c   : > { %v2964_v52 = vpop.eup %2963 }
 0x15d   : > { %v447_v54 = vmul.f32 %v2964_v52, %v418_v18 }
 0x15f   : > { %v455_v56 = vmul.f32 %v2302_v53, %v447_v54 }
 0x160   : > { %v2966_v57 = vpop.eup %2965 }
 0x161   : > { %v2968_v58 = vpop.eup %2967  ;;  %v463_v59 = vadd.f32 %v2303_v55, %v455_v56  ;;  %v448_v60 = vmul.f32 %v2966_v57, %v419_v25  ;;  %v2398_v57 = vld [vmem:[%s3129_s30 + $0x20] sm:$0xff] }
 0x162   : > { %v449_v61 = vmul.f32 %v2968_v58, %v420_v26  ;;  %v2900_v26 = vld [vmem:[%s3624_s4 + $0x8] sm:$0xff]   ;;  %v2401_v58 = vld [vmem:[%s3129_s30 + $0x38] sm:$0xf] }
 0x163   : > { %v467_v62 = vmax.f32 %v463_v59, 0.0  ;;  %v456_v63 = vmul.f32 %v2302_v53, %v448_v60  ;;  %v2399_v59 = vld [vmem:[%s3129_s30 + $0x28] sm:$0xff]  ;;  %v1280_v60 = vsel %vm409_vm0, %v2401_v58, 0.0 }
 0x164   : > { %v2970_v0 = vpop.eup %2969  ;;  %v457_v1 = vmul.f32 %v2302_v53, %v449_v61  ;;  %v2400_v61 = vld [vmem:[%s3129_s30 + $0x30] sm:$0xff] }
 0x165   : > { %475 = vst [vmem:[#allocation2 + $0x2] sm:$0xff] %v467_v62  ;;  %v464_v2 = vadd.f32 %v2303_v55, %v456_v63  ;;  %v450_v3 = vmul.f32 %v2970_v0, %v3140_v23 }
 0x166   : > { %v465_v4 = vadd.f32 %v2303_v55, %v457_v1 }
 0x167   : > { %v468_v5 = vmax.f32 %v464_v2, 0.0  ;;  %v458_v6 = vmul.f32 %v2302_v53, %v450_v3 }
 0x168   : > { %v469_v7 = vmax.f32 %v465_v4, 0.0 }
 0x169   : > { %476 = vst [vmem:[#allocation2 + $0xa] sm:$0xff] %v468_v5  ;;  %v466_v8 = vadd.f32 %v2303_v55, %v458_v6 }
 0x16a   : > { %477 = vst [vmem:[#allocation2 + $0x12] sm:$0xff] %v469_v7 }
 0x16b   : > { %v470_v9 = vmax.f32 %v466_v8, 0.0 }
 0x16c   : > { %v479_v10 = vld [vmem:[#allocation2] sm:$0xff] }
 0x16d   : > { %478 = vst [vmem:[#allocation2 + $0x1a] sm:$0xf] %v470_v9  ;;  %1340 = vst [vmem:[#allocation2] sm:$0xff] %v3036_v13 }
 0x170   : > { %v480_v11 = vld [vmem:[#allocation2 + $0x8] sm:$0xff] }
 0x171   : > { %v481_v12 = vld [vmem:[#allocation2 + $0x10] sm:$0xff]  ;;  %v534_v14 = vpack.c.bf16 %v480_v11, %v479_v10  ;;  %1341 = vst [vmem:[#allocation2 + $0x8] sm:$0xff] %v3036_v13 }
 0x172   : > { %1342 = vst [vmem:[#allocation2 + $0x10] sm:$0xff] %v3036_v13 }
 0x173   : > { %v540_v15 = vshll.u32 %v534_v14, 16  ;;  %v538_v19 = vshrl.u32 %v534_v14, 16  ;;  %v751_v35 = vrot.slane %v534_v14, 1 }
 0x174   : > { %v482_v16 = vld [vmem:[#allocation2 + $0x18] sm:$0xff] }
 0x175   : > { %v3185_v17 = vpack.c.bf16 %v482_v16, %v481_v12  ;;  %v542_v18 = vrot.slane %v540_v15, 1  ;;  %1343 = vst [vmem:[#allocation2 + $0x18] sm:$0xff] %v3036_v13 }
 0x177   : > { %v545_v20 = vshll.u32 %v3185_v17, 16  ;;  %v543_v21 = vor.u32 %v542_v18, %v538_v19  ;;  %v549_v23 = vshrl.u32 %v3185_v17, 16  ;;  %v752_v34 = vrot.slane %v3185_v17, 1 }
 0x179   : > { %v547_v22 = vrot.slane %v545_v20, 1  ;;  %v753_v37 = vsel %vm750_vm2, %v751_v35, %v752_v34 }
 0x17b   : > { %v548_v24 = vsel %vm536_vm1, %v543_v21, %v547_v22  ;;  %v551_v25 = vor.u32 %v549_v23, %v547_v22 }
 0x17c   : > { %2645 = vmatprep.mubr.bf16.mxu0 %v548_v24 }
 0x17d   : > { %2646 = vmatmul.mubr.bf16.vlgmr.msra.gmra.mrb[0].mxu0 %v551_v25 }
 0x17e   : > { %2650 = vmatpush3.bf16.msra.mxu0 %v3172_v39  ;;  %2665 = vmatprep.mubr.bf16.mxu0 %v534_v14  ;;  %v2910_v39 = vld [vmem:[%s3624_s4 + $0x98] sm:$0xff]  }
 0x17f   : > { %2651 = vmatprep.subr.bf16.mxu0 %v2900_v26 }
 0x182   : > { %2652 = vmatpush3.bf16.msra.mxu0 %v2900_v26 }
 0x183   : > { %2653 = vmatprep.subr.bf16.mxu0 %v2901_v27 }
 0x186   : > { %2654 = vmatpush3.bf16.msra.mxu0 %v2901_v27 }
 0x187   : > { %2655 = vmatprep.subr.bf16.mxu0 %v2902_v28 }
 0x18a   : > { %2656 = vmatpush3.bf16.msra.mxu0 %v2902_v28 }
 0x18b   : > { %2657 = vmatprep.subr.bf16.mxu0 %v2903_v29 }
 0x18e   : > { %2658 = vmatpush3.bf16.msra.mxu0 %v2903_v29 }
 0x18f   : > { %2659 = vmatprep.subr.bf16.mxu0 %v2904_v30 }
 0x192   : > { %2660 = vmatpush3.bf16.msra.mxu0 %v2904_v30 }
 0x193   : > { %2661 = vmatprep.subr.bf16.mxu0 %v2905_v31 }
 0x196   : > { %2662 = vmatpush3.bf16.msra.mxu0 %v2905_v31 }
 0x197   : > { %2663 = vmatprep.subr.bf16.mxu0 %v2906_v32 }
 0x19a   : > { %2664 = vmatpush3.bf16.msra.mxu0 %v2906_v32 }
 0x19b   : > { %2669 = vmatprep.subr.bf16.mxu0 %v2907_v33 }
 0x19d   : > { %2666 = vmatmul.mubr.bf16.vlgmr.msra.gmra.mrb[0].mxu0 %v3185_v17 }
 0x19e   : > { %2670 = vmatpush3.bf16.msra.mxu0 %v2907_v33  ;;  %2685 = vmatprep.mubr.bf16.mxu0 %v753_v37  ;;  %v2916_v37 = vld [vmem:[%s3627_s7 + $0x8] sm:$0xff]  }
 0x19f   : > { %2671 = vmatprep.subr.bf16.mxu0 %v2908_v36 }
 0x1a2   : > { %2672 = vmatpush3.bf16.msra.mxu0 %v2908_v36  ;;  %v2915_v36 = vld [vmem:[%s3627_s7] sm:$0xff]  }
 0x1a3   : > { %2673 = vmatprep.subr.bf16.mxu0 %v2909_v38  ;;  %2701 = vmatprep.subr.bf16.mxu1 %v2915_v36 }
 0x1a4   : > { %2702 = vmatpush3.bf16.msra.mxu1 %v2915_v36 }
 0x1a5   : > { %2703 = vmatprep.subr.bf16.mxu1 %v2916_v37 }
 0x1a6   : > { %2674 = vmatpush3.bf16.msra.mxu0 %v2909_v38  ;;  %v2917_v38 = vld [vmem:[%s3627_s7 + $0x20] sm:$0xff]  }
 0x1a7   : > { %2675 = vmatprep.subr.bf16.mxu0 %v2910_v39 }
 0x1a8   : > { %2704 = vmatpush3.bf16.msra.mxu1 %v2916_v37 }
 0x1aa   : > { %2676 = vmatpush3.bf16.msra.mxu0 %v2910_v39  ;;  %v2918_v39 = vld [vmem:[%s3627_s7 + $0x10] sm:$0xff]  }
 0x1ab   : > { %2677 = vmatprep.subr.bf16.mxu0 %v2911_v40  ;;  %2705 = vmatprep.subr.bf16.mxu1 %v2918_v39 }
 0x1ac   : > { %2706 = vmatpush3.bf16.msra.mxu1 %v2918_v39 }
 0x1ae   : > { %2678 = vmatpush3.bf16.msra.mxu0 %v2911_v40  ;;  %v2919_v40 = vld [vmem:[%s3627_s7 + $0x28] sm:$0xff]  }
 0x1af   : > { %2679 = vmatprep.subr.bf16.mxu0 %v2912_v41 }
 0x1b2   : > { %2680 = vmatpush3.bf16.msra.mxu0 %v2912_v41  ;;  %v2920_v41 = vld [vmem:[%s3627_s7 + $0x18] sm:$0xff]  }
 0x1b3   : > { %2681 = vmatprep.subr.bf16.mxu0 %v2913_v42  ;;  %2707 = vmatprep.subr.bf16.mxu1 %v2920_v41 }
 0x1b4   : > { %2708 = vmatpush3.bf16.msra.mxu1 %v2920_v41 }
 0x1b6   : > { %2682 = vmatpush3.bf16.msra.mxu0 %v2913_v42  ;;  %v2921_v42 = vld [vmem:[%s3627_s7 + $0x30] sm:$0xff]  }
 0x1b7   : > { %2683 = vmatprep.subr.bf16.mxu0 %v2914_v43 }
 0x1ba   : > { %2684 = vmatpush3.bf16.msra.mxu0 %v2914_v43  ;;  %v3323_v43 = vld [vmem:[%s3627_s7 + $0x40] sm:$0xff]  }
 0x1bb   : > { %2689 = vmatprep.subr.bf16.mxu0 %v2917_v38  ;;  %2713 = vmatprep.subr.bf16.mxu1 %v3323_v43 }
 0x1bd   : > { %2686 = vmatmul.mubr.bf16.vlgmr.msra.gmra.mrb[0].mxu0 %v752_v34 }
 0x1be   : > { %2690 = vmatpush3.bf16.msra.mxu0 %v2917_v38 }
 0x1bf   : > { %2691 = vmatprep.subr.bf16.mxu0 %v2919_v40 }
 0x1c2   : > { %2692 = vmatpush3.bf16.msra.mxu0 %v2919_v40 }
 0x1c3   : > { %2693 = vmatprep.subr.bf16.mxu0 %v2921_v42 }
 0x1c6   : > { %2694 = vmatpush3.bf16.msra.mxu0 %v2921_v42 }
 0x290   : > { %v2687_v45 = vpop.f32.mrb[0].mxu0 }
 0x291   : > { %v838_v46 = vpop.f32.mrb[1].mxu0  ;;  %v865_v50 = vadd.f32 %v2687_v45, %v2360_v44  ;;  %v2923_v45 = vld [vmem:[%s3627_s7 + $0x38] sm:$0xff]  }
 0x292   : > { %v863_v47 = vadd.f32 %v2360_v44, %v838_v46  ;;  %v2688_v48 = vpop.f32.mrb[2].mxu0  ;;  %2695 = vmatprep.subr.bf16.mxu0 %v2923_v45  ;;  %v3336_v46 = vld [vmem:[%s3624_s4 + $0x100] sm:$0xff]  }
 0x293   : > { %v841_v49 = vpop.f32.mrb[3].mxu0  ;;  %v866_v53 = vadd.f32 %v2688_v48, %v2360_v44  ;;  %v876_v55 = vsel %vm869_vm3, %v865_v50, 0.0  ;;  %2696 = vmatpush3.bf16.msra.mxu0 %v2923_v45 }
 0x294   : > { %v864_v51 = vadd.f32 %v2360_v44, %v841_v49  ;;  %v870_v52 = vsel %vm869_vm3, %v863_v47, 0.0  ;;  %v3325_v44 = vld [vmem:[#allocation3 + $0x20] sm:$0x3]  ;;  %2725 = vmatprep.subr.bf16.mxu0 %v3336_v46 }
 0x295   : > { %871 = vadd.xlane.f32.xlu0 %v870_v52  ;;  %v880_v56 = vsel %vm879_vm4, %v866_v53, 0.0  ;;  %1815 = vst.msk [vmem:[#allocation3 + $0x20] sm:$0x3] %vm948_vm5, %v3036_v13 }
 0x296   : > { %v873_v54 = vsel %vm869_vm3, %v864_v51, 0.0 }
 0x297   : > { %874 = vadd.xlane.f32.xlu1 %v873_v54 }
 0x299   : > { %877 = vadd.xlane.f32.xlu0 %v876_v55 }
 0x29b   : > { %881 = vadd.xlane.f32.xlu1 %v880_v56 }
 0x29d   : > { %1274 = vadd.xlane.f32.xlu0 %v2398_v57 }
 0x29f   : > { %1276 = vadd.xlane.f32.xlu1 %v2399_v59 }
 0x2a1   : > { %1281 = vadd.xlane.f32.xlu0 %v1280_v60 }
 0x2a3   : > { %1278 = vadd.xlane.f32.xlu1 %v2400_v61 }
 0x322   : > { %v872_v62 = vpop.xlane.xlu0 %871 }
 0x323   : > { %v884_v63 = vmul.f32 0.015625, %v872_v62 }
 0x324   : > { %v875_v0 = vpop.xlane.xlu1 %874 }
 0x325   : > { %v3260_v1 = vsub.f32 %v863_v47, %v884_v63  ;;  %v885_v2 = vmul.f32 0.015625, %v875_v0 }
 0x326   : > { %v878_v3 = vpop.xlane.xlu0 %877 }
 0x327   : > { %v3262_v4 = vsub.f32 %v864_v51, %v885_v2  ;;  %v886_v5 = vmul.f32 0.015625, %v878_v3  ;;  %v892_v6 = vmul.f32 %v3260_v1, %v3260_v1 }
 0x328   : > { %v882_v7 = vpop.xlane.xlu1 %881 }
 0x329   : > { %v3266_v8 = vsub.f32 %v865_v50, %v886_v5  ;;  %v887_v9 = vmul.f32 0.015625, %v882_v7  ;;  %v896_v10 = vsel %vm869_vm3, %v892_v6, 0.0  ;;  %v893_v11 = vmul.f32 %v3262_v4, %v3262_v4  ;;  %v2361_v7 = vld [vmem:[%s3626_s6] ss:$0 sm:$0xff] }
 0x32a   : > { %897 = vadd.xlane.f32.xlu0 %v896_v10  ;;  %v1275_v12 = vpop.xlane.xlu0 %1274 }
 0x32b   : > { %v3271_v14 = vsub.f32 %v866_v53, %v887_v9  ;;  %v1283_v15 = vmul.f32 0.0078125, %v1275_v12  ;;  %v899_v16 = vsel %vm869_vm3, %v893_v11, 0.0  ;;  %v894_v17 = vmul.f32 %v3266_v8, %v3266_v8 }
 0x32c   : > { %900 = vadd.xlane.f32.xlu1 %v899_v16  ;;  %v1277_v18 = vpop.xlane.xlu1 %1276 }
 0x32d   : > { %v3276_v19 = vsub.f32 %v2398_v57, %v1283_v15  ;;  %v1284_v20 = vmul.f32 0.0078125, %v1277_v18  ;;  %v902_v21 = vsel %vm869_vm3, %v894_v17, 0.0  ;;  %v895_v22 = vmul.f32 %v3271_v14, %v3271_v14  ;;  %v2362_v15 = vld [vmem:[%s3626_s6 + $0x1] ss:$0 sm:$0xff] }
 0x32e   : > { %903 = vadd.xlane.f32.xlu0 %v902_v21  ;;  %v1282_v23 = vpop.xlane.xlu0 %1281 }
 0x32f   : > { %v3281_v24 = vsub.f32 %v2399_v59, %v1284_v20  ;;  %v1286_v25 = vmul.f32 0.0078125, %v1282_v23  ;;  %v905_v26 = vsel %vm879_vm4, %v895_v22, 0.0  ;;  %v1291_v27 = vmul.f32 %v3276_v19, %v3276_v19 }
 0x330   : > { %906 = vadd.xlane.f32.xlu1 %v905_v26  ;;  %v1279_v28 = vpop.xlane.xlu1 %1278 }
 0x331   : > { %v3286_v29 = vsub.f32 %v2401_v58, %v1286_v25  ;;  %v1285_v30 = vmul.f32 0.0078125, %v1279_v28  ;;  %v1292_v31 = vmul.f32 %v3281_v24, %v3281_v24 }
 0x332   : > { %1295 = vadd.xlane.f32.xlu0 %v1291_v27 }
 0x333   : > { %v3290_v32 = vsub.f32 %v2400_v61, %v1285_v30  ;;  %v1294_v33 = vmul.f32 %v3286_v29, %v3286_v29 }
 0x334   : > { %1297 = vadd.xlane.f32.xlu1 %v1292_v31  ;;  %v2404_v31 = vld [vmem:[%s3623_s3 + $0x2] ss:$0 sm:$0xff] }
 0x335   : > { %v1293_v34 = vmul.f32 %v3290_v32, %v3290_v32  ;;  %v1301_v35 = vsel %vm409_vm0, %v1294_v33, 0.0 }
 0x337   : > { %1299 = vadd.xlane.f32.xlu0 %v1293_v34 }
 0x338   : > { %1302 = vadd.xlane.f32.xlu1 %v1301_v35 }
 0x3b7   : > { %v898_v47 = vpop.xlane.xlu0 %897 }
 0x3b8   : > { %v908_v48 = vmul.f32 0.015625, %v898_v47 }
 0x3b9   : > { %v901_v49 = vpop.xlane.xlu1 %900 }
 0x3ba   : > { %v912_v50 = vadd.f32 1e-05, %v908_v48  ;;  %v909_v51 = vmul.f32 0.015625, %v901_v49 }
 0x3bb   : > { %v904_v52 = vpop.xlane.xlu0 %903 }
 0x3bc   : > { %2971 = vrsqrt.f32 %v912_v50  ;;  %v913_v53 = vadd.f32 1e-05, %v909_v51  ;;  %v910_v54 = vmul.f32 0.015625, %v904_v52 }
 0x3bd   : > { %v907_v55 = vpop.xlane.xlu1 %906 }
 0x3be   : > { %2973 = vrsqrt.f32 %v913_v53  ;;  %v914_v56 = vadd.f32 1e-05, %v910_v54  ;;  %v911_v57 = vmul.f32 0.015625, %v907_v55 }
 0x3bf   : > { %v1296_v58 = vpop.xlane.xlu0 %1295 }
 0x3c0   : > { %2975 = vrsqrt.f32 %v914_v56  ;;  %v915_v59 = vadd.f32 1e-05, %v911_v57  ;;  %v1304_v60 = vmul.f32 0.0078125, %v1296_v58 }
 0x3c1   : > { %v1298_v61 = vpop.xlane.xlu1 %1297 }
 0x3c2   : > { %2977 = vrsqrt.f32 %v915_v59  ;;  %v1308_v62 = vadd.f32 1e-05, %v1304_v60  ;;  %v1305_v63 = vmul.f32 0.0078125, %v1298_v61 }
 0x3c4   : > { %2979 = vrsqrt.f32 %v1308_v62  ;;  %v1309_v0 = vadd.f32 1e-05, %v1305_v63  ;;  %v1300_v2 = vpop.xlane.xlu0 %1299 }
 0x3c5   : > { %v1306_v3 = vmul.f32 0.0078125, %v1300_v2  ;;  %v1303_v5 = vpop.xlane.xlu1 %1302 }
 0x3c6   : > { %v2972_v6 = vpop.eup %2971  ;;  %2981 = vrsqrt.f32 %v1309_v0  ;;  %v1307_v9 = vmul.f32 0.0078125, %v1303_v5 }
 0x3c7   : > { %v920_v10 = vmul.f32 %v2972_v6, %v3260_v1  ;;  %v1310_v11 = vadd.f32 1e-05, %v1306_v3 }
 0x3c8   : > { %v2974_v12 = vpop.eup %2973  ;;  %v1311_v16 = vadd.f32 1e-05, %v1307_v9 }
 0x3c9   : > { %v928_v17 = vmul.f32 %v2361_v7, %v920_v10  ;;  %v921_v18 = vmul.f32 %v2974_v12, %v3262_v4  ;;  %2983 = vrsqrt.f32 %v1310_v11 }
 0x3ca   : > { %v2976_v20 = vpop.eup %2975  ;;  %2985 = vrsqrt.f32 %v1311_v16  ;;  %v2926_v16 = vld [vmem:[%s3627_s7 + $0x50] sm:$0xff]  }
 0x3cb   : > { %v936_v21 = vadd.f32 %v2362_v15, %v928_v17  ;;  %v929_v22 = vmul.f32 %v2361_v7, %v921_v18  ;;  %v922_v23 = vmul.f32 %v2976_v20, %v3266_v8  ;;  %v2405_v8 = vld [vmem:[%s3623_s3 + $0x3] ss:$0 sm:$0xff] }
 0x3cc   : > { %v2978_v25 = vpop.eup %2977 }
 0x3cd   : > { %v940_v26 = vmax.f32 %v936_v21, 0.0  ;;  %v937_v1 = vadd.f32 %v2362_v15, %v929_v22  ;;  %v930_v27 = vmul.f32 %v2361_v7, %v922_v23  ;;  %v923_v28 = vmul.f32 %v2978_v25, %v3271_v14  ;;  %v2927_v22 = vld [vmem:[%s3624_s4 + $0x108] sm:$0xff]  }
 0x3ce   : > { %v2980_v30 = vpop.eup %2979 }
 0x3cf   : > { %950 = vst.msk [vmem:[#allocation3 + $0x2] sm:$0xff] %vm869_vm3, %v940_v26  ;;  %v941_v4 = vmax.f32 %v937_v1, 0.0  ;;  %v938_v33 = vadd.f32 %v2362_v15, %v930_v27  ;;  %v931_v34 = vmul.f32 %v2361_v7, %v923_v28  ;;  %v1316_v35 = vmul.f32 %v2980_v30, %v3276_v19  ;;  %v2928_v26 = vld [vmem:[%s3627_s7 + $0x58] sm:$0xff]  }
 0x3d0   : > { %v2982_v36 = vpop.eup %2981 }
 0x3d1   : > { %951 = vst.msk [vmem:[#allocation3 + $0xa] sm:$0xff] %vm869_vm3, %v941_v4  ;;  %v942_v14 = vmax.f32 %v938_v33, 0.0  ;;  %v939_v37 = vadd.f32 %v2362_v15, %v931_v34  ;;  %v1324_v38 = vmul.f32 %v2404_v31, %v1316_v35  ;;  %v1317_v39 = vmul.f32 %v2982_v36, %v3281_v24  ;;  %v2929_v33 = vld [vmem:[%s3624_s4 + $0x110] sm:$0xff]   ;;  %v2930_v34 = vld [vmem:[%s3624_s4 + $0xc0] sm:$0xff]   ;;  %v2931_v36 = vld [vmem:[%s3624_s4 + $0x118] sm:$0xff]  }
 0x3d3   : > { %v2984_v40 = vpop.eup %2983  ;;  %952 = vst.msk [vmem:[#allocation3 + $0x12] sm:$0xff] %vm869_vm3, %v942_v14  ;;  %v943_v41 = vmax.f32 %v939_v37, 0.0  ;;  %v1332_v42 = vadd.f32 %v2405_v8, %v1324_v38  ;;  %v1325_v45 = vmul.f32 %v2404_v31, %v1317_v39  ;;  %v2933_v37 = vld [vmem:[%s3624_s4 + $0x120] sm:$0xff]   ;;  %v2934_v38 = vld [vmem:[%s3624_s4 + $0xd0] sm:$0xff]   ;;  %v2935_v39 = vld [vmem:[%s3624_s4 + $0x128] sm:$0xff]  }
 0x3d4   : > { %v2986_v47 = vpop.eup %2985  ;;  %v1318_v19 = vmul.f32 %v2984_v40, %v3290_v32  ;;  %v2936_v40 = vld [vmem:[%s3624_s4 + $0xd8] sm:$0xff]  }
 0x3d5   : > { %953 = vst.msk [vmem:[#allocation3 + $0x1a] sm:$0x3f] %vm879_vm4, %v943_v41  ;;  %v1336_v48 = vmax.f32 %v1332_v42, 0.0  ;;  %v1333_v49 = vadd.f32 %v2405_v8, %v1325_v45  ;;  %v1319_v50 = vmul.f32 %v2986_v47, %v3286_v29  ;;  %v3369_v29 = vpack.c.bf16 %v3325_v44, %v3325_v44  ;;  %v2924_v44 = vld [vmem:[%s3627_s7 + $0x48] sm:$0xff]   ;;  %v2937_v41 = vld [vmem:[%s3624_s4 + $0x130] sm:$0xff]   ;;  %v2938_v42 = vld [vmem:[%s3624_s4 + $0xe0] sm:$0xff]  }
 0x3d6   : > { %v1326_v51 = vmul.f32 %v2404_v31, %v1318_v19  ;;  %v954_v52 = vld [vmem:[#allocation3] sm:$0xff]  ;;  %v2939_v45 = vld [vmem:[%s3624_s4 + $0x138] sm:$0xff]   ;;  %v2940_v47 = vld [vmem:[%s3624_s4 + $0xe8] sm:$0xff]  }
 0x3d7   : > { %1344 = vst [vmem:[#allocation2 + $0x2] sm:$0xff] %v1336_v48  ;;  %v1337_v53 = vmax.f32 %v1333_v49, 0.0  ;;  %v1327_v24 = vmul.f32 %v2404_v31, %v1319_v50  ;;  %1811 = vst.msk [vmem:[#allocation3] sm:$0xff] %vm869_vm3, %v3036_v13  ;;  %v1005_v62 = vshll.u32 %v3369_v29, 16  ;;  %v1171_v35 = vrot.slane %v3369_v29, 1  ;;  %v2941_v19 = vld [vmem:[%s3624_s4 + $0xf0] sm:$0xff]  }
 0x3d8   : > { %v1334_v54 = vadd.f32 %v2405_v8, %v1326_v51  ;;  %v955_v55 = vld [vmem:[#allocation3 + $0x8] sm:$0xff]  ;;  %v2942_v50 = vld [vmem:[%s3624_s4 + $0xf8] sm:$0xff]   ;;  %v2943_v51 = vld [vmem:[%s3624_s4 + $0x140] sm:$0xff]  }
 0x3d9   : > { %1345 = vst [vmem:[#allocation2 + $0xa] sm:$0xff] %v1337_v53  ;;  %v1335_v56 = vadd.f32 %v2405_v8, %v1327_v24  ;;  %v986_v57 = vpack.c.bf16 %v955_v55, %v954_v52  ;;  %1812 = vst.msk [vmem:[#allocation3 + $0x8] sm:$0xff] %vm869_vm3, %v3036_v13  ;;  %v1007_v9 = vrot.slane %v1005_v62, 1  ;;  %v2932_v8 = vld [vmem:[%s3624_s4 + $0xc8] sm:$0xff]   ;;  %v2945_v55 = vld [vmem:[%s3624_s4 + $0x150] sm:$0xff]  }
 0x3da   : > { %v1338_v32 = vmax.f32 %v1334_v54, 0.0  ;;  %v956_v58 = vld [vmem:[#allocation3 + $0x10] sm:$0xff]  ;;  %v2944_v24 = vld [vmem:[%s3624_s4 + $0x148] sm:$0xff]   ;;  %v2950_v29 = vld [vmem:[%s3624_s4 + $0x178] sm:$0xff]  }
 0x3db   : > { %v1339_v59 = vmax.f32 %v1335_v56, 0.0  ;;  %2709 = vmatprep.mubr.msk.bf16.mxu1 %vm869_vm3, %v986_v57  ;;  %1813 = vst.msk [vmem:[#allocation3 + $0x10] sm:$0xff] %vm869_vm3, %v3036_v13  ;;  %v992_v60 = vshll.u32 %v986_v57, 16  ;;  %v990_v2 = vshrl.u32 %v986_v57, 16  ;;  %v1168_v3 = vrot.slane %v986_v57, 1  ;;  %v2946_v56 = vld [vmem:[%s3624_s4 + $0x158] sm:$0xff]  }
 0x3dc   : > { %1346 = vst [vmem:[#allocation2 + $0x12] sm:$0xff] %v1338_v32  ;;  %v957_v61 = vld [vmem:[#allocation3 + $0x18] sm:$0xff]  ;;  %v2947_v57 = vld [vmem:[%s3624_s4 + $0x160] sm:$0xff]   ;;  %v2948_v32 = vld [vmem:[%s3624_s4 + $0x168] sm:$0xff]  }
 0x3dd   : > { %1347 = vst [vmem:[#allocation2 + $0x1a] sm:$0xf] %v1339_v59  ;;  %v987_v63 = vpack.c.bf16 %v957_v61, %v956_v58  ;;  %1814 = vst.msk [vmem:[#allocation3 + $0x18] sm:$0xff] %vm869_vm3, %v3036_v13  ;;  %v994_v0 = vrot.slane %v992_v60, 1  ;;  %v2949_v58 = vld [vmem:[%s3624_s4 + $0x170] sm:$0xff]  }
 0x3de   : > { %v1348_v10 = vld [vmem:[#allocation2] sm:$0xff] }
 0x3df   : > { %2710 = vmatmul.mubr.msk.bf16.vlgmr.msra.gmra.mrb[0].mxu1 %vm869_vm3, %v987_v63  ;;  %v1169_v5 = vrot.slane %v987_v63, 1  ;;  %v997_v6 = vshll.u32 %v987_v63, 16  ;;  %v995_v7 = vor.u32 %v994_v0, %v990_v2  ;;  %v1001_v15 = vshrl.u32 %v987_v63, 16 }
 0x3e0   : > { %2714 = vmatpush3.bf16.msra.mxu1 %v3323_v43  ;;  %v1349_v11 = vld [vmem:[#allocation2 + $0x8] sm:$0xff] }
 0x3e1   : > { %2715 = vmatprep.subr.bf16.mxu1 %v2924_v44  ;;  %v1170_v13 = vsel %vm750_vm2, %v1168_v3, %v1169_v5  ;;  %v999_v12 = vrot.slane %v997_v6, 1  ;;  %v3386_v17 = vpack.c.bf16 %v1349_v11, %v1348_v10  ;;  %v1172_v14 = vsel %vm750_vm2, %v1169_v5, %v1171_v35 }
 0x3e2   : > { %2721 = vmatprep.mubr.msk.bf16.mxu1 %vm869_vm3, %v1170_v13 }
 0x3e3   : > { %v1000_v18 = vsel %vm536_vm1, %v995_v7, %v999_v12  ;;  %v1003_v43 = vor.u32 %v1001_v15, %v999_v12  ;;  %v1350_v20 = vld [vmem:[#allocation2 + $0x10] sm:$0xff]  ;;  %v1410_v21 = vshll.u32 %v3386_v17, 16  ;;  %v1408_v28 = vshrl.u32 %v3386_v17, 16  ;;  %v2479_v7 = vld [vmem:[%s3625_s5 + $0x1] ss:$0 sm:$0xff] }
 0x3e4   : > { %2716 = vmatpush3.bf16.msra.mxu1 %v2924_v44  ;;  %2697 = vmatprep.mubr.msk.bf16.mxu0 %vm869_vm3, %v1000_v18  ;;  %v1351_v23 = vld [vmem:[#allocation2 + $0x18] sm:$0xff]  ;;  %v1620_v53 = vrot.slane %v3386_v17, 1 }
 0x3e5   : > { %v1008_v25 = vsel %vm536_vm1, %v1003_v43, %v1007_v9  ;;  %2717 = vmatprep.subr.bf16.mxu1 %v2926_v16  ;;  %v3399_v1 = vpack.c.bf16 %v1351_v23, %v1350_v20  ;;  %v1412_v27 = vrot.slane %v1410_v21, 1 }
 0x3e6   : > { %2698 = vmatmul.mubr.msk.bf16.vlgmr.msra.gmra.mrb[4].mxu0 %vm869_vm3, %v1008_v25 }
 0x3e7   : > { %2726 = vmatpush3.bf16.msra.mxu0 %v3336_v46  ;;  %v1415_v30 = vshll.u32 %v3399_v1, 16  ;;  %v1413_v31 = vor.u32 %v1412_v27, %v1408_v28  ;;  %v1419_v48 = vshrl.u32 %v3399_v1, 16  ;;  %v1621_v52 = vrot.slane %v3399_v1, 1 }
 0x3e8   : > { %2718 = vmatpush3.bf16.msra.mxu1 %v2926_v16  ;;  %2727 = vmatprep.subr.bf16.mxu0 %v2927_v22 }
 0x3e9   : > { %2719 = vmatprep.subr.bf16.mxu1 %v2928_v26  ;;  %v1417_v4 = vrot.slane %v1415_v30, 1  ;;  %v1622_v54 = vsel %vm750_vm2, %v1620_v53, %v1621_v52 }
 0x3eb   : > { %2728 = vmatpush3.bf16.msra.mxu0 %v2927_v22  ;;  %v1418_v46 = vsel %vm536_vm1, %v1413_v31, %v1417_v4  ;;  %v1421_v49 = vor.u32 %v1419_v48, %v1417_v4 }
 0x3ec   : > { %2720 = vmatpush3.bf16.msra.mxu1 %v2928_v26  ;;  %2741 = vmatprep.mubr.bf16.mxu0 %v1418_v46 }
 0x3ed   : > { %2729 = vmatprep.subr.bf16.mxu0 %v2929_v33  ;;  %2745 = vmatprep.subr.bf16.mxu1 %v2930_v34 }
 0x3ef   : > { %2722 = vmatmul.mubr.msk.bf16.vlgmr.msra.gmra.mrb[0].mxu1 %vm869_vm3, %v1172_v14  ;;  %2730 = vmatpush3.bf16.msra.mxu0 %v2929_v33 }
 0x3f0   : > { %2746 = vmatpush3.bf16.msra.mxu1 %v2930_v34  ;;  %2761 = vmatprep.mubr.bf16.mxu1 %v3386_v17 }
 0x3f1   : > { %2731 = vmatprep.subr.bf16.mxu0 %v2931_v36  ;;  %2747 = vmatprep.subr.bf16.mxu1 %v2932_v8 }
 0x3f3   : > { %2732 = vmatpush3.bf16.msra.mxu0 %v2931_v36 }
 0x3f4   : > { %2748 = vmatpush3.bf16.msra.mxu1 %v2932_v8  ;;  %2733 = vmatprep.subr.bf16.mxu0 %v2933_v37 }
 0x3f5   : > { %2749 = vmatprep.subr.bf16.mxu1 %v2934_v38 }
 0x3f7   : > { %2734 = vmatpush3.bf16.msra.mxu0 %v2933_v37 }
 0x3f8   : > { %2750 = vmatpush3.bf16.msra.mxu1 %v2934_v38  ;;  %2735 = vmatprep.subr.bf16.mxu0 %v2935_v39 }
 0x3f9   : > { %2751 = vmatprep.subr.bf16.mxu1 %v2936_v40 }
 0x3fb   : > { %2736 = vmatpush3.bf16.msra.mxu0 %v2935_v39 }
 0x3fc   : > { %2752 = vmatpush3.bf16.msra.mxu1 %v2936_v40  ;;  %2737 = vmatprep.subr.bf16.mxu0 %v2937_v41 }
 0x3fd   : > { %2753 = vmatprep.subr.bf16.mxu1 %v2938_v42 }
 0x3ff   : > { %2738 = vmatpush3.bf16.msra.mxu0 %v2937_v41  ;;  %v2951_v41 = vld [vmem:[%s3627_s7 + $0x80] sm:$0xff]  }
 0x400   : > { %2754 = vmatpush3.bf16.msra.mxu1 %v2938_v42  ;;  %2739 = vmatprep.subr.bf16.mxu0 %v2939_v45  ;;  %v2952_v42 = vld [vmem:[%s3627_s7 + $0x88] sm:$0xff]  }
 0x401   : > { %2755 = vmatprep.subr.bf16.mxu1 %v2940_v47 }
 0x403   : > { %2740 = vmatpush3.bf16.msra.mxu0 %v2939_v45  ;;  %v2953_v45 = vld [vmem:[%s3627_s7 + $0x90] sm:$0xff]  }
 0x404   : > { %2756 = vmatpush3.bf16.msra.mxu1 %v2940_v47  ;;  %v2954_v47 = vld [vmem:[%s3627_s7 + $0x98] sm:$0xff]  }
 0x405   : > { %2757 = vmatprep.subr.bf16.mxu1 %v2941_v19 }
 0x406   : > { %2742 = vmatmul.mubr.bf16.vlgmr.msra.gmra.mrb[8].mxu0 %v1421_v49 }
 0x408   : > { %2758 = vmatpush3.bf16.msra.mxu1 %v2941_v19  ;;  %v3515_v19 = vld [vmem:[%s3627_s7 + $0x60] sm:$0xff]  }
 0x409   : > { %2759 = vmatprep.subr.bf16.mxu1 %v2942_v50 }
 0x40c   : > { %2760 = vmatpush3.bf16.msra.mxu1 %v2942_v50 }
 0x40d   : > { %2765 = vmatprep.subr.bf16.mxu1 %v2943_v51 }
 0x40f   : > { %2762 = vmatmul.mubr.bf16.vlgmr.msra.gmra.mrb[4].mxu1 %v3399_v1 }
 0x410   : > { %2766 = vmatpush3.bf16.msra.mxu1 %v2943_v51  ;;  %2781 = vmatprep.mubr.bf16.mxu1 %v1622_v54 }
 0x411   : > { %2767 = vmatprep.subr.bf16.mxu1 %v2944_v24 }
 0x414   : > { %2768 = vmatpush3.bf16.msra.mxu1 %v2944_v24 }
 0x415   : > { %2769 = vmatprep.subr.bf16.mxu1 %v2945_v55 }
 0x418   : > { %2770 = vmatpush3.bf16.msra.mxu1 %v2945_v55 }
 0x419   : > { %2771 = vmatprep.subr.bf16.mxu1 %v2946_v56 }
 0x41c   : > { %2772 = vmatpush3.bf16.msra.mxu1 %v2946_v56 }
 0x41d   : > { %2773 = vmatprep.subr.bf16.mxu1 %v2947_v57 }
 0x420   : > { %2774 = vmatpush3.bf16.msra.mxu1 %v2947_v57 }
 0x421   : > { %2775 = vmatprep.subr.bf16.mxu1 %v2948_v32 }
 0x424   : > { %2776 = vmatpush3.bf16.msra.mxu1 %v2948_v32 }
 0x425   : > { %2777 = vmatprep.subr.bf16.mxu1 %v2949_v58 }
 0x428   : > { %2778 = vmatpush3.bf16.msra.mxu1 %v2949_v58 }
 0x429   : > { %2779 = vmatprep.subr.bf16.mxu1 %v2950_v29 }
 0x42c   : > { %2780 = vmatpush3.bf16.msra.mxu1 %v2950_v29  ;;  %v2482_v29 = vld [vmem:[%s3626_s6 + $0x2] ss:$0 sm:$0xff] }
 0x42d   : > { %2785 = vmatprep.subr.bf16.mxu1 %v2951_v41 }
 0x42f   : > { %2782 = vmatmul.mubr.bf16.vlgmr.msra.gmra.mrb[4].mxu1 %v1621_v52 }
 0x430   : > { %2786 = vmatpush3.bf16.msra.mxu1 %v2951_v41  ;;  %v2957_v41 = vld [vmem:[%s3627_s7 + $0x70] sm:$0xff]  }
 0x431   : > { %2787 = vmatprep.subr.bf16.mxu1 %v2952_v42 }
 0x434   : > { %2788 = vmatpush3.bf16.msra.mxu1 %v2952_v42  ;;  %v2958_v42 = vld [vmem:[%s3627_s7 + $0x78] sm:$0xff]  }
 0x435   : > { %2789 = vmatprep.subr.bf16.mxu1 %v2953_v45 }
 0x438   : > { %2790 = vmatpush3.bf16.msra.mxu1 %v2953_v45  ;;  %v2959_v45 = vld [vmem:[%s3627_s7 + $0xa0] sm:$0xff]  }
 0x439   : > { %2791 = vmatprep.subr.bf16.mxu1 %v2954_v47 }
 0x43c   : > { %2792 = vmatpush3.bf16.msra.mxu1 %v2954_v47 }
 0x43d   : > { %2797 = vmatprep.subr.bf16.mxu1 %v3515_v19 }
 0x4b9   : > { %v3481_v59 = vpop.f32.mrb[4].mxu0 }
 0x4ba   : > { %v3483_v60 = vpop.f32.mrb[5].mxu0 }
 0x4bb   : > { %v3485_v61 = vpop.f32.mrb[6].mxu0 }
 0x4bc   : > { %v3487_v62 = vpop.f32.mrb[7].mxu0 }
 0x4d9   : > { %v2743_v63 = vpop.f32.mrb[8].mxu0 }
 0x4da   : > { %v1506_v44 = vpop.f32.mrb[9].mxu0 }
 0x4db   : > { %v2744_v0 = vpop.f32.mrb[10].mxu0 }
 0x4dc   : > { %v1509_v2 = vpop.f32.mrb[11].mxu0 }
 0x502   : > { %v2783_v3 = vpop.f32.mrb[4].mxu1 }
 0x503   : > { %v2833_v5 = vadd.f32 %v2783_v3, %v2743_v63  ;;  %v1707_v6 = vpop.f32.mrb[5].mxu1 }
 0x504   : > { %v2834_v9 = vadd.f32 %v1707_v6, %v1506_v44  ;;  %v2784_v10 = vpop.f32.mrb[6].mxu1 }
 0x505   : > { %v2835_v11 = vadd.f32 %v2784_v10, %v2744_v0  ;;  %v1710_v13 = vpop.f32.mrb[7].mxu1  ;;  %v1734_v18 = vadd.f32 %v2833_v5, %v2479_v7  ;;  %v2483_v0 = vld [vmem:[%s3626_s6 + $0x3] ss:$0 sm:$0xff] }
 0x506   : > { %v2836_v12 = vadd.f32 %v1710_v13, %v1509_v2  ;;  %v1732_v15 = vadd.f32 %v2834_v9, %v2479_v7 }
 0x507   : > { %v1735_v20 = vadd.f32 %v2835_v11, %v2479_v7  ;;  %v1745_v21 = vsel %vm869_vm3, %v1734_v18, 0.0 }
 0x508   : > { %v1739_v16 = vsel %vm869_vm3, %v1732_v15, 0.0  ;;  %v1733_v17 = vadd.f32 %v2836_v12, %v2479_v7 }
 0x509   : > { %1740 = vadd.xlane.f32.xlu0 %v1739_v16  ;;  %v1748_v22 = vsel %vm879_vm4, %v1735_v20, 0.0 }
 0x50a   : > { %v1742_v43 = vsel %vm869_vm3, %v1733_v17, 0.0 }
 0x50b   : > { %1743 = vadd.xlane.f32.xlu1 %v1742_v43 }
 0x50d   : > { %1746 = vadd.xlane.f32.xlu0 %v1745_v21 }
 0x50f   : > { %1749 = vadd.xlane.f32.xlu1 %v1748_v22 }
 0x596   : > { %v1741_v23 = vpop.xlane.xlu0 %1740 }
 0x597   : > { %v1751_v25 = vmul.f32 0.015625, %v1741_v23 }
 0x598   : > { %v1744_v26 = vpop.xlane.xlu1 %1743 }
 0x599   : > { %v1755_v1 = vsub.f32 %v1732_v15, %v1751_v25  ;;  %v1752_v27 = vmul.f32 0.015625, %v1744_v26  ;;  %v1824_v25 = vld [vmem:[#allocation3 + $0x20] sm:$0x3] }
 0x59a   : > { %v1747_v28 = vpop.xlane.xlu0 %1746 }
 0x59b   : > { %v1756_v30 = vsub.f32 %v1733_v17, %v1752_v27  ;;  %v1753_v31 = vmul.f32 0.015625, %v1747_v28  ;;  %v1759_v4 = vmul.f32 %v1755_v1, %v1755_v1  ;;  %v1856_v27 = vpack.c.bf16 %v1824_v25, %v1824_v25 }
 0x59c   : > { %v1750_v33 = vpop.xlane.xlu1 %1749 }
 0x59d   : > { %v1757_v34 = vsub.f32 %v1734_v18, %v1753_v31  ;;  %v1754_v35 = vmul.f32 0.015625, %v1750_v33  ;;  %v1763_v46 = vsel %vm869_vm3, %v1759_v4, 0.0  ;;  %v1760_v36 = vmul.f32 %v1756_v30, %v1756_v30 }
 0x59e   : > { %1764 = vadd.xlane.f32.xlu0 %v1763_v46  ;;  %v1873_v33 = vshll.u32 %v1856_v27, 16 }
 0x59f   : > { %v1758_v8 = vsub.f32 %v1735_v20, %v1754_v35  ;;  %v1766_v14 = vsel %vm869_vm3, %v1760_v36, 0.0  ;;  %v1761_v37 = vmul.f32 %v1757_v34, %v1757_v34 }
 0x5a0   : > { %1767 = vadd.xlane.f32.xlu1 %v1766_v14  ;;  %v1875_v14 = vrot.slane %v1873_v33, 1 }
 0x5a1   : > { %v1769_v38 = vsel %vm869_vm3, %v1761_v37, 0.0  ;;  %v1762_v39 = vmul.f32 %v1758_v8, %v1758_v8 }
 0x5a2   : > { %1770 = vadd.xlane.f32.xlu0 %v1769_v38 }
 0x5a3   : > { %v1772_v40 = vsel %vm879_vm4, %v1762_v39, 0.0  ;;  %v2956_v39 = vld [vmem:[%s3627_s7 + $0x68] sm:$0xff]  }
 0x5a4   : > { %1773 = vadd.xlane.f32.xlu1 %v1772_v40 }
 0x62b   : > { %v1765_v48 = vpop.xlane.xlu0 %1764 }
 0x62c   : > { %v1775_v49 = vmul.f32 0.015625, %v1765_v48  ;;  %v2960_v48 = vld [vmem:[%s3627_s7 + $0xa8] sm:$0xff]  }
 0x62d   : > { %v1768_v50 = vpop.xlane.xlu1 %1767 }
 0x62e   : > { %v1779_v51 = vadd.f32 1e-05, %v1775_v49  ;;  %v1776_v52 = vmul.f32 0.015625, %v1768_v50  ;;  %v2961_v50 = vld [vmem:[%s3627_s7 + $0xb0] sm:$0xff]  }
 0x62f   : > { %v1771_v53 = vpop.xlane.xlu0 %1770 }
 0x630   : > { %2987 = vrsqrt.f32 %v1779_v51  ;;  %v1780_v24 = vadd.f32 1e-05, %v1776_v52  ;;  %v1777_v54 = vmul.f32 0.015625, %v1771_v53  ;;  %v2962_v51 = vld [vmem:[%s3627_s7 + $0xb8] sm:$0xff]   ;;  %v2039_v52 = vrot.slane %v1856_v27, 1 }
 0x631   : > { %v1774_v55 = vpop.xlane.xlu1 %1773 }
 0x632   : > { %2989 = vrsqrt.f32 %v1780_v24  ;;  %v1781_v56 = vadd.f32 1e-05, %v1777_v54  ;;  %v1778_v57 = vmul.f32 0.015625, %v1774_v55  ;;  %v2397_v24 = vld [vmem:[%s3628_s8] ss:$0 sm:$0xff] }
 0x633   : > { %v2821_v54 = vadd.f32 %v3481_v59, %v2397_v24  ;;  %v2824_v55 = vadd.f32 %v2397_v24, %v3483_v60 }
 0x634   : > { %2991 = vrsqrt.f32 %v1781_v56  ;;  %v1782_v32 = vadd.f32 1e-05, %v1778_v57  ;;  %v2527_v56 = vld [vmem:[%s3628_s8 + $0x1] ss:$0 sm:$0xff]  ;;  %v2827_v57 = vadd.f32 %v3485_v61, %v2397_v24 }
 0x636   : > { %2993 = vrsqrt.f32 %v1782_v32  ;;  %v2830_v32 = vadd.f32 %v2397_v24, %v3487_v62 }
 0x638   : > { %v2831_v59 = vadd.f32 %v2830_v32, %v2527_v56 }
 0x63a   : > { %v2988_v58 = vpop.eup %2987 }
 0x63b   : > { %v1787_v63 = vmul.f32 %v2988_v58, %v1755_v1  ;;  %v2822_v58 = vadd.f32 %v2821_v54, %v2527_v56 }
 0x63c   : > { %v2990_v44 = vpop.eup %2989 }
 0x63d   : > { %v1795_v2 = vmul.f32 %v2482_v29, %v1787_v63  ;;  %v1788_v3 = vmul.f32 %v2990_v44, %v1756_v30  ;;  %v2825_v63 = vadd.f32 %v2824_v55, %v2527_v56 }
 0x63e   : > { %v2992_v5 = vpop.eup %2991 }
 0x63f   : > { %v1803_v6 = vadd.f32 %v2483_v0, %v1795_v2  ;;  %v1796_v7 = vmul.f32 %v2482_v29, %v1788_v3  ;;  %v1789_v9 = vmul.f32 %v2992_v5, %v1757_v34  ;;  %v2828_v2 = vadd.f32 %v2827_v57, %v2527_v56 }
 0x640   : > { %v2994_v10 = vpop.eup %2993 }
 0x641   : > { %v1807_v11 = vmax.f32 %v1803_v6, 0.0  ;;  %v1804_v13 = vadd.f32 %v2483_v0, %v1796_v7  ;;  %v1797_v12 = vmul.f32 %v2482_v29, %v1789_v9  ;;  %v1790_v15 = vmul.f32 %v2994_v10, %v1758_v8 }
 0x643   : > { %1816 = vst.msk [vmem:[#allocation3 + $0x2] sm:$0xff] %vm869_vm3, %v1807_v11  ;;  %v1808_v16 = vmax.f32 %v1804_v13, 0.0  ;;  %v1805_v17 = vadd.f32 %v2483_v0, %v1797_v12  ;;  %v1798_v18 = vmul.f32 %v2482_v29, %v1790_v15 }
 0x645   : > { %1817 = vst.msk [vmem:[#allocation3 + $0xa] sm:$0xff] %vm869_vm3, %v1808_v16  ;;  %v1809_v43 = vmax.f32 %v1805_v17, 0.0  ;;  %v1806_v20 = vadd.f32 %v2483_v0, %v1798_v18 }
 0x647   : > { %1818 = vst.msk [vmem:[#allocation3 + $0x12] sm:$0xff] %vm869_vm3, %v1809_v43  ;;  %v1810_v21 = vmax.f32 %v1806_v20, 0.0 }
 0x649   : > { %1819 = vst.msk [vmem:[#allocation3 + $0x1a] sm:$0x3f] %vm879_vm4, %v1810_v21 }
 0x64a   : > { %v1820_v22 = vld [vmem:[#allocation3] sm:$0xff] }
 0x64c   : > { %v1821_v23 = vld [vmem:[#allocation3 + $0x8] sm:$0xff] }
 0x64d   : > { %v1854_v26 = vpack.c.bf16 %v1821_v23, %v1820_v22 }
 0x64e   : > { %v1822_v28 = vld [vmem:[#allocation3 + $0x10] sm:$0xff] }
 0x64f   : > { %v1860_v1 = vshll.u32 %v1854_v26, 16  ;;  %v1858_v34 = vshrl.u32 %v1854_v26, 16 }
 0x650   : > { %v1823_v30 = vld [vmem:[#allocation3 + $0x18] sm:$0xff] }
 0x651   : > { %v1855_v31 = vpack.c.bf16 %v1823_v30, %v1822_v28  ;;  %v1862_v4 = vrot.slane %v1860_v1, 1 }
 0x653   : > { %v1865_v35 = vshll.u32 %v1855_v31, 16  ;;  %v1863_v46 = vor.u32 %v1862_v4, %v1858_v34  ;;  %v1869_v8 = vshrl.u32 %v1855_v31, 16  ;;  %v2037_v47 = vrot.slane %v1855_v31, 1 }
 0x655   : > { %v1867_v36 = vrot.slane %v1865_v35, 1  ;;  %v2040_v53 = vsel %vm750_vm2, %v2037_v47, %v2039_v52  ;;  %v2178_v35 = vlaneseq }
 0x657   : > { %v1868_v37 = vsel %vm536_vm1, %v1863_v46, %v1867_v36  ;;  %v1871_v38 = vor.u32 %v1869_v8, %v1867_v36  ;;  %v2179_v36 = vand.u32 127, %v2178_v35  ;;  %v2198_v8 = vshrl.u32 %v2178_v35, 7 }
 0x658   : > { %2793 = vmatprep.mubr.msk.bf16.mxu1 %vm869_vm3, %v1868_v37 }
 0x659   : > { %v1876_v40 = vsel %vm536_vm1, %v1871_v38, %v1875_v14  ;;  %vm2180_vm7 = vcmp.eq.s32.totalorder %v2179_v36, 5  ;;  %vm2181_vm8 = vcmp.eq.s32.totalorder %v2179_v36, 8  ;;  %vm2183_vm10 = vcmp.eq.s32.totalorder %v2179_v36, 11 }
 0x65a   : > { %2794 = vmatmul.mubr.msk.bf16.vlgmr.msra.gmra.mrb[0].mxu1 %vm869_vm3, %v1876_v40  ;;  %vm2182_vm9 = vmor %vm2180_vm7, %vm2181_vm8  ;;  %v2199_v37 = vadd.s32 8, %v2198_v8  ;;  %v2200_v38 = vadd.s32 16, %v2198_v8  ;;  %v2203_v40 = vstv %s2202_s22 }
 0x65b   : > { %2798 = vmatpush3.bf16.msra.mxu1 %v3515_v19  ;;  %2805 = vmatprep.mubr.msk.bf16.mxu1 %vm869_vm3, %v1854_v26  ;;  %v2036_v19 = vrot.slane %v1854_v26, 1  ;;  %vm3588_vm11 = vmor %vm2182_vm9, %vm2183_vm10  ;;  %vm2204_vm12 = vcmp.ge.s32.totalorder %v2198_v8, %v2203_v40 }
 0x65c   : > { %2799 = vmatprep.subr.bf16.mxu1 %v2956_v39  ;;  %vm2205_vm13 = vcmp.ge.s32.totalorder %v2199_v37, %v2203_v40  ;;  %vm2206_vm14 = vcmp.ge.s32.totalorder %v2200_v38, %v2203_v40 }
 0x65d   : > { %v2038_v49 = vsel %vm750_vm2, %v2036_v19, %v2037_v47  ;;  %v2190_v47 = vld [vmem:[%s390_s26 + $0x8] sm:$0xff]  ;;  %v2191_v19 = vld [vmem:[%s390_s26 + $0x10] sm:$0xff] }
 0x65f   : > { %2800 = vmatpush3.bf16.msra.mxu1 %v2956_v39  ;;  %v2201_v39 = vadd.s32 24, %v2198_v8 }
 0x660   : > { %2801 = vmatprep.subr.bf16.mxu1 %v2957_v41 }
 0x661   : > { %vm2207_vm15 = vcmp.ge.s32.totalorder %v2201_v39, %v2203_v40 }
 0x663   : > { %2802 = vmatpush3.bf16.msra.mxu1 %v2957_v41 }
 0x664   : > { %2803 = vmatprep.subr.bf16.mxu1 %v2958_v42 }
 0x667   : > { %2804 = vmatpush3.bf16.msra.mxu1 %v2958_v42 }
 0x668   : > { %2809 = vmatprep.subr.bf16.mxu1 %v2959_v45 }
 0x66a   : > { %2806 = vmatmul.mubr.msk.bf16.vlgmr.msra.gmra.mrb[0].mxu1 %vm869_vm3, %v1855_v31 }
 0x66b   : > { %2810 = vmatpush3.bf16.msra.mxu1 %v2959_v45  ;;  %2817 = vmatprep.mubr.msk.bf16.mxu1 %vm869_vm3, %v2038_v49  ;;  %v2189_v45 = vld [vmem:[%s390_s26] sm:$0xff] }
 0x66c   : > { %2811 = vmatprep.subr.bf16.mxu1 %v2960_v48 }
 0x66f   : > { %2812 = vmatpush3.bf16.msra.mxu1 %v2960_v48  ;;  %v2192_v48 = vld [vmem:[%s390_s26 + $0x18] sm:$0xff] }
 0x670   : > { %2813 = vmatprep.subr.bf16.mxu1 %v2961_v50 }
 0x673   : > { %2814 = vmatpush3.bf16.msra.mxu1 %v2961_v50 }
 0x674   : > { %2815 = vmatprep.subr.bf16.mxu1 %v2962_v51 }
 0x677   : > { %2816 = vmatpush3.bf16.msra.mxu1 %v2962_v51 }
 0x67a   : > { %2818 = vmatmul.mubr.msk.bf16.vlgmr.msra.gmra.mrb[0].mxu1 %vm869_vm3, %v2040_v53 }
 0x74d   : > { %v2819_v29 = vpop.f32.mrb[0].mxu1 }
 0x74e   : > { %v3570_v44 = vadd.f32 %v2822_v58, %v2819_v29  ;;  %v2105_v0 = vpop.f32.mrb[1].mxu1 }
 0x74f   : > { %v2826_v3 = vadd.f32 %v2825_v63, %v2105_v0  ;;  %v2820_v5 = vpop.f32.mrb[2].mxu1 }
 0x750   : > { %v2829_v6 = vadd.f32 %v2828_v2, %v2820_v5  ;;  %v2108_v60 = vpop.f32.mrb[3].mxu1  ;;  %v2140_v62 = vand.u32 2147483647, %v3570_v44 }
 0x751   : > { %v2832_v7 = vadd.f32 %v2831_v59, %v2108_v60  ;;  %v2138_v9 = vand.u32 2147483647, %v2826_v3 }
 0x752   : > { %v2141_v13 = vand.u32 2147483647, %v2829_v6  ;;  %v2149_v12 = vsel %vm2142_vm6, %v2140_v62, 0.0 }
 0x753   : > { %v2143_v10 = vsel %vm2142_vm6, %v2138_v9, 0.0  ;;  %v2139_v61 = vand.u32 2147483647, %v2832_v7 }
 0x754   : > { %2144 = vadd.xlane.f32.xlu0 %v2143_v10  ;;  %v2152_v15 = vsel %vm2142_vm6, %v2141_v13, 0.0 }
 0x755   : > { %v2146_v11 = vsel %vm2142_vm6, %v2139_v61, 0.0 }
 0x756   : > { %2147 = vadd.xlane.f32.xlu1 %v2146_v11 }
 0x758   : > { %2150 = vadd.xlane.f32.xlu0 %v2149_v12 }
 0x75a   : > { %2153 = vadd.xlane.f32.xlu1 %v2152_v15 }
 0x7e1   : > { %v2145_v16 = vpop.xlane.xlu0 %2144 }
 0x7e2   : > { %v2156_v18 = vmul.f32 0.083333336, %v2145_v16 }
 0x7e3   : > { %v2148_v17 = vpop.xlane.xlu1 %2147 }
 0x7e4   : > { %v2157_v43 = vmul.f32 0.083333336, %v2148_v17 }
 0x7e5   : > { %v2151_v20 = vpop.xlane.xlu0 %2150 }
 0x7e6   : > { %v2160_v21 = vadd.f32 %v2157_v43, %v2156_v18  ;;  %v2158_v22 = vmul.f32 0.083333336, %v2151_v20 }
 0x7e7   : > { %v2154_v23 = vpop.xlane.xlu1 %2153 }
 0x7e8   : > { %v2161_v25 = vadd.f32 %v2160_v21, %v2158_v22  ;;  %v2159_v26 = vmul.f32 0.083333336, %v2154_v23 }
 0x7ea   : > { %v2162_v1 = vadd.f32 %v2161_v25, %v2159_v26 }
 0x7ec   : > { %v2163_v27 = vrot.slane %v2162_v1, 4 }
 0x7ee   : > { %v2164_v28 = vadd.f32 %v2163_v27, %v2162_v1 }
 0x7f0   : > { %v2165_v30 = vrot.slane %v2164_v28, 2 }
 0x7f2   : > { %v2166_v31 = vadd.f32 %v2165_v30, %v2164_v28 }
 0x7f4   : > { %v2167_v4 = vrot.slane %v2166_v31, 1 }
 0x7f6   : > { %v2168_v33 = vadd.f32 %v2167_v4, %v2166_v31 }
 0x7f8   : > { %v2170_v34 = vmul.f32 0.03125, %v2168_v33 }
 0x7fa   : > { %v2171_v46 = vadd.f32 0.0001, %v2170_v34 }
 0x7fc   : > { %2995 = vrcp.f32 %v2171_v46 }
 0x806   : > { %v2996_v14 = vpop.eup %2995 }
 0x807   : > { %v2173_v41 = vmul.f32 0.05, %v2996_v14 }
 0x809   : > { %v2174_v49 = vmul.f32 %v2826_v3, %v2173_v41  ;;  %v2175_v50 = vmul.f32 %v2832_v7, %v2173_v41  ;;  %v2176_v51 = vmul.f32 %v3570_v44, %v2173_v41  ;;  %v2177_v52 = vmul.f32 %v2829_v6, %v2173_v41 }
 0x80b   : > { %v2185_v53 = vsel %vm3588_vm11, 0.0, %v2174_v49  ;;  %v2186_v24 = vsel %vm3588_vm11, 0.0, %v2175_v50  ;;  %v2187_v54 = vsel %vm3588_vm11, 0.0, %v2176_v51  ;;  %v2188_v55 = vsel %vm3588_vm11, 0.0, %v2177_v52 }
 0x80c   : > { %v2193_v56 = vadd.f32 %v2189_v45, %v2185_v53  ;;  %v2194_v57 = vadd.f32 %v2190_v47, %v2186_v24  ;;  %v2195_v32 = vadd.f32 %v2191_v19, %v2187_v54  ;;  %v2196_v58 = vadd.f32 %v2192_v48, %v2188_v55 }
 0x80e   : > { %v2208_v29 = vsel %vm2204_vm12, -100.0, %v2193_v56  ;;  %v2209_v63 = vsel %vm2205_vm13, -100.0, %v2194_v57  ;;  %v2210_v44 = vsel %vm2206_vm14, -100.0, %v2195_v32  ;;  %v2211_v0 = vsel %vm2207_vm15, -100.0, %v2196_v58 }
 0x80f   : > { %2212 = vst.msk [vmem:[%s395_s28] sm:$0xff] %vm2142_vm6, %v2208_v29  ;;  %2213 = vst.msk [vmem:[%s395_s28 + $0x8] sm:$0xff] %vm2142_vm6, %v2209_v63 }
 0x810   : > { %2214 = vst.msk [vmem:[%s395_s28 + $0x10] sm:$0xff] %vm2142_vm6, %v2210_v44  ;;  %2215 = vst.msk [vmem:[%s395_s28 + $0x18] sm:$0xff] %vm2142_vm6, %v2211_v0 }
 0x811 PF: > { %p22_p0 = scmp.ge.s32.totalorder %s3109_s17, 4   ;;  %s3632_s14 = smov %s3029_s15 }
 0x812   : > { %s3633_s15 = smov %s3118_s20  ;;  %s3634_s16 = smov %s3109_s17 }
 0x813   :  { %24 = sbr.rel (!%p22_p0) target bundleno = 17 (0x11), region = 143 }

</bundles_post_ra>
